<compile_context>
chip_gen: v5e
topology: v5e:2x2
jax: 0.10.0
libtpu: 0.0.40
codegen_flags: <defaults>
</compile_context>

<pallas_src>
import math
from functools import partial

import jax
import jax.numpy as jnp
from jax.experimental import pallas as pl
from jax.experimental.pallas import tpu as pltpu

VMEM = pl.BlockSpec(memory_space=pltpu.MemorySpace.VMEM)
NEG_INF = -1e30


# ----------------------------- in-kernel helpers -----------------------------

def _layer_norm(x, g, b):
    # fused residual is applied by the caller (x already contains residual + sublayer)
    mu = jnp.mean(x, axis=-1, keepdims=True)
    xc = x - mu
    var = jnp.mean(xc * xc, axis=-1, keepdims=True)
    return xc * jax.lax.rsqrt(var + 1e-5) * g + b


def _mask_bias(nq, nk, batch, causal):
    # rows/cols are flattened seq-major: r = s * batch + b.  Allowed iff same batch
    # (and, for causal, key seq <= query seq).  Built in-kernel from iota (no DMA'd mask).
    r = jax.lax.broadcasted_iota(jnp.int32, (nq, nk), 0).astype(jnp.float32)
    c = jax.lax.broadcasted_iota(jnp.int32, (nq, nk), 1).astype(jnp.float32)
    inv_b = 1.0 / float(batch)
    sr = jnp.floor((r + 0.5) * inv_b)          # seq index of row   (exact for small ints)
    sc = jnp.floor((c + 0.5) * inv_b)          # seq index of col
    same_batch = (r - sr * batch) == (c - sc * batch)
    allowed = jnp.logical_and(same_batch, sr >= sc) if causal else same_batch
    return jnp.where(allowed, 0.0, NEG_INF).astype(jnp.float32)


def _attention(x_q, x_kv, bias, qkv_w, qkv_b, out_w, out_b, layer, *, nhead, hd):
    """Multi-head attention with the output projection fused in.

    qkv_w: (L*3*nhead, E, hd)   qkv_b: (L*3*nhead, 1, hd)
    out_w: (L*nhead, hd, E)     out_b: (L, 1, E)
    Per-head weights are indexed on the leading dim, so no lane slicing is needed.
    """
    scale = 1.0 / math.sqrt(hd)
    e = x_q.shape[1]
    attn = jnp.zeros((x_q.shape[0], e), jnp.float32)
    for h in range(nhead):
        iq = (layer * 3 + 0) * nhead + h
        ik = (layer * 3 + 1) * nhead + h
        iv = (layer * 3 + 2) * nhead + h
        q = (jnp.dot(x_q, qkv_w[iq], preferred_element_type=jnp.float32) + qkv_b[iq]) * scale
        k = jnp.dot(x_kv, qkv_w[ik], preferred_element_type=jnp.float32) + qkv_b[ik]
        v = jnp.dot(x_kv, qkv_w[iv], preferred_element_type=jnp.float32) + qkv_b[iv]
        s = jax.lax.dot_general(q, k, (((1,), (1,)), ((), ())),
                                preferred_element_type=jnp.float32) + bias
        s = s - jnp.max(s, axis=-1, keepdims=True)
        p = jnp.exp(s)
        p = p * pl.reciprocal(jnp.sum(p, axis=-1, keepdims=True), approx=True)
        o = jnp.dot(p, v, preferred_element_type=jnp.float32)
        attn = attn + jnp.dot(o, out_w[layer * nhead + h],
                              preferred_element_type=jnp.float32)
    return attn + out_b[layer]


# ------------------------------- fused kernels -------------------------------

def _encoder_kernel(x_ref, qkv_w, qkv_b, out_w, out_b, w1, b1, w2, b2,
                    n1g, n1b, n2g, n2b, fg, fb, o_ref, *, n_layers, nhead, hd, batch):
    x = x_ref[...]                                   # (S*B, E)
    n = x.shape[0]
    bias = _mask_bias(n, n, batch, causal=False)     # batch-separation mask only
    for l in range(n_layers):
        a = _attention(x, x, bias, qkv_w, qkv_b, out_w, out_b, l, nhead=nhead, hd=hd)
        x = _layer_norm(x + a, n1g[l], n1b[l])
        hmid = jnp.maximum(jnp.dot(x, w1[l], preferred_element_type=jnp.float32) + b1[l], 0.0)
        f = jnp.dot(hmid, w2[l], preferred_element_type=jnp.float32) + b2[l]
        x = _layer_norm(x + f, n2g[l], n2b[l])
    o_ref[...] = _layer_norm(x, fg[...], fb[...])    # final encoder norm fused in


def _decoder_kernel(y_ref, mem_ref,
                    sa_qkv_w, sa_qkv_b, sa_out_w, sa_out_b,
                    ca_qkv_w, ca_qkv_b, ca_out_w, ca_out_b,
                    w1, b1, w2, b2,
                    n1g, n1b, n2g, n2b, n3g, n3b, fg, fb,
                    emb, emb_b, o_ref, *, n_layers, nhead, hd, batch):
    y = y_ref[...]                                   # (T*B, E)
    mem = mem_ref[...]                               # (S*B, E)
    nq, nk = y.shape[0], mem.shape[0]
    self_bias = _mask_bias(nq, nq, batch, causal=True)   # causal + batch mask
    cross_bias = _mask_bias(nq, nk, batch, causal=False) # batch mask only
    for l in range(n_layers):
        a = _attention(y, y, self_bias, sa_qkv_w, sa_qkv_b, sa_out_w, sa_out_b,
                       l, nhead=nhead, hd=hd)
        y = _layer_norm(y + a, n1g[l], n1b[l])
        a = _attention(y, mem, cross_bias, ca_qkv_w, ca_qkv_b, ca_out_w, ca_out_b,
                       l, nhead=nhead, hd=hd)
        y = _layer_norm(y + a, n2g[l], n2b[l])
        hmid = jnp.maximum(jnp.dot(y, w1[l], preferred_element_type=jnp.float32) + b1[l], 0.0)
        f = jnp.dot(hmid, w2[l], preferred_element_type=jnp.float32) + b2[l]
        y = _layer_norm(y + f, n3g[l], n3b[l])
    y = _layer_norm(y, fg[...], fb[...])             # final decoder norm
    # tied-embedding vocab projection: y @ emb.T + b, via dot_general (no emb.T materialized)
    o_ref[...] = jax.lax.dot_general(y, emb[...], (((1,), (1,)), ((), ())),
                                     preferred_element_type=jnp.float32) + emb_b[...]


def _conv_fc_kernel(mem_ref, w3, b3, w4, b4, w5, b5, f3, f4, f5, fc_b, o_ref,
                    *, seq, batch):
    # memory rows are seq-major flattened (s*B + b); each conv tap dt is a contiguous
    # row slice, so the Conv1d is k small matmuls, then ReLU, running-max pool over seq,
    # and the fc head is folded in per-branch (fc weight pre-split into 128-column chunks).
    mem = mem_ref[...]                               # (S*B, E)
    acc = jnp.zeros((batch, fc_b.shape[-1]), jnp.float32)
    for w_ref, b_ref, f_ref, k in ((w3, b3, f3, 3), (w4, b4, f4, 4), (w5, b5, f5, 5)):
        L = seq - k + 1
        conv = jnp.zeros((L * batch, w_ref.shape[-1]), jnp.float32)
        for dt in range(k):
            conv = conv + jnp.dot(mem[dt * batch:(dt + L) * batch, :], w_ref[dt],
                                  preferred_element_type=jnp.float32)
        conv = jnp.maximum(conv + b_ref[...], 0.0)
        pooled = conv[0:batch, :]
        for t in range(1, L):
            pooled = jnp.maximum(pooled, conv[t * batch:(t + 1) * batch, :])
        acc = acc + jnp.dot(pooled, f_ref[...], preferred_element_type=jnp.float32)
    o_ref[...] = acc + fc_b[...]


# ------------------------------ pallas wrappers -------------------------------

def _call(kernel, n_in, out_shape, **static):
    return pl.pallas_call(partial(kernel, **static), out_shape=out_shape,
                          in_specs=[VMEM] * n_in, out_specs=VMEM)


def encoder_forward(params, x2d, batch):
    p = params['enc']
    args = (x2d, p['qkv_w'], p['qkv_b'], p['out_w'], p['out_b'],
            p['w1'], p['b1'], p['w2'], p['b2'],
            p['n1g'], p['n1b'], p['n2g'], p['n2b'], p['fg'], p['fb'])
    return _call(_encoder_kernel, len(args),
                 jax.ShapeDtypeStruct(x2d.shape, jnp.float32),
                 n_layers=params['n_enc'], nhead=params['nhead'],
                 hd=params['head_dim'], batch=batch)(*args)


def decoder_forward(params, y2d, memory, batch):
    p = params['dec']
    args = (y2d, memory,
            p['sa_qkv_w'], p['sa_qkv_b'], p['sa_out_w'], p['sa_out_b'],
            p['ca_qkv_w'], p['ca_qkv_b'], p['ca_out_w'], p['ca_out_b'],
            p['w1'], p['b1'], p['w2'], p['b2'],
            p['n1g'], p['n1b'], p['n2g'], p['n2b'], p['n3g'], p['n3b'],
            p['fg'], p['fb'],
            params['token_emb'], params['dec_emb_b'])
    return _call(_decoder_kernel, len(args),
                 jax.ShapeDtypeStruct((y2d.shape[0], params['vocab']), jnp.float32),
                 n_layers=params['n_dec'], nhead=params['nhead'],
                 hd=params['head_dim'], batch=batch)(*args)


def conv_fc_forward(params, memory, seq, batch):
    p = params['conv']
    args = (memory, p['w3'], p['b3'], p['w4'], p['b4'], p['w5'], p['b5'],
            p['f3'], p['f4'], p['f5'], p['fb'])
    return _call(_conv_fc_kernel, len(args),
                 jax.ShapeDtypeStruct((batch, 8), jnp.float32),
                 seq=seq, batch=batch)(*args)


# --------------------------------- model glue ---------------------------------

def make_positional_encoding(hidden, max_len):
    position = jnp.arange(max_len, dtype=jnp.float32)[:, None]
    div_term = jnp.exp(jnp.arange(0, hidden, 2, dtype=jnp.float32)
                       * (-math.log(10000.0) / hidden))
    pe = jnp.zeros((max_len, hidden), jnp.float32)
    pe = pe.at[:, 0::2].set(jnp.sin(position * div_term))
    pe = pe.at[:, 1::2].set(jnp.cos(position * div_term))
    return pe[:, None, :]  # (max_len, 1, H)


def transformer_model_forward(params, src_tokens, tgt_tokens):
    """Both src and tgt provided -> returns (memory_conv, output), matching the module."""
    H = params['hidden_size']
    emb = params['token_emb']
    pe = params['pe']
    S, B = src_tokens.shape
    T = tgt_tokens.shape[0]

    # TODO(synk): data-dependent embedding gather (+ positional add) stays in plain JAX.
    src_emb = (emb[src_tokens] * math.sqrt(H) + pe[:S]).reshape(S * B, H)
    tgt_emb = (emb[tgt_tokens] * math.sqrt(H) + pe[:T]).reshape(T * B, H)
    # dropout layers: identity (eval mode)

    memory = encoder_forward(params, src_emb, B)            # (S*B, H)   1 pallas_call
    memory_conv = conv_fc_forward(params, memory, S, B)     # (B, 8)     1 pallas_call
    logits = decoder_forward(params, tgt_emb, memory, B)    # (T*B, V)   1 pallas_call
    return memory_conv, logits.reshape(T, B, emb.shape[0])


# --------------------------------- param init ---------------------------------

def init_params(key, vocab, hidden, nhead, n_enc, n_dec, ff):
    hd = hidden // nhead
    keys = iter(jax.random.split(key, 256))

    def u(shape, s=0.08):
        return jax.random.uniform(next(keys), shape, jnp.float32, -s, s)

    def attn(n_layers):
        # per-head weight slices stored with head on a leading dim (kernel-friendly layout)
        return dict(qkv_w=u((n_layers * 3 * nhead, hidden, hd)),
                    qkv_b=u((n_layers * 3 * nhead, 1, hd)),
                    out_w=u((n_layers * nhead, hd, hidden)),
                    out_b=u((n_layers, 1, hidden)))

    def ffn_norms(n_layers, n_norms):
        d = dict(w1=u((n_layers, hidden, ff)), b1=u((n_layers, 1, ff)),
                 w2=u((n_layers, ff, hidden)), b2=u((n_layers, 1, hidden)))
        for i in range(1, n_norms + 1):
            d[f'n{i}g'] = jnp.ones((n_layers, 1, hidden), jnp.float32)
            d[f'n{i}b'] = jnp.zeros((n_layers, 1, hidden), jnp.float32)
        d['fg'] = jnp.ones((1, hidden), jnp.float32)
        d['fb'] = jnp.zeros((1, hidden), jnp.float32)
        return d

    enc = dict(**attn(n_enc), **ffn_norms(n_enc, 2))
    dec = dict(**{'sa_' + k: v for k, v in attn(n_dec).items()},
               **{'ca_' + k: v for k, v in attn(n_dec).items()},
               **ffn_norms(n_dec, 3))
    conv = dict(w3=u((3, hidden, 128)), b3=u((1, 128)),
                w4=u((4, hidden, 128)), b4=u((1, 128)),
                w5=u((5, hidden, 128)), b5=u((1, 128)),
                f3=u((128, 8)), f4=u((128, 8)), f5=u((128, 8)),   # fc weight pre-split per branch
                fb=u((1, 8)))

    return dict(hidden_size=hidden, nhead=nhead, head_dim=hd,
                n_enc=n_enc, n_dec=n_dec, vocab=vocab,
                token_emb=u((vocab, hidden), 0.1),                 # tied with decoder head
                dec_emb_b=jnp.zeros((1, vocab), jnp.float32),
                pe=make_positional_encoding(hidden, max_len=5000),
                enc=enc, dec=dec, conv=conv)


# ------------------------------------ main -------------------------------------

if __name__ == "__main__":
    vocab_size = 50
    hidden_size = 32
    num_attention_heads = 4
    num_encoder_layers = 2
    num_decoder_layers = 2
    intermediate_size = 64
    S, T, B = 8, 8, 2        # src seq, tgt seq, batch (seq-major layout [S, B])

    root = jax.random.PRNGKey(0)
    pk, sk, tk = jax.random.split(root, 3)
    params = init_params(pk, vocab_size, hidden_size, num_attention_heads,
                         num_encoder_layers, num_decoder_layers, intermediate_size)

    src_tokens = jax.random.randint(sk, (S, B), 0, vocab_size, dtype=jnp.int32)
    tgt_tokens = jax.random.randint(tk, (T, B), 0, vocab_size, dtype=jnp.int32)

    fwd = jax.jit(partial(transformer_model_forward, params))
    memory_conv, output = fwd(src_tokens, tgt_tokens)
    jax.block_until_ready((memory_conv, output))

    assert memory_conv.shape == (B, 8)
    assert output.shape == (T, B, vocab_size)
    assert jnp.all(jnp.isfinite(memory_conv)) and jnp.all(jnp.isfinite(output))
    print("KERNEL_OK")
</pallas_src>

<mosaic_0001>
module attributes {stable_mosaic.version = 11 : i64} {
  func.func @_conv_fc_kernel(%arg0: memref<16x32xf32, #tpu.memory_space<vmem>>, %arg1: memref<3x32x128xf32, #tpu.memory_space<vmem>>, %arg2: memref<1x128xf32, #tpu.memory_space<vmem>>, %arg3: memref<4x32x128xf32, #tpu.memory_space<vmem>>, %arg4: memref<1x128xf32, #tpu.memory_space<vmem>>, %arg5: memref<5x32x128xf32, #tpu.memory_space<vmem>>, %arg6: memref<1x128xf32, #tpu.memory_space<vmem>>, %arg7: memref<128x8xf32, #tpu.memory_space<vmem>>, %arg8: memref<128x8xf32, #tpu.memory_space<vmem>>, %arg9: memref<128x8xf32, #tpu.memory_space<vmem>>, %arg10: memref<1x8xf32, #tpu.memory_space<vmem>>, %arg11: memref<2x8xf32, #tpu.memory_space<vmem>>) attributes {dimension_semantics = [], scalar_prefetch = 0 : i64, scratch_operands = 0 : i64, tpu.core_type = #tpu.core_type<tc>} {
    %c0 = arith.constant 0 : index
    %c0_0 = arith.constant 0 : index
    %0 = vector.load %arg0[%c0, %c0_0] : memref<16x32xf32, #tpu.memory_space<vmem>>, vector<16x32xf32>
    %cst = arith.constant 0.000000e+00 : f32
    %1 = vector.broadcast %cst : f32 to vector<2x8xf32>
    %cst_1 = arith.constant 0.000000e+00 : f32
    %2 = vector.broadcast %cst_1 : f32 to vector<12x128xf32>
    %3 = vector.extract_strided_slice %0 {offsets = [0, 0], sizes = [12, 32], strides = [1, 1]} : vector<16x32xf32> to vector<12x32xf32>
    %c0_2 = arith.constant 0 : index
    %c0_3 = arith.constant 0 : index
    %c0_4 = arith.constant 0 : index
    %4 = vector.load %arg1[%c0_2, %c0_3, %c0_4] : memref<3x32x128xf32, #tpu.memory_space<vmem>>, vector<1x32x128xf32>
    %5 = vector.shape_cast %4 : vector<1x32x128xf32> to vector<32x128xf32>
    %cst_5 = arith.constant dense<0.000000e+00> : vector<12x128xf32>
    %6 = tpu.matmul %3, %5, %cst_5 {dimension_numbers = #tpu.dot_dimension_numbers<[1], [0], [0], [1], [0, 0, 1, 1], [], []>} : vector<12x32xf32>, vector<32x128xf32>, vector<12x128xf32> -> vector<12x128xf32>
    %7 = arith.addf %2, %6 : vector<12x128xf32>
    %8 = vector.extract_strided_slice %0 {offsets = [2, 0], sizes = [12, 32], strides = [1, 1]} : vector<16x32xf32> to vector<12x32xf32>
    %c1 = arith.constant 1 : index
    %c0_6 = arith.constant 0 : index
    %c0_7 = arith.constant 0 : index
    %9 = vector.load %arg1[%c1, %c0_6, %c0_7] : memref<3x32x128xf32, #tpu.memory_space<vmem>>, vector<1x32x128xf32>
    %10 = vector.shape_cast %9 : vector<1x32x128xf32> to vector<32x128xf32>
    %cst_8 = arith.constant dense<0.000000e+00> : vector<12x128xf32>
    %11 = tpu.matmul %8, %10, %cst_8 {dimension_numbers = #tpu.dot_dimension_numbers<[1], [0], [0], [1], [0, 0, 1, 1], [], []>} : vector<12x32xf32>, vector<32x128xf32>, vector<12x128xf32> -> vector<12x128xf32>
    %12 = arith.addf %7, %11 : vector<12x128xf32>
    %13 = vector.extract_strided_slice %0 {offsets = [4, 0], sizes = [12, 32], strides = [1, 1]} : vector<16x32xf32> to vector<12x32xf32>
    %c2 = arith.constant 2 : index
    %c0_9 = arith.constant 0 : index
    %c0_10 = arith.constant 0 : index
    %14 = vector.load %arg1[%c2, %c0_9, %c0_10] : memref<3x32x128xf32, #tpu.memory_space<vmem>>, vector<1x32x128xf32>
    %15 = vector.shape_cast %14 : vector<1x32x128xf32> to vector<32x128xf32>
    %cst_11 = arith.constant dense<0.000000e+00> : vector<12x128xf32>
    %16 = tpu.matmul %13, %15, %cst_11 {dimension_numbers = #tpu.dot_dimension_numbers<[1], [0], [0], [1], [0, 0, 1, 1], [], []>} : vector<12x32xf32>, vector<32x128xf32>, vector<12x128xf32> -> vector<12x128xf32>
    %17 = arith.addf %12, %16 : vector<12x128xf32>
    %c0_12 = arith.constant 0 : index
    %c0_13 = arith.constant 0 : index
    %18 = vector.load %arg2[%c0_12, %c0_13] : memref<1x128xf32, #tpu.memory_space<vmem>>, vector<1x128xf32>
    %19 = vector.broadcast %18 : vector<1x128xf32> to vector<12x128xf32>
    %20 = arith.addf %17, %19 : vector<12x128xf32>
    %cst_14 = arith.constant 0.000000e+00 : f32
    %21 = vector.broadcast %cst_14 : f32 to vector<12x128xf32>
    %22 = arith.maximumf %20, %21 : vector<12x128xf32>
    %23 = vector.extract_strided_slice %22 {offsets = [0, 0], sizes = [2, 128], strides = [1, 1]} : vector<12x128xf32> to vector<2x128xf32>
    %24 = vector.extract_strided_slice %22 {offsets = [2, 0], sizes = [2, 128], strides = [1, 1]} : vector<12x128xf32> to vector<2x128xf32>
    %25 = arith.maximumf %23, %24 : vector<2x128xf32>
    %26 = vector.extract_strided_slice %22 {offsets = [4, 0], sizes = [2, 128], strides = [1, 1]} : vector<12x128xf32> to vector<2x128xf32>
    %27 = arith.maximumf %25, %26 : vector<2x128xf32>
    %28 = vector.extract_strided_slice %22 {offsets = [6, 0], sizes = [2, 128], strides = [1, 1]} : vector<12x128xf32> to vector<2x128xf32>
    %29 = arith.maximumf %27, %28 : vector<2x128xf32>
    %30 = vector.extract_strided_slice %22 {offsets = [8, 0], sizes = [2, 128], strides = [1, 1]} : vector<12x128xf32> to vector<2x128xf32>
    %31 = arith.maximumf %29, %30 : vector<2x128xf32>
    %32 = vector.extract_strided_slice %22 {offsets = [10, 0], sizes = [2, 128], strides = [1, 1]} : vector<12x128xf32> to vector<2x128xf32>
    %33 = arith.maximumf %31, %32 : vector<2x128xf32>
    %c0_15 = arith.constant 0 : index
    %c0_16 = arith.constant 0 : index
    %34 = vector.load %arg7[%c0_15, %c0_16] : memref<128x8xf32, #tpu.memory_space<vmem>>, vector<128x8xf32>
    %cst_17 = arith.constant dense<0.000000e+00> : vector<2x8xf32>
    %35 = tpu.matmul %33, %34, %cst_17 {dimension_numbers = #tpu.dot_dimension_numbers<[1], [0], [0], [1], [0, 0, 1, 1], [], []>} : vector<2x128xf32>, vector<128x8xf32>, vector<2x8xf32> -> vector<2x8xf32>
    %36 = arith.addf %1, %35 : vector<2x8xf32>
    %cst_18 = arith.constant 0.000000e+00 : f32
    %37 = vector.broadcast %cst_18 : f32 to vector<10x128xf32>
    %38 = vector.extract_strided_slice %0 {offsets = [0, 0], sizes = [10, 32], strides = [1, 1]} : vector<16x32xf32> to vector<10x32xf32>
    %c0_19 = arith.constant 0 : index
    %c0_20 = arith.constant 0 : index
    %c0_21 = arith.constant 0 : index
    %39 = vector.load %arg3[%c0_19, %c0_20, %c0_21] : memref<4x32x128xf32, #tpu.memory_space<vmem>>, vector<1x32x128xf32>
    %40 = vector.shape_cast %39 : vector<1x32x128xf32> to vector<32x128xf32>
    %cst_22 = arith.constant dense<0.000000e+00> : vector<10x128xf32>
    %41 = tpu.matmul %38, %40, %cst_22 {dimension_numbers = #tpu.dot_dimension_numbers<[1], [0], [0], [1], [0, 0, 1, 1], [], []>} : vector<10x32xf32>, vector<32x128xf32>, vector<10x128xf32> -> vector<10x128xf32>
    %42 = arith.addf %37, %41 : vector<10x128xf32>
    %43 = vector.extract_strided_slice %0 {offsets = [2, 0], sizes = [10, 32], strides = [1, 1]} : vector<16x32xf32> to vector<10x32xf32>
    %c1_23 = arith.constant 1 : index
    %c0_24 = arith.constant 0 : index
    %c0_25 = arith.constant 0 : index
    %44 = vector.load %arg3[%c1_23, %c0_24, %c0_25] : memref<4x32x128xf32, #tpu.memory_space<vmem>>, vector<1x32x128xf32>
    %45 = vector.shape_cast %44 : vector<1x32x128xf32> to vector<32x128xf32>
    %cst_26 = arith.constant dense<0.000000e+00> : vector<10x128xf32>
    %46 = tpu.matmul %43, %45, %cst_26 {dimension_numbers = #tpu.dot_dimension_numbers<[1], [0], [0], [1], [0, 0, 1, 1], [], []>} : vector<10x32xf32>, vector<32x128xf32>, vector<10x128xf32> -> vector<10x128xf32>
    %47 = arith.addf %42, %46 : vector<10x128xf32>
    %48 = vector.extract_strided_slice %0 {offsets = [4, 0], sizes = [10, 32], strides = [1, 1]} : vector<16x32xf32> to vector<10x32xf32>
    %c2_27 = arith.constant 2 : index
    %c0_28 = arith.constant 0 : index
    %c0_29 = arith.constant 0 : index
    %49 = vector.load %arg3[%c2_27, %c0_28, %c0_29] : memref<4x32x128xf32, #tpu.memory_space<vmem>>, vector<1x32x128xf32>
    %50 = vector.shape_cast %49 : vector<1x32x128xf32> to vector<32x128xf32>
    %cst_30 = arith.constant dense<0.000000e+00> : vector<10x128xf32>
    %51 = tpu.matmul %48, %50, %cst_30 {dimension_numbers = #tpu.dot_dimension_numbers<[1], [0], [0], [1], [0, 0, 1, 1], [], []>} : vector<10x32xf32>, vector<32x128xf32>, vector<10x128xf32> -> vector<10x128xf32>
    %52 = arith.addf %47, %51 : vector<10x128xf32>
    %53 = vector.extract_strided_slice %0 {offsets = [6, 0], sizes = [10, 32], strides = [1, 1]} : vector<16x32xf32> to vector<10x32xf32>
    %c3 = arith.constant 3 : index
    %c0_31 = arith.constant 0 : index
    %c0_32 = arith.constant 0 : index
    %54 = vector.load %arg3[%c3, %c0_31, %c0_32] : memref<4x32x128xf32, #tpu.memory_space<vmem>>, vector<1x32x128xf32>
    %55 = vector.shape_cast %54 : vector<1x32x128xf32> to vector<32x128xf32>
    %cst_33 = arith.constant dense<0.000000e+00> : vector<10x128xf32>
    %56 = tpu.matmul %53, %55, %cst_33 {dimension_numbers = #tpu.dot_dimension_numbers<[1], [0], [0], [1], [0, 0, 1, 1], [], []>} : vector<10x32xf32>, vector<32x128xf32>, vector<10x128xf32> -> vector<10x128xf32>
    %57 = arith.addf %52, %56 : vector<10x128xf32>
    %c0_34 = arith.constant 0 : index
    %c0_35 = arith.constant 0 : index
    %58 = vector.load %arg4[%c0_34, %c0_35] : memref<1x128xf32, #tpu.memory_space<vmem>>, vector<1x128xf32>
    %59 = vector.broadcast %58 : vector<1x128xf32> to vector<10x128xf32>
    %60 = arith.addf %57, %59 : vector<10x128xf32>
    %cst_36 = arith.constant 0.000000e+00 : f32
    %61 = vector.broadcast %cst_36 : f32 to vector<10x128xf32>
    %62 = arith.maximumf %60, %61 : vector<10x128xf32>
    %63 = vector.extract_strided_slice %62 {offsets = [0, 0], sizes = [2, 128], strides = [1, 1]} : vector<10x128xf32> to vector<2x128xf32>
    %64 = vector.extract_strided_slice %62 {offsets = [2, 0], sizes = [2, 128], strides = [1, 1]} : vector<10x128xf32> to vector<2x128xf32>
    %65 = arith.maximumf %63, %64 : vector<2x128xf32>
    %66 = vector.extract_strided_slice %62 {offsets = [4, 0], sizes = [2, 128], strides = [1, 1]} : vector<10x128xf32> to vector<2x128xf32>
    %67 = arith.maximumf %65, %66 : vector<2x128xf32>
    %68 = vector.extract_strided_slice %62 {offsets = [6, 0], sizes = [2, 128], strides = [1, 1]} : vector<10x128xf32> to vector<2x128xf32>
    %69 = arith.maximumf %67, %68 : vector<2x128xf32>
    %70 = vector.extract_strided_slice %62 {offsets = [8, 0], sizes = [2, 128], strides = [1, 1]} : vector<10x128xf32> to vector<2x128xf32>
    %71 = arith.maximumf %69, %70 : vector<2x128xf32>
    %c0_37 = arith.constant 0 : index
    %c0_38 = arith.constant 0 : index
    %72 = vector.load %arg8[%c0_37, %c0_38] : memref<128x8xf32, #tpu.memory_space<vmem>>, vector<128x8xf32>
    %cst_39 = arith.constant dense<0.000000e+00> : vector<2x8xf32>
    %73 = tpu.matmul %71, %72, %cst_39 {dimension_numbers = #tpu.dot_dimension_numbers<[1], [0], [0], [1], [0, 0, 1, 1], [], []>} : vector<2x128xf32>, vector<128x8xf32>, vector<2x8xf32> -> vector<2x8xf32>
    %74 = arith.addf %36, %73 : vector<2x8xf32>
    %cst_40 = arith.constant 0.000000e+00 : f32
    %75 = vector.broadcast %cst_40 : f32 to vector<8x128xf32>
    %76 = vector.extract_strided_slice %0 {offsets = [0, 0], sizes = [8, 32], strides = [1, 1]} : vector<16x32xf32> to vector<8x32xf32>
    %c0_41 = arith.constant 0 : index
    %c0_42 = arith.constant 0 : index
    %c0_43 = arith.constant 0 : index
    %77 = vector.load %arg5[%c0_41, %c0_42, %c0_43] : memref<5x32x128xf32, #tpu.memory_space<vmem>>, vector<1x32x128xf32>
    %78 = vector.shape_cast %77 : vector<1x32x128xf32> to vector<32x128xf32>
    %cst_44 = arith.constant dense<0.000000e+00> : vector<8x128xf32>
    %79 = tpu.matmul %76, %78, %cst_44 {dimension_numbers = #tpu.dot_dimension_numbers<[1], [0], [0], [1], [0, 0, 1, 1], [], []>} : vector<8x32xf32>, vector<32x128xf32>, vector<8x128xf32> -> vector<8x128xf32>
    %80 = arith.addf %75, %79 : vector<8x128xf32>
    %81 = vector.extract_strided_slice %0 {offsets = [2, 0], sizes = [8, 32], strides = [1, 1]} : vector<16x32xf32> to vector<8x32xf32>
    %c1_45 = arith.constant 1 : index
    %c0_46 = arith.constant 0 : index
    %c0_47 = arith.constant 0 : index
    %82 = vector.load %arg5[%c1_45, %c0_46, %c0_47] : memref<5x32x128xf32, #tpu.memory_space<vmem>>, vector<1x32x128xf32>
    %83 = vector.shape_cast %82 : vector<1x32x128xf32> to vector<32x128xf32>
    %cst_48 = arith.constant dense<0.000000e+00> : vector<8x128xf32>
    %84 = tpu.matmul %81, %83, %cst_48 {dimension_numbers = #tpu.dot_dimension_numbers<[1], [0], [0], [1], [0, 0, 1, 1], [], []>} : vector<8x32xf32>, vector<32x128xf32>, vector<8x128xf32> -> vector<8x128xf32>
    %85 = arith.addf %80, %84 : vector<8x128xf32>
    %86 = vector.extract_strided_slice %0 {offsets = [4, 0], sizes = [8, 32], strides = [1, 1]} : vector<16x32xf32> to vector<8x32xf32>
    %c2_49 = arith.constant 2 : index
    %c0_50 = arith.constant 0 : index
    %c0_51 = arith.constant 0 : index
    %87 = vector.load %arg5[%c2_49, %c0_50, %c0_51] : memref<5x32x128xf32, #tpu.memory_space<vmem>>, vector<1x32x128xf32>
    %88 = vector.shape_cast %87 : vector<1x32x128xf32> to vector<32x128xf32>
    %cst_52 = arith.constant dense<0.000000e+00> : vector<8x128xf32>
    %89 = tpu.matmul %86, %88, %cst_52 {dimension_numbers = #tpu.dot_dimension_numbers<[1], [0], [0], [1], [0, 0, 1, 1], [], []>} : vector<8x32xf32>, vector<32x128xf32>, vector<8x128xf32> -> vector<8x128xf32>
    %90 = arith.addf %85, %89 : vector<8x128xf32>
    %91 = vector.extract_strided_slice %0 {offsets = [6, 0], sizes = [8, 32], strides = [1, 1]} : vector<16x32xf32> to vector<8x32xf32>
    %c3_53 = arith.constant 3 : index
    %c0_54 = arith.constant 0 : index
    %c0_55 = arith.constant 0 : index
    %92 = vector.load %arg5[%c3_53, %c0_54, %c0_55] : memref<5x32x128xf32, #tpu.memory_space<vmem>>, vector<1x32x128xf32>
    %93 = vector.shape_cast %92 : vector<1x32x128xf32> to vector<32x128xf32>
    %cst_56 = arith.constant dense<0.000000e+00> : vector<8x128xf32>
    %94 = tpu.matmul %91, %93, %cst_56 {dimension_numbers = #tpu.dot_dimension_numbers<[1], [0], [0], [1], [0, 0, 1, 1], [], []>} : vector<8x32xf32>, vector<32x128xf32>, vector<8x128xf32> -> vector<8x128xf32>
    %95 = arith.addf %90, %94 : vector<8x128xf32>
    %96 = vector.extract_strided_slice %0 {offsets = [8, 0], sizes = [8, 32], strides = [1, 1]} : vector<16x32xf32> to vector<8x32xf32>
    %c4 = arith.constant 4 : index
    %c0_57 = arith.constant 0 : index
    %c0_58 = arith.constant 0 : index
    %97 = vector.load %arg5[%c4, %c0_57, %c0_58] : memref<5x32x128xf32, #tpu.memory_space<vmem>>, vector<1x32x128xf32>
    %98 = vector.shape_cast %97 : vector<1x32x128xf32> to vector<32x128xf32>
    %cst_59 = arith.constant dense<0.000000e+00> : vector<8x128xf32>
    %99 = tpu.matmul %96, %98, %cst_59 {dimension_numbers = #tpu.dot_dimension_numbers<[1], [0], [0], [1], [0, 0, 1, 1], [], []>} : vector<8x32xf32>, vector<32x128xf32>, vector<8x128xf32> -> vector<8x128xf32>
    %100 = arith.addf %95, %99 : vector<8x128xf32>
    %c0_60 = arith.constant 0 : index
    %c0_61 = arith.constant 0 : index
    %101 = vector.load %arg6[%c0_60, %c0_61] : memref<1x128xf32, #tpu.memory_space<vmem>>, vector<1x128xf32>
    %102 = vector.broadcast %101 : vector<1x128xf32> to vector<8x128xf32>
    %103 = arith.addf %100, %102 : vector<8x128xf32>
    %cst_62 = arith.constant 0.000000e+00 : f32
    %104 = vector.broadcast %cst_62 : f32 to vector<8x128xf32>
    %105 = arith.maximumf %103, %104 : vector<8x128xf32>
    %106 = vector.extract_strided_slice %105 {offsets = [0, 0], sizes = [2, 128], strides = [1, 1]} : vector<8x128xf32> to vector<2x128xf32>
    %107 = vector.extract_strided_slice %105 {offsets = [2, 0], sizes = [2, 128], strides = [1, 1]} : vector<8x128xf32> to vector<2x128xf32>
    %108 = arith.maximumf %106, %107 : vector<2x128xf32>
    %109 = vector.extract_strided_slice %105 {offsets = [4, 0], sizes = [2, 128], strides = [1, 1]} : vector<8x128xf32> to vector<2x128xf32>
    %110 = arith.maximumf %108, %109 : vector<2x128xf32>
    %111 = vector.extract_strided_slice %105 {offsets = [6, 0], sizes = [2, 128], strides = [1, 1]} : vector<8x128xf32> to vector<2x128xf32>
    %112 = arith.maximumf %110, %111 : vector<2x128xf32>
    %c0_63 = arith.constant 0 : index
    %c0_64 = arith.constant 0 : index
    %113 = vector.load %arg9[%c0_63, %c0_64] : memref<128x8xf32, #tpu.memory_space<vmem>>, vector<128x8xf32>
    %cst_65 = arith.constant dense<0.000000e+00> : vector<2x8xf32>
    %114 = tpu.matmul %112, %113, %cst_65 {dimension_numbers = #tpu.dot_dimension_numbers<[1], [0], [0], [1], [0, 0, 1, 1], [], []>} : vector<2x128xf32>, vector<128x8xf32>, vector<2x8xf32> -> vector<2x8xf32>
    %115 = arith.addf %74, %114 : vector<2x8xf32>
    %c0_66 = arith.constant 0 : index
    %c0_67 = arith.constant 0 : index
    %116 = vector.load %arg10[%c0_66, %c0_67] : memref<1x8xf32, #tpu.memory_space<vmem>>, vector<1x8xf32>
    %117 = vector.broadcast %116 : vector<1x8xf32> to vector<2x8xf32>
    %118 = arith.addf %115, %117 : vector<2x8xf32>
    %c0_68 = arith.constant 0 : index
    %c0_69 = arith.constant 0 : index
    %119 = vector.load %arg11[%c0_68, %c0_69] : memref<2x8xf32, #tpu.memory_space<vmem>>, vector<2x8xf32>
    tpu.vector_store %arg11[%c0_68, %c0_69], %118 {strides = array<i32>} : memref<2x8xf32, #tpu.memory_space<vmem>>, vector<2x8xf32>,
    return
  }
}

module attributes {stable_mosaic.version = 11 : i64} {
  func.func @_encoder_kernel(%arg0: memref<16x32xf32, #tpu.memory_space<vmem>>, %arg1: memref<24x32x8xf32, #tpu.memory_space<vmem>>, %arg2: memref<24x1x8xf32, #tpu.memory_space<vmem>>, %arg3: memref<8x8x32xf32, #tpu.memory_space<vmem>>, %arg4: memref<2x1x32xf32, #tpu.memory_space<vmem>>, %arg5: memref<2x32x64xf32, #tpu.memory_space<vmem>>, %arg6: memref<2x1x64xf32, #tpu.memory_space<vmem>>, %arg7: memref<2x64x32xf32, #tpu.memory_space<vmem>>, %arg8: memref<2x1x32xf32, #tpu.memory_space<vmem>>, %arg9: memref<2x1x32xf32, #tpu.memory_space<vmem>>, %arg10: memref<2x1x32xf32, #tpu.memory_space<vmem>>, %arg11: memref<2x1x32xf32, #tpu.memory_space<vmem>>, %arg12: memref<2x1x32xf32, #tpu.memory_space<vmem>>, %arg13: memref<1x32xf32, #tpu.memory_space<vmem>>, %arg14: memref<1x32xf32, #tpu.memory_space<vmem>>, %arg15: memref<16x32xf32, #tpu.memory_space<vmem>>) attributes {dimension_semantics = [], scalar_prefetch = 0 : i64, scratch_operands = 0 : i64, tpu.core_type = #tpu.core_type<tc>} {
    %c0 = arith.constant 0 : index
    %c0_0 = arith.constant 0 : index
    %0 = vector.load %arg0[%c0, %c0_0] : memref<16x32xf32, #tpu.memory_space<vmem>>, vector<16x32xf32>
    %1 = tpu.iota {dimensions = array<i32: 0>} : vector<16x16xi32>
    %2 = arith.sitofp %1 : vector<16x16xi32> to vector<16x16xf32>
    %3 = tpu.iota {dimensions = array<i32: 1>} : vector<16x16xi32>
    %4 = arith.sitofp %3 : vector<16x16xi32> to vector<16x16xf32>
    %cst = arith.constant 5.000000e-01 : f32
    %5 = vector.broadcast %cst : f32 to vector<16x16xf32>
    %6 = arith.addf %2, %5 : vector<16x16xf32>
    %cst_1 = arith.constant 5.000000e-01 : f32
    %7 = vector.broadcast %cst_1 : f32 to vector<16x16xf32>
    %8 = arith.mulf %6, %7 : vector<16x16xf32>
    %9 = math.floor %8 : vector<16x16xf32>
    %cst_2 = arith.constant 5.000000e-01 : f32
    %10 = vector.broadcast %cst_2 : f32 to vector<16x16xf32>
    %11 = arith.addf %4, %10 : vector<16x16xf32>
    %cst_3 = arith.constant 5.000000e-01 : f32
    %12 = vector.broadcast %cst_3 : f32 to vector<16x16xf32>
    %13 = arith.mulf %11, %12 : vector<16x16xf32>
    %14 = math.floor %13 : vector<16x16xf32>
    %cst_4 = arith.constant 2.000000e+00 : f32
    %15 = vector.broadcast %cst_4 : f32 to vector<16x16xf32>
    %16 = arith.mulf %9, %15 : vector<16x16xf32>
    %17 = arith.subf %2, %16 : vector<16x16xf32>
    %cst_5 = arith.constant 2.000000e+00 : f32
    %18 = vector.broadcast %cst_5 : f32 to vector<16x16xf32>
    %19 = arith.mulf %14, %18 : vector<16x16xf32>
    %20 = arith.subf %4, %19 : vector<16x16xf32>
    %21 = arith.cmpf oeq, %17, %20 : vector<16x16xf32>
    %cst_6 = arith.constant 0.000000e+00 : f32
    %cst_7 = arith.constant -1.000000e+30 : f32
    %22 = vector.broadcast %cst_6 : f32 to vector<16x16xf32>
    %23 = vector.broadcast %cst_7 : f32 to vector<16x16xf32>
    %24 = arith.select %21, %22, %23 : vector<16x16xi1>, vector<16x16xf32>
    %cst_8 = arith.constant 0.000000e+00 : f32
    %25 = vector.broadcast %cst_8 : f32 to vector<16x32xf32>
    %c0_9 = arith.constant 0 : index
    %c0_10 = arith.constant 0 : index
    %c0_11 = arith.constant 0 : index
    %26 = vector.load %arg1[%c0_9, %c0_10, %c0_11] : memref<24x32x8xf32, #tpu.memory_space<vmem>>, vector<1x32x8xf32>
    %27 = vector.shape_cast %26 : vector<1x32x8xf32> to vector<32x8xf32>
    %cst_12 = arith.constant dense<0.000000e+00> : vector<16x8xf32>
    %28 = tpu.matmul %0, %27, %cst_12 {dimension_numbers = #tpu.dot_dimension_numbers<[1], [0], [0], [1], [0, 0, 1, 1], [], []>} : vector<16x32xf32>, vector<32x8xf32>, vector<16x8xf32> -> vector<16x8xf32>
    %c0_13 = arith.constant 0 : index
    %c0_14 = arith.constant 0 : index
    %c0_15 = arith.constant 0 : index
    %29 = vector.load %arg2[%c0_13, %c0_14, %c0_15] : memref<24x1x8xf32, #tpu.memory_space<vmem>>, vector<1x1x8xf32>
    %30 = vector.shape_cast %29 : vector<1x1x8xf32> to vector<1x8xf32>
    %31 = vector.broadcast %30 : vector<1x8xf32> to vector<16x8xf32>
    %32 = arith.addf %28, %31 : vector<16x8xf32>
    %cst_16 = arith.constant 0.353553385 : f32
    %33 = vector.broadcast %cst_16 : f32 to vector<16x8xf32>
    %34 = arith.mulf %32, %33 : vector<16x8xf32>
    %c4 = arith.constant 4 : index
    %c0_17 = arith.constant 0 : index
    %c0_18 = arith.constant 0 : index
    %35 = vector.load %arg1[%c4, %c0_17, %c0_18] : memref<24x32x8xf32, #tpu.memory_space<vmem>>, vector<1x32x8xf32>
    %36 = vector.shape_cast %35 : vector<1x32x8xf32> to vector<32x8xf32>
    %cst_19 = arith.constant dense<0.000000e+00> : vector<16x8xf32>
    %37 = tpu.matmul %0, %36, %cst_19 {dimension_numbers = #tpu.dot_dimension_numbers<[1], [0], [0], [1], [0, 0, 1, 1], [], []>} : vector<16x32xf32>, vector<32x8xf32>, vector<16x8xf32> -> vector<16x8xf32>
    %c4_20 = arith.constant 4 : index
    %c0_21 = arith.constant 0 : index
    %c0_22 = arith.constant 0 : index
    %38 = vector.load %arg2[%c4_20, %c0_21, %c0_22] : memref<24x1x8xf32, #tpu.memory_space<vmem>>, vector<1x1x8xf32>
    %39 = vector.shape_cast %38 : vector<1x1x8xf32> to vector<1x8xf32>
    %40 = vector.broadcast %39 : vector<1x8xf32> to vector<16x8xf32>
    %41 = arith.addf %37, %40 : vector<16x8xf32>
    %c8 = arith.constant 8 : index
    %c0_23 = arith.constant 0 : index
    %c0_24 = arith.constant 0 : index
    %42 = vector.load %arg1[%c8, %c0_23, %c0_24] : memref<24x32x8xf32, #tpu.memory_space<vmem>>, vector<1x32x8xf32>
    %43 = vector.shape_cast %42 : vector<1x32x8xf32> to vector<32x8xf32>
    %cst_25 = arith.constant dense<0.000000e+00> : vector<16x8xf32>
    %44 = tpu.matmul %0, %43, %cst_25 {dimension_numbers = #tpu.dot_dimension_numbers<[1], [0], [0], [1], [0, 0, 1, 1], [], []>} : vector<16x32xf32>, vector<32x8xf32>, vector<16x8xf32> -> vector<16x8xf32>
    %c8_26 = arith.constant 8 : index
    %c0_27 = arith.constant 0 : index
    %c0_28 = arith.constant 0 : index
    %45 = vector.load %arg2[%c8_26, %c0_27, %c0_28] : memref<24x1x8xf32, #tpu.memory_space<vmem>>, vector<1x1x8xf32>
    %46 = vector.shape_cast %45 : vector<1x1x8xf32> to vector<1x8xf32>
    %47 = vector.broadcast %46 : vector<1x8xf32> to vector<16x8xf32>
    %48 = arith.addf %44, %47 : vector<16x8xf32>
    %cst_29 = arith.constant dense<0.000000e+00> : vector<16x16xf32>
    %49 = tpu.matmul %34, %41, %cst_29 {dimension_numbers = #tpu.dot_dimension_numbers<[1], [1], [0], [0], [0, 0, 1, 0], [], []>} : vector<16x8xf32>, vector<16x8xf32>, vector<16x16xf32> -> vector<16x16xf32>
    %50 = arith.addf %49, %24 : vector<16x16xf32>
    %cst_30 = arith.constant dense<0xFF800000> : vector<16xf32>
    %51 = vector.multi_reduction <maximumf>, %50, %cst_30 [1] : vector<16x16xf32> to vector<16xf32>
    %52 = vector.shape_cast %51 : vector<16xf32> to vector<16x1xf32>
    %53 = vector.broadcast %52 : vector<16x1xf32> to vector<16x16xf32>
    %54 = arith.subf %50, %53 : vector<16x16xf32>
    %55 = math.exp %54 : vector<16x16xf32>
    %cst_31 = arith.constant dense<0.000000e+00> : vector<16xf32>
    %56 = vector.multi_reduction <add>, %55, %cst_31 [1] : vector<16x16xf32> to vector<16xf32>
    %57 = vector.shape_cast %56 : vector<16xf32> to vector<16x1xf32>
    %58 = tpu.reciprocal %57 {approx = true} : vector<16x1xf32> -> vector<16x1xf32>
    %59 = vector.broadcast %58 : vector<16x1xf32> to vector<16x16xf32>
    %60 = arith.mulf %55, %59 : vector<16x16xf32>
    %cst_32 = arith.constant dense<0.000000e+00> : vector<16x8xf32>
    %61 = tpu.matmul %60, %48, %cst_32 {dimension_numbers = #tpu.dot_dimension_numbers<[1], [0], [0], [1], [0, 0, 1, 1], [], []>} : vector<16x16xf32>, vector<16x8xf32>, vector<16x8xf32> -> vector<16x8xf32>
    %c0_33 = arith.constant 0 : index
    %c0_34 = arith.constant 0 : index
    %c0_35 = arith.constant 0 : index
    %62 = vector.load %arg3[%c0_33, %c0_34, %c0_35] : memref<8x8x32xf32, #tpu.memory_space<vmem>>, vector<1x8x32xf32>
    %63 = vector.shape_cast %62 : vector<1x8x32xf32> to vector<8x32xf32>
    %cst_36 = arith.constant dense<0.000000e+00> : vector<16x32xf32>
    %64 = tpu.matmul %61, %63, %cst_36 {dimension_numbers = #tpu.dot_dimension_numbers<[1], [0], [0], [1], [0, 0, 1, 1], [], []>} : vector<16x8xf32>, vector<8x32xf32>, vector<16x32xf32> -> vector<16x32xf32>
    %65 = arith.addf %25, %64 : vector<16x32xf32>
    %c1 = arith.constant 1 : index
    %c0_37 = arith.constant 0 : index
    %c0_38 = arith.constant 0 : index
    %66 = vector.load %arg1[%c1, %c0_37, %c0_38] : memref<24x32x8xf32, #tpu.memory_space<vmem>>, vector<1x32x8xf32>
    %67 = vector.shape_cast %66 : vector<1x32x8xf32> to vector<32x8xf32>
    %cst_39 = arith.constant dense<0.000000e+00> : vector<16x8xf32>
    %68 = tpu.matmul %0, %67, %cst_39 {dimension_numbers = #tpu.dot_dimension_numbers<[1], [0], [0], [1], [0, 0, 1, 1], [], []>} : vector<16x32xf32>, vector<32x8xf32>, vector<16x8xf32> -> vector<16x8xf32>
    %c1_40 = arith.constant 1 : index
    %c0_41 = arith.constant 0 : index
    %c0_42 = arith.constant 0 : index
    %69 = vector.load %arg2[%c1_40, %c0_41, %c0_42] : memref<24x1x8xf32, #tpu.memory_space<vmem>>, vector<1x1x8xf32>
    %70 = vector.shape_cast %69 : vector<1x1x8xf32> to vector<1x8xf32>
    %71 = vector.broadcast %70 : vector<1x8xf32> to vector<16x8xf32>
    %72 = arith.addf %68, %71 : vector<16x8xf32>
    %cst_43 = arith.constant 0.353553385 : f32
    %73 = vector.broadcast %cst_43 : f32 to vector<16x8xf32>
    %74 = arith.mulf %72, %73 : vector<16x8xf32>
    %c5 = arith.constant 5 : index
    %c0_44 = arith.constant 0 : index
    %c0_45 = arith.constant 0 : index
    %75 = vector.load %arg1[%c5, %c0_44, %c0_45] : memref<24x32x8xf32, #tpu.memory_space<vmem>>, vector<1x32x8xf32>
    %76 = vector.shape_cast %75 : vector<1x32x8xf32> to vector<32x8xf32>
    %cst_46 = arith.constant dense<0.000000e+00> : vector<16x8xf32>
    %77 = tpu.matmul %0, %76, %cst_46 {dimension_numbers = #tpu.dot_dimension_numbers<[1], [0], [0], [1], [0, 0, 1, 1], [], []>} : vector<16x32xf32>, vector<32x8xf32>, vector<16x8xf32> -> vector<16x8xf32>
    %c5_47 = arith.constant 5 : index
    %c0_48 = arith.constant 0 : index
    %c0_49 = arith.constant 0 : index
    %78 = vector.load %arg2[%c5_47, %c0_48, %c0_49] : memref<24x1x8xf32, #tpu.memory_space<vmem>>, vector<1x1x8xf32>
    %79 = vector.shape_cast %78 : vector<1x1x8xf32> to vector<1x8xf32>
    %80 = vector.broadcast %79 : vector<1x8xf32> to vector<16x8xf32>
    %81 = arith.addf %77, %80 : vector<16x8xf32>
    %c9 = arith.constant 9 : index
    %c0_50 = arith.constant 0 : index
    %c0_51 = arith.constant 0 : index
    %82 = vector.load %arg1[%c9, %c0_50, %c0_51] : memref<24x32x8xf32, #tpu.memory_space<vmem>>, vector<1x32x8xf32>
    %83 = vector.shape_cast %82 : vector<1x32x8xf32> to vector<32x8xf32>
    %cst_52 = arith.constant dense<0.000000e+00> : vector<16x8xf32>
    %84 = tpu.matmul %0, %83, %cst_52 {dimension_numbers = #tpu.dot_dimension_numbers<[1], [0], [0], [1], [0, 0, 1, 1], [], []>} : vector<16x32xf32>, vector<32x8xf32>, vector<16x8xf32> -> vector<16x8xf32>
    %c9_53 = arith.constant 9 : index
    %c0_54 = arith.constant 0 : index
    %c0_55 = arith.constant 0 : index
    %85 = vector.load %arg2[%c9_53, %c0_54, %c0_55] : memref<24x1x8xf32, #tpu.memory_space<vmem>>, vector<1x1x8xf32>
    %86 = vector.shape_cast %85 : vector<1x1x8xf32> to vector<1x8xf32>
    %87 = vector.broadcast %86 : vector<1x8xf32> to vector<16x8xf32>
    %88 = arith.addf %84, %87 : vector<16x8xf32>
    %cst_56 = arith.constant dense<0.000000e+00> : vector<16x16xf32>
    %89 = tpu.matmul %74, %81, %cst_56 {dimension_numbers = #tpu.dot_dimension_numbers<[1], [1], [0], [0], [0, 0, 1, 0], [], []>} : vector<16x8xf32>, vector<16x8xf32>, vector<16x16xf32> -> vector<16x16xf32>
    %90 = arith.addf %89, %24 : vector<16x16xf32>
    %cst_57 = arith.constant dense<0xFF800000> : vector<16xf32>
    %91 = vector.multi_reduction <maximumf>, %90, %cst_57 [1] : vector<16x16xf32> to vector<16xf32>
    %92 = vector.shape_cast %91 : vector<16xf32> to vector<16x1xf32>
    %93 = vector.broadcast %92 : vector<16x1xf32> to vector<16x16xf32>
    %94 = arith.subf %90, %93 : vector<16x16xf32>
    %95 = math.exp %94 : vector<16x16xf32>
    %cst_58 = arith.constant dense<0.000000e+00> : vector<16xf32>
    %96 = vector.multi_reduction <add>, %95, %cst_58 [1] : vector<16x16xf32> to vector<16xf32>
    %97 = vector.shape_cast %96 : vector<16xf32> to vector<16x1xf32>
    %98 = tpu.reciprocal %97 {approx = true} : vector<16x1xf32> -> vector<16x1xf32>
    %99 = vector.broadcast %98 : vector<16x1xf32> to vector<16x16xf32>
    %100 = arith.mulf %95, %99 : vector<16x16xf32>
    %cst_59 = arith.constant dense<0.000000e+00> : vector<16x8xf32>
    %101 = tpu.matmul %100, %88, %cst_59 {dimension_numbers = #tpu.dot_dimension_numbers<[1], [0], [0], [1], [0, 0, 1, 1], [], []>} : vector<16x16xf32>, vector<16x8xf32>, vector<16x8xf32> -> vector<16x8xf32>
    %c1_60 = arith.constant 1 : index
    %c0_61 = arith.constant 0 : index
    %c0_62 = arith.constant 0 : index
    %102 = vector.load %arg3[%c1_60, %c0_61, %c0_62] : memref<8x8x32xf32, #tpu.memory_space<vmem>>, vector<1x8x32xf32>
    %103 = vector.shape_cast %102 : vector<1x8x32xf32> to vector<8x32xf32>
    %cst_63 = arith.constant dense<0.000000e+00> : vector<16x32xf32>
    %104 = tpu.matmul %101, %103, %cst_63 {dimension_numbers = #tpu.dot_dimension_numbers<[1], [0], [0], [1], [0, 0, 1, 1], [], []>} : vector<16x8xf32>, vector<8x32xf32>, vector<16x32xf32> -> vector<16x32xf32>
    %105 = arith.addf %65, %104 : vector<16x32xf32>
    %c2 = arith.constant 2 : index
    %c0_64 = arith.constant 0 : index
    %c0_65 = arith.constant 0 : index
    %106 = vector.load %arg1[%c2, %c0_64, %c0_65] : memref<24x32x8xf32, #tpu.memory_space<vmem>>, vector<1x32x8xf32>
    %107 = vector.shape_cast %106 : vector<1x32x8xf32> to vector<32x8xf32>
    %cst_66 = arith.constant dense<0.000000e+00> : vector<16x8xf32>
    %108 = tpu.matmul %0, %107, %cst_66 {dimension_numbers = #tpu.dot_dimension_numbers<[1], [0], [0], [1], [0, 0, 1, 1], [], []>} : vector<16x32xf32>, vector<32x8xf32>, vector<16x8xf32> -> vector<16x8xf32>
    %c2_67 = arith.constant 2 : index
    %c0_68 = arith.constant 0 : index
    %c0_69 = arith.constant 0 : index
    %109 = vector.load %arg2[%c2_67, %c0_68, %c0_69] : memref<24x1x8xf32, #tpu.memory_space<vmem>>, vector<1x1x8xf32>
    %110 = vector.shape_cast %109 : vector<1x1x8xf32> to vector<1x8xf32>
    %111 = vector.broadcast %110 : vector<1x8xf32> to vector<16x8xf32>
    %112 = arith.addf %108, %111 : vector<16x8xf32>
    %cst_70 = arith.constant 0.353553385 : f32
    %113 = vector.broadcast %cst_70 : f32 to vector<16x8xf32>
    %114 = arith.mulf %112, %113 : vector<16x8xf32>
    %c6 = arith.constant 6 : index
    %c0_71 = arith.constant 0 : index
    %c0_72 = arith.constant 0 : index
    %115 = vector.load %arg1[%c6, %c0_71, %c0_72] : memref<24x32x8xf32, #tpu.memory_space<vmem>>, vector<1x32x8xf32>
    %116 = vector.shape_cast %115 : vector<1x32x8xf32> to vector<32x8xf32>
    %cst_73 = arith.constant dense<0.000000e+00> : vector<16x8xf32>
    %117 = tpu.matmul %0, %116, %cst_73 {dimension_numbers = #tpu.dot_dimension_numbers<[1], [0], [0], [1], [0, 0, 1, 1], [], []>} : vector<16x32xf32>, vector<32x8xf32>, vector<16x8xf32> -> vector<16x8xf32>
    %c6_74 = arith.constant 6 : index
    %c0_75 = arith.constant 0 : index
    %c0_76 = arith.constant 0 : index
    %118 = vector.load %arg2[%c6_74, %c0_75, %c0_76] : memref<24x1x8xf32, #tpu.memory_space<vmem>>, vector<1x1x8xf32>
    %119 = vector.shape_cast %118 : vector<1x1x8xf32> to vector<1x8xf32>
    %120 = vector.broadcast %119 : vector<1x8xf32> to vector<16x8xf32>
    %121 = arith.addf %117, %120 : vector<16x8xf32>
    %c10 = arith.constant 10 : index
    %c0_77 = arith.constant 0 : index
    %c0_78 = arith.constant 0 : index
    %122 = vector.load %arg1[%c10, %c0_77, %c0_78] : memref<24x32x8xf32, #tpu.memory_space<vmem>>, vector<1x32x8xf32>
    %123 = vector.shape_cast %122 : vector<1x32x8xf32> to vector<32x8xf32>
    %cst_79 = arith.constant dense<0.000000e+00> : vector<16x8xf32>
    %124 = tpu.matmul %0, %123, %cst_79 {dimension_numbers = #tpu.dot_dimension_numbers<[1], [0], [0], [1], [0, 0, 1, 1], [], []>} : vector<16x32xf32>, vector<32x8xf32>, vector<16x8xf32> -> vector<16x8xf32>
    %c10_80 = arith.constant 10 : index
    %c0_81 = arith.constant 0 : index
    %c0_82 = arith.constant 0 : index
    %125 = vector.load %arg2[%c10_80, %c0_81, %c0_82] : memref<24x1x8xf32, #tpu.memory_space<vmem>>, vector<1x1x8xf32>
    %126 = vector.shape_cast %125 : vector<1x1x8xf32> to vector<1x8xf32>
    %127 = vector.broadcast %126 : vector<1x8xf32> to vector<16x8xf32>
    %128 = arith.addf %124, %127 : vector<16x8xf32>
    %cst_83 = arith.constant dense<0.000000e+00> : vector<16x16xf32>
    %129 = tpu.matmul %114, %121, %cst_83 {dimension_numbers = #tpu.dot_dimension_numbers<[1], [1], [0], [0], [0, 0, 1, 0], [], []>} : vector<16x8xf32>, vector<16x8xf32>, vector<16x16xf32> -> vector<16x16xf32>
    %130 = arith.addf %129, %24 : vector<16x16xf32>
    %cst_84 = arith.constant dense<0xFF800000> : vector<16xf32>
    %131 = vector.multi_reduction <maximumf>, %130, %cst_84 [1] : vector<16x16xf32> to vector<16xf32>
    %132 = vector.shape_cast %131 : vector<16xf32> to vector<16x1xf32>
    %133 = vector.broadcast %132 : vector<16x1xf32> to vector<16x16xf32>
    %134 = arith.subf %130, %133 : vector<16x16xf32>
    %135 = math.exp %134 : vector<16x16xf32>
    %cst_85 = arith.constant dense<0.000000e+00> : vector<16xf32>
    %136 = vector.multi_reduction <add>, %135, %cst_85 [1] : vector<16x16xf32> to vector<16xf32>
    %137 = vector.shape_cast %136 : vector<16xf32> to vector<16x1xf32>
    %138 = tpu.reciprocal %137 {approx = true} : vector<16x1xf32> -> vector<16x1xf32>
    %139 = vector.broadcast %138 : vector<16x1xf32> to vector<16x16xf32>
    %140 = arith.mulf %135, %139 : vector<16x16xf32>
    %cst_86 = arith.constant dense<0.000000e+00> : vector<16x8xf32>
    %141 = tpu.matmul %140, %128, %cst_86 {dimension_numbers = #tpu.dot_dimension_numbers<[1], [0], [0], [1], [0, 0, 1, 1], [], []>} : vector<16x16xf32>, vector<16x8xf32>, vector<16x8xf32> -> vector<16x8xf32>
    %c2_87 = arith.constant 2 : index
    %c0_88 = arith.constant 0 : index
    %c0_89 = arith.constant 0 : index
    %142 = vector.load %arg3[%c2_87, %c0_88, %c0_89] : memref<8x8x32xf32, #tpu.memory_space<vmem>>, vector<1x8x32xf32>
    %143 = vector.shape_cast %142 : vector<1x8x32xf32> to vector<8x32xf32>
    %cst_90 = arith.constant dense<0.000000e+00> : vector<16x32xf32>
    %144 = tpu.matmul %141, %143, %cst_90 {dimension_numbers = #tpu.dot_dimension_numbers<[1], [0], [0], [1], [0, 0, 1, 1], [], []>} : vector<16x8xf32>, vector<8x32xf32>, vector<16x32xf32> -> vector<16x32xf32>
    %145 = arith.addf %105, %144 : vector<16x32xf32>
    %c3 = arith.constant 3 : index
    %c0_91 = arith.constant 0 : index
    %c0_92 = arith.constant 0 : index
    %146 = vector.load %arg1[%c3, %c0_91, %c0_92] : memref<24x32x8xf32, #tpu.memory_space<vmem>>, vector<1x32x8xf32>
    %147 = vector.shape_cast %146 : vector<1x32x8xf32> to vector<32x8xf32>
    %cst_93 = arith.constant dense<0.000000e+00> : vector<16x8xf32>
    %148 = tpu.matmul %0, %147, %cst_93 {dimension_numbers = #tpu.dot_dimension_numbers<[1], [0], [0], [1], [0, 0, 1, 1], [], []>} : vector<16x32xf32>, vector<32x8xf32>, vector<16x8xf32> -> vector<16x8xf32>
    %c3_94 = arith.constant 3 : index
    %c0_95 = arith.constant 0 : index
    %c0_96 = arith.constant 0 : index
    %149 = vector.load %arg2[%c3_94, %c0_95, %c0_96] : memref<24x1x8xf32, #tpu.memory_space<vmem>>, vector<1x1x8xf32>
    %150 = vector.shape_cast %149 : vector<1x1x8xf32> to vector<1x8xf32>
    %151 = vector.broadcast %150 : vector<1x8xf32> to vector<16x8xf32>
    %152 = arith.addf %148, %151 : vector<16x8xf32>
    %cst_97 = arith.constant 0.353553385 : f32
    %153 = vector.broadcast %cst_97 : f32 to vector<16x8xf32>
    %154 = arith.mulf %152, %153 : vector<16x8xf32>
    %c7 = arith.constant 7 : index
    %c0_98 = arith.constant 0 : index
    %c0_99 = arith.constant 0 : index
    %155 = vector.load %arg1[%c7, %c0_98, %c0_99] : memref<24x32x8xf32, #tpu.memory_space<vmem>>, vector<1x32x8xf32>
    %156 = vector.shape_cast %155 : vector<1x32x8xf32> to vector<32x8xf32>
    %cst_100 = arith.constant dense<0.000000e+00> : vector<16x8xf32>
    %157 = tpu.matmul %0, %156, %cst_100 {dimension_numbers = #tpu.dot_dimension_numbers<[1], [0], [0], [1], [0, 0, 1, 1], [], []>} : vector<16x32xf32>, vector<32x8xf32>, vector<16x8xf32> -> vector<16x8xf32>
    %c7_101 = arith.constant 7 : index
    %c0_102 = arith.constant 0 : index
    %c0_103 = arith.constant 0 : index
    %158 = vector.load %arg2[%c7_101, %c0_102, %c0_103] : memref<24x1x8xf32, #tpu.memory_space<vmem>>, vector<1x1x8xf32>
    %159 = vector.shape_cast %158 : vector<1x1x8xf32> to vector<1x8xf32>
    %160 = vector.broadcast %159 : vector<1x8xf32> to vector<16x8xf32>
    %161 = arith.addf %157, %160 : vector<16x8xf32>
    %c11 = arith.constant 11 : index
    %c0_104 = arith.constant 0 : index
    %c0_105 = arith.constant 0 : index
    %162 = vector.load %arg1[%c11, %c0_104, %c0_105] : memref<24x32x8xf32, #tpu.memory_space<vmem>>, vector<1x32x8xf32>
    %163 = vector.shape_cast %162 : vector<1x32x8xf32> to vector<32x8xf32>
    %cst_106 = arith.constant dense<0.000000e+00> : vector<16x8xf32>
    %164 = tpu.matmul %0, %163, %cst_106 {dimension_numbers = #tpu.dot_dimension_numbers<[1], [0], [0], [1], [0, 0, 1, 1], [], []>} : vector<16x32xf32>, vector<32x8xf32>, vector<16x8xf32> -> vector<16x8xf32>
    %c11_107 = arith.constant 11 : index
    %c0_108 = arith.constant 0 : index
    %c0_109 = arith.constant 0 : index
    %165 = vector.load %arg2[%c11_107, %c0_108, %c0_109] : memref<24x1x8xf32, #tpu.memory_space<vmem>>, vector<1x1x8xf32>
    %166 = vector.shape_cast %165 : vector<1x1x8xf32> to vector<1x8xf32>
    %167 = vector.broadcast %166 : vector<1x8xf32> to vector<16x8xf32>
    %168 = arith.addf %164, %167 : vector<16x8xf32>
    %cst_110 = arith.constant dense<0.000000e+00> : vector<16x16xf32>
    %169 = tpu.matmul %154, %161, %cst_110 {dimension_numbers = #tpu.dot_dimension_numbers<[1], [1], [0], [0], [0, 0, 1, 0], [], []>} : vector<16x8xf32>, vector<16x8xf32>, vector<16x16xf32> -> vector<16x16xf32>
    %170 = arith.addf %169, %24 : vector<16x16xf32>
    %cst_111 = arith.constant dense<0xFF800000> : vector<16xf32>
    %171 = vector.multi_reduction <maximumf>, %170, %cst_111 [1] : vector<16x16xf32> to vector<16xf32>
    %172 = vector.shape_cast %171 : vector<16xf32> to vector<16x1xf32>
    %173 = vector.broadcast %172 : vector<16x1xf32> to vector<16x16xf32>
    %174 = arith.subf %170, %173 : vector<16x16xf32>
    %175 = math.exp %174 : vector<16x16xf32>
    %cst_112 = arith.constant dense<0.000000e+00> : vector<16xf32>
    %176 = vector.multi_reduction <add>, %175, %cst_112 [1] : vector<16x16xf32> to vector<16xf32>
    %177 = vector.shape_cast %176 : vector<16xf32> to vector<16x1xf32>
    %178 = tpu.reciprocal %177 {approx = true} : vector<16x1xf32> -> vector<16x1xf32>
    %179 = vector.broadcast %178 : vector<16x1xf32> to vector<16x16xf32>
    %180 = arith.mulf %175, %179 : vector<16x16xf32>
    %cst_113 = arith.constant dense<0.000000e+00> : vector<16x8xf32>
    %181 = tpu.matmul %180, %168, %cst_113 {dimension_numbers = #tpu.dot_dimension_numbers<[1], [0], [0], [1], [0, 0, 1, 1], [], []>} : vector<16x16xf32>, vector<16x8xf32>, vector<16x8xf32> -> vector<16x8xf32>
    %c3_114 = arith.constant 3 : index
    %c0_115 = arith.constant 0 : index
    %c0_116 = arith.constant 0 : index
    %182 = vector.load %arg3[%c3_114, %c0_115, %c0_116] : memref<8x8x32xf32, #tpu.memory_space<vmem>>, vector<1x8x32xf32>
    %183 = vector.shape_cast %182 : vector<1x8x32xf32> to vector<8x32xf32>
    %cst_117 = arith.constant dense<0.000000e+00> : vector<16x32xf32>
    %184 = tpu.matmul %181, %183, %cst_117 {dimension_numbers = #tpu.dot_dimension_numbers<[1], [0], [0], [1], [0, 0, 1, 1], [], []>} : vector<16x8xf32>, vector<8x32xf32>, vector<16x32xf32> -> vector<16x32xf32>
    %185 = arith.addf %145, %184 : vector<16x32xf32>
    %c0_118 = arith.constant 0 : index
    %c0_119 = arith.constant 0 : index
    %c0_120 = arith.constant 0 : index
    %186 = vector.load %arg4[%c0_118, %c0_119, %c0_120] : memref<2x1x32xf32, #tpu.memory_space<vmem>>, vector<1x1x32xf32>
    %187 = vector.shape_cast %186 : vector<1x1x32xf32> to vector<1x32xf32>
    %188 = vector.broadcast %187 : vector<1x32xf32> to vector<16x32xf32>
    %189 = arith.addf %185, %188 : vector<16x32xf32>
    %190 = arith.addf %0, %189 : vector<16x32xf32>
    %c0_121 = arith.constant 0 : index
    %c0_122 = arith.constant 0 : index
    %c0_123 = arith.constant 0 : index
    %191 = vector.load %arg9[%c0_121, %c0_122, %c0_123] : memref<2x1x32xf32, #tpu.memory_space<vmem>>, vector<1x1x32xf32>
    %192 = vector.shape_cast %191 : vector<1x1x32xf32> to vector<1x32xf32>
    %c0_124 = arith.constant 0 : index
    %c0_125 = arith.constant 0 : index
    %c0_126 = arith.constant 0 : index
    %193 = vector.load %arg10[%c0_124, %c0_125, %c0_126] : memref<2x1x32xf32, #tpu.memory_space<vmem>>, vector<1x1x32xf32>
    %194 = vector.shape_cast %193 : vector<1x1x32xf32> to vector<1x32xf32>
    %cst_127 = arith.constant dense<0.000000e+00> : vector<16xf32>
    %195 = vector.multi_reduction <add>, %190, %cst_127 [1] : vector<16x32xf32> to vector<16xf32>
    %196 = vector.shape_cast %195 : vector<16xf32> to vector<16x1xf32>
    %cst_128 = arith.constant 3.200000e+01 : f32
    %197 = vector.broadcast %cst_128 : f32 to vector<16x1xf32>
    %198 = arith.divf %196, %197 : vector<16x1xf32>
    %199 = vector.broadcast %198 : vector<16x1xf32> to vector<16x32xf32>
    %200 = arith.subf %190, %199 : vector<16x32xf32>
    %201 = arith.mulf %200, %200 : vector<16x32xf32>
    %cst_129 = arith.constant dense<0.000000e+00> : vector<16xf32>
    %202 = vector.multi_reduction <add>, %201, %cst_129 [1] : vector<16x32xf32> to vector<16xf32>
    %203 = vector.shape_cast %202 : vector<16xf32> to vector<16x1xf32>
    %cst_130 = arith.constant 3.200000e+01 : f32
    %204 = vector.broadcast %cst_130 : f32 to vector<16x1xf32>
    %205 = arith.divf %203, %204 : vector<16x1xf32>
    %cst_131 = arith.constant 9.99999974E-6 : f32
    %206 = vector.broadcast %cst_131 : f32 to vector<16x1xf32>
    %207 = arith.addf %205, %206 : vector<16x1xf32>
    %208 = math.rsqrt %207 : vector<16x1xf32>
    %209 = vector.broadcast %208 : vector<16x1xf32> to vector<16x32xf32>
    %210 = arith.mulf %200, %209 : vector<16x32xf32>
    %211 = vector.broadcast %192 : vector<1x32xf32> to vector<16x32xf32>
    %212 = arith.mulf %210, %211 : vector<16x32xf32>
    %213 = vector.broadcast %194 : vector<1x32xf32> to vector<16x32xf32>
    %214 = arith.addf %212, %213 : vector<16x32xf32>
    %c0_132 = arith.constant 0 : index
    %c0_133 = arith.constant 0 : index
    %c0_134 = arith.constant 0 : index
    %215 = vector.load %arg5[%c0_132, %c0_133, %c0_134] : memref<2x32x64xf32, #tpu.memory_space<vmem>>, vector<1x32x64xf32>
    %216 = vector.shape_cast %215 : vector<1x32x64xf32> to vector<32x64xf32>
    %cst_135 = arith.constant dense<0.000000e+00> : vector<16x64xf32>
    %217 = tpu.matmul %214, %216, %cst_135 {dimension_numbers = #tpu.dot_dimension_numbers<[1], [0], [0], [1], [0, 0, 1, 1], [], []>} : vector<16x32xf32>, vector<32x64xf32>, vector<16x64xf32> -> vector<16x64xf32>
    %c0_136 = arith.constant 0 : index
    %c0_137 = arith.constant 0 : index
    %c0_138 = arith.constant 0 : index
    %218 = vector.load %arg6[%c0_136, %c0_137, %c0_138] : memref<2x1x64xf32, #tpu.memory_space<vmem>>, vector<1x1x64xf32>
    %219 = vector.shape_cast %218 : vector<1x1x64xf32> to vector<1x64xf32>
    %220 = vector.broadcast %219 : vector<1x64xf32> to vector<16x64xf32>
    %221 = arith.addf %217, %220 : vector<16x64xf32>
    %cst_139 = arith.constant 0.000000e+00 : f32
    %222 = vector.broadcast %cst_139 : f32 to vector<16x64xf32>
    %223 = arith.maximumf %221, %222 : vector<16x64xf32>
    %c0_140 = arith.constant 0 : index
    %c0_141 = arith.constant 0 : index
    %c0_142 = arith.constant 0 : index
    %224 = vector.load %arg7[%c0_140, %c0_141, %c0_142] : memref<2x64x32xf32, #tpu.memory_space<vmem>>, vector<1x64x32xf32>
    %225 = vector.shape_cast %224 : vector<1x64x32xf32> to vector<64x32xf32>
    %cst_143 = arith.constant dense<0.000000e+00> : vector<16x32xf32>
    %226 = tpu.matmul %223, %225, %cst_143 {dimension_numbers = #tpu.dot_dimension_numbers<[1], [0], [0], [1], [0, 0, 1, 1], [], []>} : vector<16x64xf32>, vector<64x32xf32>, vector<16x32xf32> -> vector<16x32xf32>
    %c0_144 = arith.constant 0 : index
    %c0_145 = arith.constant 0 : index
    %c0_146 = arith.constant 0 : index
    %227 = vector.load %arg8[%c0_144, %c0_145, %c0_146] : memref<2x1x32xf32, #tpu.memory_space<vmem>>, vector<1x1x32xf32>
    %228 = vector.shape_cast %227 : vector<1x1x32xf32> to vector<1x32xf32>
    %229 = vector.broadcast %228 : vector<1x32xf32> to vector<16x32xf32>
    %230 = arith.addf %226, %229 : vector<16x32xf32>
    %231 = arith.addf %214, %230 : vector<16x32xf32>
    %c0_147 = arith.constant 0 : index
    %c0_148 = arith.constant 0 : index
    %c0_149 = arith.constant 0 : index
    %232 = vector.load %arg11[%c0_147, %c0_148, %c0_149] : memref<2x1x32xf32, #tpu.memory_space<vmem>>, vector<1x1x32xf32>
    %233 = vector.shape_cast %232 : vector<1x1x32xf32> to vector<1x32xf32>
    %c0_150 = arith.constant 0 : index
    %c0_151 = arith.constant 0 : index
    %c0_152 = arith.constant 0 : index
    %234 = vector.load %arg12[%c0_150, %c0_151, %c0_152] : memref<2x1x32xf32, #tpu.memory_space<vmem>>, vector<1x1x32xf32>
    %235 = vector.shape_cast %234 : vector<1x1x32xf32> to vector<1x32xf32>
    %cst_153 = arith.constant dense<0.000000e+00> : vector<16xf32>
    %236 = vector.multi_reduction <add>, %231, %cst_153 [1] : vector<16x32xf32> to vector<16xf32>
    %237 = vector.shape_cast %236 : vector<16xf32> to vector<16x1xf32>
    %cst_154 = arith.constant 3.200000e+01 : f32
    %238 = vector.broadcast %cst_154 : f32 to vector<16x1xf32>
    %239 = arith.divf %237, %238 : vector<16x1xf32>
    %240 = vector.broadcast %239 : vector<16x1xf32> to vector<16x32xf32>
    %241 = arith.subf %231, %240 : vector<16x32xf32>
    %242 = arith.mulf %241, %241 : vector<16x32xf32>
    %cst_155 = arith.constant dense<0.000000e+00> : vector<16xf32>
    %243 = vector.multi_reduction <add>, %242, %cst_155 [1] : vector<16x32xf32> to vector<16xf32>
    %244 = vector.shape_cast %243 : vector<16xf32> to vector<16x1xf32>
    %cst_156 = arith.constant 3.200000e+01 : f32
    %245 = vector.broadcast %cst_156 : f32 to vector<16x1xf32>
    %246 = arith.divf %244, %245 : vector<16x1xf32>
    %cst_157 = arith.constant 9.99999974E-6 : f32
    %247 = vector.broadcast %cst_157 : f32 to vector<16x1xf32>
    %248 = arith.addf %246, %247 : vector<16x1xf32>
    %249 = math.rsqrt %248 : vector<16x1xf32>
    %250 = vector.broadcast %249 : vector<16x1xf32> to vector<16x32xf32>
    %251 = arith.mulf %241, %250 : vector<16x32xf32>
    %252 = vector.broadcast %233 : vector<1x32xf32> to vector<16x32xf32>
    %253 = arith.mulf %251, %252 : vector<16x32xf32>
    %254 = vector.broadcast %235 : vector<1x32xf32> to vector<16x32xf32>
    %255 = arith.addf %253, %254 : vector<16x32xf32>
    %cst_158 = arith.constant 0.000000e+00 : f32
    %256 = vector.broadcast %cst_158 : f32 to vector<16x32xf32>
    %c12 = arith.constant 12 : index
    %c0_159 = arith.constant 0 : index
    %c0_160 = arith.constant 0 : index
    %257 = vector.load %arg1[%c12, %c0_159, %c0_160] : memref<24x32x8xf32, #tpu.memory_space<vmem>>, vector<1x32x8xf32>
    %258 = vector.shape_cast %257 : vector<1x32x8xf32> to vector<32x8xf32>
    %cst_161 = arith.constant dense<0.000000e+00> : vector<16x8xf32>
    %259 = tpu.matmul %255, %258, %cst_161 {dimension_numbers = #tpu.dot_dimension_numbers<[1], [0], [0], [1], [0, 0, 1, 1], [], []>} : vector<16x32xf32>, vector<32x8xf32>, vector<16x8xf32> -> vector<16x8xf32>
    %c12_162 = arith.constant 12 : index
    %c0_163 = arith.constant 0 : index
    %c0_164 = arith.constant 0 : index
    %260 = vector.load %arg2[%c12_162, %c0_163, %c0_164] : memref<24x1x8xf32, #tpu.memory_space<vmem>>, vector<1x1x8xf32>
    %261 = vector.shape_cast %260 : vector<1x1x8xf32> to vector<1x8xf32>
    %262 = vector.broadcast %261 : vector<1x8xf32> to vector<16x8xf32>
    %263 = arith.addf %259, %262 : vector<16x8xf32>
    %cst_165 = arith.constant 0.353553385 : f32
    %264 = vector.broadcast %cst_165 : f32 to vector<16x8xf32>
    %265 = arith.mulf %263, %264 : vector<16x8xf32>
    %c16 = arith.constant 16 : index
    %c0_166 = arith.constant 0 : index
    %c0_167 = arith.constant 0 : index
    %266 = vector.load %arg1[%c16, %c0_166, %c0_167] : memref<24x32x8xf32, #tpu.memory_space<vmem>>, vector<1x32x8xf32>
    %267 = vector.shape_cast %266 : vector<1x32x8xf32> to vector<32x8xf32>
    %cst_168 = arith.constant dense<0.000000e+00> : vector<16x8xf32>
    %268 = tpu.matmul %255, %267, %cst_168 {dimension_numbers = #tpu.dot_dimension_numbers<[1], [0], [0], [1], [0, 0, 1, 1], [], []>} : vector<16x32xf32>, vector<32x8xf32>, vector<16x8xf32> -> vector<16x8xf32>
    %c16_169 = arith.constant 16 : index
    %c0_170 = arith.constant 0 : index
    %c0_171 = arith.constant 0 : index
    %269 = vector.load %arg2[%c16_169, %c0_170, %c0_171] : memref<24x1x8xf32, #tpu.memory_space<vmem>>, vector<1x1x8xf32>
    %270 = vector.shape_cast %269 : vector<1x1x8xf32> to vector<1x8xf32>
    %271 = vector.broadcast %270 : vector<1x8xf32> to vector<16x8xf32>
    %272 = arith.addf %268, %271 : vector<16x8xf32>
    %c20 = arith.constant 20 : index
    %c0_172 = arith.constant 0 : index
    %c0_173 = arith.constant 0 : index
    %273 = vector.load %arg1[%c20, %c0_172, %c0_173] : memref<24x32x8xf32, #tpu.memory_space<vmem>>, vector<1x32x8xf32>
    %274 = vector.shape_cast %273 : vector<1x32x8xf32> to vector<32x8xf32>
    %cst_174 = arith.constant dense<0.000000e+00> : vector<16x8xf32>
    %275 = tpu.matmul %255, %274, %cst_174 {dimension_numbers = #tpu.dot_dimension_numbers<[1], [0], [0], [1], [0, 0, 1, 1], [], []>} : vector<16x32xf32>, vector<32x8xf32>, vector<16x8xf32> -> vector<16x8xf32>
    %c20_175 = arith.constant 20 : index
    %c0_176 = arith.constant 0 : index
    %c0_177 = arith.constant 0 : index
    %276 = vector.load %arg2[%c20_175, %c0_176, %c0_177] : memref<24x1x8xf32, #tpu.memory_space<vmem>>, vector<1x1x8xf32>
    %277 = vector.shape_cast %276 : vector<1x1x8xf32> to vector<1x8xf32>
    %278 = vector.broadcast %277 : vector<1x8xf32> to vector<16x8xf32>
    %279 = arith.addf %275, %278 : vector<16x8xf32>
    %cst_178 = arith.constant dense<0.000000e+00> : vector<16x16xf32>
    %280 = tpu.matmul %265, %272, %cst_178 {dimension_numbers = #tpu.dot_dimension_numbers<[1], [1], [0], [0], [0, 0, 1, 0], [], []>} : vector<16x8xf32>, vector<16x8xf32>, vector<16x16xf32> -> vector<16x16xf32>
    %281 = arith.addf %280, %24 : vector<16x16xf32>
    %cst_179 = arith.constant dense<0xFF800000> : vector<16xf32>
    %282 = vector.multi_reduction <maximumf>, %281, %cst_179 [1] : vector<16x16xf32> to vector<16xf32>
    %283 = vector.shape_cast %282 : vector<16xf32> to vector<16x1xf32>
    %284 = vector.broadcast %283 : vector<16x1xf32> to vector<16x16xf32>
    %285 = arith.subf %281, %284 : vector<16x16xf32>
    %286 = math.exp %285 : vector<16x16xf32>
    %cst_180 = arith.constant dense<0.000000e+00> : vector<16xf32>
    %287 = vector.multi_reduction <add>, %286, %cst_180 [1] : vector<16x16xf32> to vector<16xf32>
    %288 = vector.shape_cast %287 : vector<16xf32> to vector<16x1xf32>
    %289 = tpu.reciprocal %288 {approx = true} : vector<16x1xf32> -> vector<16x1xf32>
    %290 = vector.broadcast %289 : vector<16x1xf32> to vector<16x16xf32>
    %291 = arith.mulf %286, %290 : vector<16x16xf32>
    %cst_181 = arith.constant dense<0.000000e+00> : vector<16x8xf32>
    %292 = tpu.matmul %291, %279, %cst_181 {dimension_numbers = #tpu.dot_dimension_numbers<[1], [0], [0], [1], [0, 0, 1, 1], [], []>} : vector<16x16xf32>, vector<16x8xf32>, vector<16x8xf32> -> vector<16x8xf32>
    %c4_182 = arith.constant 4 : index
    %c0_183 = arith.constant 0 : index
    %c0_184 = arith.constant 0 : index
    %293 = vector.load %arg3[%c4_182, %c0_183, %c0_184] : memref<8x8x32xf32, #tpu.memory_space<vmem>>, vector<1x8x32xf32>
    %294 = vector.shape_cast %293 : vector<1x8x32xf32> to vector<8x32xf32>
    %cst_185 = arith.constant dense<0.000000e+00> : vector<16x32xf32>
    %295 = tpu.matmul %292, %294, %cst_185 {dimension_numbers = #tpu.dot_dimension_numbers<[1], [0], [0], [1], [0, 0, 1, 1], [], []>} : vector<16x8xf32>, vector<8x32xf32>, vector<16x32xf32> -> vector<16x32xf32>
    %296 = arith.addf %256, %295 : vector<16x32xf32>
    %c13 = arith.constant 13 : index
    %c0_186 = arith.constant 0 : index
    %c0_187 = arith.constant 0 : index
    %297 = vector.load %arg1[%c13, %c0_186, %c0_187] : memref<24x32x8xf32, #tpu.memory_space<vmem>>, vector<1x32x8xf32>
    %298 = vector.shape_cast %297 : vector<1x32x8xf32> to vector<32x8xf32>
    %cst_188 = arith.constant dense<0.000000e+00> : vector<16x8xf32>
    %299 = tpu.matmul %255, %298, %cst_188 {dimension_numbers = #tpu.dot_dimension_numbers<[1], [0], [0], [1], [0, 0, 1, 1], [], []>} : vector<16x32xf32>, vector<32x8xf32>, vector<16x8xf32> -> vector<16x8xf32>
    %c13_189 = arith.constant 13 : index
    %c0_190 = arith.constant 0 : index
    %c0_191 = arith.constant 0 : index
    %300 = vector.load %arg2[%c13_189, %c0_190, %c0_191] : memref<24x1x8xf32, #tpu.memory_space<vmem>>, vector<1x1x8xf32>
    %301 = vector.shape_cast %300 : vector<1x1x8xf32> to vector<1x8xf32>
    %302 = vector.broadcast %301 : vector<1x8xf32> to vector<16x8xf32>
    %303 = arith.addf %299, %302 : vector<16x8xf32>
    %cst_192 = arith.constant 0.353553385 : f32
    %304 = vector.broadcast %cst_192 : f32 to vector<16x8xf32>
    %305 = arith.mulf %303, %304 : vector<16x8xf32>
    %c17 = arith.constant 17 : index
    %c0_193 = arith.constant 0 : index
    %c0_194 = arith.constant 0 : index
    %306 = vector.load %arg1[%c17, %c0_193, %c0_194] : memref<24x32x8xf32, #tpu.memory_space<vmem>>, vector<1x32x8xf32>
    %307 = vector.shape_cast %306 : vector<1x32x8xf32> to vector<32x8xf32>
    %cst_195 = arith.constant dense<0.000000e+00> : vector<16x8xf32>
    %308 = tpu.matmul %255, %307, %cst_195 {dimension_numbers = #tpu.dot_dimension_numbers<[1], [0], [0], [1], [0, 0, 1, 1], [], []>} : vector<16x32xf32>, vector<32x8xf32>, vector<16x8xf32> -> vector<16x8xf32>
    %c17_196 = arith.constant 17 : index
    %c0_197 = arith.constant 0 : index
    %c0_198 = arith.constant 0 : index
    %309 = vector.load %arg2[%c17_196, %c0_197, %c0_198] : memref<24x1x8xf32, #tpu.memory_space<vmem>>, vector<1x1x8xf32>
    %310 = vector.shape_cast %309 : vector<1x1x8xf32> to vector<1x8xf32>
    %311 = vector.broadcast %310 : vector<1x8xf32> to vector<16x8xf32>
    %312 = arith.addf %308, %311 : vector<16x8xf32>
    %c21 = arith.constant 21 : index
    %c0_199 = arith.constant 0 : index
    %c0_200 = arith.constant 0 : index
    %313 = vector.load %arg1[%c21, %c0_199, %c0_200] : memref<24x32x8xf32, #tpu.memory_space<vmem>>, vector<1x32x8xf32>
    %314 = vector.shape_cast %313 : vector<1x32x8xf32> to vector<32x8xf32>
    %cst_201 = arith.constant dense<0.000000e+00> : vector<16x8xf32>
    %315 = tpu.matmul %255, %314, %cst_201 {dimension_numbers = #tpu.dot_dimension_numbers<[1], [0], [0], [1], [0, 0, 1, 1], [], []>} : vector<16x32xf32>, vector<32x8xf32>, vector<16x8xf32> -> vector<16x8xf32>
    %c21_202 = arith.constant 21 : index
    %c0_203 = arith.constant 0 : index
    %c0_204 = arith.constant 0 : index
    %316 = vector.load %arg2[%c21_202, %c0_203, %c0_204] : memref<24x1x8xf32, #tpu.memory_space<vmem>>, vector<1x1x8xf32>
    %317 = vector.shape_cast %316 : vector<1x1x8xf32> to vector<1x8xf32>
    %318 = vector.broadcast %317 : vector<1x8xf32> to vector<16x8xf32>
    %319 = arith.addf %315, %318 : vector<16x8xf32>
    %cst_205 = arith.constant dense<0.000000e+00> : vector<16x16xf32>
    %320 = tpu.matmul %305, %312, %cst_205 {dimension_numbers = #tpu.dot_dimension_numbers<[1], [1], [0], [0], [0, 0, 1, 0], [], []>} : vector<16x8xf32>, vector<16x8xf32>, vector<16x16xf32> -> vector<16x16xf32>
    %321 = arith.addf %320, %24 : vector<16x16xf32>
    %cst_206 = arith.constant dense<0xFF800000> : vector<16xf32>
    %322 = vector.multi_reduction <maximumf>, %321, %cst_206 [1] : vector<16x16xf32> to vector<16xf32>
    %323 = vector.shape_cast %322 : vector<16xf32> to vector<16x1xf32>
    %324 = vector.broadcast %323 : vector<16x1xf32> to vector<16x16xf32>
    %325 = arith.subf %321, %324 : vector<16x16xf32>
    %326 = math.exp %325 : vector<16x16xf32>
    %cst_207 = arith.constant dense<0.000000e+00> : vector<16xf32>
    %327 = vector.multi_reduction <add>, %326, %cst_207 [1] : vector<16x16xf32> to vector<16xf32>
    %328 = vector.shape_cast %327 : vector<16xf32> to vector<16x1xf32>
    %329 = tpu.reciprocal %328 {approx = true} : vector<16x1xf32> -> vector<16x1xf32>
    %330 = vector.broadcast %329 : vector<16x1xf32> to vector<16x16xf32>
    %331 = arith.mulf %326, %330 : vector<16x16xf32>
    %cst_208 = arith.constant dense<0.000000e+00> : vector<16x8xf32>
    %332 = tpu.matmul %331, %319, %cst_208 {dimension_numbers = #tpu.dot_dimension_numbers<[1], [0], [0], [1], [0, 0, 1, 1], [], []>} : vector<16x16xf32>, vector<16x8xf32>, vector<16x8xf32> -> vector<16x8xf32>
    %c5_209 = arith.constant 5 : index
    %c0_210 = arith.constant 0 : index
    %c0_211 = arith.constant 0 : index
    %333 = vector.load %arg3[%c5_209, %c0_210, %c0_211] : memref<8x8x32xf32, #tpu.memory_space<vmem>>, vector<1x8x32xf32>
    %334 = vector.shape_cast %333 : vector<1x8x32xf32> to vector<8x32xf32>
    %cst_212 = arith.constant dense<0.000000e+00> : vector<16x32xf32>
    %335 = tpu.matmul %332, %334, %cst_212 {dimension_numbers = #tpu.dot_dimension_numbers<[1], [0], [0], [1], [0, 0, 1, 1], [], []>} : vector<16x8xf32>, vector<8x32xf32>, vector<16x32xf32> -> vector<16x32xf32>
    %336 = arith.addf %296, %335 : vector<16x32xf32>
    %c14 = arith.constant 14 : index
    %c0_213 = arith.constant 0 : index
    %c0_214 = arith.constant 0 : index
    %337 = vector.load %arg1[%c14, %c0_213, %c0_214] : memref<24x32x8xf32, #tpu.memory_space<vmem>>, vector<1x32x8xf32>
    %338 = vector.shape_cast %337 : vector<1x32x8xf32> to vector<32x8xf32>
    %cst_215 = arith.constant dense<0.000000e+00> : vector<16x8xf32>
    %339 = tpu.matmul %255, %338, %cst_215 {dimension_numbers = #tpu.dot_dimension_numbers<[1], [0], [0], [1], [0, 0, 1, 1], [], []>} : vector<16x32xf32>, vector<32x8xf32>, vector<16x8xf32> -> vector<16x8xf32>
    %c14_216 = arith.constant 14 : index
    %c0_217 = arith.constant 0 : index
    %c0_218 = arith.constant 0 : index
    %340 = vector.load %arg2[%c14_216, %c0_217, %c0_218] : memref<24x1x8xf32, #tpu.memory_space<vmem>>, vector<1x1x8xf32>
    %341 = vector.shape_cast %340 : vector<1x1x8xf32> to vector<1x8xf32>
    %342 = vector.broadcast %341 : vector<1x8xf32> to vector<16x8xf32>
    %343 = arith.addf %339, %342 : vector<16x8xf32>
    %cst_219 = arith.constant 0.353553385 : f32
    %344 = vector.broadcast %cst_219 : f32 to vector<16x8xf32>
    %345 = arith.mulf %343, %344 : vector<16x8xf32>
    %c18 = arith.constant 18 : index
    %c0_220 = arith.constant 0 : index
    %c0_221 = arith.constant 0 : index
    %346 = vector.load %arg1[%c18, %c0_220, %c0_221] : memref<24x32x8xf32, #tpu.memory_space<vmem>>, vector<1x32x8xf32>
    %347 = vector.shape_cast %346 : vector<1x32x8xf32> to vector<32x8xf32>
    %cst_222 = arith.constant dense<0.000000e+00> : vector<16x8xf32>
    %348 = tpu.matmul %255, %347, %cst_222 {dimension_numbers = #tpu.dot_dimension_numbers<[1], [0], [0], [1], [0, 0, 1, 1], [], []>} : vector<16x32xf32>, vector<32x8xf32>, vector<16x8xf32> -> vector<16x8xf32>
    %c18_223 = arith.constant 18 : index
    %c0_224 = arith.constant 0 : index
    %c0_225 = arith.constant 0 : index
    %349 = vector.load %arg2[%c18_223, %c0_224, %c0_225] : memref<24x1x8xf32, #tpu.memory_space<vmem>>, vector<1x1x8xf32>
    %350 = vector.shape_cast %349 : vector<1x1x8xf32> to vector<1x8xf32>
    %351 = vector.broadcast %350 : vector<1x8xf32> to vector<16x8xf32>
    %352 = arith.addf %348, %351 : vector<16x8xf32>
    %c22 = arith.constant 22 : index
    %c0_226 = arith.constant 0 : index
    %c0_227 = arith.constant 0 : index
    %353 = vector.load %arg1[%c22, %c0_226, %c0_227] : memref<24x32x8xf32, #tpu.memory_space<vmem>>, vector<1x32x8xf32>
    %354 = vector.shape_cast %353 : vector<1x32x8xf32> to vector<32x8xf32>
    %cst_228 = arith.constant dense<0.000000e+00> : vector<16x8xf32>
    %355 = tpu.matmul %255, %354, %cst_228 {dimension_numbers = #tpu.dot_dimension_numbers<[1], [0], [0], [1], [0, 0, 1, 1], [], []>} : vector<16x32xf32>, vector<32x8xf32>, vector<16x8xf32> -> vector<16x8xf32>
    %c22_229 = arith.constant 22 : index
    %c0_230 = arith.constant 0 : index
    %c0_231 = arith.constant 0 : index
    %356 = vector.load %arg2[%c22_229, %c0_230, %c0_231] : memref<24x1x8xf32, #tpu.memory_space<vmem>>, vector<1x1x8xf32>
    %357 = vector.shape_cast %356 : vector<1x1x8xf32> to vector<1x8xf32>
    %358 = vector.broadcast %357 : vector<1x8xf32> to vector<16x8xf32>
    %359 = arith.addf %355, %358 : vector<16x8xf32>
    %cst_232 = arith.constant dense<0.000000e+00> : vector<16x16xf32>
    %360 = tpu.matmul %345, %352, %cst_232 {dimension_numbers = #tpu.dot_dimension_numbers<[1], [1], [0], [0], [0, 0, 1, 0], [], []>} : vector<16x8xf32>, vector<16x8xf32>, vector<16x16xf32> -> vector<16x16xf32>
    %361 = arith.addf %360, %24 : vector<16x16xf32>
    %cst_233 = arith.constant dense<0xFF800000> : vector<16xf32>
    %362 = vector.multi_reduction <maximumf>, %361, %cst_233 [1] : vector<16x16xf32> to vector<16xf32>
    %363 = vector.shape_cast %362 : vector<16xf32> to vector<16x1xf32>
    %364 = vector.broadcast %363 : vector<16x1xf32> to vector<16x16xf32>
    %365 = arith.subf %361, %364 : vector<16x16xf32>
    %366 = math.exp %365 : vector<16x16xf32>
    %cst_234 = arith.constant dense<0.000000e+00> : vector<16xf32>
    %367 = vector.multi_reduction <add>, %366, %cst_234 [1] : vector<16x16xf32> to vector<16xf32>
    %368 = vector.shape_cast %367 : vector<16xf32> to vector<16x1xf32>
    %369 = tpu.reciprocal %368 {approx = true} : vector<16x1xf32> -> vector<16x1xf32>
    %370 = vector.broadcast %369 : vector<16x1xf32> to vector<16x16xf32>
    %371 = arith.mulf %366, %370 : vector<16x16xf32>
    %cst_235 = arith.constant dense<0.000000e+00> : vector<16x8xf32>
    %372 = tpu.matmul %371, %359, %cst_235 {dimension_numbers = #tpu.dot_dimension_numbers<[1], [0], [0], [1], [0, 0, 1, 1], [], []>} : vector<16x16xf32>, vector<16x8xf32>, vector<16x8xf32> -> vector<16x8xf32>
    %c6_236 = arith.constant 6 : index
    %c0_237 = arith.constant 0 : index
    %c0_238 = arith.constant 0 : index
    %373 = vector.load %arg3[%c6_236, %c0_237, %c0_238] : memref<8x8x32xf32, #tpu.memory_space<vmem>>, vector<1x8x32xf32>
    %374 = vector.shape_cast %373 : vector<1x8x32xf32> to vector<8x32xf32>
    %cst_239 = arith.constant dense<0.000000e+00> : vector<16x32xf32>
    %375 = tpu.matmul %372, %374, %cst_239 {dimension_numbers = #tpu.dot_dimension_numbers<[1], [0], [0], [1], [0, 0, 1, 1], [], []>} : vector<16x8xf32>, vector<8x32xf32>, vector<16x32xf32> -> vector<16x32xf32>
    %376 = arith.addf %336, %375 : vector<16x32xf32>
    %c15 = arith.constant 15 : index
    %c0_240 = arith.constant 0 : index
    %c0_241 = arith.constant 0 : index
    %377 = vector.load %arg1[%c15, %c0_240, %c0_241] : memref<24x32x8xf32, #tpu.memory_space<vmem>>, vector<1x32x8xf32>
    %378 = vector.shape_cast %377 : vector<1x32x8xf32> to vector<32x8xf32>
    %cst_242 = arith.constant dense<0.000000e+00> : vector<16x8xf32>
    %379 = tpu.matmul %255, %378, %cst_242 {dimension_numbers = #tpu.dot_dimension_numbers<[1], [0], [0], [1], [0, 0, 1, 1], [], []>} : vector<16x32xf32>, vector<32x8xf32>, vector<16x8xf32> -> vector<16x8xf32>
    %c15_243 = arith.constant 15 : index
    %c0_244 = arith.constant 0 : index
    %c0_245 = arith.constant 0 : index
    %380 = vector.load %arg2[%c15_243, %c0_244, %c0_245] : memref<24x1x8xf32, #tpu.memory_space<vmem>>, vector<1x1x8xf32>
    %381 = vector.shape_cast %380 : vector<1x1x8xf32> to vector<1x8xf32>
    %382 = vector.broadcast %381 : vector<1x8xf32> to vector<16x8xf32>
    %383 = arith.addf %379, %382 : vector<16x8xf32>
    %cst_246 = arith.constant 0.353553385 : f32
    %384 = vector.broadcast %cst_246 : f32 to vector<16x8xf32>
    %385 = arith.mulf %383, %384 : vector<16x8xf32>
    %c19 = arith.constant 19 : index
    %c0_247 = arith.constant 0 : index
    %c0_248 = arith.constant 0 : index
    %386 = vector.load %arg1[%c19, %c0_247, %c0_248] : memref<24x32x8xf32, #tpu.memory_space<vmem>>, vector<1x32x8xf32>
    %387 = vector.shape_cast %386 : vector<1x32x8xf32> to vector<32x8xf32>
    %cst_249 = arith.constant dense<0.000000e+00> : vector<16x8xf32>
    %388 = tpu.matmul %255, %387, %cst_249 {dimension_numbers = #tpu.dot_dimension_numbers<[1], [0], [0], [1], [0, 0, 1, 1], [], []>} : vector<16x32xf32>, vector<32x8xf32>, vector<16x8xf32> -> vector<16x8xf32>
    %c19_250 = arith.constant 19 : index
    %c0_251 = arith.constant 0 : index
    %c0_252 = arith.constant 0 : index
    %389 = vector.load %arg2[%c19_250, %c0_251, %c0_252] : memref<24x1x8xf32, #tpu.memory_space<vmem>>, vector<1x1x8xf32>
    %390 = vector.shape_cast %389 : vector<1x1x8xf32> to vector<1x8xf32>
    %391 = vector.broadcast %390 : vector<1x8xf32> to vector<16x8xf32>
    %392 = arith.addf %388, %391 : vector<16x8xf32>
    %c23 = arith.constant 23 : index
    %c0_253 = arith.constant 0 : index
    %c0_254 = arith.constant 0 : index
    %393 = vector.load %arg1[%c23, %c0_253, %c0_254] : memref<24x32x8xf32, #tpu.memory_space<vmem>>, vector<1x32x8xf32>
    %394 = vector.shape_cast %393 : vector<1x32x8xf32> to vector<32x8xf32>
    %cst_255 = arith.constant dense<0.000000e+00> : vector<16x8xf32>
    %395 = tpu.matmul %255, %394, %cst_255 {dimension_numbers = #tpu.dot_dimension_numbers<[1], [0], [0], [1], [0, 0, 1, 1], [], []>} : vector<16x32xf32>, vector<32x8xf32>, vector<16x8xf32> -> vector<16x8xf32>
    %c23_256 = arith.constant 23 : index
    %c0_257 = arith.constant 0 : index
    %c0_258 = arith.constant 0 : index
    %396 = vector.load %arg2[%c23_256, %c0_257, %c0_258] : memref<24x1x8xf32, #tpu.memory_space<vmem>>, vector<1x1x8xf32>
    %397 = vector.shape_cast %396 : vector<1x1x8xf32> to vector<1x8xf32>
    %398 = vector.broadcast %397 : vector<1x8xf32> to vector<16x8xf32>
    %399 = arith.addf %395, %398 : vector<16x8xf32>
    %cst_259 = arith.constant dense<0.000000e+00> : vector<16x16xf32>
    %400 = tpu.matmul %385, %392, %cst_259 {dimension_numbers = #tpu.dot_dimension_numbers<[1], [1], [0], [0], [0, 0, 1, 0], [], []>} : vector<16x8xf32>, vector<16x8xf32>, vector<16x16xf32> -> vector<16x16xf32>
    %401 = arith.addf %400, %24 : vector<16x16xf32>
    %cst_260 = arith.constant dense<0xFF800000> : vector<16xf32>
    %402 = vector.multi_reduction <maximumf>, %401, %cst_260 [1] : vector<16x16xf32> to vector<16xf32>
    %403 = vector.shape_cast %402 : vector<16xf32> to vector<16x1xf32>
    %404 = vector.broadcast %403 : vector<16x1xf32> to vector<16x16xf32>
    %405 = arith.subf %401, %404 : vector<16x16xf32>
    %406 = math.exp %405 : vector<16x16xf32>
    %cst_261 = arith.constant dense<0.000000e+00> : vector<16xf32>
    %407 = vector.multi_reduction <add>, %406, %cst_261 [1] : vector<16x16xf32> to vector<16xf32>
    %408 = vector.shape_cast %407 : vector<16xf32> to vector<16x1xf32>
    %409 = tpu.reciprocal %408 {approx = true} : vector<16x1xf32> -> vector<16x1xf32>
    %410 = vector.broadcast %409 : vector<16x1xf32> to vector<16x16xf32>
    %411 = arith.mulf %406, %410 : vector<16x16xf32>
    %cst_262 = arith.constant dense<0.000000e+00> : vector<16x8xf32>
    %412 = tpu.matmul %411, %399, %cst_262 {dimension_numbers = #tpu.dot_dimension_numbers<[1], [0], [0], [1], [0, 0, 1, 1], [], []>} : vector<16x16xf32>, vector<16x8xf32>, vector<16x8xf32> -> vector<16x8xf32>
    %c7_263 = arith.constant 7 : index
    %c0_264 = arith.constant 0 : index
    %c0_265 = arith.constant 0 : index
    %413 = vector.load %arg3[%c7_263, %c0_264, %c0_265] : memref<8x8x32xf32, #tpu.memory_space<vmem>>, vector<1x8x32xf32>
    %414 = vector.shape_cast %413 : vector<1x8x32xf32> to vector<8x32xf32>
    %cst_266 = arith.constant dense<0.000000e+00> : vector<16x32xf32>
    %415 = tpu.matmul %412, %414, %cst_266 {dimension_numbers = #tpu.dot_dimension_numbers<[1], [0], [0], [1], [0, 0, 1, 1], [], []>} : vector<16x8xf32>, vector<8x32xf32>, vector<16x32xf32> -> vector<16x32xf32>
    %416 = arith.addf %376, %415 : vector<16x32xf32>
    %c1_267 = arith.constant 1 : index
    %c0_268 = arith.constant 0 : index
    %c0_269 = arith.constant 0 : index
    %417 = vector.load %arg4[%c1_267, %c0_268, %c0_269] : memref<2x1x32xf32, #tpu.memory_space<vmem>>, vector<1x1x32xf32>
    %418 = vector.shape_cast %417 : vector<1x1x32xf32> to vector<1x32xf32>
    %419 = vector.broadcast %418 : vector<1x32xf32> to vector<16x32xf32>
    %420 = arith.addf %416, %419 : vector<16x32xf32>
    %421 = arith.addf %255, %420 : vector<16x32xf32>
    %c1_270 = arith.constant 1 : index
    %c0_271 = arith.constant 0 : index
    %c0_272 = arith.constant 0 : index
    %422 = vector.load %arg9[%c1_270, %c0_271, %c0_272] : memref<2x1x32xf32, #tpu.memory_space<vmem>>, vector<1x1x32xf32>
    %423 = vector.shape_cast %422 : vector<1x1x32xf32> to vector<1x32xf32>
    %c1_273 = arith.constant 1 : index
    %c0_274 = arith.constant 0 : index
    %c0_275 = arith.constant 0 : index
    %424 = vector.load %arg10[%c1_273, %c0_274, %c0_275] : memref<2x1x32xf32, #tpu.memory_space<vmem>>, vector<1x1x32xf32>
    %425 = vector.shape_cast %424 : vector<1x1x32xf32> to vector<1x32xf32>
    %cst_276 = arith.constant dense<0.000000e+00> : vector<16xf32>
    %426 = vector.multi_reduction <add>, %421, %cst_276 [1] : vector<16x32xf32> to vector<16xf32>
    %427 = vector.shape_cast %426 : vector<16xf32> to vector<16x1xf32>
    %cst_277 = arith.constant 3.200000e+01 : f32
    %428 = vector.broadcast %cst_277 : f32 to vector<16x1xf32>
    %429 = arith.divf %427, %428 : vector<16x1xf32>
    %430 = vector.broadcast %429 : vector<16x1xf32> to vector<16x32xf32>
    %431 = arith.subf %421, %430 : vector<16x32xf32>
    %432 = arith.mulf %431, %431 : vector<16x32xf32>
    %cst_278 = arith.constant dense<0.000000e+00> : vector<16xf32>
    %433 = vector.multi_reduction <add>, %432, %cst_278 [1] : vector<16x32xf32> to vector<16xf32>
    %434 = vector.shape_cast %433 : vector<16xf32> to vector<16x1xf32>
    %cst_279 = arith.constant 3.200000e+01 : f32
    %435 = vector.broadcast %cst_279 : f32 to vector<16x1xf32>
    %436 = arith.divf %434, %435 : vector<16x1xf32>
    %cst_280 = arith.constant 9.99999974E-6 : f32
    %437 = vector.broadcast %cst_280 : f32 to vector<16x1xf32>
    %438 = arith.addf %436, %437 : vector<16x1xf32>
    %439 = math.rsqrt %438 : vector<16x1xf32>
    %440 = vector.broadcast %439 : vector<16x1xf32> to vector<16x32xf32>
    %441 = arith.mulf %431, %440 : vector<16x32xf32>
    %442 = vector.broadcast %423 : vector<1x32xf32> to vector<16x32xf32>
    %443 = arith.mulf %441, %442 : vector<16x32xf32>
    %444 = vector.broadcast %425 : vector<1x32xf32> to vector<16x32xf32>
    %445 = arith.addf %443, %444 : vector<16x32xf32>
    %c1_281 = arith.constant 1 : index
    %c0_282 = arith.constant 0 : index
    %c0_283 = arith.constant 0 : index
    %446 = vector.load %arg5[%c1_281, %c0_282, %c0_283] : memref<2x32x64xf32, #tpu.memory_space<vmem>>, vector<1x32x64xf32>
    %447 = vector.shape_cast %446 : vector<1x32x64xf32> to vector<32x64xf32>
    %cst_284 = arith.constant dense<0.000000e+00> : vector<16x64xf32>
    %448 = tpu.matmul %445, %447, %cst_284 {dimension_numbers = #tpu.dot_dimension_numbers<[1], [0], [0], [1], [0, 0, 1, 1], [], []>} : vector<16x32xf32>, vector<32x64xf32>, vector<16x64xf32> -> vector<16x64xf32>
    %c1_285 = arith.constant 1 : index
    %c0_286 = arith.constant 0 : index
    %c0_287 = arith.constant 0 : index
    %449 = vector.load %arg6[%c1_285, %c0_286, %c0_287] : memref<2x1x64xf32, #tpu.memory_space<vmem>>, vector<1x1x64xf32>
    %450 = vector.shape_cast %449 : vector<1x1x64xf32> to vector<1x64xf32>
    %451 = vector.broadcast %450 : vector<1x64xf32> to vector<16x64xf32>
    %452 = arith.addf %448, %451 : vector<16x64xf32>
    %cst_288 = arith.constant 0.000000e+00 : f32
    %453 = vector.broadcast %cst_288 : f32 to vector<16x64xf32>
    %454 = arith.maximumf %452, %453 : vector<16x64xf32>
    %c1_289 = arith.constant 1 : index
    %c0_290 = arith.constant 0 : index
    %c0_291 = arith.constant 0 : index
    %455 = vector.load %arg7[%c1_289, %c0_290, %c0_291] : memref<2x64x32xf32, #tpu.memory_space<vmem>>, vector<1x64x32xf32>
    %456 = vector.shape_cast %455 : vector<1x64x32xf32> to vector<64x32xf32>
    %cst_292 = arith.constant dense<0.000000e+00> : vector<16x32xf32>
    %457 = tpu.matmul %454, %456, %cst_292 {dimension_numbers = #tpu.dot_dimension_numbers<[1], [0], [0], [1], [0, 0, 1, 1], [], []>} : vector<16x64xf32>, vector<64x32xf32>, vector<16x32xf32> -> vector<16x32xf32>
    %c1_293 = arith.constant 1 : index
    %c0_294 = arith.constant 0 : index
    %c0_295 = arith.constant 0 : index
    %458 = vector.load %arg8[%c1_293, %c0_294, %c0_295] : memref<2x1x32xf32, #tpu.memory_space<vmem>>, vector<1x1x32xf32>
    %459 = vector.shape_cast %458 : vector<1x1x32xf32> to vector<1x32xf32>
    %460 = vector.broadcast %459 : vector<1x32xf32> to vector<16x32xf32>
    %461 = arith.addf %457, %460 : vector<16x32xf32>
    %462 = arith.addf %445, %461 : vector<16x32xf32>
    %c1_296 = arith.constant 1 : index
    %c0_297 = arith.constant 0 : index
    %c0_298 = arith.constant 0 : index
    %463 = vector.load %arg11[%c1_296, %c0_297, %c0_298] : memref<2x1x32xf32, #tpu.memory_space<vmem>>, vector<1x1x32xf32>
    %464 = vector.shape_cast %463 : vector<1x1x32xf32> to vector<1x32xf32>
    %c1_299 = arith.constant 1 : index
    %c0_300 = arith.constant 0 : index
    %c0_301 = arith.constant 0 : index
    %465 = vector.load %arg12[%c1_299, %c0_300, %c0_301] : memref<2x1x32xf32, #tpu.memory_space<vmem>>, vector<1x1x32xf32>
    %466 = vector.shape_cast %465 : vector<1x1x32xf32> to vector<1x32xf32>
    %cst_302 = arith.constant dense<0.000000e+00> : vector<16xf32>
    %467 = vector.multi_reduction <add>, %462, %cst_302 [1] : vector<16x32xf32> to vector<16xf32>
    %468 = vector.shape_cast %467 : vector<16xf32> to vector<16x1xf32>
    %cst_303 = arith.constant 3.200000e+01 : f32
    %469 = vector.broadcast %cst_303 : f32 to vector<16x1xf32>
    %470 = arith.divf %468, %469 : vector<16x1xf32>
    %471 = vector.broadcast %470 : vector<16x1xf32> to vector<16x32xf32>
    %472 = arith.subf %462, %471 : vector<16x32xf32>
    %473 = arith.mulf %472, %472 : vector<16x32xf32>
    %cst_304 = arith.constant dense<0.000000e+00> : vector<16xf32>
    %474 = vector.multi_reduction <add>, %473, %cst_304 [1] : vector<16x32xf32> to vector<16xf32>
    %475 = vector.shape_cast %474 : vector<16xf32> to vector<16x1xf32>
    %cst_305 = arith.constant 3.200000e+01 : f32
    %476 = vector.broadcast %cst_305 : f32 to vector<16x1xf32>
    %477 = arith.divf %475, %476 : vector<16x1xf32>
    %cst_306 = arith.constant 9.99999974E-6 : f32
    %478 = vector.broadcast %cst_306 : f32 to vector<16x1xf32>
    %479 = arith.addf %477, %478 : vector<16x1xf32>
    %480 = math.rsqrt %479 : vector<16x1xf32>
    %481 = vector.broadcast %480 : vector<16x1xf32> to vector<16x32xf32>
    %482 = arith.mulf %472, %481 : vector<16x32xf32>
    %483 = vector.broadcast %464 : vector<1x32xf32> to vector<16x32xf32>
    %484 = arith.mulf %482, %483 : vector<16x32xf32>
    %485 = vector.broadcast %466 : vector<1x32xf32> to vector<16x32xf32>
    %486 = arith.addf %484, %485 : vector<16x32xf32>
    %c0_307 = arith.constant 0 : index
    %c0_308 = arith.constant 0 : index
    %487 = vector.load %arg13[%c0_307, %c0_308] : memref<1x32xf32, #tpu.memory_space<vmem>>, vector<1x32xf32>
    %c0_309 = arith.constant 0 : index
    %c0_310 = arith.constant 0 : index
    %488 = vector.load %arg14[%c0_309, %c0_310] : memref<1x32xf32, #tpu.memory_space<vmem>>, vector<1x32xf32>
    %cst_311 = arith.constant dense<0.000000e+00> : vector<16xf32>
    %489 = vector.multi_reduction <add>, %486, %cst_311 [1] : vector<16x32xf32> to vector<16xf32>
    %490 = vector.shape_cast %489 : vector<16xf32> to vector<16x1xf32>
    %cst_312 = arith.constant 3.200000e+01 : f32
    %491 = vector.broadcast %cst_312 : f32 to vector<16x1xf32>
    %492 = arith.divf %490, %491 : vector<16x1xf32>
    %493 = vector.broadcast %492 : vector<16x1xf32> to vector<16x32xf32>
    %494 = arith.subf %486, %493 : vector<16x32xf32>
    %495 = arith.mulf %494, %494 : vector<16x32xf32>
    %cst_313 = arith.constant dense<0.000000e+00> : vector<16xf32>
    %496 = vector.multi_reduction <add>, %495, %cst_313 [1] : vector<16x32xf32> to vector<16xf32>
    %497 = vector.shape_cast %496 : vector<16xf32> to vector<16x1xf32>
    %cst_314 = arith.constant 3.200000e+01 : f32
    %498 = vector.broadcast %cst_314 : f32 to vector<16x1xf32>
    %499 = arith.divf %497, %498 : vector<16x1xf32>
    %cst_315 = arith.constant 9.99999974E-6 : f32
    %500 = vector.broadcast %cst_315 : f32 to vector<16x1xf32>
    %501 = arith.addf %499, %500 : vector<16x1xf32>
    %502 = math.rsqrt %501 : vector<16x1xf32>
    %503 = vector.broadcast %502 : vector<16x1xf32> to vector<16x32xf32>
    %504 = arith.mulf %494, %503 : vector<16x32xf32>
    %505 = vector.broadcast %487 : vector<1x32xf32> to vector<16x32xf32>
    %506 = arith.mulf %504, %505 : vector<16x32xf32>
    %507 = vector.broadcast %488 : vector<1x32xf32> to vector<16x32xf32>
    %508 = arith.addf %506, %507 : vector<16x32xf32>
    %c0_316 = arith.constant 0 : index
    %c0_317 = arith.constant 0 : index
    %509 = vector.load %arg15[%c0_316, %c0_317] : memref<16x32xf32, #tpu.memory_space<vmem>>, vector<16x32xf32>
    tpu.vector_store %arg15[%c0_316, %c0_317], %508 {strides = array<i32>} : memref<16x32xf32, #tpu.memory_space<vmem>>, vector<16x32xf32>,
    return
  }
}

module attributes {stable_mosaic.version = 11 : i64} {
  func.func @_decoder_kernel(%arg0: memref<16x32xf32, #tpu.memory_space<vmem>>, %arg1: memref<16x32xf32, #tpu.memory_space<vmem>>, %arg2: memref<24x32x8xf32, #tpu.memory_space<vmem>>, %arg3: memref<24x1x8xf32, #tpu.memory_space<vmem>>, %arg4: memref<8x8x32xf32, #tpu.memory_space<vmem>>, %arg5: memref<2x1x32xf32, #tpu.memory_space<vmem>>, %arg6: memref<24x32x8xf32, #tpu.memory_space<vmem>>, %arg7: memref<24x1x8xf32, #tpu.memory_space<vmem>>, %arg8: memref<8x8x32xf32, #tpu.memory_space<vmem>>, %arg9: memref<2x1x32xf32, #tpu.memory_space<vmem>>, %arg10: memref<2x32x64xf32, #tpu.memory_space<vmem>>, %arg11: memref<2x1x64xf32, #tpu.memory_space<vmem>>, %arg12: memref<2x64x32xf32, #tpu.memory_space<vmem>>, %arg13: memref<2x1x32xf32, #tpu.memory_space<vmem>>, %arg14: memref<2x1x32xf32, #tpu.memory_space<vmem>>, %arg15: memref<2x1x32xf32, #tpu.memory_space<vmem>>, %arg16: memref<2x1x32xf32, #tpu.memory_space<vmem>>, %arg17: memref<2x1x32xf32, #tpu.memory_space<vmem>>, %arg18: memref<2x1x32xf32, #tpu.memory_space<vmem>>, %arg19: memref<2x1x32xf32, #tpu.memory_space<vmem>>, %arg20: memref<1x32xf32, #tpu.memory_space<vmem>>, %arg21: memref<1x32xf32, #tpu.memory_space<vmem>>, %arg22: memref<50x32xf32, #tpu.memory_space<vmem>>, %arg23: memref<1x50xf32, #tpu.memory_space<vmem>>, %arg24: memref<16x50xf32, #tpu.memory_space<vmem>>) attributes {dimension_semantics = [], scalar_prefetch = 0 : i64, scratch_operands = 0 : i64, tpu.core_type = #tpu.core_type<tc>} {
    %c0 = arith.constant 0 : index
    %c0_0 = arith.constant 0 : index
    %0 = vector.load %arg0[%c0, %c0_0] : memref<16x32xf32, #tpu.memory_space<vmem>>, vector<16x32xf32>
    %c0_1 = arith.constant 0 : index
    %c0_2 = arith.constant 0 : index
    %1 = vector.load %arg1[%c0_1, %c0_2] : memref<16x32xf32, #tpu.memory_space<vmem>>, vector<16x32xf32>
    %2 = tpu.iota {dimensions = array<i32: 0>} : vector<16x16xi32>
    %3 = arith.sitofp %2 : vector<16x16xi32> to vector<16x16xf32>
    %4 = tpu.iota {dimensions = array<i32: 1>} : vector<16x16xi32>
    %5 = arith.sitofp %4 : vector<16x16xi32> to vector<16x16xf32>
    %cst = arith.constant 5.000000e-01 : f32
    %6 = vector.broadcast %cst : f32 to vector<16x16xf32>
    %7 = arith.addf %3, %6 : vector<16x16xf32>
    %cst_3 = arith.constant 5.000000e-01 : f32
    %8 = vector.broadcast %cst_3 : f32 to vector<16x16xf32>
    %9 = arith.mulf %7, %8 : vector<16x16xf32>
    %10 = math.floor %9 : vector<16x16xf32>
    %cst_4 = arith.constant 5.000000e-01 : f32
    %11 = vector.broadcast %cst_4 : f32 to vector<16x16xf32>
    %12 = arith.addf %5, %11 : vector<16x16xf32>
    %cst_5 = arith.constant 5.000000e-01 : f32
    %13 = vector.broadcast %cst_5 : f32 to vector<16x16xf32>
    %14 = arith.mulf %12, %13 : vector<16x16xf32>
    %15 = math.floor %14 : vector<16x16xf32>
    %cst_6 = arith.constant 2.000000e+00 : f32
    %16 = vector.broadcast %cst_6 : f32 to vector<16x16xf32>
    %17 = arith.mulf %10, %16 : vector<16x16xf32>
    %18 = arith.subf %3, %17 : vector<16x16xf32>
    %cst_7 = arith.constant 2.000000e+00 : f32
    %19 = vector.broadcast %cst_7 : f32 to vector<16x16xf32>
    %20 = arith.mulf %15, %19 : vector<16x16xf32>
    %21 = arith.subf %5, %20 : vector<16x16xf32>
    %22 = arith.cmpf oeq, %18, %21 : vector<16x16xf32>
    %23 = arith.cmpf oge, %10, %15 : vector<16x16xf32>
    %24 = arith.andi %22, %23 : vector<16x16xi1>
    %cst_8 = arith.constant 0.000000e+00 : f32
    %cst_9 = arith.constant -1.000000e+30 : f32
    %25 = vector.broadcast %cst_8 : f32 to vector<16x16xf32>
    %26 = vector.broadcast %cst_9 : f32 to vector<16x16xf32>
    %27 = arith.select %24, %25, %26 : vector<16x16xi1>, vector<16x16xf32>
    %28 = tpu.iota {dimensions = array<i32: 0>} : vector<16x16xi32>
    %29 = arith.sitofp %28 : vector<16x16xi32> to vector<16x16xf32>
    %30 = tpu.iota {dimensions = array<i32: 1>} : vector<16x16xi32>
    %31 = arith.sitofp %30 : vector<16x16xi32> to vector<16x16xf32>
    %cst_10 = arith.constant 5.000000e-01 : f32
    %32 = vector.broadcast %cst_10 : f32 to vector<16x16xf32>
    %33 = arith.addf %29, %32 : vector<16x16xf32>
    %cst_11 = arith.constant 5.000000e-01 : f32
    %34 = vector.broadcast %cst_11 : f32 to vector<16x16xf32>
    %35 = arith.mulf %33, %34 : vector<16x16xf32>
    %36 = math.floor %35 : vector<16x16xf32>
    %cst_12 = arith.constant 5.000000e-01 : f32
    %37 = vector.broadcast %cst_12 : f32 to vector<16x16xf32>
    %38 = arith.addf %31, %37 : vector<16x16xf32>
    %cst_13 = arith.constant 5.000000e-01 : f32
    %39 = vector.broadcast %cst_13 : f32 to vector<16x16xf32>
    %40 = arith.mulf %38, %39 : vector<16x16xf32>
    %41 = math.floor %40 : vector<16x16xf32>
    %cst_14 = arith.constant 2.000000e+00 : f32
    %42 = vector.broadcast %cst_14 : f32 to vector<16x16xf32>
    %43 = arith.mulf %36, %42 : vector<16x16xf32>
    %44 = arith.subf %29, %43 : vector<16x16xf32>
    %cst_15 = arith.constant 2.000000e+00 : f32
    %45 = vector.broadcast %cst_15 : f32 to vector<16x16xf32>
    %46 = arith.mulf %41, %45 : vector<16x16xf32>
    %47 = arith.subf %31, %46 : vector<16x16xf32>
    %48 = arith.cmpf oeq, %44, %47 : vector<16x16xf32>
    %cst_16 = arith.constant 0.000000e+00 : f32
    %cst_17 = arith.constant -1.000000e+30 : f32
    %49 = vector.broadcast %cst_16 : f32 to vector<16x16xf32>
    %50 = vector.broadcast %cst_17 : f32 to vector<16x16xf32>
    %51 = arith.select %48, %49, %50 : vector<16x16xi1>, vector<16x16xf32>
    %cst_18 = arith.constant 0.000000e+00 : f32
    %52 = vector.broadcast %cst_18 : f32 to vector<16x32xf32>
    %c0_19 = arith.constant 0 : index
    %c0_20 = arith.constant 0 : index
    %c0_21 = arith.constant 0 : index
    %53 = vector.load %arg2[%c0_19, %c0_20, %c0_21] : memref<24x32x8xf32, #tpu.memory_space<vmem>>, vector<1x32x8xf32>
    %54 = vector.shape_cast %53 : vector<1x32x8xf32> to vector<32x8xf32>
    %cst_22 = arith.constant dense<0.000000e+00> : vector<16x8xf32>
    %55 = tpu.matmul %0, %54, %cst_22 {dimension_numbers = #tpu.dot_dimension_numbers<[1], [0], [0], [1], [0, 0, 1, 1], [], []>} : vector<16x32xf32>, vector<32x8xf32>, vector<16x8xf32> -> vector<16x8xf32>
    %c0_23 = arith.constant 0 : index
    %c0_24 = arith.constant 0 : index
    %c0_25 = arith.constant 0 : index
    %56 = vector.load %arg3[%c0_23, %c0_24, %c0_25] : memref<24x1x8xf32, #tpu.memory_space<vmem>>, vector<1x1x8xf32>
    %57 = vector.shape_cast %56 : vector<1x1x8xf32> to vector<1x8xf32>
    %58 = vector.broadcast %57 : vector<1x8xf32> to vector<16x8xf32>
    %59 = arith.addf %55, %58 : vector<16x8xf32>
    %cst_26 = arith.constant 0.353553385 : f32
    %60 = vector.broadcast %cst_26 : f32 to vector<16x8xf32>
    %61 = arith.mulf %59, %60 : vector<16x8xf32>
    %c4 = arith.constant 4 : index
    %c0_27 = arith.constant 0 : index
    %c0_28 = arith.constant 0 : index
    %62 = vector.load %arg2[%c4, %c0_27, %c0_28] : memref<24x32x8xf32, #tpu.memory_space<vmem>>, vector<1x32x8xf32>
    %63 = vector.shape_cast %62 : vector<1x32x8xf32> to vector<32x8xf32>
    %cst_29 = arith.constant dense<0.000000e+00> : vector<16x8xf32>
    %64 = tpu.matmul %0, %63, %cst_29 {dimension_numbers = #tpu.dot_dimension_numbers<[1], [0], [0], [1], [0, 0, 1, 1], [], []>} : vector<16x32xf32>, vector<32x8xf32>, vector<16x8xf32> -> vector<16x8xf32>
    %c4_30 = arith.constant 4 : index
    %c0_31 = arith.constant 0 : index
    %c0_32 = arith.constant 0 : index
    %65 = vector.load %arg3[%c4_30, %c0_31, %c0_32] : memref<24x1x8xf32, #tpu.memory_space<vmem>>, vector<1x1x8xf32>
    %66 = vector.shape_cast %65 : vector<1x1x8xf32> to vector<1x8xf32>
    %67 = vector.broadcast %66 : vector<1x8xf32> to vector<16x8xf32>
    %68 = arith.addf %64, %67 : vector<16x8xf32>
    %c8 = arith.constant 8 : index
    %c0_33 = arith.constant 0 : index
    %c0_34 = arith.constant 0 : index
    %69 = vector.load %arg2[%c8, %c0_33, %c0_34] : memref<24x32x8xf32, #tpu.memory_space<vmem>>, vector<1x32x8xf32>
    %70 = vector.shape_cast %69 : vector<1x32x8xf32> to vector<32x8xf32>
    %cst_35 = arith.constant dense<0.000000e+00> : vector<16x8xf32>
    %71 = tpu.matmul %0, %70, %cst_35 {dimension_numbers = #tpu.dot_dimension_numbers<[1], [0], [0], [1], [0, 0, 1, 1], [], []>} : vector<16x32xf32>, vector<32x8xf32>, vector<16x8xf32> -> vector<16x8xf32>
    %c8_36 = arith.constant 8 : index
    %c0_37 = arith.constant 0 : index
    %c0_38 = arith.constant 0 : index
    %72 = vector.load %arg3[%c8_36, %c0_37, %c0_38] : memref<24x1x8xf32, #tpu.memory_space<vmem>>, vector<1x1x8xf32>
    %73 = vector.shape_cast %72 : vector<1x1x8xf32> to vector<1x8xf32>
    %74 = vector.broadcast %73 : vector<1x8xf32> to vector<16x8xf32>
    %75 = arith.addf %71, %74 : vector<16x8xf32>
    %cst_39 = arith.constant dense<0.000000e+00> : vector<16x16xf32>
    %76 = tpu.matmul %61, %68, %cst_39 {dimension_numbers = #tpu.dot_dimension_numbers<[1], [1], [0], [0], [0, 0, 1, 0], [], []>} : vector<16x8xf32>, vector<16x8xf32>, vector<16x16xf32> -> vector<16x16xf32>
    %77 = arith.addf %76, %27 : vector<16x16xf32>
    %cst_40 = arith.constant dense<0xFF800000> : vector<16xf32>
    %78 = vector.multi_reduction <maximumf>, %77, %cst_40 [1] : vector<16x16xf32> to vector<16xf32>
    %79 = vector.shape_cast %78 : vector<16xf32> to vector<16x1xf32>
    %80 = vector.broadcast %79 : vector<16x1xf32> to vector<16x16xf32>
    %81 = arith.subf %77, %80 : vector<16x16xf32>
    %82 = math.exp %81 : vector<16x16xf32>
    %cst_41 = arith.constant dense<0.000000e+00> : vector<16xf32>
    %83 = vector.multi_reduction <add>, %82, %cst_41 [1] : vector<16x16xf32> to vector<16xf32>
    %84 = vector.shape_cast %83 : vector<16xf32> to vector<16x1xf32>
    %85 = tpu.reciprocal %84 {approx = true} : vector<16x1xf32> -> vector<16x1xf32>
    %86 = vector.broadcast %85 : vector<16x1xf32> to vector<16x16xf32>
    %87 = arith.mulf %82, %86 : vector<16x16xf32>
    %cst_42 = arith.constant dense<0.000000e+00> : vector<16x8xf32>
    %88 = tpu.matmul %87, %75, %cst_42 {dimension_numbers = #tpu.dot_dimension_numbers<[1], [0], [0], [1], [0, 0, 1, 1], [], []>} : vector<16x16xf32>, vector<16x8xf32>, vector<16x8xf32> -> vector<16x8xf32>
    %c0_43 = arith.constant 0 : index
    %c0_44 = arith.constant 0 : index
    %c0_45 = arith.constant 0 : index
    %89 = vector.load %arg4[%c0_43, %c0_44, %c0_45] : memref<8x8x32xf32, #tpu.memory_space<vmem>>, vector<1x8x32xf32>
    %90 = vector.shape_cast %89 : vector<1x8x32xf32> to vector<8x32xf32>
    %cst_46 = arith.constant dense<0.000000e+00> : vector<16x32xf32>
    %91 = tpu.matmul %88, %90, %cst_46 {dimension_numbers = #tpu.dot_dimension_numbers<[1], [0], [0], [1], [0, 0, 1, 1], [], []>} : vector<16x8xf32>, vector<8x32xf32>, vector<16x32xf32> -> vector<16x32xf32>
    %92 = arith.addf %52, %91 : vector<16x32xf32>
    %c1 = arith.constant 1 : index
    %c0_47 = arith.constant 0 : index
    %c0_48 = arith.constant 0 : index
    %93 = vector.load %arg2[%c1, %c0_47, %c0_48] : memref<24x32x8xf32, #tpu.memory_space<vmem>>, vector<1x32x8xf32>
    %94 = vector.shape_cast %93 : vector<1x32x8xf32> to vector<32x8xf32>
    %cst_49 = arith.constant dense<0.000000e+00> : vector<16x8xf32>
    %95 = tpu.matmul %0, %94, %cst_49 {dimension_numbers = #tpu.dot_dimension_numbers<[1], [0], [0], [1], [0, 0, 1, 1], [], []>} : vector<16x32xf32>, vector<32x8xf32>, vector<16x8xf32> -> vector<16x8xf32>
    %c1_50 = arith.constant 1 : index
    %c0_51 = arith.constant 0 : index
    %c0_52 = arith.constant 0 : index
    %96 = vector.load %arg3[%c1_50, %c0_51, %c0_52] : memref<24x1x8xf32, #tpu.memory_space<vmem>>, vector<1x1x8xf32>
    %97 = vector.shape_cast %96 : vector<1x1x8xf32> to vector<1x8xf32>
    %98 = vector.broadcast %97 : vector<1x8xf32> to vector<16x8xf32>
    %99 = arith.addf %95, %98 : vector<16x8xf32>
    %cst_53 = arith.constant 0.353553385 : f32
    %100 = vector.broadcast %cst_53 : f32 to vector<16x8xf32>
    %101 = arith.mulf %99, %100 : vector<16x8xf32>
    %c5 = arith.constant 5 : index
    %c0_54 = arith.constant 0 : index
    %c0_55 = arith.constant 0 : index
    %102 = vector.load %arg2[%c5, %c0_54, %c0_55] : memref<24x32x8xf32, #tpu.memory_space<vmem>>, vector<1x32x8xf32>
    %103 = vector.shape_cast %102 : vector<1x32x8xf32> to vector<32x8xf32>
    %cst_56 = arith.constant dense<0.000000e+00> : vector<16x8xf32>
    %104 = tpu.matmul %0, %103, %cst_56 {dimension_numbers = #tpu.dot_dimension_numbers<[1], [0], [0], [1], [0, 0, 1, 1], [], []>} : vector<16x32xf32>, vector<32x8xf32>, vector<16x8xf32> -> vector<16x8xf32>
    %c5_57 = arith.constant 5 : index
    %c0_58 = arith.constant 0 : index
    %c0_59 = arith.constant 0 : index
    %105 = vector.load %arg3[%c5_57, %c0_58, %c0_59] : memref<24x1x8xf32, #tpu.memory_space<vmem>>, vector<1x1x8xf32>
    %106 = vector.shape_cast %105 : vector<1x1x8xf32> to vector<1x8xf32>
    %107 = vector.broadcast %106 : vector<1x8xf32> to vector<16x8xf32>
    %108 = arith.addf %104, %107 : vector<16x8xf32>
    %c9 = arith.constant 9 : index
    %c0_60 = arith.constant 0 : index
    %c0_61 = arith.constant 0 : index
    %109 = vector.load %arg2[%c9, %c0_60, %c0_61] : memref<24x32x8xf32, #tpu.memory_space<vmem>>, vector<1x32x8xf32>
    %110 = vector.shape_cast %109 : vector<1x32x8xf32> to vector<32x8xf32>
    %cst_62 = arith.constant dense<0.000000e+00> : vector<16x8xf32>
    %111 = tpu.matmul %0, %110, %cst_62 {dimension_numbers = #tpu.dot_dimension_numbers<[1], [0], [0], [1], [0, 0, 1, 1], [], []>} : vector<16x32xf32>, vector<32x8xf32>, vector<16x8xf32> -> vector<16x8xf32>
    %c9_63 = arith.constant 9 : index
    %c0_64 = arith.constant 0 : index
    %c0_65 = arith.constant 0 : index
    %112 = vector.load %arg3[%c9_63, %c0_64, %c0_65] : memref<24x1x8xf32, #tpu.memory_space<vmem>>, vector<1x1x8xf32>
    %113 = vector.shape_cast %112 : vector<1x1x8xf32> to vector<1x8xf32>
    %114 = vector.broadcast %113 : vector<1x8xf32> to vector<16x8xf32>
    %115 = arith.addf %111, %114 : vector<16x8xf32>
    %cst_66 = arith.constant dense<0.000000e+00> : vector<16x16xf32>
    %116 = tpu.matmul %101, %108, %cst_66 {dimension_numbers = #tpu.dot_dimension_numbers<[1], [1], [0], [0], [0, 0, 1, 0], [], []>} : vector<16x8xf32>, vector<16x8xf32>, vector<16x16xf32> -> vector<16x16xf32>
    %117 = arith.addf %116, %27 : vector<16x16xf32>
    %cst_67 = arith.constant dense<0xFF800000> : vector<16xf32>
    %118 = vector.multi_reduction <maximumf>, %117, %cst_67 [1] : vector<16x16xf32> to vector<16xf32>
    %119 = vector.shape_cast %118 : vector<16xf32> to vector<16x1xf32>
    %120 = vector.broadcast %119 : vector<16x1xf32> to vector<16x16xf32>
    %121 = arith.subf %117, %120 : vector<16x16xf32>
    %122 = math.exp %121 : vector<16x16xf32>
    %cst_68 = arith.constant dense<0.000000e+00> : vector<16xf32>
    %123 = vector.multi_reduction <add>, %122, %cst_68 [1] : vector<16x16xf32> to vector<16xf32>
    %124 = vector.shape_cast %123 : vector<16xf32> to vector<16x1xf32>
    %125 = tpu.reciprocal %124 {approx = true} : vector<16x1xf32> -> vector<16x1xf32>
    %126 = vector.broadcast %125 : vector<16x1xf32> to vector<16x16xf32>
    %127 = arith.mulf %122, %126 : vector<16x16xf32>
    %cst_69 = arith.constant dense<0.000000e+00> : vector<16x8xf32>
    %128 = tpu.matmul %127, %115, %cst_69 {dimension_numbers = #tpu.dot_dimension_numbers<[1], [0], [0], [1], [0, 0, 1, 1], [], []>} : vector<16x16xf32>, vector<16x8xf32>, vector<16x8xf32> -> vector<16x8xf32>
    %c1_70 = arith.constant 1 : index
    %c0_71 = arith.constant 0 : index
    %c0_72 = arith.constant 0 : index
    %129 = vector.load %arg4[%c1_70, %c0_71, %c0_72] : memref<8x8x32xf32, #tpu.memory_space<vmem>>, vector<1x8x32xf32>
    %130 = vector.shape_cast %129 : vector<1x8x32xf32> to vector<8x32xf32>
    %cst_73 = arith.constant dense<0.000000e+00> : vector<16x32xf32>
    %131 = tpu.matmul %128, %130, %cst_73 {dimension_numbers = #tpu.dot_dimension_numbers<[1], [0], [0], [1], [0, 0, 1, 1], [], []>} : vector<16x8xf32>, vector<8x32xf32>, vector<16x32xf32> -> vector<16x32xf32>
    %132 = arith.addf %92, %131 : vector<16x32xf32>
    %c2 = arith.constant 2 : index
    %c0_74 = arith.constant 0 : index
    %c0_75 = arith.constant 0 : index
    %133 = vector.load %arg2[%c2, %c0_74, %c0_75] : memref<24x32x8xf32, #tpu.memory_space<vmem>>, vector<1x32x8xf32>
    %134 = vector.shape_cast %133 : vector<1x32x8xf32> to vector<32x8xf32>
    %cst_76 = arith.constant dense<0.000000e+00> : vector<16x8xf32>
    %135 = tpu.matmul %0, %134, %cst_76 {dimension_numbers = #tpu.dot_dimension_numbers<[1], [0], [0], [1], [0, 0, 1, 1], [], []>} : vector<16x32xf32>, vector<32x8xf32>, vector<16x8xf32> -> vector<16x8xf32>
    %c2_77 = arith.constant 2 : index
    %c0_78 = arith.constant 0 : index
    %c0_79 = arith.constant 0 : index
    %136 = vector.load %arg3[%c2_77, %c0_78, %c0_79] : memref<24x1x8xf32, #tpu.memory_space<vmem>>, vector<1x1x8xf32>
    %137 = vector.shape_cast %136 : vector<1x1x8xf32> to vector<1x8xf32>
    %138 = vector.broadcast %137 : vector<1x8xf32> to vector<16x8xf32>
    %139 = arith.addf %135, %138 : vector<16x8xf32>
    %cst_80 = arith.constant 0.353553385 : f32
    %140 = vector.broadcast %cst_80 : f32 to vector<16x8xf32>
    %141 = arith.mulf %139, %140 : vector<16x8xf32>
    %c6 = arith.constant 6 : index
    %c0_81 = arith.constant 0 : index
    %c0_82 = arith.constant 0 : index
    %142 = vector.load %arg2[%c6, %c0_81, %c0_82] : memref<24x32x8xf32, #tpu.memory_space<vmem>>, vector<1x32x8xf32>
    %143 = vector.shape_cast %142 : vector<1x32x8xf32> to vector<32x8xf32>
    %cst_83 = arith.constant dense<0.000000e+00> : vector<16x8xf32>
    %144 = tpu.matmul %0, %143, %cst_83 {dimension_numbers = #tpu.dot_dimension_numbers<[1], [0], [0], [1], [0, 0, 1, 1], [], []>} : vector<16x32xf32>, vector<32x8xf32>, vector<16x8xf32> -> vector<16x8xf32>
    %c6_84 = arith.constant 6 : index
    %c0_85 = arith.constant 0 : index
    %c0_86 = arith.constant 0 : index
    %145 = vector.load %arg3[%c6_84, %c0_85, %c0_86] : memref<24x1x8xf32, #tpu.memory_space<vmem>>, vector<1x1x8xf32>
    %146 = vector.shape_cast %145 : vector<1x1x8xf32> to vector<1x8xf32>
    %147 = vector.broadcast %146 : vector<1x8xf32> to vector<16x8xf32>
    %148 = arith.addf %144, %147 : vector<16x8xf32>
    %c10 = arith.constant 10 : index
    %c0_87 = arith.constant 0 : index
    %c0_88 = arith.constant 0 : index
    %149 = vector.load %arg2[%c10, %c0_87, %c0_88] : memref<24x32x8xf32, #tpu.memory_space<vmem>>, vector<1x32x8xf32>
    %150 = vector.shape_cast %149 : vector<1x32x8xf32> to vector<32x8xf32>
    %cst_89 = arith.constant dense<0.000000e+00> : vector<16x8xf32>
    %151 = tpu.matmul %0, %150, %cst_89 {dimension_numbers = #tpu.dot_dimension_numbers<[1], [0], [0], [1], [0, 0, 1, 1], [], []>} : vector<16x32xf32>, vector<32x8xf32>, vector<16x8xf32> -> vector<16x8xf32>
    %c10_90 = arith.constant 10 : index
    %c0_91 = arith.constant 0 : index
    %c0_92 = arith.constant 0 : index
    %152 = vector.load %arg3[%c10_90, %c0_91, %c0_92] : memref<24x1x8xf32, #tpu.memory_space<vmem>>, vector<1x1x8xf32>
    %153 = vector.shape_cast %152 : vector<1x1x8xf32> to vector<1x8xf32>
    %154 = vector.broadcast %153 : vector<1x8xf32> to vector<16x8xf32>
    %155 = arith.addf %151, %154 : vector<16x8xf32>
    %cst_93 = arith.constant dense<0.000000e+00> : vector<16x16xf32>
    %156 = tpu.matmul %141, %148, %cst_93 {dimension_numbers = #tpu.dot_dimension_numbers<[1], [1], [0], [0], [0, 0, 1, 0], [], []>} : vector<16x8xf32>, vector<16x8xf32>, vector<16x16xf32> -> vector<16x16xf32>
    %157 = arith.addf %156, %27 : vector<16x16xf32>
    %cst_94 = arith.constant dense<0xFF800000> : vector<16xf32>
    %158 = vector.multi_reduction <maximumf>, %157, %cst_94 [1] : vector<16x16xf32> to vector<16xf32>
    %159 = vector.shape_cast %158 : vector<16xf32> to vector<16x1xf32>
    %160 = vector.broadcast %159 : vector<16x1xf32> to vector<16x16xf32>
    %161 = arith.subf %157, %160 : vector<16x16xf32>
    %162 = math.exp %161 : vector<16x16xf32>
    %cst_95 = arith.constant dense<0.000000e+00> : vector<16xf32>
    %163 = vector.multi_reduction <add>, %162, %cst_95 [1] : vector<16x16xf32> to vector<16xf32>
    %164 = vector.shape_cast %163 : vector<16xf32> to vector<16x1xf32>
    %165 = tpu.reciprocal %164 {approx = true} : vector<16x1xf32> -> vector<16x1xf32>
    %166 = vector.broadcast %165 : vector<16x1xf32> to vector<16x16xf32>
    %167 = arith.mulf %162, %166 : vector<16x16xf32>
    %cst_96 = arith.constant dense<0.000000e+00> : vector<16x8xf32>
    %168 = tpu.matmul %167, %155, %cst_96 {dimension_numbers = #tpu.dot_dimension_numbers<[1], [0], [0], [1], [0, 0, 1, 1], [], []>} : vector<16x16xf32>, vector<16x8xf32>, vector<16x8xf32> -> vector<16x8xf32>
    %c2_97 = arith.constant 2 : index
    %c0_98 = arith.constant 0 : index
    %c0_99 = arith.constant 0 : index
    %169 = vector.load %arg4[%c2_97, %c0_98, %c0_99] : memref<8x8x32xf32, #tpu.memory_space<vmem>>, vector<1x8x32xf32>
    %170 = vector.shape_cast %169 : vector<1x8x32xf32> to vector<8x32xf32>
    %cst_100 = arith.constant dense<0.000000e+00> : vector<16x32xf32>
    %171 = tpu.matmul %168, %170, %cst_100 {dimension_numbers = #tpu.dot_dimension_numbers<[1], [0], [0], [1], [0, 0, 1, 1], [], []>} : vector<16x8xf32>, vector<8x32xf32>, vector<16x32xf32> -> vector<16x32xf32>
    %172 = arith.addf %132, %171 : vector<16x32xf32>
    %c3 = arith.constant 3 : index
    %c0_101 = arith.constant 0 : index
    %c0_102 = arith.constant 0 : index
    %173 = vector.load %arg2[%c3, %c0_101, %c0_102] : memref<24x32x8xf32, #tpu.memory_space<vmem>>, vector<1x32x8xf32>
    %174 = vector.shape_cast %173 : vector<1x32x8xf32> to vector<32x8xf32>
    %cst_103 = arith.constant dense<0.000000e+00> : vector<16x8xf32>
    %175 = tpu.matmul %0, %174, %cst_103 {dimension_numbers = #tpu.dot_dimension_numbers<[1], [0], [0], [1], [0, 0, 1, 1], [], []>} : vector<16x32xf32>, vector<32x8xf32>, vector<16x8xf32> -> vector<16x8xf32>
    %c3_104 = arith.constant 3 : index
    %c0_105 = arith.constant 0 : index
    %c0_106 = arith.constant 0 : index
    %176 = vector.load %arg3[%c3_104, %c0_105, %c0_106] : memref<24x1x8xf32, #tpu.memory_space<vmem>>, vector<1x1x8xf32>
    %177 = vector.shape_cast %176 : vector<1x1x8xf32> to vector<1x8xf32>
    %178 = vector.broadcast %177 : vector<1x8xf32> to vector<16x8xf32>
    %179 = arith.addf %175, %178 : vector<16x8xf32>
    %cst_107 = arith.constant 0.353553385 : f32
    %180 = vector.broadcast %cst_107 : f32 to vector<16x8xf32>
    %181 = arith.mulf %179, %180 : vector<16x8xf32>
    %c7 = arith.constant 7 : index
    %c0_108 = arith.constant 0 : index
    %c0_109 = arith.constant 0 : index
    %182 = vector.load %arg2[%c7, %c0_108, %c0_109] : memref<24x32x8xf32, #tpu.memory_space<vmem>>, vector<1x32x8xf32>
    %183 = vector.shape_cast %182 : vector<1x32x8xf32> to vector<32x8xf32>
    %cst_110 = arith.constant dense<0.000000e+00> : vector<16x8xf32>
    %184 = tpu.matmul %0, %183, %cst_110 {dimension_numbers = #tpu.dot_dimension_numbers<[1], [0], [0], [1], [0, 0, 1, 1], [], []>} : vector<16x32xf32>, vector<32x8xf32>, vector<16x8xf32> -> vector<16x8xf32>
    %c7_111 = arith.constant 7 : index
    %c0_112 = arith.constant 0 : index
    %c0_113 = arith.constant 0 : index
    %185 = vector.load %arg3[%c7_111, %c0_112, %c0_113] : memref<24x1x8xf32, #tpu.memory_space<vmem>>, vector<1x1x8xf32>
    %186 = vector.shape_cast %185 : vector<1x1x8xf32> to vector<1x8xf32>
    %187 = vector.broadcast %186 : vector<1x8xf32> to vector<16x8xf32>
    %188 = arith.addf %184, %187 : vector<16x8xf32>
    %c11 = arith.constant 11 : index
    %c0_114 = arith.constant 0 : index
    %c0_115 = arith.constant 0 : index
    %189 = vector.load %arg2[%c11, %c0_114, %c0_115] : memref<24x32x8xf32, #tpu.memory_space<vmem>>, vector<1x32x8xf32>
    %190 = vector.shape_cast %189 : vector<1x32x8xf32> to vector<32x8xf32>
    %cst_116 = arith.constant dense<0.000000e+00> : vector<16x8xf32>
    %191 = tpu.matmul %0, %190, %cst_116 {dimension_numbers = #tpu.dot_dimension_numbers<[1], [0], [0], [1], [0, 0, 1, 1], [], []>} : vector<16x32xf32>, vector<32x8xf32>, vector<16x8xf32> -> vector<16x8xf32>
    %c11_117 = arith.constant 11 : index
    %c0_118 = arith.constant 0 : index
    %c0_119 = arith.constant 0 : index
    %192 = vector.load %arg3[%c11_117, %c0_118, %c0_119] : memref<24x1x8xf32, #tpu.memory_space<vmem>>, vector<1x1x8xf32>
    %193 = vector.shape_cast %192 : vector<1x1x8xf32> to vector<1x8xf32>
    %194 = vector.broadcast %193 : vector<1x8xf32> to vector<16x8xf32>
    %195 = arith.addf %191, %194 : vector<16x8xf32>
    %cst_120 = arith.constant dense<0.000000e+00> : vector<16x16xf32>
    %196 = tpu.matmul %181, %188, %cst_120 {dimension_numbers = #tpu.dot_dimension_numbers<[1], [1], [0], [0], [0, 0, 1, 0], [], []>} : vector<16x8xf32>, vector<16x8xf32>, vector<16x16xf32> -> vector<16x16xf32>
    %197 = arith.addf %196, %27 : vector<16x16xf32>
    %cst_121 = arith.constant dense<0xFF800000> : vector<16xf32>
    %198 = vector.multi_reduction <maximumf>, %197, %cst_121 [1] : vector<16x16xf32> to vector<16xf32>
    %199 = vector.shape_cast %198 : vector<16xf32> to vector<16x1xf32>
    %200 = vector.broadcast %199 : vector<16x1xf32> to vector<16x16xf32>
    %201 = arith.subf %197, %200 : vector<16x16xf32>
    %202 = math.exp %201 : vector<16x16xf32>
    %cst_122 = arith.constant dense<0.000000e+00> : vector<16xf32>
    %203 = vector.multi_reduction <add>, %202, %cst_122 [1] : vector<16x16xf32> to vector<16xf32>
    %204 = vector.shape_cast %203 : vector<16xf32> to vector<16x1xf32>
    %205 = tpu.reciprocal %204 {approx = true} : vector<16x1xf32> -> vector<16x1xf32>
    %206 = vector.broadcast %205 : vector<16x1xf32> to vector<16x16xf32>
    %207 = arith.mulf %202, %206 : vector<16x16xf32>
    %cst_123 = arith.constant dense<0.000000e+00> : vector<16x8xf32>
    %208 = tpu.matmul %207, %195, %cst_123 {dimension_numbers = #tpu.dot_dimension_numbers<[1], [0], [0], [1], [0, 0, 1, 1], [], []>} : vector<16x16xf32>, vector<16x8xf32>, vector<16x8xf32> -> vector<16x8xf32>
    %c3_124 = arith.constant 3 : index
    %c0_125 = arith.constant 0 : index
    %c0_126 = arith.constant 0 : index
    %209 = vector.load %arg4[%c3_124, %c0_125, %c0_126] : memref<8x8x32xf32, #tpu.memory_space<vmem>>, vector<1x8x32xf32>
    %210 = vector.shape_cast %209 : vector<1x8x32xf32> to vector<8x32xf32>
    %cst_127 = arith.constant dense<0.000000e+00> : vector<16x32xf32>
    %211 = tpu.matmul %208, %210, %cst_127 {dimension_numbers = #tpu.dot_dimension_numbers<[1], [0], [0], [1], [0, 0, 1, 1], [], []>} : vector<16x8xf32>, vector<8x32xf32>, vector<16x32xf32> -> vector<16x32xf32>
    %212 = arith.addf %172, %211 : vector<16x32xf32>
    %c0_128 = arith.constant 0 : index
    %c0_129 = arith.constant 0 : index
    %c0_130 = arith.constant 0 : index
    %213 = vector.load %arg5[%c0_128, %c0_129, %c0_130] : memref<2x1x32xf32, #tpu.memory_space<vmem>>, vector<1x1x32xf32>
    %214 = vector.shape_cast %213 : vector<1x1x32xf32> to vector<1x32xf32>
    %215 = vector.broadcast %214 : vector<1x32xf32> to vector<16x32xf32>
    %216 = arith.addf %212, %215 : vector<16x32xf32>
    %217 = arith.addf %0, %216 : vector<16x32xf32>
    %c0_131 = arith.constant 0 : index
    %c0_132 = arith.constant 0 : index
    %c0_133 = arith.constant 0 : index
    %218 = vector.load %arg14[%c0_131, %c0_132, %c0_133] : memref<2x1x32xf32, #tpu.memory_space<vmem>>, vector<1x1x32xf32>
    %219 = vector.shape_cast %218 : vector<1x1x32xf32> to vector<1x32xf32>
    %c0_134 = arith.constant 0 : index
    %c0_135 = arith.constant 0 : index
    %c0_136 = arith.constant 0 : index
    %220 = vector.load %arg15[%c0_134, %c0_135, %c0_136] : memref<2x1x32xf32, #tpu.memory_space<vmem>>, vector<1x1x32xf32>
    %221 = vector.shape_cast %220 : vector<1x1x32xf32> to vector<1x32xf32>
    %cst_137 = arith.constant dense<0.000000e+00> : vector<16xf32>
    %222 = vector.multi_reduction <add>, %217, %cst_137 [1] : vector<16x32xf32> to vector<16xf32>
    %223 = vector.shape_cast %222 : vector<16xf32> to vector<16x1xf32>
    %cst_138 = arith.constant 3.200000e+01 : f32
    %224 = vector.broadcast %cst_138 : f32 to vector<16x1xf32>
    %225 = arith.divf %223, %224 : vector<16x1xf32>
    %226 = vector.broadcast %225 : vector<16x1xf32> to vector<16x32xf32>
    %227 = arith.subf %217, %226 : vector<16x32xf32>
    %228 = arith.mulf %227, %227 : vector<16x32xf32>
    %cst_139 = arith.constant dense<0.000000e+00> : vector<16xf32>
    %229 = vector.multi_reduction <add>, %228, %cst_139 [1] : vector<16x32xf32> to vector<16xf32>
    %230 = vector.shape_cast %229 : vector<16xf32> to vector<16x1xf32>
    %cst_140 = arith.constant 3.200000e+01 : f32
    %231 = vector.broadcast %cst_140 : f32 to vector<16x1xf32>
    %232 = arith.divf %230, %231 : vector<16x1xf32>
    %cst_141 = arith.constant 9.99999974E-6 : f32
    %233 = vector.broadcast %cst_141 : f32 to vector<16x1xf32>
    %234 = arith.addf %232, %233 : vector<16x1xf32>
    %235 = math.rsqrt %234 : vector<16x1xf32>
    %236 = vector.broadcast %235 : vector<16x1xf32> to vector<16x32xf32>
    %237 = arith.mulf %227, %236 : vector<16x32xf32>
    %238 = vector.broadcast %219 : vector<1x32xf32> to vector<16x32xf32>
    %239 = arith.mulf %237, %238 : vector<16x32xf32>
    %240 = vector.broadcast %221 : vector<1x32xf32> to vector<16x32xf32>
    %241 = arith.addf %239, %240 : vector<16x32xf32>
    %cst_142 = arith.constant 0.000000e+00 : f32
    %242 = vector.broadcast %cst_142 : f32 to vector<16x32xf32>
    %c0_143 = arith.constant 0 : index
    %c0_144 = arith.constant 0 : index
    %c0_145 = arith.constant 0 : index
    %243 = vector.load %arg6[%c0_143, %c0_144, %c0_145] : memref<24x32x8xf32, #tpu.memory_space<vmem>>, vector<1x32x8xf32>
    %244 = vector.shape_cast %243 : vector<1x32x8xf32> to vector<32x8xf32>
    %cst_146 = arith.constant dense<0.000000e+00> : vector<16x8xf32>
    %245 = tpu.matmul %241, %244, %cst_146 {dimension_numbers = #tpu.dot_dimension_numbers<[1], [0], [0], [1], [0, 0, 1, 1], [], []>} : vector<16x32xf32>, vector<32x8xf32>, vector<16x8xf32> -> vector<16x8xf32>
    %c0_147 = arith.constant 0 : index
    %c0_148 = arith.constant 0 : index
    %c0_149 = arith.constant 0 : index
    %246 = vector.load %arg7[%c0_147, %c0_148, %c0_149] : memref<24x1x8xf32, #tpu.memory_space<vmem>>, vector<1x1x8xf32>
    %247 = vector.shape_cast %246 : vector<1x1x8xf32> to vector<1x8xf32>
    %248 = vector.broadcast %247 : vector<1x8xf32> to vector<16x8xf32>
    %249 = arith.addf %245, %248 : vector<16x8xf32>
    %cst_150 = arith.constant 0.353553385 : f32
    %250 = vector.broadcast %cst_150 : f32 to vector<16x8xf32>
    %251 = arith.mulf %249, %250 : vector<16x8xf32>
    %c4_151 = arith.constant 4 : index
    %c0_152 = arith.constant 0 : index
    %c0_153 = arith.constant 0 : index
    %252 = vector.load %arg6[%c4_151, %c0_152, %c0_153] : memref<24x32x8xf32, #tpu.memory_space<vmem>>, vector<1x32x8xf32>
    %253 = vector.shape_cast %252 : vector<1x32x8xf32> to vector<32x8xf32>
    %cst_154 = arith.constant dense<0.000000e+00> : vector<16x8xf32>
    %254 = tpu.matmul %1, %253, %cst_154 {dimension_numbers = #tpu.dot_dimension_numbers<[1], [0], [0], [1], [0, 0, 1, 1], [], []>} : vector<16x32xf32>, vector<32x8xf32>, vector<16x8xf32> -> vector<16x8xf32>
    %c4_155 = arith.constant 4 : index
    %c0_156 = arith.constant 0 : index
    %c0_157 = arith.constant 0 : index
    %255 = vector.load %arg7[%c4_155, %c0_156, %c0_157] : memref<24x1x8xf32, #tpu.memory_space<vmem>>, vector<1x1x8xf32>
    %256 = vector.shape_cast %255 : vector<1x1x8xf32> to vector<1x8xf32>
    %257 = vector.broadcast %256 : vector<1x8xf32> to vector<16x8xf32>
    %258 = arith.addf %254, %257 : vector<16x8xf32>
    %c8_158 = arith.constant 8 : index
    %c0_159 = arith.constant 0 : index
    %c0_160 = arith.constant 0 : index
    %259 = vector.load %arg6[%c8_158, %c0_159, %c0_160] : memref<24x32x8xf32, #tpu.memory_space<vmem>>, vector<1x32x8xf32>
    %260 = vector.shape_cast %259 : vector<1x32x8xf32> to vector<32x8xf32>
    %cst_161 = arith.constant dense<0.000000e+00> : vector<16x8xf32>
    %261 = tpu.matmul %1, %260, %cst_161 {dimension_numbers = #tpu.dot_dimension_numbers<[1], [0], [0], [1], [0, 0, 1, 1], [], []>} : vector<16x32xf32>, vector<32x8xf32>, vector<16x8xf32> -> vector<16x8xf32>
    %c8_162 = arith.constant 8 : index
    %c0_163 = arith.constant 0 : index
    %c0_164 = arith.constant 0 : index
    %262 = vector.load %arg7[%c8_162, %c0_163, %c0_164] : memref<24x1x8xf32, #tpu.memory_space<vmem>>, vector<1x1x8xf32>
    %263 = vector.shape_cast %262 : vector<1x1x8xf32> to vector<1x8xf32>
    %264 = vector.broadcast %263 : vector<1x8xf32> to vector<16x8xf32>
    %265 = arith.addf %261, %264 : vector<16x8xf32>
    %cst_165 = arith.constant dense<0.000000e+00> : vector<16x16xf32>
    %266 = tpu.matmul %251, %258, %cst_165 {dimension_numbers = #tpu.dot_dimension_numbers<[1], [1], [0], [0], [0, 0, 1, 0], [], []>} : vector<16x8xf32>, vector<16x8xf32>, vector<16x16xf32> -> vector<16x16xf32>
    %267 = arith.addf %266, %51 : vector<16x16xf32>
    %cst_166 = arith.constant dense<0xFF800000> : vector<16xf32>
    %268 = vector.multi_reduction <maximumf>, %267, %cst_166 [1] : vector<16x16xf32> to vector<16xf32>
    %269 = vector.shape_cast %268 : vector<16xf32> to vector<16x1xf32>
    %270 = vector.broadcast %269 : vector<16x1xf32> to vector<16x16xf32>
    %271 = arith.subf %267, %270 : vector<16x16xf32>
    %272 = math.exp %271 : vector<16x16xf32>
    %cst_167 = arith.constant dense<0.000000e+00> : vector<16xf32>
    %273 = vector.multi_reduction <add>, %272, %cst_167 [1] : vector<16x16xf32> to vector<16xf32>
    %274 = vector.shape_cast %273 : vector<16xf32> to vector<16x1xf32>
    %275 = tpu.reciprocal %274 {approx = true} : vector<16x1xf32> -> vector<16x1xf32>
    %276 = vector.broadcast %275 : vector<16x1xf32> to vector<16x16xf32>
    %277 = arith.mulf %272, %276 : vector<16x16xf32>
    %cst_168 = arith.constant dense<0.000000e+00> : vector<16x8xf32>
    %278 = tpu.matmul %277, %265, %cst_168 {dimension_numbers = #tpu.dot_dimension_numbers<[1], [0], [0], [1], [0, 0, 1, 1], [], []>} : vector<16x16xf32>, vector<16x8xf32>, vector<16x8xf32> -> vector<16x8xf32>
    %c0_169 = arith.constant 0 : index
    %c0_170 = arith.constant 0 : index
    %c0_171 = arith.constant 0 : index
    %279 = vector.load %arg8[%c0_169, %c0_170, %c0_171] : memref<8x8x32xf32, #tpu.memory_space<vmem>>, vector<1x8x32xf32>
    %280 = vector.shape_cast %279 : vector<1x8x32xf32> to vector<8x32xf32>
    %cst_172 = arith.constant dense<0.000000e+00> : vector<16x32xf32>
    %281 = tpu.matmul %278, %280, %cst_172 {dimension_numbers = #tpu.dot_dimension_numbers<[1], [0], [0], [1], [0, 0, 1, 1], [], []>} : vector<16x8xf32>, vector<8x32xf32>, vector<16x32xf32> -> vector<16x32xf32>
    %282 = arith.addf %242, %281 : vector<16x32xf32>
    %c1_173 = arith.constant 1 : index
    %c0_174 = arith.constant 0 : index
    %c0_175 = arith.constant 0 : index
    %283 = vector.load %arg6[%c1_173, %c0_174, %c0_175] : memref<24x32x8xf32, #tpu.memory_space<vmem>>, vector<1x32x8xf32>
    %284 = vector.shape_cast %283 : vector<1x32x8xf32> to vector<32x8xf32>
    %cst_176 = arith.constant dense<0.000000e+00> : vector<16x8xf32>
    %285 = tpu.matmul %241, %284, %cst_176 {dimension_numbers = #tpu.dot_dimension_numbers<[1], [0], [0], [1], [0, 0, 1, 1], [], []>} : vector<16x32xf32>, vector<32x8xf32>, vector<16x8xf32> -> vector<16x8xf32>
    %c1_177 = arith.constant 1 : index
    %c0_178 = arith.constant 0 : index
    %c0_179 = arith.constant 0 : index
    %286 = vector.load %arg7[%c1_177, %c0_178, %c0_179] : memref<24x1x8xf32, #tpu.memory_space<vmem>>, vector<1x1x8xf32>
    %287 = vector.shape_cast %286 : vector<1x1x8xf32> to vector<1x8xf32>
    %288 = vector.broadcast %287 : vector<1x8xf32> to vector<16x8xf32>
    %289 = arith.addf %285, %288 : vector<16x8xf32>
    %cst_180 = arith.constant 0.353553385 : f32
    %290 = vector.broadcast %cst_180 : f32 to vector<16x8xf32>
    %291 = arith.mulf %289, %290 : vector<16x8xf32>
    %c5_181 = arith.constant 5 : index
    %c0_182 = arith.constant 0 : index
    %c0_183 = arith.constant 0 : index
    %292 = vector.load %arg6[%c5_181, %c0_182, %c0_183] : memref<24x32x8xf32, #tpu.memory_space<vmem>>, vector<1x32x8xf32>
    %293 = vector.shape_cast %292 : vector<1x32x8xf32> to vector<32x8xf32>
    %cst_184 = arith.constant dense<0.000000e+00> : vector<16x8xf32>
    %294 = tpu.matmul %1, %293, %cst_184 {dimension_numbers = #tpu.dot_dimension_numbers<[1], [0], [0], [1], [0, 0, 1, 1], [], []>} : vector<16x32xf32>, vector<32x8xf32>, vector<16x8xf32> -> vector<16x8xf32>
    %c5_185 = arith.constant 5 : index
    %c0_186 = arith.constant 0 : index
    %c0_187 = arith.constant 0 : index
    %295 = vector.load %arg7[%c5_185, %c0_186, %c0_187] : memref<24x1x8xf32, #tpu.memory_space<vmem>>, vector<1x1x8xf32>
    %296 = vector.shape_cast %295 : vector<1x1x8xf32> to vector<1x8xf32>
    %297 = vector.broadcast %296 : vector<1x8xf32> to vector<16x8xf32>
    %298 = arith.addf %294, %297 : vector<16x8xf32>
    %c9_188 = arith.constant 9 : index
    %c0_189 = arith.constant 0 : index
    %c0_190 = arith.constant 0 : index
    %299 = vector.load %arg6[%c9_188, %c0_189, %c0_190] : memref<24x32x8xf32, #tpu.memory_space<vmem>>, vector<1x32x8xf32>
    %300 = vector.shape_cast %299 : vector<1x32x8xf32> to vector<32x8xf32>
    %cst_191 = arith.constant dense<0.000000e+00> : vector<16x8xf32>
    %301 = tpu.matmul %1, %300, %cst_191 {dimension_numbers = #tpu.dot_dimension_numbers<[1], [0], [0], [1], [0, 0, 1, 1], [], []>} : vector<16x32xf32>, vector<32x8xf32>, vector<16x8xf32> -> vector<16x8xf32>
    %c9_192 = arith.constant 9 : index
    %c0_193 = arith.constant 0 : index
    %c0_194 = arith.constant 0 : index
    %302 = vector.load %arg7[%c9_192, %c0_193, %c0_194] : memref<24x1x8xf32, #tpu.memory_space<vmem>>, vector<1x1x8xf32>
    %303 = vector.shape_cast %302 : vector<1x1x8xf32> to vector<1x8xf32>
    %304 = vector.broadcast %303 : vector<1x8xf32> to vector<16x8xf32>
    %305 = arith.addf %301, %304 : vector<16x8xf32>
    %cst_195 = arith.constant dense<0.000000e+00> : vector<16x16xf32>
    %306 = tpu.matmul %291, %298, %cst_195 {dimension_numbers = #tpu.dot_dimension_numbers<[1], [1], [0], [0], [0, 0, 1, 0], [], []>} : vector<16x8xf32>, vector<16x8xf32>, vector<16x16xf32> -> vector<16x16xf32>
    %307 = arith.addf %306, %51 : vector<16x16xf32>
    %cst_196 = arith.constant dense<0xFF800000> : vector<16xf32>
    %308 = vector.multi_reduction <maximumf>, %307, %cst_196 [1] : vector<16x16xf32> to vector<16xf32>
    %309 = vector.shape_cast %308 : vector<16xf32> to vector<16x1xf32>
    %310 = vector.broadcast %309 : vector<16x1xf32> to vector<16x16xf32>
    %311 = arith.subf %307, %310 : vector<16x16xf32>
    %312 = math.exp %311 : vector<16x16xf32>
    %cst_197 = arith.constant dense<0.000000e+00> : vector<16xf32>
    %313 = vector.multi_reduction <add>, %312, %cst_197 [1] : vector<16x16xf32> to vector<16xf32>
    %314 = vector.shape_cast %313 : vector<16xf32> to vector<16x1xf32>
    %315 = tpu.reciprocal %314 {approx = true} : vector<16x1xf32> -> vector<16x1xf32>
    %316 = vector.broadcast %315 : vector<16x1xf32> to vector<16x16xf32>
    %317 = arith.mulf %312, %316 : vector<16x16xf32>
    %cst_198 = arith.constant dense<0.000000e+00> : vector<16x8xf32>
    %318 = tpu.matmul %317, %305, %cst_198 {dimension_numbers = #tpu.dot_dimension_numbers<[1], [0], [0], [1], [0, 0, 1, 1], [], []>} : vector<16x16xf32>, vector<16x8xf32>, vector<16x8xf32> -> vector<16x8xf32>
    %c1_199 = arith.constant 1 : index
    %c0_200 = arith.constant 0 : index
    %c0_201 = arith.constant 0 : index
    %319 = vector.load %arg8[%c1_199, %c0_200, %c0_201] : memref<8x8x32xf32, #tpu.memory_space<vmem>>, vector<1x8x32xf32>
    %320 = vector.shape_cast %319 : vector<1x8x32xf32> to vector<8x32xf32>
    %cst_202 = arith.constant dense<0.000000e+00> : vector<16x32xf32>
    %321 = tpu.matmul %318, %320, %cst_202 {dimension_numbers = #tpu.dot_dimension_numbers<[1], [0], [0], [1], [0, 0, 1, 1], [], []>} : vector<16x8xf32>, vector<8x32xf32>, vector<16x32xf32> -> vector<16x32xf32>
    %322 = arith.addf %282, %321 : vector<16x32xf32>
    %c2_203 = arith.constant 2 : index
    %c0_204 = arith.constant 0 : index
    %c0_205 = arith.constant 0 : index
    %323 = vector.load %arg6[%c2_203, %c0_204, %c0_205] : memref<24x32x8xf32, #tpu.memory_space<vmem>>, vector<1x32x8xf32>
    %324 = vector.shape_cast %323 : vector<1x32x8xf32> to vector<32x8xf32>
    %cst_206 = arith.constant dense<0.000000e+00> : vector<16x8xf32>
    %325 = tpu.matmul %241, %324, %cst_206 {dimension_numbers = #tpu.dot_dimension_numbers<[1], [0], [0], [1], [0, 0, 1, 1], [], []>} : vector<16x32xf32>, vector<32x8xf32>, vector<16x8xf32> -> vector<16x8xf32>
    %c2_207 = arith.constant 2 : index
    %c0_208 = arith.constant 0 : index
    %c0_209 = arith.constant 0 : index
    %326 = vector.load %arg7[%c2_207, %c0_208, %c0_209] : memref<24x1x8xf32, #tpu.memory_space<vmem>>, vector<1x1x8xf32>
    %327 = vector.shape_cast %326 : vector<1x1x8xf32> to vector<1x8xf32>
    %328 = vector.broadcast %327 : vector<1x8xf32> to vector<16x8xf32>
    %329 = arith.addf %325, %328 : vector<16x8xf32>
    %cst_210 = arith.constant 0.353553385 : f32
    %330 = vector.broadcast %cst_210 : f32 to vector<16x8xf32>
    %331 = arith.mulf %329, %330 : vector<16x8xf32>
    %c6_211 = arith.constant 6 : index
    %c0_212 = arith.constant 0 : index
    %c0_213 = arith.constant 0 : index
    %332 = vector.load %arg6[%c6_211, %c0_212, %c0_213] : memref<24x32x8xf32, #tpu.memory_space<vmem>>, vector<1x32x8xf32>
    %333 = vector.shape_cast %332 : vector<1x32x8xf32> to vector<32x8xf32>
    %cst_214 = arith.constant dense<0.000000e+00> : vector<16x8xf32>
    %334 = tpu.matmul %1, %333, %cst_214 {dimension_numbers = #tpu.dot_dimension_numbers<[1], [0], [0], [1], [0, 0, 1, 1], [], []>} : vector<16x32xf32>, vector<32x8xf32>, vector<16x8xf32> -> vector<16x8xf32>
    %c6_215 = arith.constant 6 : index
    %c0_216 = arith.constant 0 : index
    %c0_217 = arith.constant 0 : index
    %335 = vector.load %arg7[%c6_215, %c0_216, %c0_217] : memref<24x1x8xf32, #tpu.memory_space<vmem>>, vector<1x1x8xf32>
    %336 = vector.shape_cast %335 : vector<1x1x8xf32> to vector<1x8xf32>
    %337 = vector.broadcast %336 : vector<1x8xf32> to vector<16x8xf32>
    %338 = arith.addf %334, %337 : vector<16x8xf32>
    %c10_218 = arith.constant 10 : index
    %c0_219 = arith.constant 0 : index
    %c0_220 = arith.constant 0 : index
    %339 = vector.load %arg6[%c10_218, %c0_219, %c0_220] : memref<24x32x8xf32, #tpu.memory_space<vmem>>, vector<1x32x8xf32>
    %340 = vector.shape_cast %339 : vector<1x32x8xf32> to vector<32x8xf32>
    %cst_221 = arith.constant dense<0.000000e+00> : vector<16x8xf32>
    %341 = tpu.matmul %1, %340, %cst_221 {dimension_numbers = #tpu.dot_dimension_numbers<[1], [0], [0], [1], [0, 0, 1, 1], [], []>} : vector<16x32xf32>, vector<32x8xf32>, vector<16x8xf32> -> vector<16x8xf32>
    %c10_222 = arith.constant 10 : index
    %c0_223 = arith.constant 0 : index
    %c0_224 = arith.constant 0 : index
    %342 = vector.load %arg7[%c10_222, %c0_223, %c0_224] : memref<24x1x8xf32, #tpu.memory_space<vmem>>, vector<1x1x8xf32>
    %343 = vector.shape_cast %342 : vector<1x1x8xf32> to vector<1x8xf32>
    %344 = vector.broadcast %343 : vector<1x8xf32> to vector<16x8xf32>
    %345 = arith.addf %341, %344 : vector<16x8xf32>
    %cst_225 = arith.constant dense<0.000000e+00> : vector<16x16xf32>
    %346 = tpu.matmul %331, %338, %cst_225 {dimension_numbers = #tpu.dot_dimension_numbers<[1], [1], [0], [0], [0, 0, 1, 0], [], []>} : vector<16x8xf32>, vector<16x8xf32>, vector<16x16xf32> -> vector<16x16xf32>
    %347 = arith.addf %346, %51 : vector<16x16xf32>
    %cst_226 = arith.constant dense<0xFF800000> : vector<16xf32>
    %348 = vector.multi_reduction <maximumf>, %347, %cst_226 [1] : vector<16x16xf32> to vector<16xf32>
    %349 = vector.shape_cast %348 : vector<16xf32> to vector<16x1xf32>
    %350 = vector.broadcast %349 : vector<16x1xf32> to vector<16x16xf32>
    %351 = arith.subf %347, %350 : vector<16x16xf32>
    %352 = math.exp %351 : vector<16x16xf32>
    %cst_227 = arith.constant dense<0.000000e+00> : vector<16xf32>
    %353 = vector.multi_reduction <add>, %352, %cst_227 [1] : vector<16x16xf32> to vector<16xf32>
    %354 = vector.shape_cast %353 : vector<16xf32> to vector<16x1xf32>
    %355 = tpu.reciprocal %354 {approx = true} : vector<16x1xf32> -> vector<16x1xf32>
    %356 = vector.broadcast %355 : vector<16x1xf32> to vector<16x16xf32>
    %357 = arith.mulf %352, %356 : vector<16x16xf32>
    %cst_228 = arith.constant dense<0.000000e+00> : vector<16x8xf32>
    %358 = tpu.matmul %357, %345, %cst_228 {dimension_numbers = #tpu.dot_dimension_numbers<[1], [0], [0], [1], [0, 0, 1, 1], [], []>} : vector<16x16xf32>, vector<16x8xf32>, vector<16x8xf32> -> vector<16x8xf32>
    %c2_229 = arith.constant 2 : index
    %c0_230 = arith.constant 0 : index
    %c0_231 = arith.constant 0 : index
    %359 = vector.load %arg8[%c2_229, %c0_230, %c0_231] : memref<8x8x32xf32, #tpu.memory_space<vmem>>, vector<1x8x32xf32>
    %360 = vector.shape_cast %359 : vector<1x8x32xf32> to vector<8x32xf32>
    %cst_232 = arith.constant dense<0.000000e+00> : vector<16x32xf32>
    %361 = tpu.matmul %358, %360, %cst_232 {dimension_numbers = #tpu.dot_dimension_numbers<[1], [0], [0], [1], [0, 0, 1, 1], [], []>} : vector<16x8xf32>, vector<8x32xf32>, vector<16x32xf32> -> vector<16x32xf32>
    %362 = arith.addf %322, %361 : vector<16x32xf32>
    %c3_233 = arith.constant 3 : index
    %c0_234 = arith.constant 0 : index
    %c0_235 = arith.constant 0 : index
    %363 = vector.load %arg6[%c3_233, %c0_234, %c0_235] : memref<24x32x8xf32, #tpu.memory_space<vmem>>, vector<1x32x8xf32>
    %364 = vector.shape_cast %363 : vector<1x32x8xf32> to vector<32x8xf32>
    %cst_236 = arith.constant dense<0.000000e+00> : vector<16x8xf32>
    %365 = tpu.matmul %241, %364, %cst_236 {dimension_numbers = #tpu.dot_dimension_numbers<[1], [0], [0], [1], [0, 0, 1, 1], [], []>} : vector<16x32xf32>, vector<32x8xf32>, vector<16x8xf32> -> vector<16x8xf32>
    %c3_237 = arith.constant 3 : index
    %c0_238 = arith.constant 0 : index
    %c0_239 = arith.constant 0 : index
    %366 = vector.load %arg7[%c3_237, %c0_238, %c0_239] : memref<24x1x8xf32, #tpu.memory_space<vmem>>, vector<1x1x8xf32>
    %367 = vector.shape_cast %366 : vector<1x1x8xf32> to vector<1x8xf32>
    %368 = vector.broadcast %367 : vector<1x8xf32> to vector<16x8xf32>
    %369 = arith.addf %365, %368 : vector<16x8xf32>
    %cst_240 = arith.constant 0.353553385 : f32
    %370 = vector.broadcast %cst_240 : f32 to vector<16x8xf32>
    %371 = arith.mulf %369, %370 : vector<16x8xf32>
    %c7_241 = arith.constant 7 : index
    %c0_242 = arith.constant 0 : index
    %c0_243 = arith.constant 0 : index
    %372 = vector.load %arg6[%c7_241, %c0_242, %c0_243] : memref<24x32x8xf32, #tpu.memory_space<vmem>>, vector<1x32x8xf32>
    %373 = vector.shape_cast %372 : vector<1x32x8xf32> to vector<32x8xf32>
    %cst_244 = arith.constant dense<0.000000e+00> : vector<16x8xf32>
    %374 = tpu.matmul %1, %373, %cst_244 {dimension_numbers = #tpu.dot_dimension_numbers<[1], [0], [0], [1], [0, 0, 1, 1], [], []>} : vector<16x32xf32>, vector<32x8xf32>, vector<16x8xf32> -> vector<16x8xf32>
    %c7_245 = arith.constant 7 : index
    %c0_246 = arith.constant 0 : index
    %c0_247 = arith.constant 0 : index
    %375 = vector.load %arg7[%c7_245, %c0_246, %c0_247] : memref<24x1x8xf32, #tpu.memory_space<vmem>>, vector<1x1x8xf32>
    %376 = vector.shape_cast %375 : vector<1x1x8xf32> to vector<1x8xf32>
    %377 = vector.broadcast %376 : vector<1x8xf32> to vector<16x8xf32>
    %378 = arith.addf %374, %377 : vector<16x8xf32>
    %c11_248 = arith.constant 11 : index
    %c0_249 = arith.constant 0 : index
    %c0_250 = arith.constant 0 : index
    %379 = vector.load %arg6[%c11_248, %c0_249, %c0_250] : memref<24x32x8xf32, #tpu.memory_space<vmem>>, vector<1x32x8xf32>
    %380 = vector.shape_cast %379 : vector<1x32x8xf32> to vector<32x8xf32>
    %cst_251 = arith.constant dense<0.000000e+00> : vector<16x8xf32>
    %381 = tpu.matmul %1, %380, %cst_251 {dimension_numbers = #tpu.dot_dimension_numbers<[1], [0], [0], [1], [0, 0, 1, 1], [], []>} : vector<16x32xf32>, vector<32x8xf32>, vector<16x8xf32> -> vector<16x8xf32>
    %c11_252 = arith.constant 11 : index
    %c0_253 = arith.constant 0 : index
    %c0_254 = arith.constant 0 : index
    %382 = vector.load %arg7[%c11_252, %c0_253, %c0_254] : memref<24x1x8xf32, #tpu.memory_space<vmem>>, vector<1x1x8xf32>
    %383 = vector.shape_cast %382 : vector<1x1x8xf32> to vector<1x8xf32>
    %384 = vector.broadcast %383 : vector<1x8xf32> to vector<16x8xf32>
    %385 = arith.addf %381, %384 : vector<16x8xf32>
    %cst_255 = arith.constant dense<0.000000e+00> : vector<16x16xf32>
    %386 = tpu.matmul %371, %378, %cst_255 {dimension_numbers = #tpu.dot_dimension_numbers<[1], [1], [0], [0], [0, 0, 1, 0], [], []>} : vector<16x8xf32>, vector<16x8xf32>, vector<16x16xf32> -> vector<16x16xf32>
    %387 = arith.addf %386, %51 : vector<16x16xf32>
    %cst_256 = arith.constant dense<0xFF800000> : vector<16xf32>
    %388 = vector.multi_reduction <maximumf>, %387, %cst_256 [1] : vector<16x16xf32> to vector<16xf32>
    %389 = vector.shape_cast %388 : vector<16xf32> to vector<16x1xf32>
    %390 = vector.broadcast %389 : vector<16x1xf32> to vector<16x16xf32>
    %391 = arith.subf %387, %390 : vector<16x16xf32>
    %392 = math.exp %391 : vector<16x16xf32>
    %cst_257 = arith.constant dense<0.000000e+00> : vector<16xf32>
    %393 = vector.multi_reduction <add>, %392, %cst_257 [1] : vector<16x16xf32> to vector<16xf32>
    %394 = vector.shape_cast %393 : vector<16xf32> to vector<16x1xf32>
    %395 = tpu.reciprocal %394 {approx = true} : vector<16x1xf32> -> vector<16x1xf32>
    %396 = vector.broadcast %395 : vector<16x1xf32> to vector<16x16xf32>
    %397 = arith.mulf %392, %396 : vector<16x16xf32>
    %cst_258 = arith.constant dense<0.000000e+00> : vector<16x8xf32>
    %398 = tpu.matmul %397, %385, %cst_258 {dimension_numbers = #tpu.dot_dimension_numbers<[1], [0], [0], [1], [0, 0, 1, 1], [], []>} : vector<16x16xf32>, vector<16x8xf32>, vector<16x8xf32> -> vector<16x8xf32>
    %c3_259 = arith.constant 3 : index
    %c0_260 = arith.constant 0 : index
    %c0_261 = arith.constant 0 : index
    %399 = vector.load %arg8[%c3_259, %c0_260, %c0_261] : memref<8x8x32xf32, #tpu.memory_space<vmem>>, vector<1x8x32xf32>
    %400 = vector.shape_cast %399 : vector<1x8x32xf32> to vector<8x32xf32>
    %cst_262 = arith.constant dense<0.000000e+00> : vector<16x32xf32>
    %401 = tpu.matmul %398, %400, %cst_262 {dimension_numbers = #tpu.dot_dimension_numbers<[1], [0], [0], [1], [0, 0, 1, 1], [], []>} : vector<16x8xf32>, vector<8x32xf32>, vector<16x32xf32> -> vector<16x32xf32>
    %402 = arith.addf %362, %401 : vector<16x32xf32>
    %c0_263 = arith.constant 0 : index
    %c0_264 = arith.constant 0 : index
    %c0_265 = arith.constant 0 : index
    %403 = vector.load %arg9[%c0_263, %c0_264, %c0_265] : memref<2x1x32xf32, #tpu.memory_space<vmem>>, vector<1x1x32xf32>
    %404 = vector.shape_cast %403 : vector<1x1x32xf32> to vector<1x32xf32>
    %405 = vector.broadcast %404 : vector<1x32xf32> to vector<16x32xf32>
    %406 = arith.addf %402, %405 : vector<16x32xf32>
    %407 = arith.addf %241, %406 : vector<16x32xf32>
    %c0_266 = arith.constant 0 : index
    %c0_267 = arith.constant 0 : index
    %c0_268 = arith.constant 0 : index
    %408 = vector.load %arg16[%c0_266, %c0_267, %c0_268] : memref<2x1x32xf32, #tpu.memory_space<vmem>>, vector<1x1x32xf32>
    %409 = vector.shape_cast %408 : vector<1x1x32xf32> to vector<1x32xf32>
    %c0_269 = arith.constant 0 : index
    %c0_270 = arith.constant 0 : index
    %c0_271 = arith.constant 0 : index
    %410 = vector.load %arg17[%c0_269, %c0_270, %c0_271] : memref<2x1x32xf32, #tpu.memory_space<vmem>>, vector<1x1x32xf32>
    %411 = vector.shape_cast %410 : vector<1x1x32xf32> to vector<1x32xf32>
    %cst_272 = arith.constant dense<0.000000e+00> : vector<16xf32>
    %412 = vector.multi_reduction <add>, %407, %cst_272 [1] : vector<16x32xf32> to vector<16xf32>
    %413 = vector.shape_cast %412 : vector<16xf32> to vector<16x1xf32>
    %cst_273 = arith.constant 3.200000e+01 : f32
    %414 = vector.broadcast %cst_273 : f32 to vector<16x1xf32>
    %415 = arith.divf %413, %414 : vector<16x1xf32>
    %416 = vector.broadcast %415 : vector<16x1xf32> to vector<16x32xf32>
    %417 = arith.subf %407, %416 : vector<16x32xf32>
    %418 = arith.mulf %417, %417 : vector<16x32xf32>
    %cst_274 = arith.constant dense<0.000000e+00> : vector<16xf32>
    %419 = vector.multi_reduction <add>, %418, %cst_274 [1] : vector<16x32xf32> to vector<16xf32>
    %420 = vector.shape_cast %419 : vector<16xf32> to vector<16x1xf32>
    %cst_275 = arith.constant 3.200000e+01 : f32
    %421 = vector.broadcast %cst_275 : f32 to vector<16x1xf32>
    %422 = arith.divf %420, %421 : vector<16x1xf32>
    %cst_276 = arith.constant 9.99999974E-6 : f32
    %423 = vector.broadcast %cst_276 : f32 to vector<16x1xf32>
    %424 = arith.addf %422, %423 : vector<16x1xf32>
    %425 = math.rsqrt %424 : vector<16x1xf32>
    %426 = vector.broadcast %425 : vector<16x1xf32> to vector<16x32xf32>
    %427 = arith.mulf %417, %426 : vector<16x32xf32>
    %428 = vector.broadcast %409 : vector<1x32xf32> to vector<16x32xf32>
    %429 = arith.mulf %427, %428 : vector<16x32xf32>
    %430 = vector.broadcast %411 : vector<1x32xf32> to vector<16x32xf32>
    %431 = arith.addf %429, %430 : vector<16x32xf32>
    %c0_277 = arith.constant 0 : index
    %c0_278 = arith.constant 0 : index
    %c0_279 = arith.constant 0 : index
    %432 = vector.load %arg10[%c0_277, %c0_278, %c0_279] : memref<2x32x64xf32, #tpu.memory_space<vmem>>, vector<1x32x64xf32>
    %433 = vector.shape_cast %432 : vector<1x32x64xf32> to vector<32x64xf32>
    %cst_280 = arith.constant dense<0.000000e+00> : vector<16x64xf32>
    %434 = tpu.matmul %431, %433, %cst_280 {dimension_numbers = #tpu.dot_dimension_numbers<[1], [0], [0], [1], [0, 0, 1, 1], [], []>} : vector<16x32xf32>, vector<32x64xf32>, vector<16x64xf32> -> vector<16x64xf32>
    %c0_281 = arith.constant 0 : index
    %c0_282 = arith.constant 0 : index
    %c0_283 = arith.constant 0 : index
    %435 = vector.load %arg11[%c0_281, %c0_282, %c0_283] : memref<2x1x64xf32, #tpu.memory_space<vmem>>, vector<1x1x64xf32>
    %436 = vector.shape_cast %435 : vector<1x1x64xf32> to vector<1x64xf32>
    %437 = vector.broadcast %436 : vector<1x64xf32> to vector<16x64xf32>
    %438 = arith.addf %434, %437 : vector<16x64xf32>
    %cst_284 = arith.constant 0.000000e+00 : f32
    %439 = vector.broadcast %cst_284 : f32 to vector<16x64xf32>
    %440 = arith.maximumf %438, %439 : vector<16x64xf32>
    %c0_285 = arith.constant 0 : index
    %c0_286 = arith.constant 0 : index
    %c0_287 = arith.constant 0 : index
    %441 = vector.load %arg12[%c0_285, %c0_286, %c0_287] : memref<2x64x32xf32, #tpu.memory_space<vmem>>, vector<1x64x32xf32>
    %442 = vector.shape_cast %441 : vector<1x64x32xf32> to vector<64x32xf32>
    %cst_288 = arith.constant dense<0.000000e+00> : vector<16x32xf32>
    %443 = tpu.matmul %440, %442, %cst_288 {dimension_numbers = #tpu.dot_dimension_numbers<[1], [0], [0], [1], [0, 0, 1, 1], [], []>} : vector<16x64xf32>, vector<64x32xf32>, vector<16x32xf32> -> vector<16x32xf32>
    %c0_289 = arith.constant 0 : index
    %c0_290 = arith.constant 0 : index
    %c0_291 = arith.constant 0 : index
    %444 = vector.load %arg13[%c0_289, %c0_290, %c0_291] : memref<2x1x32xf32, #tpu.memory_space<vmem>>, vector<1x1x32xf32>
    %445 = vector.shape_cast %444 : vector<1x1x32xf32> to vector<1x32xf32>
    %446 = vector.broadcast %445 : vector<1x32xf32> to vector<16x32xf32>
    %447 = arith.addf %443, %446 : vector<16x32xf32>
    %448 = arith.addf %431, %447 : vector<16x32xf32>
    %c0_292 = arith.constant 0 : index
    %c0_293 = arith.constant 0 : index
    %c0_294 = arith.constant 0 : index
    %449 = vector.load %arg18[%c0_292, %c0_293, %c0_294] : memref<2x1x32xf32, #tpu.memory_space<vmem>>, vector<1x1x32xf32>
    %450 = vector.shape_cast %449 : vector<1x1x32xf32> to vector<1x32xf32>
    %c0_295 = arith.constant 0 : index
    %c0_296 = arith.constant 0 : index
    %c0_297 = arith.constant 0 : index
    %451 = vector.load %arg19[%c0_295, %c0_296, %c0_297] : memref<2x1x32xf32, #tpu.memory_space<vmem>>, vector<1x1x32xf32>
    %452 = vector.shape_cast %451 : vector<1x1x32xf32> to vector<1x32xf32>
    %cst_298 = arith.constant dense<0.000000e+00> : vector<16xf32>
    %453 = vector.multi_reduction <add>, %448, %cst_298 [1] : vector<16x32xf32> to vector<16xf32>
    %454 = vector.shape_cast %453 : vector<16xf32> to vector<16x1xf32>
    %cst_299 = arith.constant 3.200000e+01 : f32
    %455 = vector.broadcast %cst_299 : f32 to vector<16x1xf32>
    %456 = arith.divf %454, %455 : vector<16x1xf32>
    %457 = vector.broadcast %456 : vector<16x1xf32> to vector<16x32xf32>
    %458 = arith.subf %448, %457 : vector<16x32xf32>
    %459 = arith.mulf %458, %458 : vector<16x32xf32>
    %cst_300 = arith.constant dense<0.000000e+00> : vector<16xf32>
    %460 = vector.multi_reduction <add>, %459, %cst_300 [1] : vector<16x32xf32> to vector<16xf32>
    %461 = vector.shape_cast %460 : vector<16xf32> to vector<16x1xf32>
    %cst_301 = arith.constant 3.200000e+01 : f32
    %462 = vector.broadcast %cst_301 : f32 to vector<16x1xf32>
    %463 = arith.divf %461, %462 : vector<16x1xf32>
    %cst_302 = arith.constant 9.99999974E-6 : f32
    %464 = vector.broadcast %cst_302 : f32 to vector<16x1xf32>
    %465 = arith.addf %463, %464 : vector<16x1xf32>
    %466 = math.rsqrt %465 : vector<16x1xf32>
    %467 = vector.broadcast %466 : vector<16x1xf32> to vector<16x32xf32>
    %468 = arith.mulf %458, %467 : vector<16x32xf32>
    %469 = vector.broadcast %450 : vector<1x32xf32> to vector<16x32xf32>
    %470 = arith.mulf %468, %469 : vector<16x32xf32>
    %471 = vector.broadcast %452 : vector<1x32xf32> to vector<16x32xf32>
    %472 = arith.addf %470, %471 : vector<16x32xf32>
    %cst_303 = arith.constant 0.000000e+00 : f32
    %473 = vector.broadcast %cst_303 : f32 to vector<16x32xf32>
    %c12 = arith.constant 12 : index
    %c0_304 = arith.constant 0 : index
    %c0_305 = arith.constant 0 : index
    %474 = vector.load %arg2[%c12, %c0_304, %c0_305] : memref<24x32x8xf32, #tpu.memory_space<vmem>>, vector<1x32x8xf32>
    %475 = vector.shape_cast %474 : vector<1x32x8xf32> to vector<32x8xf32>
    %cst_306 = arith.constant dense<0.000000e+00> : vector<16x8xf32>
    %476 = tpu.matmul %472, %475, %cst_306 {dimension_numbers = #tpu.dot_dimension_numbers<[1], [0], [0], [1], [0, 0, 1, 1], [], []>} : vector<16x32xf32>, vector<32x8xf32>, vector<16x8xf32> -> vector<16x8xf32>
    %c12_307 = arith.constant 12 : index
    %c0_308 = arith.constant 0 : index
    %c0_309 = arith.constant 0 : index
    %477 = vector.load %arg3[%c12_307, %c0_308, %c0_309] : memref<24x1x8xf32, #tpu.memory_space<vmem>>, vector<1x1x8xf32>
    %478 = vector.shape_cast %477 : vector<1x1x8xf32> to vector<1x8xf32>
    %479 = vector.broadcast %478 : vector<1x8xf32> to vector<16x8xf32>
    %480 = arith.addf %476, %479 : vector<16x8xf32>
    %cst_310 = arith.constant 0.353553385 : f32
    %481 = vector.broadcast %cst_310 : f32 to vector<16x8xf32>
    %482 = arith.mulf %480, %481 : vector<16x8xf32>
    %c16 = arith.constant 16 : index
    %c0_311 = arith.constant 0 : index
    %c0_312 = arith.constant 0 : index
    %483 = vector.load %arg2[%c16, %c0_311, %c0_312] : memref<24x32x8xf32, #tpu.memory_space<vmem>>, vector<1x32x8xf32>
    %484 = vector.shape_cast %483 : vector<1x32x8xf32> to vector<32x8xf32>
    %cst_313 = arith.constant dense<0.000000e+00> : vector<16x8xf32>
    %485 = tpu.matmul %472, %484, %cst_313 {dimension_numbers = #tpu.dot_dimension_numbers<[1], [0], [0], [1], [0, 0, 1, 1], [], []>} : vector<16x32xf32>, vector<32x8xf32>, vector<16x8xf32> -> vector<16x8xf32>
    %c16_314 = arith.constant 16 : index
    %c0_315 = arith.constant 0 : index
    %c0_316 = arith.constant 0 : index
    %486 = vector.load %arg3[%c16_314, %c0_315, %c0_316] : memref<24x1x8xf32, #tpu.memory_space<vmem>>, vector<1x1x8xf32>
    %487 = vector.shape_cast %486 : vector<1x1x8xf32> to vector<1x8xf32>
    %488 = vector.broadcast %487 : vector<1x8xf32> to vector<16x8xf32>
    %489 = arith.addf %485, %488 : vector<16x8xf32>
    %c20 = arith.constant 20 : index
    %c0_317 = arith.constant 0 : index
    %c0_318 = arith.constant 0 : index
    %490 = vector.load %arg2[%c20, %c0_317, %c0_318] : memref<24x32x8xf32, #tpu.memory_space<vmem>>, vector<1x32x8xf32>
    %491 = vector.shape_cast %490 : vector<1x32x8xf32> to vector<32x8xf32>
    %cst_319 = arith.constant dense<0.000000e+00> : vector<16x8xf32>
    %492 = tpu.matmul %472, %491, %cst_319 {dimension_numbers = #tpu.dot_dimension_numbers<[1], [0], [0], [1], [0, 0, 1, 1], [], []>} : vector<16x32xf32>, vector<32x8xf32>, vector<16x8xf32> -> vector<16x8xf32>
    %c20_320 = arith.constant 20 : index
    %c0_321 = arith.constant 0 : index
    %c0_322 = arith.constant 0 : index
    %493 = vector.load %arg3[%c20_320, %c0_321, %c0_322] : memref<24x1x8xf32, #tpu.memory_space<vmem>>, vector<1x1x8xf32>
    %494 = vector.shape_cast %493 : vector<1x1x8xf32> to vector<1x8xf32>
    %495 = vector.broadcast %494 : vector<1x8xf32> to vector<16x8xf32>
    %496 = arith.addf %492, %495 : vector<16x8xf32>
    %cst_323 = arith.constant dense<0.000000e+00> : vector<16x16xf32>
    %497 = tpu.matmul %482, %489, %cst_323 {dimension_numbers = #tpu.dot_dimension_numbers<[1], [1], [0], [0], [0, 0, 1, 0], [], []>} : vector<16x8xf32>, vector<16x8xf32>, vector<16x16xf32> -> vector<16x16xf32>
    %498 = arith.addf %497, %27 : vector<16x16xf32>
    %cst_324 = arith.constant dense<0xFF800000> : vector<16xf32>
    %499 = vector.multi_reduction <maximumf>, %498, %cst_324 [1] : vector<16x16xf32> to vector<16xf32>
    %500 = vector.shape_cast %499 : vector<16xf32> to vector<16x1xf32>
    %501 = vector.broadcast %500 : vector<16x1xf32> to vector<16x16xf32>
    %502 = arith.subf %498, %501 : vector<16x16xf32>
    %503 = math.exp %502 : vector<16x16xf32>
    %cst_325 = arith.constant dense<0.000000e+00> : vector<16xf32>
    %504 = vector.multi_reduction <add>, %503, %cst_325 [1] : vector<16x16xf32> to vector<16xf32>
    %505 = vector.shape_cast %504 : vector<16xf32> to vector<16x1xf32>
    %506 = tpu.reciprocal %505 {approx = true} : vector<16x1xf32> -> vector<16x1xf32>
    %507 = vector.broadcast %506 : vector<16x1xf32> to vector<16x16xf32>
    %508 = arith.mulf %503, %507 : vector<16x16xf32>
    %cst_326 = arith.constant dense<0.000000e+00> : vector<16x8xf32>
    %509 = tpu.matmul %508, %496, %cst_326 {dimension_numbers = #tpu.dot_dimension_numbers<[1], [0], [0], [1], [0, 0, 1, 1], [], []>} : vector<16x16xf32>, vector<16x8xf32>, vector<16x8xf32> -> vector<16x8xf32>
    %c4_327 = arith.constant 4 : index
    %c0_328 = arith.constant 0 : index
    %c0_329 = arith.constant 0 : index
    %510 = vector.load %arg4[%c4_327, %c0_328, %c0_329] : memref<8x8x32xf32, #tpu.memory_space<vmem>>, vector<1x8x32xf32>
    %511 = vector.shape_cast %510 : vector<1x8x32xf32> to vector<8x32xf32>
    %cst_330 = arith.constant dense<0.000000e+00> : vector<16x32xf32>
    %512 = tpu.matmul %509, %511, %cst_330 {dimension_numbers = #tpu.dot_dimension_numbers<[1], [0], [0], [1], [0, 0, 1, 1], [], []>} : vector<16x8xf32>, vector<8x32xf32>, vector<16x32xf32> -> vector<16x32xf32>
    %513 = arith.addf %473, %512 : vector<16x32xf32>
    %c13 = arith.constant 13 : index
    %c0_331 = arith.constant 0 : index
    %c0_332 = arith.constant 0 : index
    %514 = vector.load %arg2[%c13, %c0_331, %c0_332] : memref<24x32x8xf32, #tpu.memory_space<vmem>>, vector<1x32x8xf32>
    %515 = vector.shape_cast %514 : vector<1x32x8xf32> to vector<32x8xf32>
    %cst_333 = arith.constant dense<0.000000e+00> : vector<16x8xf32>
    %516 = tpu.matmul %472, %515, %cst_333 {dimension_numbers = #tpu.dot_dimension_numbers<[1], [0], [0], [1], [0, 0, 1, 1], [], []>} : vector<16x32xf32>, vector<32x8xf32>, vector<16x8xf32> -> vector<16x8xf32>
    %c13_334 = arith.constant 13 : index
    %c0_335 = arith.constant 0 : index
    %c0_336 = arith.constant 0 : index
    %517 = vector.load %arg3[%c13_334, %c0_335, %c0_336] : memref<24x1x8xf32, #tpu.memory_space<vmem>>, vector<1x1x8xf32>
    %518 = vector.shape_cast %517 : vector<1x1x8xf32> to vector<1x8xf32>
    %519 = vector.broadcast %518 : vector<1x8xf32> to vector<16x8xf32>
    %520 = arith.addf %516, %519 : vector<16x8xf32>
    %cst_337 = arith.constant 0.353553385 : f32
    %521 = vector.broadcast %cst_337 : f32 to vector<16x8xf32>
    %522 = arith.mulf %520, %521 : vector<16x8xf32>
    %c17 = arith.constant 17 : index
    %c0_338 = arith.constant 0 : index
    %c0_339 = arith.constant 0 : index
    %523 = vector.load %arg2[%c17, %c0_338, %c0_339] : memref<24x32x8xf32, #tpu.memory_space<vmem>>, vector<1x32x8xf32>
    %524 = vector.shape_cast %523 : vector<1x32x8xf32> to vector<32x8xf32>
    %cst_340 = arith.constant dense<0.000000e+00> : vector<16x8xf32>
    %525 = tpu.matmul %472, %524, %cst_340 {dimension_numbers = #tpu.dot_dimension_numbers<[1], [0], [0], [1], [0, 0, 1, 1], [], []>} : vector<16x32xf32>, vector<32x8xf32>, vector<16x8xf32> -> vector<16x8xf32>
    %c17_341 = arith.constant 17 : index
    %c0_342 = arith.constant 0 : index
    %c0_343 = arith.constant 0 : index
    %526 = vector.load %arg3[%c17_341, %c0_342, %c0_343] : memref<24x1x8xf32, #tpu.memory_space<vmem>>, vector<1x1x8xf32>
    %527 = vector.shape_cast %526 : vector<1x1x8xf32> to vector<1x8xf32>
    %528 = vector.broadcast %527 : vector<1x8xf32> to vector<16x8xf32>
    %529 = arith.addf %525, %528 : vector<16x8xf32>
    %c21 = arith.constant 21 : index
    %c0_344 = arith.constant 0 : index
    %c0_345 = arith.constant 0 : index
    %530 = vector.load %arg2[%c21, %c0_344, %c0_345] : memref<24x32x8xf32, #tpu.memory_space<vmem>>, vector<1x32x8xf32>
    %531 = vector.shape_cast %530 : vector<1x32x8xf32> to vector<32x8xf32>
    %cst_346 = arith.constant dense<0.000000e+00> : vector<16x8xf32>
    %532 = tpu.matmul %472, %531, %cst_346 {dimension_numbers = #tpu.dot_dimension_numbers<[1], [0], [0], [1], [0, 0, 1, 1], [], []>} : vector<16x32xf32>, vector<32x8xf32>, vector<16x8xf32> -> vector<16x8xf32>
    %c21_347 = arith.constant 21 : index
    %c0_348 = arith.constant 0 : index
    %c0_349 = arith.constant 0 : index
    %533 = vector.load %arg3[%c21_347, %c0_348, %c0_349] : memref<24x1x8xf32, #tpu.memory_space<vmem>>, vector<1x1x8xf32>
    %534 = vector.shape_cast %533 : vector<1x1x8xf32> to vector<1x8xf32>
    %535 = vector.broadcast %534 : vector<1x8xf32> to vector<16x8xf32>
    %536 = arith.addf %532, %535 : vector<16x8xf32>
    %cst_350 = arith.constant dense<0.000000e+00> : vector<16x16xf32>
    %537 = tpu.matmul %522, %529, %cst_350 {dimension_numbers = #tpu.dot_dimension_numbers<[1], [1], [0], [0], [0, 0, 1, 0], [], []>} : vector<16x8xf32>, vector<16x8xf32>, vector<16x16xf32> -> vector<16x16xf32>
    %538 = arith.addf %537, %27 : vector<16x16xf32>
    %cst_351 = arith.constant dense<0xFF800000> : vector<16xf32>
    %539 = vector.multi_reduction <maximumf>, %538, %cst_351 [1] : vector<16x16xf32> to vector<16xf32>
    %540 = vector.shape_cast %539 : vector<16xf32> to vector<16x1xf32>
    %541 = vector.broadcast %540 : vector<16x1xf32> to vector<16x16xf32>
    %542 = arith.subf %538, %541 : vector<16x16xf32>
    %543 = math.exp %542 : vector<16x16xf32>
    %cst_352 = arith.constant dense<0.000000e+00> : vector<16xf32>
    %544 = vector.multi_reduction <add>, %543, %cst_352 [1] : vector<16x16xf32> to vector<16xf32>
    %545 = vector.shape_cast %544 : vector<16xf32> to vector<16x1xf32>
    %546 = tpu.reciprocal %545 {approx = true} : vector<16x1xf32> -> vector<16x1xf32>
    %547 = vector.broadcast %546 : vector<16x1xf32> to vector<16x16xf32>
    %548 = arith.mulf %543, %547 : vector<16x16xf32>
    %cst_353 = arith.constant dense<0.000000e+00> : vector<16x8xf32>
    %549 = tpu.matmul %548, %536, %cst_353 {dimension_numbers = #tpu.dot_dimension_numbers<[1], [0], [0], [1], [0, 0, 1, 1], [], []>} : vector<16x16xf32>, vector<16x8xf32>, vector<16x8xf32> -> vector<16x8xf32>
    %c5_354 = arith.constant 5 : index
    %c0_355 = arith.constant 0 : index
    %c0_356 = arith.constant 0 : index
    %550 = vector.load %arg4[%c5_354, %c0_355, %c0_356] : memref<8x8x32xf32, #tpu.memory_space<vmem>>, vector<1x8x32xf32>
    %551 = vector.shape_cast %550 : vector<1x8x32xf32> to vector<8x32xf32>
    %cst_357 = arith.constant dense<0.000000e+00> : vector<16x32xf32>
    %552 = tpu.matmul %549, %551, %cst_357 {dimension_numbers = #tpu.dot_dimension_numbers<[1], [0], [0], [1], [0, 0, 1, 1], [], []>} : vector<16x8xf32>, vector<8x32xf32>, vector<16x32xf32> -> vector<16x32xf32>
    %553 = arith.addf %513, %552 : vector<16x32xf32>
    %c14 = arith.constant 14 : index
    %c0_358 = arith.constant 0 : index
    %c0_359 = arith.constant 0 : index
    %554 = vector.load %arg2[%c14, %c0_358, %c0_359] : memref<24x32x8xf32, #tpu.memory_space<vmem>>, vector<1x32x8xf32>
    %555 = vector.shape_cast %554 : vector<1x32x8xf32> to vector<32x8xf32>
    %cst_360 = arith.constant dense<0.000000e+00> : vector<16x8xf32>
    %556 = tpu.matmul %472, %555, %cst_360 {dimension_numbers = #tpu.dot_dimension_numbers<[1], [0], [0], [1], [0, 0, 1, 1], [], []>} : vector<16x32xf32>, vector<32x8xf32>, vector<16x8xf32> -> vector<16x8xf32>
    %c14_361 = arith.constant 14 : index
    %c0_362 = arith.constant 0 : index
    %c0_363 = arith.constant 0 : index
    %557 = vector.load %arg3[%c14_361, %c0_362, %c0_363] : memref<24x1x8xf32, #tpu.memory_space<vmem>>, vector<1x1x8xf32>
    %558 = vector.shape_cast %557 : vector<1x1x8xf32> to vector<1x8xf32>
    %559 = vector.broadcast %558 : vector<1x8xf32> to vector<16x8xf32>
    %560 = arith.addf %556, %559 : vector<16x8xf32>
    %cst_364 = arith.constant 0.353553385 : f32
    %561 = vector.broadcast %cst_364 : f32 to vector<16x8xf32>
    %562 = arith.mulf %560, %561 : vector<16x8xf32>
    %c18 = arith.constant 18 : index
    %c0_365 = arith.constant 0 : index
    %c0_366 = arith.constant 0 : index
    %563 = vector.load %arg2[%c18, %c0_365, %c0_366] : memref<24x32x8xf32, #tpu.memory_space<vmem>>, vector<1x32x8xf32>
    %564 = vector.shape_cast %563 : vector<1x32x8xf32> to vector<32x8xf32>
    %cst_367 = arith.constant dense<0.000000e+00> : vector<16x8xf32>
    %565 = tpu.matmul %472, %564, %cst_367 {dimension_numbers = #tpu.dot_dimension_numbers<[1], [0], [0], [1], [0, 0, 1, 1], [], []>} : vector<16x32xf32>, vector<32x8xf32>, vector<16x8xf32> -> vector<16x8xf32>
    %c18_368 = arith.constant 18 : index
    %c0_369 = arith.constant 0 : index
    %c0_370 = arith.constant 0 : index
    %566 = vector.load %arg3[%c18_368, %c0_369, %c0_370] : memref<24x1x8xf32, #tpu.memory_space<vmem>>, vector<1x1x8xf32>
    %567 = vector.shape_cast %566 : vector<1x1x8xf32> to vector<1x8xf32>
    %568 = vector.broadcast %567 : vector<1x8xf32> to vector<16x8xf32>
    %569 = arith.addf %565, %568 : vector<16x8xf32>
    %c22 = arith.constant 22 : index
    %c0_371 = arith.constant 0 : index
    %c0_372 = arith.constant 0 : index
    %570 = vector.load %arg2[%c22, %c0_371, %c0_372] : memref<24x32x8xf32, #tpu.memory_space<vmem>>, vector<1x32x8xf32>
    %571 = vector.shape_cast %570 : vector<1x32x8xf32> to vector<32x8xf32>
    %cst_373 = arith.constant dense<0.000000e+00> : vector<16x8xf32>
    %572 = tpu.matmul %472, %571, %cst_373 {dimension_numbers = #tpu.dot_dimension_numbers<[1], [0], [0], [1], [0, 0, 1, 1], [], []>} : vector<16x32xf32>, vector<32x8xf32>, vector<16x8xf32> -> vector<16x8xf32>
    %c22_374 = arith.constant 22 : index
    %c0_375 = arith.constant 0 : index
    %c0_376 = arith.constant 0 : index
    %573 = vector.load %arg3[%c22_374, %c0_375, %c0_376] : memref<24x1x8xf32, #tpu.memory_space<vmem>>, vector<1x1x8xf32>
    %574 = vector.shape_cast %573 : vector<1x1x8xf32> to vector<1x8xf32>
    %575 = vector.broadcast %574 : vector<1x8xf32> to vector<16x8xf32>
    %576 = arith.addf %572, %575 : vector<16x8xf32>
    %cst_377 = arith.constant dense<0.000000e+00> : vector<16x16xf32>
    %577 = tpu.matmul %562, %569, %cst_377 {dimension_numbers = #tpu.dot_dimension_numbers<[1], [1], [0], [0], [0, 0, 1, 0], [], []>} : vector<16x8xf32>, vector<16x8xf32>, vector<16x16xf32> -> vector<16x16xf32>
    %578 = arith.addf %577, %27 : vector<16x16xf32>
    %cst_378 = arith.constant dense<0xFF800000> : vector<16xf32>
    %579 = vector.multi_reduction <maximumf>, %578, %cst_378 [1] : vector<16x16xf32> to vector<16xf32>
    %580 = vector.shape_cast %579 : vector<16xf32> to vector<16x1xf32>
    %581 = vector.broadcast %580 : vector<16x1xf32> to vector<16x16xf32>
    %582 = arith.subf %578, %581 : vector<16x16xf32>
    %583 = math.exp %582 : vector<16x16xf32>
    %cst_379 = arith.constant dense<0.000000e+00> : vector<16xf32>
    %584 = vector.multi_reduction <add>, %583, %cst_379 [1] : vector<16x16xf32> to vector<16xf32>
    %585 = vector.shape_cast %584 : vector<16xf32> to vector<16x1xf32>
    %586 = tpu.reciprocal %585 {approx = true} : vector<16x1xf32> -> vector<16x1xf32>
    %587 = vector.broadcast %586 : vector<16x1xf32> to vector<16x16xf32>
    %588 = arith.mulf %583, %587 : vector<16x16xf32>
    %cst_380 = arith.constant dense<0.000000e+00> : vector<16x8xf32>
    %589 = tpu.matmul %588, %576, %cst_380 {dimension_numbers = #tpu.dot_dimension_numbers<[1], [0], [0], [1], [0, 0, 1, 1], [], []>} : vector<16x16xf32>, vector<16x8xf32>, vector<16x8xf32> -> vector<16x8xf32>
    %c6_381 = arith.constant 6 : index
    %c0_382 = arith.constant 0 : index
    %c0_383 = arith.constant 0 : index
    %590 = vector.load %arg4[%c6_381, %c0_382, %c0_383] : memref<8x8x32xf32, #tpu.memory_space<vmem>>, vector<1x8x32xf32>
    %591 = vector.shape_cast %590 : vector<1x8x32xf32> to vector<8x32xf32>
    %cst_384 = arith.constant dense<0.000000e+00> : vector<16x32xf32>
    %592 = tpu.matmul %589, %591, %cst_384 {dimension_numbers = #tpu.dot_dimension_numbers<[1], [0], [0], [1], [0, 0, 1, 1], [], []>} : vector<16x8xf32>, vector<8x32xf32>, vector<16x32xf32> -> vector<16x32xf32>
    %593 = arith.addf %553, %592 : vector<16x32xf32>
    %c15 = arith.constant 15 : index
    %c0_385 = arith.constant 0 : index
    %c0_386 = arith.constant 0 : index
    %594 = vector.load %arg2[%c15, %c0_385, %c0_386] : memref<24x32x8xf32, #tpu.memory_space<vmem>>, vector<1x32x8xf32>
    %595 = vector.shape_cast %594 : vector<1x32x8xf32> to vector<32x8xf32>
    %cst_387 = arith.constant dense<0.000000e+00> : vector<16x8xf32>
    %596 = tpu.matmul %472, %595, %cst_387 {dimension_numbers = #tpu.dot_dimension_numbers<[1], [0], [0], [1], [0, 0, 1, 1], [], []>} : vector<16x32xf32>, vector<32x8xf32>, vector<16x8xf32> -> vector<16x8xf32>
    %c15_388 = arith.constant 15 : index
    %c0_389 = arith.constant 0 : index
    %c0_390 = arith.constant 0 : index
    %597 = vector.load %arg3[%c15_388, %c0_389, %c0_390] : memref<24x1x8xf32, #tpu.memory_space<vmem>>, vector<1x1x8xf32>
    %598 = vector.shape_cast %597 : vector<1x1x8xf32> to vector<1x8xf32>
    %599 = vector.broadcast %598 : vector<1x8xf32> to vector<16x8xf32>
    %600 = arith.addf %596, %599 : vector<16x8xf32>
    %cst_391 = arith.constant 0.353553385 : f32
    %601 = vector.broadcast %cst_391 : f32 to vector<16x8xf32>
    %602 = arith.mulf %600, %601 : vector<16x8xf32>
    %c19 = arith.constant 19 : index
    %c0_392 = arith.constant 0 : index
    %c0_393 = arith.constant 0 : index
    %603 = vector.load %arg2[%c19, %c0_392, %c0_393] : memref<24x32x8xf32, #tpu.memory_space<vmem>>, vector<1x32x8xf32>
    %604 = vector.shape_cast %603 : vector<1x32x8xf32> to vector<32x8xf32>
    %cst_394 = arith.constant dense<0.000000e+00> : vector<16x8xf32>
    %605 = tpu.matmul %472, %604, %cst_394 {dimension_numbers = #tpu.dot_dimension_numbers<[1], [0], [0], [1], [0, 0, 1, 1], [], []>} : vector<16x32xf32>, vector<32x8xf32>, vector<16x8xf32> -> vector<16x8xf32>
    %c19_395 = arith.constant 19 : index
    %c0_396 = arith.constant 0 : index
    %c0_397 = arith.constant 0 : index
    %606 = vector.load %arg3[%c19_395, %c0_396, %c0_397] : memref<24x1x8xf32, #tpu.memory_space<vmem>>, vector<1x1x8xf32>
    %607 = vector.shape_cast %606 : vector<1x1x8xf32> to vector<1x8xf32>
    %608 = vector.broadcast %607 : vector<1x8xf32> to vector<16x8xf32>
    %609 = arith.addf %605, %608 : vector<16x8xf32>
    %c23 = arith.constant 23 : index
    %c0_398 = arith.constant 0 : index
    %c0_399 = arith.constant 0 : index
    %610 = vector.load %arg2[%c23, %c0_398, %c0_399] : memref<24x32x8xf32, #tpu.memory_space<vmem>>, vector<1x32x8xf32>
    %611 = vector.shape_cast %610 : vector<1x32x8xf32> to vector<32x8xf32>
    %cst_400 = arith.constant dense<0.000000e+00> : vector<16x8xf32>
    %612 = tpu.matmul %472, %611, %cst_400 {dimension_numbers = #tpu.dot_dimension_numbers<[1], [0], [0], [1], [0, 0, 1, 1], [], []>} : vector<16x32xf32>, vector<32x8xf32>, vector<16x8xf32> -> vector<16x8xf32>
    %c23_401 = arith.constant 23 : index
    %c0_402 = arith.constant 0 : index
    %c0_403 = arith.constant 0 : index
    %613 = vector.load %arg3[%c23_401, %c0_402, %c0_403] : memref<24x1x8xf32, #tpu.memory_space<vmem>>, vector<1x1x8xf32>
    %614 = vector.shape_cast %613 : vector<1x1x8xf32> to vector<1x8xf32>
    %615 = vector.broadcast %614 : vector<1x8xf32> to vector<16x8xf32>
    %616 = arith.addf %612, %615 : vector<16x8xf32>
    %cst_404 = arith.constant dense<0.000000e+00> : vector<16x16xf32>
    %617 = tpu.matmul %602, %609, %cst_404 {dimension_numbers = #tpu.dot_dimension_numbers<[1], [1], [0], [0], [0, 0, 1, 0], [], []>} : vector<16x8xf32>, vector<16x8xf32>, vector<16x16xf32> -> vector<16x16xf32>
    %618 = arith.addf %617, %27 : vector<16x16xf32>
    %cst_405 = arith.constant dense<0xFF800000> : vector<16xf32>
    %619 = vector.multi_reduction <maximumf>, %618, %cst_405 [1] : vector<16x16xf32> to vector<16xf32>
    %620 = vector.shape_cast %619 : vector<16xf32> to vector<16x1xf32>
    %621 = vector.broadcast %620 : vector<16x1xf32> to vector<16x16xf32>
    %622 = arith.subf %618, %621 : vector<16x16xf32>
    %623 = math.exp %622 : vector<16x16xf32>
    %cst_406 = arith.constant dense<0.000000e+00> : vector<16xf32>
    %624 = vector.multi_reduction <add>, %623, %cst_406 [1] : vector<16x16xf32> to vector<16xf32>
    %625 = vector.shape_cast %624 : vector<16xf32> to vector<16x1xf32>
    %626 = tpu.reciprocal %625 {approx = true} : vector<16x1xf32> -> vector<16x1xf32>
    %627 = vector.broadcast %626 : vector<16x1xf32> to vector<16x16xf32>
    %628 = arith.mulf %623, %627 : vector<16x16xf32>
    %cst_407 = arith.constant dense<0.000000e+00> : vector<16x8xf32>
    %629 = tpu.matmul %628, %616, %cst_407 {dimension_numbers = #tpu.dot_dimension_numbers<[1], [0], [0], [1], [0, 0, 1, 1], [], []>} : vector<16x16xf32>, vector<16x8xf32>, vector<16x8xf32> -> vector<16x8xf32>
    %c7_408 = arith.constant 7 : index
    %c0_409 = arith.constant 0 : index
    %c0_410 = arith.constant 0 : index
    %630 = vector.load %arg4[%c7_408, %c0_409, %c0_410] : memref<8x8x32xf32, #tpu.memory_space<vmem>>, vector<1x8x32xf32>
    %631 = vector.shape_cast %630 : vector<1x8x32xf32> to vector<8x32xf32>
    %cst_411 = arith.constant dense<0.000000e+00> : vector<16x32xf32>
    %632 = tpu.matmul %629, %631, %cst_411 {dimension_numbers = #tpu.dot_dimension_numbers<[1], [0], [0], [1], [0, 0, 1, 1], [], []>} : vector<16x8xf32>, vector<8x32xf32>, vector<16x32xf32> -> vector<16x32xf32>
    %633 = arith.addf %593, %632 : vector<16x32xf32>
    %c1_412 = arith.constant 1 : index
    %c0_413 = arith.constant 0 : index
    %c0_414 = arith.constant 0 : index
    %634 = vector.load %arg5[%c1_412, %c0_413, %c0_414] : memref<2x1x32xf32, #tpu.memory_space<vmem>>, vector<1x1x32xf32>
    %635 = vector.shape_cast %634 : vector<1x1x32xf32> to vector<1x32xf32>
    %636 = vector.broadcast %635 : vector<1x32xf32> to vector<16x32xf32>
    %637 = arith.addf %633, %636 : vector<16x32xf32>
    %638 = arith.addf %472, %637 : vector<16x32xf32>
    %c1_415 = arith.constant 1 : index
    %c0_416 = arith.constant 0 : index
    %c0_417 = arith.constant 0 : index
    %639 = vector.load %arg14[%c1_415, %c0_416, %c0_417] : memref<2x1x32xf32, #tpu.memory_space<vmem>>, vector<1x1x32xf32>
    %640 = vector.shape_cast %639 : vector<1x1x32xf32> to vector<1x32xf32>
    %c1_418 = arith.constant 1 : index
    %c0_419 = arith.constant 0 : index
    %c0_420 = arith.constant 0 : index
    %641 = vector.load %arg15[%c1_418, %c0_419, %c0_420] : memref<2x1x32xf32, #tpu.memory_space<vmem>>, vector<1x1x32xf32>
    %642 = vector.shape_cast %641 : vector<1x1x32xf32> to vector<1x32xf32>
    %cst_421 = arith.constant dense<0.000000e+00> : vector<16xf32>
    %643 = vector.multi_reduction <add>, %638, %cst_421 [1] : vector<16x32xf32> to vector<16xf32>
    %644 = vector.shape_cast %643 : vector<16xf32> to vector<16x1xf32>
    %cst_422 = arith.constant 3.200000e+01 : f32
    %645 = vector.broadcast %cst_422 : f32 to vector<16x1xf32>
    %646 = arith.divf %644, %645 : vector<16x1xf32>
    %647 = vector.broadcast %646 : vector<16x1xf32> to vector<16x32xf32>
    %648 = arith.subf %638, %647 : vector<16x32xf32>
    %649 = arith.mulf %648, %648 : vector<16x32xf32>
    %cst_423 = arith.constant dense<0.000000e+00> : vector<16xf32>
    %650 = vector.multi_reduction <add>, %649, %cst_423 [1] : vector<16x32xf32> to vector<16xf32>
    %651 = vector.shape_cast %650 : vector<16xf32> to vector<16x1xf32>
    %cst_424 = arith.constant 3.200000e+01 : f32
    %652 = vector.broadcast %cst_424 : f32 to vector<16x1xf32>
    %653 = arith.divf %651, %652 : vector<16x1xf32>
    %cst_425 = arith.constant 9.99999974E-6 : f32
    %654 = vector.broadcast %cst_425 : f32 to vector<16x1xf32>
    %655 = arith.addf %653, %654 : vector<16x1xf32>
    %656 = math.rsqrt %655 : vector<16x1xf32>
    %657 = vector.broadcast %656 : vector<16x1xf32> to vector<16x32xf32>
    %658 = arith.mulf %648, %657 : vector<16x32xf32>
    %659 = vector.broadcast %640 : vector<1x32xf32> to vector<16x32xf32>
    %660 = arith.mulf %658, %659 : vector<16x32xf32>
    %661 = vector.broadcast %642 : vector<1x32xf32> to vector<16x32xf32>
    %662 = arith.addf %660, %661 : vector<16x32xf32>
    %cst_426 = arith.constant 0.000000e+00 : f32
    %663 = vector.broadcast %cst_426 : f32 to vector<16x32xf32>
    %c12_427 = arith.constant 12 : index
    %c0_428 = arith.constant 0 : index
    %c0_429 = arith.constant 0 : index
    %664 = vector.load %arg6[%c12_427, %c0_428, %c0_429] : memref<24x32x8xf32, #tpu.memory_space<vmem>>, vector<1x32x8xf32>
    %665 = vector.shape_cast %664 : vector<1x32x8xf32> to vector<32x8xf32>
    %cst_430 = arith.constant dense<0.000000e+00> : vector<16x8xf32>
    %666 = tpu.matmul %662, %665, %cst_430 {dimension_numbers = #tpu.dot_dimension_numbers<[1], [0], [0], [1], [0, 0, 1, 1], [], []>} : vector<16x32xf32>, vector<32x8xf32>, vector<16x8xf32> -> vector<16x8xf32>
    %c12_431 = arith.constant 12 : index
    %c0_432 = arith.constant 0 : index
    %c0_433 = arith.constant 0 : index
    %667 = vector.load %arg7[%c12_431, %c0_432, %c0_433] : memref<24x1x8xf32, #tpu.memory_space<vmem>>, vector<1x1x8xf32>
    %668 = vector.shape_cast %667 : vector<1x1x8xf32> to vector<1x8xf32>
    %669 = vector.broadcast %668 : vector<1x8xf32> to vector<16x8xf32>
    %670 = arith.addf %666, %669 : vector<16x8xf32>
    %cst_434 = arith.constant 0.353553385 : f32
    %671 = vector.broadcast %cst_434 : f32 to vector<16x8xf32>
    %672 = arith.mulf %670, %671 : vector<16x8xf32>
    %c16_435 = arith.constant 16 : index
    %c0_436 = arith.constant 0 : index
    %c0_437 = arith.constant 0 : index
    %673 = vector.load %arg6[%c16_435, %c0_436, %c0_437] : memref<24x32x8xf32, #tpu.memory_space<vmem>>, vector<1x32x8xf32>
    %674 = vector.shape_cast %673 : vector<1x32x8xf32> to vector<32x8xf32>
    %cst_438 = arith.constant dense<0.000000e+00> : vector<16x8xf32>
    %675 = tpu.matmul %1, %674, %cst_438 {dimension_numbers = #tpu.dot_dimension_numbers<[1], [0], [0], [1], [0, 0, 1, 1], [], []>} : vector<16x32xf32>, vector<32x8xf32>, vector<16x8xf32> -> vector<16x8xf32>
    %c16_439 = arith.constant 16 : index
    %c0_440 = arith.constant 0 : index
    %c0_441 = arith.constant 0 : index
    %676 = vector.load %arg7[%c16_439, %c0_440, %c0_441] : memref<24x1x8xf32, #tpu.memory_space<vmem>>, vector<1x1x8xf32>
    %677 = vector.shape_cast %676 : vector<1x1x8xf32> to vector<1x8xf32>
    %678 = vector.broadcast %677 : vector<1x8xf32> to vector<16x8xf32>
    %679 = arith.addf %675, %678 : vector<16x8xf32>
    %c20_442 = arith.constant 20 : index
    %c0_443 = arith.constant 0 : index
    %c0_444 = arith.constant 0 : index
    %680 = vector.load %arg6[%c20_442, %c0_443, %c0_444] : memref<24x32x8xf32, #tpu.memory_space<vmem>>, vector<1x32x8xf32>
    %681 = vector.shape_cast %680 : vector<1x32x8xf32> to vector<32x8xf32>
    %cst_445 = arith.constant dense<0.000000e+00> : vector<16x8xf32>
    %682 = tpu.matmul %1, %681, %cst_445 {dimension_numbers = #tpu.dot_dimension_numbers<[1], [0], [0], [1], [0, 0, 1, 1], [], []>} : vector<16x32xf32>, vector<32x8xf32>, vector<16x8xf32> -> vector<16x8xf32>
    %c20_446 = arith.constant 20 : index
    %c0_447 = arith.constant 0 : index
    %c0_448 = arith.constant 0 : index
    %683 = vector.load %arg7[%c20_446, %c0_447, %c0_448] : memref<24x1x8xf32, #tpu.memory_space<vmem>>, vector<1x1x8xf32>
    %684 = vector.shape_cast %683 : vector<1x1x8xf32> to vector<1x8xf32>
    %685 = vector.broadcast %684 : vector<1x8xf32> to vector<16x8xf32>
    %686 = arith.addf %682, %685 : vector<16x8xf32>
    %cst_449 = arith.constant dense<0.000000e+00> : vector<16x16xf32>
    %687 = tpu.matmul %672, %679, %cst_449 {dimension_numbers = #tpu.dot_dimension_numbers<[1], [1], [0], [0], [0, 0, 1, 0], [], []>} : vector<16x8xf32>, vector<16x8xf32>, vector<16x16xf32> -> vector<16x16xf32>
    %688 = arith.addf %687, %51 : vector<16x16xf32>
    %cst_450 = arith.constant dense<0xFF800000> : vector<16xf32>
    %689 = vector.multi_reduction <maximumf>, %688, %cst_450 [1] : vector<16x16xf32> to vector<16xf32>
    %690 = vector.shape_cast %689 : vector<16xf32> to vector<16x1xf32>
    %691 = vector.broadcast %690 : vector<16x1xf32> to vector<16x16xf32>
    %692 = arith.subf %688, %691 : vector<16x16xf32>
    %693 = math.exp %692 : vector<16x16xf32>
    %cst_451 = arith.constant dense<0.000000e+00> : vector<16xf32>
    %694 = vector.multi_reduction <add>, %693, %cst_451 [1] : vector<16x16xf32> to vector<16xf32>
    %695 = vector.shape_cast %694 : vector<16xf32> to vector<16x1xf32>
    %696 = tpu.reciprocal %695 {approx = true} : vector<16x1xf32> -> vector<16x1xf32>
    %697 = vector.broadcast %696 : vector<16x1xf32> to vector<16x16xf32>
    %698 = arith.mulf %693, %697 : vector<16x16xf32>
    %cst_452 = arith.constant dense<0.000000e+00> : vector<16x8xf32>
    %699 = tpu.matmul %698, %686, %cst_452 {dimension_numbers = #tpu.dot_dimension_numbers<[1], [0], [0], [1], [0, 0, 1, 1], [], []>} : vector<16x16xf32>, vector<16x8xf32>, vector<16x8xf32> -> vector<16x8xf32>
    %c4_453 = arith.constant 4 : index
    %c0_454 = arith.constant 0 : index
    %c0_455 = arith.constant 0 : index
    %700 = vector.load %arg8[%c4_453, %c0_454, %c0_455] : memref<8x8x32xf32, #tpu.memory_space<vmem>>, vector<1x8x32xf32>
    %701 = vector.shape_cast %700 : vector<1x8x32xf32> to vector<8x32xf32>
    %cst_456 = arith.constant dense<0.000000e+00> : vector<16x32xf32>
    %702 = tpu.matmul %699, %701, %cst_456 {dimension_numbers = #tpu.dot_dimension_numbers<[1], [0], [0], [1], [0, 0, 1, 1], [], []>} : vector<16x8xf32>, vector<8x32xf32>, vector<16x32xf32> -> vector<16x32xf32>
    %703 = arith.addf %663, %702 : vector<16x32xf32>
    %c13_457 = arith.constant 13 : index
    %c0_458 = arith.constant 0 : index
    %c0_459 = arith.constant 0 : index
    %704 = vector.load %arg6[%c13_457, %c0_458, %c0_459] : memref<24x32x8xf32, #tpu.memory_space<vmem>>, vector<1x32x8xf32>
    %705 = vector.shape_cast %704 : vector<1x32x8xf32> to vector<32x8xf32>
    %cst_460 = arith.constant dense<0.000000e+00> : vector<16x8xf32>
    %706 = tpu.matmul %662, %705, %cst_460 {dimension_numbers = #tpu.dot_dimension_numbers<[1], [0], [0], [1], [0, 0, 1, 1], [], []>} : vector<16x32xf32>, vector<32x8xf32>, vector<16x8xf32> -> vector<16x8xf32>
    %c13_461 = arith.constant 13 : index
    %c0_462 = arith.constant 0 : index
    %c0_463 = arith.constant 0 : index
    %707 = vector.load %arg7[%c13_461, %c0_462, %c0_463] : memref<24x1x8xf32, #tpu.memory_space<vmem>>, vector<1x1x8xf32>
    %708 = vector.shape_cast %707 : vector<1x1x8xf32> to vector<1x8xf32>
    %709 = vector.broadcast %708 : vector<1x8xf32> to vector<16x8xf32>
    %710 = arith.addf %706, %709 : vector<16x8xf32>
    %cst_464 = arith.constant 0.353553385 : f32
    %711 = vector.broadcast %cst_464 : f32 to vector<16x8xf32>
    %712 = arith.mulf %710, %711 : vector<16x8xf32>
    %c17_465 = arith.constant 17 : index
    %c0_466 = arith.constant 0 : index
    %c0_467 = arith.constant 0 : index
    %713 = vector.load %arg6[%c17_465, %c0_466, %c0_467] : memref<24x32x8xf32, #tpu.memory_space<vmem>>, vector<1x32x8xf32>
    %714 = vector.shape_cast %713 : vector<1x32x8xf32> to vector<32x8xf32>
    %cst_468 = arith.constant dense<0.000000e+00> : vector<16x8xf32>
    %715 = tpu.matmul %1, %714, %cst_468 {dimension_numbers = #tpu.dot_dimension_numbers<[1], [0], [0], [1], [0, 0, 1, 1], [], []>} : vector<16x32xf32>, vector<32x8xf32>, vector<16x8xf32> -> vector<16x8xf32>
    %c17_469 = arith.constant 17 : index
    %c0_470 = arith.constant 0 : index
    %c0_471 = arith.constant 0 : index
    %716 = vector.load %arg7[%c17_469, %c0_470, %c0_471] : memref<24x1x8xf32, #tpu.memory_space<vmem>>, vector<1x1x8xf32>
    %717 = vector.shape_cast %716 : vector<1x1x8xf32> to vector<1x8xf32>
    %718 = vector.broadcast %717 : vector<1x8xf32> to vector<16x8xf32>
    %719 = arith.addf %715, %718 : vector<16x8xf32>
    %c21_472 = arith.constant 21 : index
    %c0_473 = arith.constant 0 : index
    %c0_474 = arith.constant 0 : index
    %720 = vector.load %arg6[%c21_472, %c0_473, %c0_474] : memref<24x32x8xf32, #tpu.memory_space<vmem>>, vector<1x32x8xf32>
    %721 = vector.shape_cast %720 : vector<1x32x8xf32> to vector<32x8xf32>
    %cst_475 = arith.constant dense<0.000000e+00> : vector<16x8xf32>
    %722 = tpu.matmul %1, %721, %cst_475 {dimension_numbers = #tpu.dot_dimension_numbers<[1], [0], [0], [1], [0, 0, 1, 1], [], []>} : vector<16x32xf32>, vector<32x8xf32>, vector<16x8xf32> -> vector<16x8xf32>
    %c21_476 = arith.constant 21 : index
    %c0_477 = arith.constant 0 : index
    %c0_478 = arith.constant 0 : index
    %723 = vector.load %arg7[%c21_476, %c0_477, %c0_478] : memref<24x1x8xf32, #tpu.memory_space<vmem>>, vector<1x1x8xf32>
    %724 = vector.shape_cast %723 : vector<1x1x8xf32> to vector<1x8xf32>
    %725 = vector.broadcast %724 : vector<1x8xf32> to vector<16x8xf32>
    %726 = arith.addf %722, %725 : vector<16x8xf32>
    %cst_479 = arith.constant dense<0.000000e+00> : vector<16x16xf32>
    %727 = tpu.matmul %712, %719, %cst_479 {dimension_numbers = #tpu.dot_dimension_numbers<[1], [1], [0], [0], [0, 0, 1, 0], [], []>} : vector<16x8xf32>, vector<16x8xf32>, vector<16x16xf32> -> vector<16x16xf32>
    %728 = arith.addf %727, %51 : vector<16x16xf32>
    %cst_480 = arith.constant dense<0xFF800000> : vector<16xf32>
    %729 = vector.multi_reduction <maximumf>, %728, %cst_480 [1] : vector<16x16xf32> to vector<16xf32>
    %730 = vector.shape_cast %729 : vector<16xf32> to vector<16x1xf32>
    %731 = vector.broadcast %730 : vector<16x1xf32> to vector<16x16xf32>
    %732 = arith.subf %728, %731 : vector<16x16xf32>
    %733 = math.exp %732 : vector<16x16xf32>
    %cst_481 = arith.constant dense<0.000000e+00> : vector<16xf32>
    %734 = vector.multi_reduction <add>, %733, %cst_481 [1] : vector<16x16xf32> to vector<16xf32>
    %735 = vector.shape_cast %734 : vector<16xf32> to vector<16x1xf32>
    %736 = tpu.reciprocal %735 {approx = true} : vector<16x1xf32> -> vector<16x1xf32>
    %737 = vector.broadcast %736 : vector<16x1xf32> to vector<16x16xf32>
    %738 = arith.mulf %733, %737 : vector<16x16xf32>
    %cst_482 = arith.constant dense<0.000000e+00> : vector<16x8xf32>
    %739 = tpu.matmul %738, %726, %cst_482 {dimension_numbers = #tpu.dot_dimension_numbers<[1], [0], [0], [1], [0, 0, 1, 1], [], []>} : vector<16x16xf32>, vector<16x8xf32>, vector<16x8xf32> -> vector<16x8xf32>
    %c5_483 = arith.constant 5 : index
    %c0_484 = arith.constant 0 : index
    %c0_485 = arith.constant 0 : index
    %740 = vector.load %arg8[%c5_483, %c0_484, %c0_485] : memref<8x8x32xf32, #tpu.memory_space<vmem>>, vector<1x8x32xf32>
    %741 = vector.shape_cast %740 : vector<1x8x32xf32> to vector<8x32xf32>
    %cst_486 = arith.constant dense<0.000000e+00> : vector<16x32xf32>
    %742 = tpu.matmul %739, %741, %cst_486 {dimension_numbers = #tpu.dot_dimension_numbers<[1], [0], [0], [1], [0, 0, 1, 1], [], []>} : vector<16x8xf32>, vector<8x32xf32>, vector<16x32xf32> -> vector<16x32xf32>
    %743 = arith.addf %703, %742 : vector<16x32xf32>
    %c14_487 = arith.constant 14 : index
    %c0_488 = arith.constant 0 : index
    %c0_489 = arith.constant 0 : index
    %744 = vector.load %arg6[%c14_487, %c0_488, %c0_489] : memref<24x32x8xf32, #tpu.memory_space<vmem>>, vector<1x32x8xf32>
    %745 = vector.shape_cast %744 : vector<1x32x8xf32> to vector<32x8xf32>
    %cst_490 = arith.constant dense<0.000000e+00> : vector<16x8xf32>
    %746 = tpu.matmul %662, %745, %cst_490 {dimension_numbers = #tpu.dot_dimension_numbers<[1], [0], [0], [1], [0, 0, 1, 1], [], []>} : vector<16x32xf32>, vector<32x8xf32>, vector<16x8xf32> -> vector<16x8xf32>
    %c14_491 = arith.constant 14 : index
    %c0_492 = arith.constant 0 : index
    %c0_493 = arith.constant 0 : index
    %747 = vector.load %arg7[%c14_491, %c0_492, %c0_493] : memref<24x1x8xf32, #tpu.memory_space<vmem>>, vector<1x1x8xf32>
    %748 = vector.shape_cast %747 : vector<1x1x8xf32> to vector<1x8xf32>
    %749 = vector.broadcast %748 : vector<1x8xf32> to vector<16x8xf32>
    %750 = arith.addf %746, %749 : vector<16x8xf32>
    %cst_494 = arith.constant 0.353553385 : f32
    %751 = vector.broadcast %cst_494 : f32 to vector<16x8xf32>
    %752 = arith.mulf %750, %751 : vector<16x8xf32>
    %c18_495 = arith.constant 18 : index
    %c0_496 = arith.constant 0 : index
    %c0_497 = arith.constant 0 : index
    %753 = vector.load %arg6[%c18_495, %c0_496, %c0_497] : memref<24x32x8xf32, #tpu.memory_space<vmem>>, vector<1x32x8xf32>
    %754 = vector.shape_cast %753 : vector<1x32x8xf32> to vector<32x8xf32>
    %cst_498 = arith.constant dense<0.000000e+00> : vector<16x8xf32>
    %755 = tpu.matmul %1, %754, %cst_498 {dimension_numbers = #tpu.dot_dimension_numbers<[1], [0], [0], [1], [0, 0, 1, 1], [], []>} : vector<16x32xf32>, vector<32x8xf32>, vector<16x8xf32> -> vector<16x8xf32>
    %c18_499 = arith.constant 18 : index
    %c0_500 = arith.constant 0 : index
    %c0_501 = arith.constant 0 : index
    %756 = vector.load %arg7[%c18_499, %c0_500, %c0_501] : memref<24x1x8xf32, #tpu.memory_space<vmem>>, vector<1x1x8xf32>
    %757 = vector.shape_cast %756 : vector<1x1x8xf32> to vector<1x8xf32>
    %758 = vector.broadcast %757 : vector<1x8xf32> to vector<16x8xf32>
    %759 = arith.addf %755, %758 : vector<16x8xf32>
    %c22_502 = arith.constant 22 : index
    %c0_503 = arith.constant 0 : index
    %c0_504 = arith.constant 0 : index
    %760 = vector.load %arg6[%c22_502, %c0_503, %c0_504] : memref<24x32x8xf32, #tpu.memory_space<vmem>>, vector<1x32x8xf32>
    %761 = vector.shape_cast %760 : vector<1x32x8xf32> to vector<32x8xf32>
    %cst_505 = arith.constant dense<0.000000e+00> : vector<16x8xf32>
    %762 = tpu.matmul %1, %761, %cst_505 {dimension_numbers = #tpu.dot_dimension_numbers<[1], [0], [0], [1], [0, 0, 1, 1], [], []>} : vector<16x32xf32>, vector<32x8xf32>, vector<16x8xf32> -> vector<16x8xf32>
    %c22_506 = arith.constant 22 : index
    %c0_507 = arith.constant 0 : index
    %c0_508 = arith.constant 0 : index
    %763 = vector.load %arg7[%c22_506, %c0_507, %c0_508] : memref<24x1x8xf32, #tpu.memory_space<vmem>>, vector<1x1x8xf32>
    %764 = vector.shape_cast %763 : vector<1x1x8xf32> to vector<1x8xf32>
    %765 = vector.broadcast %764 : vector<1x8xf32> to vector<16x8xf32>
    %766 = arith.addf %762, %765 : vector<16x8xf32>
    %cst_509 = arith.constant dense<0.000000e+00> : vector<16x16xf32>
    %767 = tpu.matmul %752, %759, %cst_509 {dimension_numbers = #tpu.dot_dimension_numbers<[1], [1], [0], [0], [0, 0, 1, 0], [], []>} : vector<16x8xf32>, vector<16x8xf32>, vector<16x16xf32> -> vector<16x16xf32>
    %768 = arith.addf %767, %51 : vector<16x16xf32>
    %cst_510 = arith.constant dense<0xFF800000> : vector<16xf32>
    %769 = vector.multi_reduction <maximumf>, %768, %cst_510 [1] : vector<16x16xf32> to vector<16xf32>
    %770 = vector.shape_cast %769 : vector<16xf32> to vector<16x1xf32>
    %771 = vector.broadcast %770 : vector<16x1xf32> to vector<16x16xf32>
    %772 = arith.subf %768, %771 : vector<16x16xf32>
    %773 = math.exp %772 : vector<16x16xf32>
    %cst_511 = arith.constant dense<0.000000e+00> : vector<16xf32>
    %774 = vector.multi_reduction <add>, %773, %cst_511 [1] : vector<16x16xf32> to vector<16xf32>
    %775 = vector.shape_cast %774 : vector<16xf32> to vector<16x1xf32>
    %776 = tpu.reciprocal %775 {approx = true} : vector<16x1xf32> -> vector<16x1xf32>
    %777 = vector.broadcast %776 : vector<16x1xf32> to vector<16x16xf32>
    %778 = arith.mulf %773, %777 : vector<16x16xf32>
    %cst_512 = arith.constant dense<0.000000e+00> : vector<16x8xf32>
    %779 = tpu.matmul %778, %766, %cst_512 {dimension_numbers = #tpu.dot_dimension_numbers<[1], [0], [0], [1], [0, 0, 1, 1], [], []>} : vector<16x16xf32>, vector<16x8xf32>, vector<16x8xf32> -> vector<16x8xf32>
    %c6_513 = arith.constant 6 : index
    %c0_514 = arith.constant 0 : index
    %c0_515 = arith.constant 0 : index
    %780 = vector.load %arg8[%c6_513, %c0_514, %c0_515] : memref<8x8x32xf32, #tpu.memory_space<vmem>>, vector<1x8x32xf32>
    %781 = vector.shape_cast %780 : vector<1x8x32xf32> to vector<8x32xf32>
    %cst_516 = arith.constant dense<0.000000e+00> : vector<16x32xf32>
    %782 = tpu.matmul %779, %781, %cst_516 {dimension_numbers = #tpu.dot_dimension_numbers<[1], [0], [0], [1], [0, 0, 1, 1], [], []>} : vector<16x8xf32>, vector<8x32xf32>, vector<16x32xf32> -> vector<16x32xf32>
    %783 = arith.addf %743, %782 : vector<16x32xf32>
    %c15_517 = arith.constant 15 : index
    %c0_518 = arith.constant 0 : index
    %c0_519 = arith.constant 0 : index
    %784 = vector.load %arg6[%c15_517, %c0_518, %c0_519] : memref<24x32x8xf32, #tpu.memory_space<vmem>>, vector<1x32x8xf32>
    %785 = vector.shape_cast %784 : vector<1x32x8xf32> to vector<32x8xf32>
    %cst_520 = arith.constant dense<0.000000e+00> : vector<16x8xf32>
    %786 = tpu.matmul %662, %785, %cst_520 {dimension_numbers = #tpu.dot_dimension_numbers<[1], [0], [0], [1], [0, 0, 1, 1], [], []>} : vector<16x32xf32>, vector<32x8xf32>, vector<16x8xf32> -> vector<16x8xf32>
    %c15_521 = arith.constant 15 : index
    %c0_522 = arith.constant 0 : index
    %c0_523 = arith.constant 0 : index
    %787 = vector.load %arg7[%c15_521, %c0_522, %c0_523] : memref<24x1x8xf32, #tpu.memory_space<vmem>>, vector<1x1x8xf32>
    %788 = vector.shape_cast %787 : vector<1x1x8xf32> to vector<1x8xf32>
    %789 = vector.broadcast %788 : vector<1x8xf32> to vector<16x8xf32>
    %790 = arith.addf %786, %789 : vector<16x8xf32>
    %cst_524 = arith.constant 0.353553385 : f32
    %791 = vector.broadcast %cst_524 : f32 to vector<16x8xf32>
    %792 = arith.mulf %790, %791 : vector<16x8xf32>
    %c19_525 = arith.constant 19 : index
    %c0_526 = arith.constant 0 : index
    %c0_527 = arith.constant 0 : index
    %793 = vector.load %arg6[%c19_525, %c0_526, %c0_527] : memref<24x32x8xf32, #tpu.memory_space<vmem>>, vector<1x32x8xf32>
    %794 = vector.shape_cast %793 : vector<1x32x8xf32> to vector<32x8xf32>
    %cst_528 = arith.constant dense<0.000000e+00> : vector<16x8xf32>
    %795 = tpu.matmul %1, %794, %cst_528 {dimension_numbers = #tpu.dot_dimension_numbers<[1], [0], [0], [1], [0, 0, 1, 1], [], []>} : vector<16x32xf32>, vector<32x8xf32>, vector<16x8xf32> -> vector<16x8xf32>
    %c19_529 = arith.constant 19 : index
    %c0_530 = arith.constant 0 : index
    %c0_531 = arith.constant 0 : index
    %796 = vector.load %arg7[%c19_529, %c0_530, %c0_531] : memref<24x1x8xf32, #tpu.memory_space<vmem>>, vector<1x1x8xf32>
    %797 = vector.shape_cast %796 : vector<1x1x8xf32> to vector<1x8xf32>
    %798 = vector.broadcast %797 : vector<1x8xf32> to vector<16x8xf32>
    %799 = arith.addf %795, %798 : vector<16x8xf32>
    %c23_532 = arith.constant 23 : index
    %c0_533 = arith.constant 0 : index
    %c0_534 = arith.constant 0 : index
    %800 = vector.load %arg6[%c23_532, %c0_533, %c0_534] : memref<24x32x8xf32, #tpu.memory_space<vmem>>, vector<1x32x8xf32>
    %801 = vector.shape_cast %800 : vector<1x32x8xf32> to vector<32x8xf32>
    %cst_535 = arith.constant dense<0.000000e+00> : vector<16x8xf32>
    %802 = tpu.matmul %1, %801, %cst_535 {dimension_numbers = #tpu.dot_dimension_numbers<[1], [0], [0], [1], [0, 0, 1, 1], [], []>} : vector<16x32xf32>, vector<32x8xf32>, vector<16x8xf32> -> vector<16x8xf32>
    %c23_536 = arith.constant 23 : index
    %c0_537 = arith.constant 0 : index
    %c0_538 = arith.constant 0 : index
    %803 = vector.load %arg7[%c23_536, %c0_537, %c0_538] : memref<24x1x8xf32, #tpu.memory_space<vmem>>, vector<1x1x8xf32>
    %804 = vector.shape_cast %803 : vector<1x1x8xf32> to vector<1x8xf32>
    %805 = vector.broadcast %804 : vector<1x8xf32> to vector<16x8xf32>
    %806 = arith.addf %802, %805 : vector<16x8xf32>
    %cst_539 = arith.constant dense<0.000000e+00> : vector<16x16xf32>
    %807 = tpu.matmul %792, %799, %cst_539 {dimension_numbers = #tpu.dot_dimension_numbers<[1], [1], [0], [0], [0, 0, 1, 0], [], []>} : vector<16x8xf32>, vector<16x8xf32>, vector<16x16xf32> -> vector<16x16xf32>
    %808 = arith.addf %807, %51 : vector<16x16xf32>
    %cst_540 = arith.constant dense<0xFF800000> : vector<16xf32>
    %809 = vector.multi_reduction <maximumf>, %808, %cst_540 [1] : vector<16x16xf32> to vector<16xf32>
    %810 = vector.shape_cast %809 : vector<16xf32> to vector<16x1xf32>
    %811 = vector.broadcast %810 : vector<16x1xf32> to vector<16x16xf32>
    %812 = arith.subf %808, %811 : vector<16x16xf32>
    %813 = math.exp %812 : vector<16x16xf32>
    %cst_541 = arith.constant dense<0.000000e+00> : vector<16xf32>
    %814 = vector.multi_reduction <add>, %813, %cst_541 [1] : vector<16x16xf32> to vector<16xf32>
    %815 = vector.shape_cast %814 : vector<16xf32> to vector<16x1xf32>
    %816 = tpu.reciprocal %815 {approx = true} : vector<16x1xf32> -> vector<16x1xf32>
    %817 = vector.broadcast %816 : vector<16x1xf32> to vector<16x16xf32>
    %818 = arith.mulf %813, %817 : vector<16x16xf32>
    %cst_542 = arith.constant dense<0.000000e+00> : vector<16x8xf32>
    %819 = tpu.matmul %818, %806, %cst_542 {dimension_numbers = #tpu.dot_dimension_numbers<[1], [0], [0], [1], [0, 0, 1, 1], [], []>} : vector<16x16xf32>, vector<16x8xf32>, vector<16x8xf32> -> vector<16x8xf32>
    %c7_543 = arith.constant 7 : index
    %c0_544 = arith.constant 0 : index
    %c0_545 = arith.constant 0 : index
    %820 = vector.load %arg8[%c7_543, %c0_544, %c0_545] : memref<8x8x32xf32, #tpu.memory_space<vmem>>, vector<1x8x32xf32>
    %821 = vector.shape_cast %820 : vector<1x8x32xf32> to vector<8x32xf32>
    %cst_546 = arith.constant dense<0.000000e+00> : vector<16x32xf32>
    %822 = tpu.matmul %819, %821, %cst_546 {dimension_numbers = #tpu.dot_dimension_numbers<[1], [0], [0], [1], [0, 0, 1, 1], [], []>} : vector<16x8xf32>, vector<8x32xf32>, vector<16x32xf32> -> vector<16x32xf32>
    %823 = arith.addf %783, %822 : vector<16x32xf32>
    %c1_547 = arith.constant 1 : index
    %c0_548 = arith.constant 0 : index
    %c0_549 = arith.constant 0 : index
    %824 = vector.load %arg9[%c1_547, %c0_548, %c0_549] : memref<2x1x32xf32, #tpu.memory_space<vmem>>, vector<1x1x32xf32>
    %825 = vector.shape_cast %824 : vector<1x1x32xf32> to vector<1x32xf32>
    %826 = vector.broadcast %825 : vector<1x32xf32> to vector<16x32xf32>
    %827 = arith.addf %823, %826 : vector<16x32xf32>
    %828 = arith.addf %662, %827 : vector<16x32xf32>
    %c1_550 = arith.constant 1 : index
    %c0_551 = arith.constant 0 : index
    %c0_552 = arith.constant 0 : index
    %829 = vector.load %arg16[%c1_550, %c0_551, %c0_552] : memref<2x1x32xf32, #tpu.memory_space<vmem>>, vector<1x1x32xf32>
    %830 = vector.shape_cast %829 : vector<1x1x32xf32> to vector<1x32xf32>
    %c1_553 = arith.constant 1 : index
    %c0_554 = arith.constant 0 : index
    %c0_555 = arith.constant 0 : index
    %831 = vector.load %arg17[%c1_553, %c0_554, %c0_555] : memref<2x1x32xf32, #tpu.memory_space<vmem>>, vector<1x1x32xf32>
    %832 = vector.shape_cast %831 : vector<1x1x32xf32> to vector<1x32xf32>
    %cst_556 = arith.constant dense<0.000000e+00> : vector<16xf32>
    %833 = vector.multi_reduction <add>, %828, %cst_556 [1] : vector<16x32xf32> to vector<16xf32>
    %834 = vector.shape_cast %833 : vector<16xf32> to vector<16x1xf32>
    %cst_557 = arith.constant 3.200000e+01 : f32
    %835 = vector.broadcast %cst_557 : f32 to vector<16x1xf32>
    %836 = arith.divf %834, %835 : vector<16x1xf32>
    %837 = vector.broadcast %836 : vector<16x1xf32> to vector<16x32xf32>
    %838 = arith.subf %828, %837 : vector<16x32xf32>
    %839 = arith.mulf %838, %838 : vector<16x32xf32>
    %cst_558 = arith.constant dense<0.000000e+00> : vector<16xf32>
    %840 = vector.multi_reduction <add>, %839, %cst_558 [1] : vector<16x32xf32> to vector<16xf32>
    %841 = vector.shape_cast %840 : vector<16xf32> to vector<16x1xf32>
    %cst_559 = arith.constant 3.200000e+01 : f32
    %842 = vector.broadcast %cst_559 : f32 to vector<16x1xf32>
    %843 = arith.divf %841, %842 : vector<16x1xf32>
    %cst_560 = arith.constant 9.99999974E-6 : f32
    %844 = vector.broadcast %cst_560 : f32 to vector<16x1xf32>
    %845 = arith.addf %843, %844 : vector<16x1xf32>
    %846 = math.rsqrt %845 : vector<16x1xf32>
    %847 = vector.broadcast %846 : vector<16x1xf32> to vector<16x32xf32>
    %848 = arith.mulf %838, %847 : vector<16x32xf32>
    %849 = vector.broadcast %830 : vector<1x32xf32> to vector<16x32xf32>
    %850 = arith.mulf %848, %849 : vector<16x32xf32>
    %851 = vector.broadcast %832 : vector<1x32xf32> to vector<16x32xf32>
    %852 = arith.addf %850, %851 : vector<16x32xf32>
    %c1_561 = arith.constant 1 : index
    %c0_562 = arith.constant 0 : index
    %c0_563 = arith.constant 0 : index
    %853 = vector.load %arg10[%c1_561, %c0_562, %c0_563] : memref<2x32x64xf32, #tpu.memory_space<vmem>>, vector<1x32x64xf32>
    %854 = vector.shape_cast %853 : vector<1x32x64xf32> to vector<32x64xf32>
    %cst_564 = arith.constant dense<0.000000e+00> : vector<16x64xf32>
    %855 = tpu.matmul %852, %854, %cst_564 {dimension_numbers = #tpu.dot_dimension_numbers<[1], [0], [0], [1], [0, 0, 1, 1], [], []>} : vector<16x32xf32>, vector<32x64xf32>, vector<16x64xf32> -> vector<16x64xf32>
    %c1_565 = arith.constant 1 : index
    %c0_566 = arith.constant 0 : index
    %c0_567 = arith.constant 0 : index
    %856 = vector.load %arg11[%c1_565, %c0_566, %c0_567] : memref<2x1x64xf32, #tpu.memory_space<vmem>>, vector<1x1x64xf32>
    %857 = vector.shape_cast %856 : vector<1x1x64xf32> to vector<1x64xf32>
    %858 = vector.broadcast %857 : vector<1x64xf32> to vector<16x64xf32>
    %859 = arith.addf %855, %858 : vector<16x64xf32>
    %cst_568 = arith.constant 0.000000e+00 : f32
    %860 = vector.broadcast %cst_568 : f32 to vector<16x64xf32>
    %861 = arith.maximumf %859, %860 : vector<16x64xf32>
    %c1_569 = arith.constant 1 : index
    %c0_570 = arith.constant 0 : index
    %c0_571 = arith.constant 0 : index
    %862 = vector.load %arg12[%c1_569, %c0_570, %c0_571] : memref<2x64x32xf32, #tpu.memory_space<vmem>>, vector<1x64x32xf32>
    %863 = vector.shape_cast %862 : vector<1x64x32xf32> to vector<64x32xf32>
    %cst_572 = arith.constant dense<0.000000e+00> : vector<16x32xf32>
    %864 = tpu.matmul %861, %863, %cst_572 {dimension_numbers = #tpu.dot_dimension_numbers<[1], [0], [0], [1], [0, 0, 1, 1], [], []>} : vector<16x64xf32>, vector<64x32xf32>, vector<16x32xf32> -> vector<16x32xf32>
    %c1_573 = arith.constant 1 : index
    %c0_574 = arith.constant 0 : index
    %c0_575 = arith.constant 0 : index
    %865 = vector.load %arg13[%c1_573, %c0_574, %c0_575] : memref<2x1x32xf32, #tpu.memory_space<vmem>>, vector<1x1x32xf32>
    %866 = vector.shape_cast %865 : vector<1x1x32xf32> to vector<1x32xf32>
    %867 = vector.broadcast %866 : vector<1x32xf32> to vector<16x32xf32>
    %868 = arith.addf %864, %867 : vector<16x32xf32>
    %869 = arith.addf %852, %868 : vector<16x32xf32>
    %c1_576 = arith.constant 1 : index
    %c0_577 = arith.constant 0 : index
    %c0_578 = arith.constant 0 : index
    %870 = vector.load %arg18[%c1_576, %c0_577, %c0_578] : memref<2x1x32xf32, #tpu.memory_space<vmem>>, vector<1x1x32xf32>
    %871 = vector.shape_cast %870 : vector<1x1x32xf32> to vector<1x32xf32>
    %c1_579 = arith.constant 1 : index
    %c0_580 = arith.constant 0 : index
    %c0_581 = arith.constant 0 : index
    %872 = vector.load %arg19[%c1_579, %c0_580, %c0_581] : memref<2x1x32xf32, #tpu.memory_space<vmem>>, vector<1x1x32xf32>
    %873 = vector.shape_cast %872 : vector<1x1x32xf32> to vector<1x32xf32>
    %cst_582 = arith.constant dense<0.000000e+00> : vector<16xf32>
    %874 = vector.multi_reduction <add>, %869, %cst_582 [1] : vector<16x32xf32> to vector<16xf32>
    %875 = vector.shape_cast %874 : vector<16xf32> to vector<16x1xf32>
    %cst_583 = arith.constant 3.200000e+01 : f32
    %876 = vector.broadcast %cst_583 : f32 to vector<16x1xf32>
    %877 = arith.divf %875, %876 : vector<16x1xf32>
    %878 = vector.broadcast %877 : vector<16x1xf32> to vector<16x32xf32>
    %879 = arith.subf %869, %878 : vector<16x32xf32>
    %880 = arith.mulf %879, %879 : vector<16x32xf32>
    %cst_584 = arith.constant dense<0.000000e+00> : vector<16xf32>
    %881 = vector.multi_reduction <add>, %880, %cst_584 [1] : vector<16x32xf32> to vector<16xf32>
    %882 = vector.shape_cast %881 : vector<16xf32> to vector<16x1xf32>
    %cst_585 = arith.constant 3.200000e+01 : f32
    %883 = vector.broadcast %cst_585 : f32 to vector<16x1xf32>
    %884 = arith.divf %882, %883 : vector<16x1xf32>
    %cst_586 = arith.constant 9.99999974E-6 : f32
    %885 = vector.broadcast %cst_586 : f32 to vector<16x1xf32>
    %886 = arith.addf %884, %885 : vector<16x1xf32>
    %887 = math.rsqrt %886 : vector<16x1xf32>
    %888 = vector.broadcast %887 : vector<16x1xf32> to vector<16x32xf32>
    %889 = arith.mulf %879, %888 : vector<16x32xf32>
    %890 = vector.broadcast %871 : vector<1x32xf32> to vector<16x32xf32>
    %891 = arith.mulf %889, %890 : vector<16x32xf32>
    %892 = vector.broadcast %873 : vector<1x32xf32> to vector<16x32xf32>
    %893 = arith.addf %891, %892 : vector<16x32xf32>
    %c0_587 = arith.constant 0 : index
    %c0_588 = arith.constant 0 : index
    %894 = vector.load %arg20[%c0_587, %c0_588] : memref<1x32xf32, #tpu.memory_space<vmem>>, vector<1x32xf32>
    %c0_589 = arith.constant 0 : index
    %c0_590 = arith.constant 0 : index
    %895 = vector.load %arg21[%c0_589, %c0_590] : memref<1x32xf32, #tpu.memory_space<vmem>>, vector<1x32xf32>
    %cst_591 = arith.constant dense<0.000000e+00> : vector<16xf32>
    %896 = vector.multi_reduction <add>, %893, %cst_591 [1] : vector<16x32xf32> to vector<16xf32>
    %897 = vector.shape_cast %896 : vector<16xf32> to vector<16x1xf32>
    %cst_592 = arith.constant 3.200000e+01 : f32
    %898 = vector.broadcast %cst_592 : f32 to vector<16x1xf32>
    %899 = arith.divf %897, %898 : vector<16x1xf32>
    %900 = vector.broadcast %899 : vector<16x1xf32> to vector<16x32xf32>
    %901 = arith.subf %893, %900 : vector<16x32xf32>
    %902 = arith.mulf %901, %901 : vector<16x32xf32>
    %cst_593 = arith.constant dense<0.000000e+00> : vector<16xf32>
    %903 = vector.multi_reduction <add>, %902, %cst_593 [1] : vector<16x32xf32> to vector<16xf32>
    %904 = vector.shape_cast %903 : vector<16xf32> to vector<16x1xf32>
    %cst_594 = arith.constant 3.200000e+01 : f32
    %905 = vector.broadcast %cst_594 : f32 to vector<16x1xf32>
    %906 = arith.divf %904, %905 : vector<16x1xf32>
    %cst_595 = arith.constant 9.99999974E-6 : f32
    %907 = vector.broadcast %cst_595 : f32 to vector<16x1xf32>
    %908 = arith.addf %906, %907 : vector<16x1xf32>
    %909 = math.rsqrt %908 : vector<16x1xf32>
    %910 = vector.broadcast %909 : vector<16x1xf32> to vector<16x32xf32>
    %911 = arith.mulf %901, %910 : vector<16x32xf32>
    %912 = vector.broadcast %894 : vector<1x32xf32> to vector<16x32xf32>
    %913 = arith.mulf %911, %912 : vector<16x32xf32>
    %914 = vector.broadcast %895 : vector<1x32xf32> to vector<16x32xf32>
    %915 = arith.addf %913, %914 : vector<16x32xf32>
    %c0_596 = arith.constant 0 : index
    %c0_597 = arith.constant 0 : index
    %916 = vector.load %arg22[%c0_596, %c0_597] : memref<50x32xf32, #tpu.memory_space<vmem>>, vector<50x32xf32>
    %cst_598 = arith.constant dense<0.000000e+00> : vector<16x50xf32>
    %917 = tpu.matmul %915, %916, %cst_598 {dimension_numbers = #tpu.dot_dimension_numbers<[1], [1], [0], [0], [0, 0, 1, 0], [], []>} : vector<16x32xf32>, vector<50x32xf32>, vector<16x50xf32> -> vector<16x50xf32>
    %c0_599 = arith.constant 0 : index
    %c0_600 = arith.constant 0 : index
    %918 = vector.load %arg23[%c0_599, %c0_600] : memref<1x50xf32, #tpu.memory_space<vmem>>, vector<1x50xf32>
    %919 = vector.broadcast %918 : vector<1x50xf32> to vector<16x50xf32>
    %920 = arith.addf %917, %919 : vector<16x50xf32>
    %c0_601 = arith.constant 0 : index
    %c0_602 = arith.constant 0 : index
    %921 = vector.load %arg24[%c0_601, %c0_602] : memref<16x50xf32, #tpu.memory_space<vmem>>, vector<16x50xf32>
    tpu.vector_store %arg24[%c0_601, %c0_602], %920 {strides = array<i32>} : memref<16x50xf32, #tpu.memory_space<vmem>>, vector<16x50xf32>,
    return
  }
}

</mosaic_0001>

<bundles_post_ra>
// kernel: transformer_model_forward.4
= control target key start
LH: loop header
LB: loop body
LE: loop exit
PB: predicated region body
PF: predicated region fallthrough
CT: control target
= control target key end

     0   :  { %16 = vsyncpa [#allocation3], 0  ;;  %s1094_s0 = inlined_call_operand.vmem [shape: f32[16,32], index: 0, kind: input, shape index: {}]   ;;  %s1095_s1 = inlined_call_operand.vmem [shape: f32[3,32,128], index: 1, kind: input, shape index: {}]   ;;  %s1096_s2 = inlined_call_operand.vmem [shape: f32[1,128], index: 2, kind: input, shape index: {}]   ;;  %s1097_s3 = inlined_call_operand.vmem [shape: f32[4,32,128], index: 3, kind: input, shape index: {}]   ;;  %s1098_s4 = inlined_call_operand.vmem [shape: f32[1,128], index: 4, kind: input, shape index: {}]   ;;  %s1099_s5 = inlined_call_operand.vmem [shape: f32[5,32,128], index: 5, kind: input, shape index: {}]   ;;  %s1100_s6 = inlined_call_operand.vmem [shape: f32[1,128], index: 6, kind: input, shape index: {}]   ;;  %s1101_s7 = inlined_call_operand.hbm [shape: f32[128,8], index: 7, kind: input, shape index: {}]   ;;  %s1102_s8 = inlined_call_operand.hbm [shape: f32[128,8], index: 8, kind: input, shape index: {}]   ;;  %s1103_s9 = inlined_call_operand.hbm [shape: f32[128,8], index: 9, kind: input, shape index: {}]   ;;  %s1104_s10 = inlined_call_operand.vmem [shape: f32[1,8], index: 10, kind: input, shape index: {}]   ;;  %s1105_s11 = inlined_call_operand.hbm [shape: f32[2,8], index: 11, kind: output, shape index: {}]  }
   0x1   :  { %17 = vsyncpa [#allocation6], 0 }
   0x2   :  { %18 = vsyncpa [#allocation4], 0  ;;  %s50_s19 = sshll.u32 %s1102_s8, 4  ;;  %s805_s20 = smov [#allocation5]   ;;  %s51_s19 = int_to_ptr.hbm [resolvable:$true] %s50_s19 }
   0x3   :  { %s52_s21 = sshll.u32 %s805_s20, 4  ;;  %s37_s24 = sshll.u32 %s1101_s7, 4  ;;  %s53_s21 = int_to_ptr.vmem [resolvable:$true] %s52_s21  ;;  %s38_s24 = int_to_ptr.hbm [resolvable:$true] %s37_s24 }
   0x4   :  { %s806_s25 = smov 128   ;;  %s807_s26 = smov 8  }
   0x5   :  { %58 = dma.hbm_to_vmem [thread:$0]  %s51_s19, 2048, %s53_s21, [#allocation6], %s806_s25, %s806_s25, %s807_s26  }
   0x6   :  { %s808_s27 = smov [#allocation2]   ;;  %s63_s12 = sshll.u32 %s1103_s9, 4  ;;  %s64_s12 = int_to_ptr.hbm [resolvable:$true] %s63_s12 }
   0x7   :  { %s39_s28 = sshll.u32 %s808_s27, 4  ;;  %s809_s8 = smov [#allocation7]   ;;  %s40_s28 = int_to_ptr.vmem [resolvable:$true] %s39_s28 }
   0x8   :  { %45 = dma.hbm_to_vmem [thread:$0]  %s38_s24, 2048, %s40_s28, [#allocation3], %s806_s25, %s806_s25, %s807_s26  }
   0x9   :  { %s65_s13 = sshll.u32 %s809_s8, 4  ;;  %s66_s13 = int_to_ptr.vmem [resolvable:$true] %s65_s13 }
   0xa   :  { %71 = dma.hbm_to_vmem [thread:$0]  %s64_s12, 2048, %s66_s13, [#allocation6], %s806_s25, %s806_s25, %s807_s26  }
   0xb   :  { %799 = dma.done.wait [#allocation3], 2048  }
   0xc   :  { %800 = vsyncadd [#allocation3], 4294965248 }
   0xd   :  { %801 = dma.done.wait [#allocation6], 4096  }
   0xe   :  { %802 = vsyncadd [#allocation6], 4294963200  ;;  %v91_v0 = vld [vmem:[%s1095_s1 + $0x18] sm:$0xff]  ;;  %v90_v1 = vld [vmem:[%s1095_s1 + $0x10] sm:$0xff]  ;;  %vm99_vm0 = vcmask 1045504   ;;  %vm103_vm1 = vcmask 261120  }
   0xf   :  { %147 = vmatpush.msra.mxu2 %v91_v0  ;;  %v641_v2 = vld [vmem:[%s1095_s1 + $0x38] sm:$0xff]  ;;  %v892_v3 = vld [vmem:[%s1094_s0] sm:$0xff]  ;;  %v89_v4 = vld [vmem:[%s1095_s1 + $0x8] sm:$0xff]  ;;  %vm163_vm2 = vcmask 1043456   ;;  %vm325_vm3 = vcmask 1041408   ;;  %s810_s19 = smov [#allocation8]  }
  0x10   :  { %120 = vmatpush.msra.mxu0 %v641_v2  ;;  %v640_v5 = vld [vmem:[%s1095_s1 + $0x30] sm:$0xff]  ;;  %v100_v6 = vrot.slane %v892_v3, 2  ;;  %v639_v7 = vld [vmem:[%s1095_s1 + $0x28] sm:$0xff]  ;;  %v88_v9 = vld [vmem:[%s1095_s1] sm:$0xff]  ;;  %v164_v29 = vrot.slane %v892_v3, 4  ;;  %v326_v36 = vrot.slane %v892_v3, 6 }
  0x11   :  { %148 = vmatpush.msra.mxu2 %v90_v1  ;;  %v907_v8 = vld [vmem:[%s1094_s0 + $0x8] sm:$0xff]  ;;  %v638_v11 = vld [vmem:[%s1095_s1 + $0x20] sm:$0xff]  ;;  %v655_v12 = vld [vmem:[%s1097_s3 + $0x38] sm:$0xff]  ;;  %s627_s22 = sshll.u32 %s1105_s11, 4  ;;  %vm618_vm4 = vcmask 58368   ;;  %s628_s22 = int_to_ptr.hbm [resolvable:$true] %s627_s22 }
  0x12   :  { %121 = vmatpush.msra.mxu0 %v640_v5  ;;  %v101_v10 = vrot.slane %v907_v8, 2  ;;  %v649_v13 = vld [vmem:[%s1095_s1 + $0x58] sm:$0xff]  ;;  %256 = vmatpush.msra.mxu3 %v655_v12  ;;  %v654_v16 = vld [vmem:[%s1097_s3 + $0x30] sm:$0xff]  ;;  %v647_v18 = vld [vmem:[%s1095_s1 + $0x48] sm:$0xff]  ;;  %v165_v30 = vrot.slane %v907_v8, 4  ;;  %v327_v37 = vrot.slane %v907_v8, 6 }
  0x13   :  { %149 = vmatpush.msra.mxu2 %v89_v4  ;;  %v238_v15 = vld [vmem:[%s1097_s3 + $0x18] sm:$0xff]  ;;  %v648_v17 = vld [vmem:[%s1095_s1 + $0x50] sm:$0xff]  ;;  %v653_v21 = vld [vmem:[%s1097_s3 + $0x28] sm:$0xff] }
  0x14   :  { %122 = vmatpush.msra.mxu0 %v639_v7  ;;  %v922_v14 = vsel %vm99_vm0, %v100_v6, %v101_v10  ;;  %v663_v19 = vld [vmem:[%s1097_s3 + $0x58] sm:$0xff]  ;;  %v237_v20 = vld [vmem:[%s1097_s3 + $0x10] sm:$0xff]  ;;  %257 = vmatpush.msra.mxu3 %v654_v16  ;;  %v236_v23 = vld [vmem:[%s1097_s3 + $0x8] sm:$0xff]  ;;  %v986_v34 = vsel %vm163_vm2, %v164_v29, %v165_v30  ;;  %v1004_v38 = vsel %vm325_vm3, %v326_v36, %v327_v37 }
  0x15   :  { %150 = vmatpush.msra.mxu2 %v88_v9  ;;  %v662_v22 = vld [vmem:[%s1097_s3 + $0x50] sm:$0xff]  ;;  %v652_v24 = vld [vmem:[%s1097_s3 + $0x20] sm:$0xff]  ;;  %307 = vmatpush.msra.mxu1 %v663_v19  ;;  %v669_v27 = vld [vmem:[%s1097_s3 + $0x78] sm:$0xff] }
  0x16   :  { %644 = vmatmul.msk.f32.vlgmr.msra.gmra.mxu2 %vm103_vm1, %v892_v3  ;;  %123 = vmatpush.msra.mxu0 %v638_v11  ;;  %v646_v25 = vld [vmem:[%s1095_s1 + $0x40] sm:$0xff]  ;;  %v661_v28 = vld [vmem:[%s1097_s3 + $0x48] sm:$0xff]  ;;  %v668_v31 = vld [vmem:[%s1097_s3 + $0x70] sm:$0xff] }
  0x17   :  { %183 = vmatpush.msrb.mxu2 %v649_v13  ;;  %642 = vmatmul.msk.f32.vlgmr.msra.gmra.mxu0 %vm103_vm1, %v922_v14  ;;  %v235_v26 = vld [vmem:[%s1097_s3] sm:$0xff]  ;;  %v667_v33 = vld [vmem:[%s1097_s3 + $0x68] sm:$0xff]  ;;  %v234_v39 = vld [vmem:[#allocation2 + $0x78] sm:$0xff] }
  0x18   :  { %279 = vmatpush.msrb.mxu0 %v238_v15  ;;  %258 = vmatpush.msra.mxu3 %v653_v21  ;;  %v660_v32 = vld [vmem:[%s1097_s3 + $0x40] sm:$0xff]  ;;  %v233_v40 = vld [vmem:[#allocation2 + $0x70] sm:$0xff]  ;;  %v232_v41 = vld [vmem:[#allocation2 + $0x68] sm:$0xff] }
  0x19   :  { %184 = vmatpush.msrb.mxu2 %v648_v17  ;;  %308 = vmatpush.msra.mxu1 %v662_v22  ;;  %v666_v35 = vld [vmem:[%s1097_s3 + $0x60] sm:$0xff]  ;;  %v230_v43 = vld [vmem:[#allocation2 + $0x58] sm:$0xff]  ;;  %v229_v44 = vld [vmem:[#allocation2 + $0x50] sm:$0xff] }
  0x1a   :  { %280 = vmatpush.msrb.mxu0 %v237_v20  ;;  %259 = vmatpush.msra.mxu3 %v652_v24  ;;  %v231_v42 = vld [vmem:[#allocation2 + $0x60] sm:$0xff]  ;;  %v228_v45 = vld [vmem:[#allocation2 + $0x48] sm:$0xff]  ;;  %v392_v46 = vld [vmem:[#allocation5 + $0x78] sm:$0xff] }
  0x1b   :  { %185 = vmatpush.msrb.mxu2 %v647_v18  ;;  %656 = vmatmul.msk.f32.vlgmr.msra.gmra.mxu3 %vm103_vm1, %v922_v14  ;;  %v227_v47 = vld [vmem:[#allocation2 + $0x40] sm:$0xff]  ;;  %v391_v48 = vld [vmem:[#allocation5 + $0x70] sm:$0xff]  ;;  %v226_v49 = vld [vmem:[#allocation2 + $0x38] sm:$0xff] }
  0x1c   :  { %281 = vmatpush.msrb.mxu0 %v236_v23  ;;  %309 = vmatpush.msra.mxu1 %v661_v28  ;;  %v390_v50 = vld [vmem:[#allocation5 + $0x68] sm:$0xff]  ;;  %v225_v51 = vld [vmem:[#allocation2 + $0x30] sm:$0xff]  ;;  %v389_v52 = vld [vmem:[#allocation5 + $0x60] sm:$0xff] }
  0x1d   :  { %186 = vmatpush.msrb.mxu2 %v646_v25  ;;  %393 = vmatpush.msrb.mxu3 %v392_v46  ;;  %v224_v53 = vld [vmem:[#allocation2 + $0x28] sm:$0xff]  ;;  %v388_v54 = vld [vmem:[#allocation5 + $0x58] sm:$0xff]  ;;  %v223_v55 = vld [vmem:[#allocation2 + $0x20] sm:$0xff] }
  0x1e   :  { %645 = vmatmul.msk.f32.gmra.mxu2 %vm103_vm1, %v907_v8  ;;  %282 = vmatpush.msrb.mxu0 %v235_v26  ;;  %v387_v56 = vld [vmem:[#allocation5 + $0x50] sm:$0xff]  ;;  %v222_v57 = vld [vmem:[#allocation2 + $0x18] sm:$0xff]  ;;  %v386_v58 = vld [vmem:[#allocation5 + $0x48] sm:$0xff] }
  0x1f   :  { %643 = vmatmul.msk.f32.gmra.mxu0 %vm103_vm1, %v101_v10  ;;  %345 = vmatpush.msra.mxu2 %v669_v27  ;;  %v221_v59 = vld [vmem:[#allocation2 + $0x10] sm:$0xff]  ;;  %v385_v60 = vld [vmem:[#allocation5 + $0x40] sm:$0xff]  ;;  %v220_v61 = vld [vmem:[#allocation2 + $0x8] sm:$0xff] }
  0x20   :  { %310 = vmatpush.msra.mxu1 %v660_v32  ;;  %413 = vmatpush.msra.mxu0 %v234_v39  ;;  %v384_v63 = vld [vmem:[#allocation5 + $0x38] sm:$0xff]  ;;  %v219_v0 = vld [vmem:[#allocation2] sm:$0xff]  ;;  %v383_v2 = vld [vmem:[#allocation5 + $0x30] sm:$0xff] }
  0x21   :  { %346 = vmatpush.msra.mxu2 %v668_v31  ;;  %664 = vmatmul.msk.f32.vlgmr.msra.gmra.mxu1 %vm103_vm1, %v986_v34  ;;  %v382_v4 = vld [vmem:[#allocation5 + $0x28] sm:$0xff]  ;;  %v436_v5 = vld [vmem:[%s1099_s5 + $0x18] sm:$0xff]  ;;  %v381_v6 = vld [vmem:[#allocation5 + $0x20] sm:$0xff] }
  0x22   :  { %414 = vmatpush.msra.mxu0 %v233_v40  ;;  %394 = vmatpush.msrb.mxu3 %v391_v48  ;;  %v380_v9 = vld [vmem:[#allocation5 + $0x18] sm:$0xff]  ;;  %v435_v12 = vld [vmem:[%s1099_s5 + $0x10] sm:$0xff]  ;;  %v378_v13 = vld [vmem:[#allocation5 + $0x8] sm:$0xff] }
  0x23   :  { %347 = vmatpush.msra.mxu2 %v667_v33  ;;  %657 = vmatmul.msk.f32.gmra.mxu3 %vm103_vm1, %v101_v10  ;;  %v379_v10 = vld [vmem:[#allocation5 + $0x10] sm:$0xff]  ;;  %v434_v15 = vld [vmem:[%s1099_s5 + $0x8] sm:$0xff]  ;;  %v377_v16 = vld [vmem:[#allocation5] sm:$0xff] }
  0x24   :  { %415 = vmatpush.msra.mxu0 %v232_v41  ;;  %395 = vmatpush.msrb.mxu3 %v390_v50  ;;  %v699_v18 = vld [vmem:[%s1096_s2] ss:$0 sm:$0xff]  ;;  %v675_v21 = vld [vmem:[%s1099_s5 + $0x38] sm:$0xff]  ;;  %v674_v22 = vld [vmem:[%s1099_s5 + $0x30] sm:$0xff] }
  0x25   :  { %348 = vmatpush.msra.mxu2 %v666_v35  ;;  %v433_v23 = vld [vmem:[%s1099_s5] sm:$0xff]  ;;  %v681_v24 = vld [vmem:[%s1099_s5 + $0x58] sm:$0xff]  ;;  %v673_v27 = vld [vmem:[%s1099_s5 + $0x28] sm:$0xff] }
  0x26   :  { %650 = vmatmul.msk.f32.vlgmr.msrb.gmra.mxu2 %vm103_vm1, %v986_v34  ;;  %416 = vmatpush.msra.mxu0 %v231_v42  ;;  %v686_v25 = vld [vmem:[%s1099_s5 + $0x78] sm:$0xff]  ;;  %v680_v28 = vld [vmem:[%s1099_s5 + $0x50] sm:$0xff]  ;;  %v672_v33 = vld [vmem:[%s1099_s5 + $0x20] sm:$0xff] }
  0x27   :  { %658 = vmatmul.msk.f32.vlgmr.msrb.gmra.mxu0 %vm103_vm1, %v892_v3  ;;  %396 = vmatpush.msrb.mxu3 %v389_v52  ;;  %v685_v29 = vld [vmem:[%s1099_s5 + $0x70] sm:$0xff] }
  0x28   :  { %417 = vmatpush.msra.mxu0 %v230_v43  ;;  %474 = vmatpush.msrb.mxu2 %v436_v5  ;;  %v684_v43 = vld [vmem:[%s1099_s5 + $0x68] sm:$0xff] }
  0x29   :  { %665 = vmatmul.msk.f32.gmra.mxu1 %vm103_vm1, %v165_v30  ;;  %397 = vmatpush.msrb.mxu3 %v388_v54 }
  0x2a   :  { %418 = vmatpush.msra.mxu0 %v229_v44  ;;  %475 = vmatpush.msrb.mxu2 %v435_v12  ;;  %v679_v44 = vld [vmem:[%s1099_s5 + $0x48] sm:$0xff] }
  0x2b   :  { %398 = vmatpush.msrb.mxu3 %v387_v56  ;;  %499 = vmatpush.msrb.mxu1 %v681_v24  ;;  %v585_v24 = vld [vmem:[#allocation7 + $0x48] sm:$0xff] }
  0x2c   :  { %419 = vmatpush.msra.mxu0 %v228_v45  ;;  %476 = vmatpush.msrb.mxu2 %v434_v15  ;;  %v683_v45 = vld [vmem:[%s1099_s5 + $0x60] sm:$0xff]  ;;  %v690_v15 = vld [vmem:[%s1099_s5 + $0x90] sm:$0xff] }
  0x2d   :  { %399 = vmatpush.msrb.mxu3 %v386_v58  ;;  %500 = vmatpush.msrb.mxu1 %v680_v28  ;;  %v579_v28 = vld [vmem:[#allocation7 + $0x18] sm:$0xff] }
  0x2e   :  { %651 = vmatmul.msk.f32.gmra.mxu2 %vm103_vm1, %v165_v30  ;;  %420 = vmatpush.msra.mxu0 %v227_v47 }
  0x2f   :  { %659 = vmatmul.msk.f32.gmra.mxu0 %vm103_vm1, %v907_v8  ;;  %400 = vmatpush.msrb.mxu3 %v385_v60 }
  0x30   :  { %421 = vmatpush.msra.mxu0 %v226_v49  ;;  %477 = vmatpush.msrb.mxu2 %v433_v23  ;;  %v678_v49 = vld [vmem:[%s1099_s5 + $0x40] sm:$0xff]  ;;  %v586_v23 = vld [vmem:[#allocation7 + $0x50] sm:$0xff] }
  0x31   :  { %401 = vmatpush.msrb.mxu3 %v384_v63  ;;  %501 = vmatpush.msrb.mxu1 %v679_v44 }
  0x32   :  { %422 = vmatpush.msra.mxu0 %v225_v51 }
  0x33   :  { %402 = vmatpush.msrb.mxu3 %v383_v2  ;;  %502 = vmatpush.msrb.mxu1 %v678_v49 }
  0x34   :  { %423 = vmatpush.msra.mxu0 %v224_v53  ;;  %682 = vmatmul.msk.f32.vlgmr.msrb.gmra.mxu1 %vm103_vm1, %v986_v34 }
  0x35   :  { %403 = vmatpush.msrb.mxu3 %v382_v4 }
  0x36   :  { %670 = vmatmul.msk.f32.vlgmr.msra.gmra.mxu2 %vm103_vm1, %v1004_v38  ;;  %424 = vmatpush.msra.mxu0 %v223_v55 }
  0x37   :  { %404 = vmatpush.msrb.mxu3 %v381_v6  ;;  %525 = vmatpush.msra.mxu2 %v686_v25  ;;  %v584_v25 = vld [vmem:[#allocation7 + $0x40] sm:$0xff] }
  0x38   :  { %425 = vmatpush.msra.mxu0 %v222_v57  ;;  %v700_v57 = vld [vmem:[%s1098_s4] ss:$0 sm:$0xff] }
  0x39   :  { %405 = vmatpush.msrb.mxu3 %v380_v9  ;;  %526 = vmatpush.msra.mxu2 %v685_v29  ;;  %v578_v29 = vld [vmem:[#allocation7 + $0x10] sm:$0xff] }
  0x3a   :  { %426 = vmatpush.msra.mxu0 %v221_v59 }
  0x3b   :  { %406 = vmatpush.msrb.mxu3 %v379_v10  ;;  %527 = vmatpush.msra.mxu2 %v684_v43 }
  0x3c   :  { %427 = vmatpush.msra.mxu0 %v220_v61 }
  0x3d   :  { %407 = vmatpush.msrb.mxu3 %v378_v13  ;;  %528 = vmatpush.msra.mxu2 %v683_v45  ;;  %v691_v13 = vld [vmem:[%s1099_s5 + $0x98] sm:$0xff] }
  0x3e   :  { %671 = vmatmul.msk.f32.gmra.mxu2 %vm103_vm1, %v327_v37  ;;  %428 = vmatpush.msra.mxu0 %v219_v0 }
  0x3f   :  { %408 = vmatpush.msrb.mxu3 %v377_v16  ;;  %v689_v16 = vld [vmem:[%s1099_s5 + $0x88] sm:$0xff] }
  0x41   :  { %454 = vmatpush.msra.mxu3 %v675_v21  ;;  %v588_v21 = vld [vmem:[#allocation7 + $0x60] sm:$0xff] }
  0x43   :  { %455 = vmatpush.msra.mxu3 %v674_v22  ;;  %v587_v22 = vld [vmem:[#allocation7 + $0x58] sm:$0xff] }
  0x45   :  { %456 = vmatpush.msra.mxu3 %v673_v27  ;;  %v580_v27 = vld [vmem:[#allocation7 + $0x20] sm:$0xff] }
  0x46   :  { %677 = vmatmul.msk.f32.vlgmr.msrb.gmra.mxu2 %vm103_vm1, %v892_v3 }
  0x47   :  { %457 = vmatpush.msra.mxu3 %v672_v33 }
  0x4e   :  { %687 = vmatmul.msk.f32.vlgmr.msra.gmra.mxu2 %vm103_vm1, %v1004_v38 }
  0x94   :  { %v125_v1 = vpop.f32.mrf.mxu0 }
  0x99   :  { %v152_v62 = vpop.f32.mrf.mxu2 }
  0x9a   :  { %v153_v17 = vadd.f32 %v152_v62, %v125_v1 }
  0x9c   :  { %v128_v11 = vpop.f32.mrf.mxu0 }
  0x9e   :  { %v261_v30 = vpop.f32.mrf.mxu3  ;;  %v312_v37 = vpop.f32.mrf.mxu1 }
  0xa1   :  { %v155_v7 = vpop.f32.mrf.mxu2 }
  0xa2   :  { %v156_v3 = vadd.f32 %v155_v7, %v128_v11 }
  0xa4   :  { %v284_v31 = vpop.f32.mrf.mxu0 }
  0xa5   :  { %v285_v42 = vadd.f32 %v284_v31, %v261_v30  ;;  %v577_v30 = vld [vmem:[#allocation7 + $0x8] sm:$0xff]  ;;  %v576_v31 = vld [vmem:[#allocation7] sm:$0xff] }
  0xa6   :  { %v264_v53 = vpop.f32.mrf.mxu3  ;;  %v315_v62 = vpop.f32.mrf.mxu1 }
  0xa7   :  { %v318_v52 = vadd.f32 %v312_v37, %v285_v42 }
  0xa9   :  { %v188_v19 = vpop.f32.mrf.mxu2 }
  0xaa   :  { %v194_v20 = vadd.f32 %v188_v19, %v153_v17  ;;  %v688_v17 = vld [vmem:[%s1099_s5 + $0x80] sm:$0xff]  ;;  %v590_v19 = vld [vmem:[#allocation7 + $0x70] sm:$0xff] }
  0xac   :  { %v200_v26 = vadd.f32 %v699_v18, %v194_v20  ;;  %v287_v54 = vpop.f32.mrf.mxu0  ;;  %v589_v20 = vld [vmem:[#allocation7 + $0x68] sm:$0xff] }
  0xad   :  { %v288_v61 = vadd.f32 %v287_v54, %v264_v53  ;;  %v702_v54 = vld [vmem:[%s1104_s10] ss:$0 sm:$0xff] }
  0xae   :  { %v202_v32 = vmax.f32 %v200_v26, 0.0  ;;  %v582_v26 = vld [vmem:[#allocation7 + $0x30] sm:$0xff] }
  0xaf   :  { %v319_v38 = vadd.f32 %v315_v62, %v288_v61 }
  0xb0   :  { %v205_v35 = vrot.slane %v202_v32, 2  ;;  %v208_v41 = vrot.slane %v202_v32, 4  ;;  %v211_v48 = vrot.slane %v202_v32, 6 }
  0xb1   :  { %v191_v36 = vpop.f32.mrf.mxu2 }
  0xb2   :  { %v195_v39 = vadd.f32 %v191_v36, %v156_v3  ;;  %v207_v40 = vmax.f32 %v202_v32, %v205_v35  ;;  %v504_v35 = vpop.f32.mrf.mxu1 }
  0xb4   :  { %v201_v46 = vadd.f32 %v699_v18, %v195_v39  ;;  %v210_v47 = vmax.f32 %v207_v40, %v208_v41  ;;  %v591_v18 = vld [vmem:[#allocation7 + $0x78] sm:$0xff]  ;;  %v701_v41 = vld [vmem:[%s1100_s6] ss:$0 sm:$0xff]  ;;  %s625_s6 = sshll.u32 %s810_s19, 4  ;;  %s626_s6 = int_to_ptr.vmem [resolvable:$true] %s625_s6 }
  0xb5   :  { %592 = vmatpush.msra.mxu1 %v591_v18 }
  0xb6   :  { %v203_v50 = vmax.f32 %v201_v46, 0.0  ;;  %v213_v51 = vmax.f32 %v210_v47, %v211_v48 }
  0xb7   :  { %593 = vmatpush.msra.mxu1 %v590_v19 }
  0xb8   :  { %v214_v55 = vmax.f32 %v213_v51, %v203_v50  ;;  %v216_v56 = vrot.slane %v203_v50, 2 }
  0xb9   :  { %v350_v58 = vpop.f32.mrf.mxu2  ;;  %594 = vmatpush.msra.mxu1 %v589_v20 }
  0xba   :  { %v218_v59 = vmax.f32 %v214_v55, %v216_v56  ;;  %v356_v60 = vadd.f32 %v350_v58, %v318_v52 }
  0xbb   :  { %595 = vmatpush.msra.mxu1 %v588_v21 }
  0xbc   :  { %v362_v63 = vadd.f32 %v700_v57, %v356_v60  ;;  %429 = vmatmul.f32.vlgmr.msra.gmra.mxu0 %v218_v59 }
  0xbd   :  { %596 = vmatpush.msra.mxu1 %v587_v22 }
  0xbe   :  { %v364_v0 = vmax.f32 %v362_v63, 0.0 }
  0xbf   :  { %597 = vmatpush.msra.mxu1 %v586_v23 }
  0xc0   :  { %v367_v1 = vrot.slane %v364_v0, 2  ;;  %v370_v5 = vrot.slane %v364_v0, 4  ;;  %v373_v9 = vrot.slane %v364_v0, 6 }
  0xc1   :  { %v353_v2 = vpop.f32.mrf.mxu2  ;;  %598 = vmatpush.msra.mxu1 %v585_v24 }
  0xc2   :  { %v357_v34 = vadd.f32 %v353_v2, %v319_v38  ;;  %v369_v4 = vmax.f32 %v364_v0, %v367_v1 }
  0xc3   :  { %599 = vmatpush.msra.mxu1 %v584_v25 }
  0xc4   :  { %v363_v6 = vadd.f32 %v700_v57, %v357_v34  ;;  %v372_v7 = vmax.f32 %v369_v4, %v370_v5 }
  0xc6   :  { %v365_v10 = vmax.f32 %v363_v6, 0.0  ;;  %v375_v11 = vmax.f32 %v372_v7, %v373_v9 }
  0xc8   :  { %v376_v12 = vmax.f32 %v375_v11, %v365_v10 }
  0xc9   :  { %v479_v33 = vpop.f32.mrf.mxu2 }
  0xca   :  { %409 = vmatmul.f32.vlgmr.msrb.gmra.mxu3 %v376_v12 }
  0xcb   :  { %551 = vmatpush.msrb.mxu3 %v691_v13 }
  0xcd   :  { %552 = vmatpush.msrb.mxu3 %v690_v15 }
  0xcf   :  { %553 = vmatpush.msrb.mxu3 %v689_v16 }
  0xd1   :  { %554 = vmatpush.msrb.mxu3 %v688_v17  ;;  %v530_v39 = vpop.f32.mrf.mxu2 }
  0xd2   :  { %676 = vmatmul.msk.f32.vlgmr.msra.gmra.mxu3 %vm103_vm1, %v922_v14  ;;  %v583_v14 = vld [vmem:[#allocation7 + $0x38] sm:$0xff] }
  0xd3   :  { %600 = vmatpush.msra.mxu1 %v583_v14 }
  0xd5   :  { %601 = vmatpush.msra.mxu1 %v582_v26 }
  0xda   :  { %692 = vmatmul.msk.f32.vlgmr.msrb.gmra.mxu3 %vm103_vm1, %v907_v8  ;;  %v581_v8 = vld [vmem:[#allocation7 + $0x28] sm:$0xff] }
  0xdb   :  { %602 = vmatpush.msra.mxu1 %v581_v8 }
  0xdd   :  { %603 = vmatpush.msra.mxu1 %v580_v27 }
  0xdf   :  { %604 = vmatpush.msra.mxu1 %v579_v28 }
  0xe1   :  { %605 = vmatpush.msra.mxu1 %v578_v29 }
  0xe3   :  { %606 = vmatpush.msra.mxu1 %v577_v30 }
  0xe5   :  { %607 = vmatpush.msra.mxu1 %v576_v31 }
 0x139   :  { %v430_v52 = vpop.f32.mrf.mxu0 }
 0x14d   :  { %v410_v32 = vpop.f32.mrf.mxu3 }
 0x14e   :  { %v431_v53 = vadd.f32 %v430_v52, %v410_v32 }
 0x155   :  { %v459_v3 = vpop.f32.mrf.mxu3 }
 0x156   :  { %v480_v36 = vadd.f32 %v479_v33, %v459_v3 }
 0x158   :  { %v507_v37 = vadd.f32 %v504_v35, %v480_v36 }
 0x15a   :  { %v533_v40 = vadd.f32 %v530_v39, %v507_v37 }
 0x15d   :  { %v556_v42 = vpop.f32.mrf.mxu3 }
 0x15e   :  { %v559_v43 = vadd.f32 %v556_v42, %v533_v40 }
 0x160   :  { %v564_v44 = vadd.f32 %v701_v41, %v559_v43 }
 0x162   :  { %v565_v45 = vmax.f32 %v564_v44, 0.0 }
 0x164   :  { %v567_v46 = vrot.slane %v565_v45, 2  ;;  %v570_v48 = vrot.slane %v565_v45, 4  ;;  %v573_v50 = vrot.slane %v565_v45, 6 }
 0x166   :  { %v569_v47 = vmax.f32 %v565_v45, %v567_v46 }
 0x168   :  { %v572_v49 = vmax.f32 %v569_v47, %v570_v48 }
 0x16a   :  { %v575_v51 = vmax.f32 %v572_v49, %v573_v50 }
 0x16c   :  { %608 = vmatmul.f32.vlgmr.msra.gmra.mxu1 %v575_v51 }
 0x1e9   :  { %v609_v55 = vpop.f32.mrf.mxu1 }
 0x1ea   :  { %v612_v56 = vadd.f32 %v609_v55, %v431_v53 }
 0x1ec   :  { %v617_v57 = vadd.f32 %v702_v54, %v612_v56 }
 0x1ee   :  { %619 = vst.msk [vmem:[#allocation8] sm:$0x3] %vm618_vm4, %v617_v57 }
 0x1ef   :  { %630 = dma.vmem_to_hbm [thread:$0]  %s626_s6, 32, %s628_s22, [#allocation4]  }
 0x1f0   :  { %803 = dma.done.wait [#allocation4], 32  }
 0x1f1   :  { %804 = vsyncadd [#allocation4], 4294967264 }
 0x1f2   :  { %635 = vsyncpa [#allocation3], 1 }
 0x1f3   :  { %636 = vsyncpa [#allocation6], 1 }
 0x1f4   :  { %637 = vsyncpa [#allocation4], 1 }

// kernel: transformer_model_forward.3
= control target key start
LH: loop header
LB: loop body
LE: loop exit
PB: predicated region body
PF: predicated region fallthrough
CT: control target
= control target key end

     0   :  { %20 = vsyncpa [#allocation3], 0  ;;  %s3270_s0 = inlined_call_operand.vmem [shape: f32[16,32], index: 0, kind: input, shape index: {}]   ;;  %s3271_s1 = inlined_call_operand.hbm [shape: f32[24,32,8], index: 1, kind: input, shape index: {}]   ;;  %s3272_s2 = inlined_call_operand.hbm [shape: f32[24,1,8], index: 2, kind: input, shape index: {}]   ;;  %s3273_s3 = inlined_call_operand.hbm [shape: f32[8,8,32], index: 3, kind: input, shape index: {}]   ;;  %s3274_s4 = inlined_call_operand.vmem [shape: f32[2,1,32], index: 4, kind: input, shape index: {}]   ;;  %s3275_s5 = inlined_call_operand.hbm [shape: f32[2,32,64], index: 5, kind: input, shape index: {}]   ;;  %s3276_s6 = inlined_call_operand.vmem [shape: f32[2,1,64], index: 6, kind: input, shape index: {}]   ;;  %s3277_s7 = inlined_call_operand.hbm [shape: f32[2,64,32], index: 7, kind: input, shape index: {}]   ;;  %s3278_s8 = inlined_call_operand.vmem [shape: f32[2,1,32], index: 8, kind: input, shape index: {}]   ;;  %s3279_s9 = inlined_call_operand.vmem [shape: f32[2,1,32], index: 9, kind: input, shape index: {}, may-alias: {9,11}]   ;;  %s3280_s10 = inlined_call_operand.vmem [shape: f32[2,1,32], index: 10, kind: input, shape index: {}, may-alias: {10,12}]   ;;  %s3281_s11 = inlined_call_operand.vmem [shape: f32[2,1,32], index: 11, kind: input, shape index: {}, may-alias: {9,11}]   ;;  %s3282_s12 = inlined_call_operand.vmem [shape: f32[2,1,32], index: 12, kind: input, shape index: {}, may-alias: {10,12}]   ;;  %s3283_s13 = inlined_call_operand.vmem [shape: f32[1,32], index: 13, kind: input, shape index: {}]   ;;  %s3284_s14 = inlined_call_operand.vmem [shape: f32[1,32], index: 14, kind: input, shape index: {}]   ;;  %s3285_s15 = inlined_call_operand.vmem [shape: f32[16,32], index: 15, kind: output, shape index: {}]  }
   0x1   :  { %21 = vsyncpa [#allocation5], 0  ;;  %s42_s20 = sshll.u32 %s3272_s2, 4  ;;  %s43_s20 = int_to_ptr.hbm [resolvable:$true] %s42_s20 }
   0x2   :  { %22 = vsyncpa [#allocation8], 0  ;;  %s2797_s21 = smov [#allocation4]   ;;  %s2798_s23 = smov 16  }
   0x3   :  { %s44_s22 = sshll.u32 %s2797_s21, 4  ;;  %s2799_s24 = smov 1   ;;  %s45_s22 = int_to_ptr.vmem [resolvable:$true] %s44_s22 }
   0x4   :  { %50 = dma.hbm_to_vmem [thread:$0]  %s43_s20, 384, %s45_s22, [#allocation5], %s2798_s23, %s2798_s23, %s2799_s24  }
   0x5   :  { %s70_s27 = sshll.u32 %s3275_s5, 4  ;;  %s2800_s28 = smov [#allocation7]   ;;  %s71_s27 = int_to_ptr.hbm [resolvable:$true] %s70_s27 }
   0x6   :  { %s72_s29 = sshll.u32 %s2800_s28, 4  ;;  %s29_s17 = sshll.u32 %s3271_s1, 4  ;;  %s73_s29 = int_to_ptr.vmem [resolvable:$true] %s72_s29  ;;  %s30_s17 = int_to_ptr.hbm [resolvable:$true] %s29_s17 }
   0x7   :  { %s2801_s2 = smov 128   ;;  %s2802_s18 = smov 8  }
   0x8   :  { %78 = dma.hbm_to_vmem [thread:$0]  %s71_s27, 1024, %s73_s29, [#allocation8], %s2801_s2, %s2801_s2, %s2802_s18  }
   0x9   :  { %s55_s20 = sshll.u32 %s3273_s3, 4  ;;  %s2803_s22 = smov [#allocation2]   ;;  %s56_s20 = int_to_ptr.hbm [resolvable:$true] %s55_s20 }
   0xa   :  { %s31_s23 = sshll.u32 %s2803_s22, 4  ;;  %s2804_s5 = smov [#allocation6]   ;;  %s32_s23 = int_to_ptr.vmem [resolvable:$true] %s31_s23 }
   0xb   :  { %37 = dma.hbm_to_vmem [thread:$0]  %s30_s17, 12288, %s32_s23, [#allocation3], %s2801_s2, %s2801_s2, %s2802_s18  }
   0xc   :  { %s57_s24 = sshll.u32 %s2804_s5, 4  ;;  %s85_s1 = sshll.u32 %s3277_s7, 4  ;;  %s58_s24 = int_to_ptr.vmem [resolvable:$true] %s57_s24  ;;  %s86_s1 = int_to_ptr.hbm [resolvable:$true] %s85_s1 }
   0xd   :  { %63 = dma.hbm_to_vmem [thread:$0]  %s56_s20, 1024, %s58_s24, [#allocation5], %s2801_s2, %s2801_s2, %s2802_s18  }
   0xe   :  { %s2805_s28 = smov [#allocation9]  }
   0xf   :  { %s87_s27 = sshll.u32 %s2805_s28, 4  ;;  %s88_s27 = int_to_ptr.vmem [resolvable:$true] %s87_s27 }
  0x10   :  { %93 = dma.hbm_to_vmem [thread:$0]  %s86_s1, 2048, %s88_s27, [#allocation8], %s2801_s2, %s2801_s2, %s2802_s18  }
  0x11   :  { %2791 = dma.done.wait [#allocation3], 12288  }
  0x12   :  { %2792 = vsyncadd [#allocation3], 4294955008 }
  0x13   :  { %2793 = dma.done.wait [#allocation5], 1408  }
  0x14   :  { %2794 = vsyncadd [#allocation5], 4294965888 }
  0x15   :  { %2795 = dma.done.wait [#allocation8], 3072  }
  0x16   :  { %2796 = vsyncadd [#allocation8], 4294964224  ;;  %v201_v0 = vld [vmem:[#allocation2 + $0x98] sm:$0xff]  ;;  %v200_v1 = vld [vmem:[#allocation2 + $0x90] sm:$0xff]  ;;  %vm165_vm0 = vcmask 261120   ;;  %vm263_vm1 = vcmask 64512   ;;  %v130_v22 = vlaneseq }
  0x17   :  { %219 = vmatpush.msra.mxu1 %v201_v0  ;;  %v160_v2 = vld [vmem:[#allocation2 + $0x18] sm:$0xff]  ;;  %v199_v3 = vld [vmem:[#allocation2 + $0x88] sm:$0xff]  ;;  %v198_v4 = vld [vmem:[#allocation2 + $0x80] sm:$0xff]  ;;  %v2806_v51 = vmov -1e+30   ;;  %vm299_vm3 = vcmask 130048  }
  0x18   :  { %184 = vmatpush.msra.mxu0 %v160_v2  ;;  %v159_v5 = vld [vmem:[#allocation2 + $0x10] sm:$0xff]  ;;  %v2906_v6 = vld [vmem:[%s3270_s0] sm:$0xff]  ;;  %v158_v7 = vld [vmem:[#allocation2 + $0x8] sm:$0xff]  ;;  %v131_v23 = vshrl.u32 %v130_v22, 7  ;;  %v136_v24 = vand.u32 127, %v130_v22  ;;  %vm1161_vm12 = vcmask 523264  }
  0x19   :  { %220 = vmatpush.msra.mxu1 %v200_v1  ;;  %v157_v8 = vld [vmem:[#allocation2] sm:$0xff]  ;;  %v2915_v9 = vld [vmem:[%s3270_s0 + $0x8] sm:$0xff]  ;;  %v234_v33 = vld [vmem:[#allocation2 + $0x118] sm:$0xff] }
  0x1a   :  { %185 = vmatpush.msra.mxu0 %v159_v5  ;;  %v2546_v12 = vld [vmem:[#allocation4] ss:$0 sm:$0xff]  ;;  %v2545_v13 = vld [vmem:[#allocation4 + $0x4] ss:$0 sm:$0xff]  ;;  %v133_v25 = vcvt.s32.f32 %v131_v23  ;;  %v137_v26 = vcvt.s32.f32 %v136_v24  ;;  %v132_v29 = vadd.s32 8, %v131_v23  ;;  %v233_v34 = vld [vmem:[#allocation2 + $0x110] sm:$0xff]  ;;  %252 = vmatpush.msra.mxu2 %v234_v33 }
  0x1b   :  { %221 = vmatpush.msra.mxu1 %v199_v3  ;;  %v232_v35 = vld [vmem:[#allocation2 + $0x108] sm:$0xff]  ;;  %v231_v39 = vld [vmem:[#allocation2 + $0x100] sm:$0xff]  ;;  %v391_v40 = vld [vmem:[#allocation2 + $0xb8] sm:$0xff] }
  0x1c   :  { %186 = vmatpush.msra.mxu0 %v158_v7  ;;  %v138_v27 = vadd.f32 0.5, %v133_v25  ;;  %v144_v28 = vadd.f32 0.5, %v137_v26  ;;  %v134_v32 = vcvt.s32.f32 %v132_v29  ;;  %253 = vmatpush.msra.mxu2 %v233_v34  ;;  %v390_v44 = vld [vmem:[#allocation2 + $0xb0] sm:$0xff]  ;;  %v389_v45 = vld [vmem:[#allocation2 + $0xa8] sm:$0xff]  ;;  %v388_v49 = vld [vmem:[#allocation2 + $0xa0] sm:$0xff] }
  0x1d   :  { %222 = vmatpush.msra.mxu1 %v198_v4  ;;  %v356_v61 = vld [vmem:[#allocation2 + $0x38] sm:$0xff]  ;;  %v355_v62 = vld [vmem:[#allocation2 + $0x30] sm:$0xff]  ;;  %v354_v63 = vld [vmem:[#allocation2 + $0x28] sm:$0xff] }
  0x1e   :  { %2409 = vmatmul.msk.f32.vlgmr.msra.gmra.mxu1 %vm165_vm0, %v2906_v6  ;;  %187 = vmatpush.msra.mxu0 %v157_v8  ;;  %v140_v30 = vmul.f32 0.5, %v138_v27  ;;  %v145_v31 = vmul.f32 0.5, %v144_v28  ;;  %v139_v38 = vadd.f32 0.5, %v134_v32  ;;  %v353_v0 = vld [vmem:[#allocation2 + $0x20] sm:$0xff]  ;;  %v2547_v5 = vld [vmem:[#allocation4 + $0x8] ss:$0 sm:$0xff] }
  0x1f   :  { %2407 = vmatmul.msk.f32.vlgmr.msra.gmra.mxu0 %vm165_vm0, %v2906_v6  ;;  %254 = vmatpush.msra.mxu2 %v232_v35  ;;  %v424_v24 = vld [vmem:[#allocation2 + $0x138] sm:$0xff]  ;;  %v421_v27 = vld [vmem:[#allocation2 + $0x120] sm:$0xff] }
  0x20   :  { %v142_v36 = vfloor.f32 %v140_v30  ;;  %v146_v37 = vfloor.f32 %v145_v31  ;;  %v141_v43 = vmul.f32 0.5, %v139_v38  ;;  %374 = vmatpush.msrb.mxu1 %v356_v61 }
  0x21   :  { %255 = vmatpush.msra.mxu2 %v231_v39 }
  0x22   :  { %v147_v41 = vmul.f32 2.0, %v142_v36  ;;  %v151_v42 = vmul.f32 2.0, %v146_v37  ;;  %2411 = vmatmul.msk.f32.vlgmr.msra.gmra.mxu2 %vm165_vm0, %v2906_v6  ;;  %v143_v48 = vfloor.f32 %v141_v43  ;;  %375 = vmatpush.msrb.mxu1 %v355_v62 }
  0x23   :  { %409 = vmatpush.msrb.mxu2 %v391_v40  ;;  %v351_v40 = vld [vmem:[#allocation6] sm:$0xff] }
  0x24   :  { %v149_v46 = vsub.f32 %v133_v25, %v147_v41  ;;  %v152_v47 = vsub.f32 %v137_v26, %v151_v42  ;;  %v148_v50 = vmul.f32 2.0, %v143_v48  ;;  %376 = vmatpush.msrb.mxu1 %v354_v63  ;;  %v423_v25 = vld [vmem:[#allocation2 + $0x130] sm:$0xff]  ;;  %v422_v26 = vld [vmem:[#allocation2 + $0x128] sm:$0xff] }
  0x25   :  { %410 = vmatpush.msrb.mxu2 %v390_v44  ;;  %v2550_v44 = vld [vmem:[#allocation4 + $0x9] ss:$0 sm:$0xff] }
  0x26   :  { %2410 = vmatmul.msk.f32.gmra.mxu1 %vm165_vm0, %v2915_v9  ;;  %vm153_vm2 = vcmp.eq.f32.partialorder %v149_v46, %v152_v47  ;;  %v150_v53 = vsub.f32 %v134_v32, %v148_v50  ;;  %v2549_v32 = vld [vmem:[#allocation4 + $0x1] ss:$0 sm:$0xff] }
  0x27   :  { %2408 = vmatmul.msk.f32.gmra.mxu0 %vm165_vm0, %v2915_v9  ;;  %411 = vmatpush.msrb.mxu2 %v389_v45  ;;  %v2929_v52 = vsel %vm153_vm2, 0.0, %v2806_v51 }
  0x28   :  { %vm154_vm4 = vcmp.eq.f32.partialorder %v150_v53, %v152_v47  ;;  %377 = vmatpush.msrb.mxu1 %v353_v0 }
  0x29   :  { %412 = vmatpush.msrb.mxu2 %v388_v49  ;;  %v2935_v57 = vsel %vm154_vm4, 0.0, %v2806_v51 }
  0x2a   :  { %2412 = vmatmul.msk.f32.gmra.mxu2 %vm165_vm0, %v2915_v9 }
  0x2e   :  { %2419 = vmatmul.msk.f32.vlgmr.msrb.gmra.mxu1 %vm165_vm0, %v2906_v6 }
  0x32   :  { %2421 = vmatmul.msk.f32.vlgmr.msrb.gmra.mxu2 %vm165_vm0, %v2906_v6 }
  0x36   :  { %2420 = vmatmul.msk.f32.gmra.mxu1 %vm165_vm0, %v2915_v9 }
  0x3a   :  { %2422 = vmatmul.msk.f32.gmra.mxu2 %vm165_vm0, %v2915_v9 }
  0x9b   :  { %v224_v10 = vpop.f32.mrf.mxu1 }
  0x9c   :  { %v189_v11 = vpop.f32.mrf.mxu0  ;;  %v225_v17 = vadd.f32 %v2545_v13, %v224_v10 }
  0x9d   :  { %v190_v16 = vadd.f32 %v2546_v12, %v189_v11 }
  0x9f   :  { %v195_v18 = vmul.f32 0.35355338, %v190_v16 }
  0xa3   :  { %v227_v14 = vpop.f32.mrf.mxu1 }
  0xa4   :  { %v228_v15 = vadd.f32 %v2545_v13, %v227_v14  ;;  %v192_v19 = vpop.f32.mrf.mxu0 }
  0xa5   :  { %v193_v20 = vadd.f32 %v2546_v12, %v192_v19  ;;  %v257_v2 = vpop.f32.mrf.mxu2  ;;  %v2548_v19 = vld [vmem:[#allocation4 + $0x5] ss:$0 sm:$0xff] }
  0xa6   :  { %2413 = vmatpush.xpose.msk.msra.mxu3 %vm263_vm1, %v228_v15  ;;  %v258_v12 = vadd.f32 %v2547_v5, %v257_v2  ;;  %v638_v2 = vld [vmem:[#allocation2 + $0xd8] sm:$0xff] }
  0xa7   :  { %v196_v21 = vmul.f32 0.35355338, %v193_v20 }
  0xaa   :  { %2414 = vmatpush.xpose.msk.msra.mxu3 %vm263_vm1, %v225_v17 }
  0xab   :  { %v379_v31 = vpop.f32.mrf.mxu1 }
  0xac   :  { %v380_v35 = vadd.f32 %v2549_v32, %v379_v31 }
  0xad   :  { %2415 = vmatmul.msk.f32.vlgmr.msra.gmra.mxu3 %vm263_vm1, %v195_v18  ;;  %v260_v8 = vpop.f32.mrf.mxu2 }
  0xae   :  { %v261_v11 = vadd.f32 %v2547_v5, %v260_v8  ;;  %442 = vmatpush.msrb.mxu3 %v424_v24  ;;  %v385_v36 = vmul.f32 0.35355338, %v380_v35  ;;  %v635_v5 = vld [vmem:[#allocation2 + $0xc0] sm:$0xff]  ;;  %v602_v8 = vld [vmem:[#allocation2 + $0x50] sm:$0xff] }
  0xaf   :  { %v2551_v24 = vld [vmem:[#allocation4 + $0x6] ss:$0 sm:$0xff] }
  0xb0   :  { %342 = vmatpush.msrb.mxu0 %v261_v11  ;;  %443 = vmatpush.msrb.mxu3 %v423_v25  ;;  %v601_v11 = vld [vmem:[#allocation2 + $0x48] sm:$0xff] }
  0xb2   :  { %343 = vmatpush.msrb.mxu0 %v258_v12  ;;  %444 = vmatpush.msrb.mxu3 %v422_v26  ;;  %v600_v12 = vld [vmem:[#allocation2 + $0x40] sm:$0xff] }
  0xb3   :  { %v382_v37 = vpop.f32.mrf.mxu1 }
  0xb4   :  { %445 = vmatpush.msrb.mxu3 %v421_v27  ;;  %v383_v38 = vadd.f32 %v2549_v32, %v382_v37  ;;  %v668_v37 = vld [vmem:[#allocation2 + $0x140] sm:$0xff] }
  0xb5   :  { %2416 = vmatmul.msk.f32.gmra.mxu3 %vm263_vm1, %v196_v21  ;;  %v414_v18 = vpop.f32.mrf.mxu2 }
  0xb6   :  { %v415_v22 = vadd.f32 %v2548_v19, %v414_v18  ;;  %v386_v39 = vmul.f32 0.35355338, %v383_v38  ;;  %591 = vmatpush.msra.mxu3 %v351_v40  ;;  %v540_v18 = vld [vmem:[#allocation6 + $0x8] sm:$0xff] }
  0xb7   :  { %562 = vmatpush.msra.mxu2 %v540_v18 }
  0xbd   :  { %v417_v20 = vpop.f32.mrf.mxu2  ;;  %2423 = vmatmul.msk.f32.vlgmr.msrb.gmra.mxu3 %vm165_vm0, %v2906_v6 }
  0xbe   :  { %v418_v21 = vadd.f32 %v2548_v19, %v417_v20 }
  0xc0   :  { %2425 = vmatpush.xpose.msk.msra.mxu0 %vm263_vm1, %v418_v21 }
  0xc4   :  { %2426 = vmatpush.xpose.msk.msra.mxu0 %vm263_vm1, %v415_v22 }
  0xc5   :  { %2424 = vmatmul.msk.f32.gmra.mxu3 %vm165_vm0, %v2915_v9 }
 0x130   :  { %v293_v54 = vpop.f32.mrf.mxu3 }
 0x131   :  { %v294_v55 = vadd.f32 %v293_v54, %v2929_v52 }
 0x133   :  { %v300_v56 = vsel %vm299_vm3, %v294_v55, -inf }
 0x134   :  { %301 = vmax.xlane.f32.xlu0 %v300_v56 }
 0x138   :  { %v296_v58 = vpop.f32.mrf.mxu3 }
 0x139   :  { %v297_v59 = vadd.f32 %v296_v58, %v2935_v57 }
 0x13b   :  { %v303_v60 = vsel %vm299_vm3, %v297_v59, -inf }
 0x13c   :  { %304 = vmax.xlane.f32.xlu0 %v303_v60 }
 0x140   :  { %v447_v42 = vpop.f32.mrf.mxu3 }
 0x141   :  { %v448_v46 = vadd.f32 %v2550_v44, %v447_v42 }
 0x148   :  { %v450_v45 = vpop.f32.mrf.mxu3 }
 0x149   :  { %v451_v47 = vadd.f32 %v2550_v44, %v450_v45 }
 0x14b   :  { %530 = vmatpush.msra.mxu1 %v451_v47  ;;  %v857_v47 = vld [vmem:[#allocation2 + $0xf0] sm:$0xff] }
 0x14d   :  { %531 = vmatpush.msra.mxu1 %v448_v46  ;;  %v858_v46 = vld [vmem:[#allocation2 + $0xf8] sm:$0xff] }
 0x14f   :  { %656 = vmatpush.msrb.mxu1 %v638_v2 }
 0x1a7   :  { %v302_v1 = vpop.xlane.xlu0 %301 }
 0x1a8   :  { %v306_v3 = vsub.f32 %v294_v55, %v302_v1 }
 0x1aa   :  { %v308_v4 = vmul.f32 1.442695, %v306_v3  ;;  %v637_v3 = vld [vmem:[#allocation2 + $0xd0] sm:$0xff] }
 0x1ab   :  { %657 = vmatpush.msrb.mxu1 %v637_v3 }
 0x1ac   :  { %2585 = vpow2.f32 %v308_v4  ;;  %v636_v4 = vld [vmem:[#allocation2 + $0xc8] sm:$0xff] }
 0x1ad   :  { %658 = vmatpush.msrb.mxu1 %v636_v4  ;;  %v823_v4 = vld [vmem:[#allocation2 + $0x78] sm:$0xff] }
 0x1af   :  { %v305_v7 = vpop.xlane.xlu0 %304  ;;  %659 = vmatpush.msrb.mxu1 %v635_v5  ;;  %v822_v5 = vld [vmem:[#allocation2 + $0x70] sm:$0xff] }
 0x1b0   :  { %v307_v10 = vsub.f32 %v297_v59, %v305_v7  ;;  %v603_v7 = vld [vmem:[#allocation2 + $0x58] sm:$0xff] }
 0x1b2   :  { %v2586_v13 = vpop.eup %2585  ;;  %v310_v14 = vmul.f32 1.442695, %v307_v10 }
 0x1b3   :  { %v312_v15 = vsel %vm299_vm3, %v2586_v13, 0.0 }
 0x1b4   :  { %2587 = vpow2.f32 %v310_v14  ;;  %313 = vadd.xlane.f32.xlu1 %v312_v15 }
 0x1ba   :  { %v2588_v16 = vpop.eup %2587 }
 0x1bb   :  { %v315_v17 = vsel %vm299_vm3, %v2588_v16, 0.0 }
 0x1bc   :  { %316 = vadd.xlane.f32.xlu1 %v315_v17 }
 0x227   :  { %v314_v23 = vpop.xlane.xlu1 %313 }
 0x228   :  { %2589 = vrcp.f32 %v314_v23  ;;  %v2552_v23 = vld [vmem:[#allocation4 + $0x2] ss:$0 sm:$0xff] }
 0x22e   :  { %v2590_v28 = vpop.eup %2589 }
 0x22f   :  { %v317_v29 = vpop.xlane.xlu1 %316  ;;  %v320_v30 = vmul.f32 %v2590_v28, %v2586_v13 }
 0x230   :  { %2591 = vrcp.f32 %v317_v29 }
 0x231   :  { %2417 = vmatmul.msk.f32.vlgmr.msrb.gmra.mxu0 %vm299_vm3, %v320_v30 }
 0x232   :  { %621 = vmatpush.msrb.mxu0 %v603_v7  ;;  %v821_v7 = vld [vmem:[#allocation2 + $0x68] sm:$0xff] }
 0x234   :  { %622 = vmatpush.msrb.mxu0 %v602_v8  ;;  %v820_v8 = vld [vmem:[#allocation2 + $0x60] sm:$0xff] }
 0x236   :  { %v2592_v33 = vpop.eup %2591  ;;  %623 = vmatpush.msrb.mxu0 %v601_v11 }
 0x237   :  { %v321_v34 = vmul.f32 %v2592_v33, %v2588_v16  ;;  %v671_v33 = vld [vmem:[#allocation2 + $0x158] sm:$0xff] }
 0x238   :  { %624 = vmatpush.msrb.mxu0 %v600_v12  ;;  %689 = vmatpush.msrb.mxu2 %v671_v33  ;;  %v889_v33 = vld [vmem:[#allocation2 + $0x168] sm:$0xff] }
 0x239   :  { %2418 = vmatmul.msk.f32.gmra.mxu0 %vm299_vm3, %v321_v34  ;;  %v670_v34 = vld [vmem:[#allocation2 + $0x150] sm:$0xff] }
 0x23a   :  { %690 = vmatpush.msrb.mxu2 %v670_v34 }
 0x241   :  { %2427 = vmatmul.msk.f32.vlgmr.msra.gmra.mxu0 %vm263_vm1, %v385_v36  ;;  %v669_v36 = vld [vmem:[#allocation2 + $0x148] sm:$0xff] }
 0x242   :  { %691 = vmatpush.msrb.mxu2 %v669_v36 }
 0x244   :  { %692 = vmatpush.msrb.mxu2 %v668_v37  ;;  %v888_v37 = vld [vmem:[#allocation2 + $0x160] sm:$0xff] }
 0x249   :  { %2428 = vmatmul.msk.f32.gmra.mxu0 %vm263_vm1, %v386_v39 }
 0x251   :  { %2435 = vmatmul.msk.f32.vlgmr.msrb.gmra.mxu0 %vm165_vm0, %v2906_v6 }
 0x259   :  { %2436 = vmatmul.msk.f32.gmra.mxu0 %vm165_vm0, %v2915_v9 }
 0x2ae   :  { %v345_v41 = vpop.f32.mrf.mxu0 }
 0x2af   :  { %2433 = vmatmul.msk.f32.vlgmr.msra.gmra.mxu3 %vm263_vm1, %v345_v41 }
 0x2b6   :  { %v348_v43 = vpop.f32.mrf.mxu0 }
 0x2b7   :  { %2434 = vmatmul.msk.f32.gmra.mxu3 %vm263_vm1, %v348_v43 }
 0x2be   :  { %v482_v48 = vpop.f32.mrf.mxu0 }
 0x2bf   :  { %v483_v49 = vadd.f32 %v482_v48, %v2929_v52  ;;  %v856_v48 = vld [vmem:[#allocation2 + $0xe8] sm:$0xff] }
 0x2c1   :  { %v488_v50 = vsel %vm299_vm3, %v483_v49, -inf }
 0x2c2   :  { %489 = vmax.xlane.f32.xlu2 %v488_v50  ;;  %v855_v50 = vld [vmem:[#allocation2 + $0xe0] sm:$0xff] }
 0x2c6   :  { %v485_v51 = vpop.f32.mrf.mxu0 }
 0x2c7   :  { %v486_v53 = vadd.f32 %v485_v51, %v2935_v57 }
 0x2c9   :  { %v491_v54 = vsel %vm299_vm3, %v486_v53, -inf }
 0x2ca   :  { %492 = vmax.xlane.f32.xlu2 %v491_v54 }
 0x2ce   :  { %v626_v22 = vpop.f32.mrf.mxu0 }
 0x2cf   :  { %v627_v27 = vadd.f32 %v2552_v23, %v626_v22 }
 0x2d1   :  { %v632_v29 = vmul.f32 0.35355338, %v627_v27 }
 0x2d6   :  { %v629_v30 = vpop.f32.mrf.mxu0 }
 0x2d7   :  { %v630_v31 = vadd.f32 %v2552_v23, %v629_v30 }
 0x2d9   :  { %v633_v32 = vmul.f32 0.35355338, %v630_v31  ;;  %v891_v31 = vld [vmem:[#allocation2 + $0x178] sm:$0xff] }
 0x332   :  { %v2981_v35 = vpop.f32.mrf.mxu3 }
 0x335   :  { %v490_v55 = vpop.xlane.xlu2 %489 }
 0x336   :  { %v494_v56 = vsub.f32 %v483_v49, %v490_v55 }
 0x338   :  { %v496_v58 = vmul.f32 1.442695, %v494_v56  ;;  %v2553_v56 = vld [vmem:[#allocation4 + $0xa] ss:$0 sm:$0xff] }
 0x33a   :  { %2593 = vpow2.f32 %v496_v58  ;;  %v2985_v38 = vpop.f32.mrf.mxu3 }
 0x33d   :  { %v493_v59 = vpop.xlane.xlu2 %492 }
 0x33e   :  { %v495_v60 = vsub.f32 %v486_v53, %v493_v59 }
 0x340   :  { %v2594_v61 = vpop.eup %2593  ;;  %v498_v62 = vmul.f32 1.442695, %v495_v60 }
 0x341   :  { %v500_v63 = vsel %vm299_vm3, %v2594_v61, 0.0 }
 0x342   :  { %2595 = vpow2.f32 %v498_v62  ;;  %501 = vadd.xlane.f32.xlu0 %v500_v63 }
 0x348   :  { %v2596_v0 = vpop.eup %2595 }
 0x349   :  { %v503_v1 = vsel %vm299_vm3, %v2596_v0, 0.0 }
 0x34a   :  { %504 = vadd.xlane.f32.xlu1 %v503_v1 }
 0x3b5   :  { %v502_v10 = vpop.xlane.xlu0 %501 }
 0x3b6   :  { %2597 = vrcp.f32 %v502_v10  ;;  %v787_v10 = vld [vmem:[#allocation6 + $0x10] sm:$0xff] }
 0x3bc   :  { %v2598_v13 = vpop.eup %2597 }
 0x3bd   :  { %v508_v14 = vmul.f32 %v2598_v13, %v2594_v61  ;;  %v505_v15 = vpop.xlane.xlu1 %504  ;;  %v2554_v13 = vld [vmem:[#allocation4 + $0x7] ss:$0 sm:$0xff] }
 0x3be   :  { %2599 = vrcp.f32 %v505_v15 }
 0x3bf   :  { %2429 = vmatmul.msk.f32.vlgmr.msra.gmra.mxu1 %vm299_vm3, %v508_v14 }
 0x3c0   :  { %809 = vmatpush.msra.mxu1 %v787_v10 }
 0x3c4   :  { %v2600_v16 = vpop.eup %2599 }
 0x3c5   :  { %v509_v17 = vmul.f32 %v2600_v16, %v2596_v0 }
 0x3c7   :  { %2430 = vmatmul.msk.f32.gmra.mxu1 %vm299_vm3, %v509_v17 }
 0x3cf   :  { %2437 = vmatmul.msk.f32.vlgmr.msrb.gmra.mxu1 %vm165_vm0, %v2906_v6 }
 0x3d7   :  { %2438 = vmatmul.msk.f32.gmra.mxu1 %vm165_vm0, %v2915_v9 }
 0x43c   :  { %v533_v19 = vpop.f32.mrf.mxu1 }
 0x43d   :  { %2431 = vmatmul.msk.f32.vlgmr.msra.gmra.mxu2 %vm263_vm1, %v533_v19 }
 0x43e   :  { %841 = vmatpush.msra.mxu2 %v823_v4 }
 0x440   :  { %842 = vmatpush.msra.mxu2 %v822_v5 }
 0x442   :  { %843 = vmatpush.msra.mxu2 %v821_v7 }
 0x444   :  { %v536_v20 = vpop.f32.mrf.mxu1  ;;  %844 = vmatpush.msra.mxu2 %v820_v8 }
 0x445   :  { %2432 = vmatmul.msk.f32.gmra.mxu2 %vm263_vm1, %v536_v20 }
 0x44c   :  { %v661_v21 = vpop.f32.mrf.mxu1 }
 0x44d   :  { %v662_v28 = vadd.f32 %v2551_v24, %v661_v21  ;;  %2439 = vmatmul.msk.f32.vlgmr.msrb.gmra.mxu2 %vm165_vm0, %v2906_v6 }
 0x454   :  { %v664_v25 = vpop.f32.mrf.mxu1 }
 0x455   :  { %v665_v26 = vadd.f32 %v2551_v24, %v664_v25  ;;  %2440 = vmatmul.msk.f32.gmra.mxu2 %vm165_vm0, %v2915_v9  ;;  %v2555_v24 = vld [vmem:[#allocation4 + $0x3] ss:$0 sm:$0xff] }
 0x457   :  { %2441 = vmatpush.xpose.msk.msrb.mxu3 %vm263_vm1, %v665_v26 }
 0x45b   :  { %2442 = vmatpush.xpose.msk.msrb.mxu3 %vm263_vm1, %v662_v28 }
 0x45d   :  { %2449 = vmatmul.msk.f32.vlgmr.msra.gmra.mxu2 %vm165_vm0, %v2906_v6 }
 0x45e   :  { %2443 = vmatmul.msk.f32.vlgmr.msrb.gmra.mxu3 %vm263_vm1, %v632_v29 }
 0x45f   :  { %876 = vmatpush.msra.mxu3 %v858_v46 }
 0x461   :  { %877 = vmatpush.msra.mxu3 %v857_v47 }
 0x463   :  { %878 = vmatpush.msra.mxu3 %v856_v48 }
 0x465   :  { %879 = vmatpush.msra.mxu3 %v855_v50  ;;  %2450 = vmatmul.msk.f32.gmra.mxu2 %vm165_vm0, %v2915_v9  ;;  %v2556_v50 = vld [vmem:[#allocation4 + $0xb] ss:$0 sm:$0xff] }
 0x466   :  { %2444 = vmatmul.msk.f32.gmra.mxu3 %vm263_vm1, %v633_v32  ;;  %v890_v32 = vld [vmem:[#allocation2 + $0x170] sm:$0xff] }
 0x46e   :  { %2451 = vmatmul.msk.f32.vlgmr.msra.gmra.mxu3 %vm165_vm0, %v2906_v6 }
 0x476   :  { %2452 = vmatmul.msk.f32.gmra.mxu3 %vm165_vm0, %v2915_v9 }
 0x4c0   :  { %v2993_v45 = vpop.f32.mrf.mxu2 }
 0x4c1   :  { %v594_v34 = vadd.f32 %v2981_v35, %v2993_v45 }
 0x4c8   :  { %v2995_v49 = vpop.f32.mrf.mxu2 }
 0x4d0   :  { %v694_v53 = vpop.f32.mrf.mxu2 }
 0x4d1   :  { %v695_v61 = vadd.f32 %v2553_v56, %v694_v53 }
 0x4d8   :  { %v697_v59 = vpop.f32.mrf.mxu2 }
 0x4d9   :  { %v698_v62 = vadd.f32 %v2553_v56, %v697_v59 }
 0x4db   :  { %777 = vmatpush.msra.mxu0 %v698_v62 }
 0x4dd   :  { %778 = vmatpush.msra.mxu0 %v695_v61 }
 0x4df   :  { %909 = vmatpush.msrb.mxu0 %v891_v31 }
 0x4e0   :  { %v846_v23 = vpop.f32.mrf.mxu2 }
 0x4e1   :  { %v729_v39 = vpop.f32.mrf.mxu3  ;;  %v847_v26 = vadd.f32 %v2555_v24, %v846_v23  ;;  %910 = vmatpush.msrb.mxu0 %v890_v32 }
 0x4e2   :  { %v730_v40 = vadd.f32 %v729_v39, %v2929_v52 }
 0x4e3   :  { %v852_v27 = vmul.f32 0.35355338, %v847_v26  ;;  %911 = vmatpush.msrb.mxu0 %v889_v33 }
 0x4e4   :  { %v735_v41 = vsel %vm299_vm3, %v730_v40, -inf }
 0x4e5   :  { %736 = vmax.xlane.f32.xlu2 %v735_v41  ;;  %912 = vmatpush.msrb.mxu0 %v888_v37 }
 0x4e8   :  { %v849_v28 = vpop.f32.mrf.mxu2 }
 0x4e9   :  { %v732_v42 = vpop.f32.mrf.mxu3  ;;  %v850_v29 = vadd.f32 %v2555_v24, %v849_v28 }
 0x4ea   :  { %v733_v43 = vadd.f32 %v732_v42, %v2935_v57 }
 0x4eb   :  { %v853_v30 = vmul.f32 0.35355338, %v850_v29 }
 0x4ec   :  { %v738_v44 = vsel %vm299_vm3, %v733_v43, -inf }
 0x4ed   :  { %739 = vmax.xlane.f32.xlu0 %v738_v44 }
 0x4f1   :  { %v881_v12 = vpop.f32.mrf.mxu3 }
 0x4f2   :  { %v882_v19 = vadd.f32 %v2554_v13, %v881_v12 }
 0x4f9   :  { %v884_v17 = vpop.f32.mrf.mxu3 }
 0x4fa   :  { %v885_v18 = vadd.f32 %v2554_v13, %v884_v17 }
 0x4fc   :  { %2455 = vmatpush.xpose.msk.msrb.mxu1 %vm263_vm1, %v885_v18 }
 0x500   :  { %2456 = vmatpush.xpose.msk.msrb.mxu1 %vm263_vm1, %v882_v19 }
 0x558   :  { %v737_v51 = vpop.xlane.xlu2 %736 }
 0x559   :  { %v741_v54 = vsub.f32 %v730_v40, %v737_v51  ;;  %v597_v40 = vadd.f32 %v2985_v38, %v2995_v49 }
 0x55b   :  { %v743_v55 = vmul.f32 1.442695, %v741_v54 }
 0x55d   :  { %2601 = vpow2.f32 %v743_v55 }
 0x560   :  { %v740_v58 = vpop.xlane.xlu0 %739 }
 0x561   :  { %v742_v60 = vsub.f32 %v733_v43, %v740_v58 }
 0x563   :  { %v2602_v63 = vpop.eup %2601  ;;  %v745_v0 = vmul.f32 1.442695, %v742_v60 }
 0x564   :  { %v747_v1 = vsel %vm299_vm3, %v2602_v63, 0.0 }
 0x565   :  { %2603 = vpow2.f32 %v745_v0  ;;  %748 = vadd.xlane.f32.xlu1 %v747_v1  ;;  %v1007_v0 = vld [vmem:[#allocation6 + $0x18] sm:$0xff] }
 0x566   :  { %1029 = vmatpush.msrb.mxu3 %v1007_v0 }
 0x56b   :  { %v2604_v2 = vpop.eup %2603 }
 0x56c   :  { %v750_v3 = vsel %vm299_vm3, %v2604_v2, 0.0 }
 0x56d   :  { %751 = vadd.xlane.f32.xlu2 %v750_v3 }
 0x5d8   :  { %v749_v11 = vpop.xlane.xlu1 %748 }
 0x5d9   :  { %2605 = vrcp.f32 %v749_v11  ;;  %v2557_v11 = vld [vmem:[%s3274_s4] ss:$0 sm:$0xff] }
 0x5df   :  { %v2606_v14 = vpop.eup %2605 }
 0x5e0   :  { %v755_v15 = vmul.f32 %v2606_v14, %v2602_v63  ;;  %v752_v16 = vpop.xlane.xlu2 %751 }
 0x5e1   :  { %2607 = vrcp.f32 %v752_v16 }
 0x5e2   :  { %2445 = vmatmul.msk.f32.vlgmr.msra.gmra.mxu0 %vm299_vm3, %v755_v15 }
 0x5e7   :  { %v2608_v20 = vpop.eup %2607 }
 0x5e8   :  { %v756_v21 = vmul.f32 %v2608_v20, %v2604_v2 }
 0x5ea   :  { %2446 = vmatmul.msk.f32.gmra.mxu0 %vm299_vm3, %v756_v21 }
 0x5f2   :  { %2453 = vmatmul.msk.f32.vlgmr.msrb.gmra.mxu0 %vm165_vm0, %v2906_v6 }
 0x5fa   :  { %2454 = vmatmul.msk.f32.gmra.mxu0 %vm165_vm0, %v2915_v9 }
 0x65f   :  { %v780_v22 = vpop.f32.mrf.mxu0 }
 0x660   :  { %2447 = vmatmul.msk.f32.vlgmr.msra.gmra.mxu1 %vm263_vm1, %v780_v22  ;;  %v2807_v22 = vmov 32.0  }
 0x667   :  { %v783_v25 = vpop.f32.mrf.mxu0 }
 0x668   :  { %2448 = vmatmul.msk.f32.gmra.mxu1 %vm263_vm1, %v783_v25 }
 0x66f   :  { %v914_v48 = vpop.f32.mrf.mxu0 }
 0x670   :  { %2457 = vmatmul.msk.f32.vlgmr.msrb.gmra.mxu1 %vm263_vm1, %v852_v27  ;;  %v915_v54 = vadd.f32 %v2556_v50, %v914_v48 }
 0x677   :  { %v917_v51 = vpop.f32.mrf.mxu0 }
 0x678   :  { %2458 = vmatmul.msk.f32.gmra.mxu1 %vm263_vm1, %v853_v30  ;;  %v918_v55 = vadd.f32 %v2556_v50, %v917_v51 }
 0x67a   :  { %997 = vmatpush.msrb.mxu2 %v918_v55 }
 0x67c   :  { %998 = vmatpush.msrb.mxu2 %v915_v54 }
 0x6dd   :  { %v811_v36 = vpop.f32.mrf.mxu1 }
 0x6de   :  { %v817_v39 = vadd.f32 %v811_v36, %v594_v34 }
 0x6e5   :  { %v814_v41 = vpop.f32.mrf.mxu1 }
 0x6e6   :  { %v818_v42 = vadd.f32 %v814_v41, %v597_v40  ;;  %v1112_v40 = vld [vmem:[#allocation7 + $0x10] sm:$0xff]  ;;  %v1111_v41 = vld [vmem:[#allocation7 + $0x8] sm:$0xff] }
 0x6ed   :  { %v949_v43 = vpop.f32.mrf.mxu1 }
 0x6ee   :  { %v950_v35 = vadd.f32 %v949_v43, %v2929_v52 }
 0x6f0   :  { %v955_v44 = vsel %vm299_vm3, %v950_v35, -inf }
 0x6f1   :  { %956 = vmax.xlane.f32.xlu0 %v955_v44 }
 0x6f5   :  { %v952_v45 = vpop.f32.mrf.mxu1 }
 0x6f6   :  { %v953_v46 = vadd.f32 %v952_v45, %v2935_v57  ;;  %v1156_v45 = vld [vmem:[#allocation9 + $0x38] sm:$0xff] }
 0x6f7   :  { %1176 = vmatpush.msra.mxu1 %v1156_v45  ;;  %v1327_v45 = vld [vmem:[#allocation2 + $0x298] sm:$0xff] }
 0x6f8   :  { %v958_v47 = vsel %vm299_vm3, %v953_v46, -inf }
 0x6f9   :  { %959 = vmax.xlane.f32.xlu1 %v958_v47  ;;  %v1154_v47 = vld [vmem:[#allocation9 + $0x28] sm:$0xff] }
 0x764   :  { %v957_v38 = vpop.xlane.xlu0 %956 }
 0x765   :  { %v961_v49 = vsub.f32 %v950_v35, %v957_v38  ;;  %v1153_v38 = vld [vmem:[#allocation9 + $0x20] sm:$0xff] }
 0x767   :  { %v963_v53 = vmul.f32 1.442695, %v961_v49 }
 0x769   :  { %2609 = vpow2.f32 %v963_v53  ;;  %v1152_v53 = vld [vmem:[#allocation9 + $0x18] sm:$0xff] }
 0x76c   :  { %v960_v56 = vpop.xlane.xlu1 %959 }
 0x76d   :  { %v962_v58 = vsub.f32 %v953_v46, %v960_v56  ;;  %v1155_v46 = vld [vmem:[#allocation9 + $0x30] sm:$0xff] }
 0x76e   :  { %1177 = vmatpush.msra.mxu1 %v1155_v46  ;;  %v1252_v46 = vld [vmem:[#allocation2 + $0x190] sm:$0xff] }
 0x76f   :  { %v2610_v59 = vpop.eup %2609  ;;  %v965_v60 = vmul.f32 1.442695, %v962_v58 }
 0x770   :  { %v967_v61 = vsel %vm299_vm3, %v2610_v59, 0.0  ;;  %1178 = vmatpush.msra.mxu1 %v1154_v47  ;;  %v1293_v47 = vld [vmem:[#allocation2 + $0x210] sm:$0xff] }
 0x771   :  { %2611 = vpow2.f32 %v965_v60  ;;  %968 = vadd.xlane.f32.xlu2 %v967_v61 }
 0x772   :  { %1179 = vmatpush.msra.mxu1 %v1153_v38  ;;  %v1292_v38 = vld [vmem:[#allocation2 + $0x208] sm:$0xff] }
 0x774   :  { %1180 = vmatpush.msra.mxu1 %v1152_v53  ;;  %v1291_v53 = vld [vmem:[#allocation2 + $0x200] sm:$0xff] }
 0x777   :  { %v2612_v62 = vpop.eup %2611 }
 0x778   :  { %v970_v63 = vsel %vm299_vm3, %v2612_v62, 0.0 }
 0x779   :  { %971 = vadd.xlane.f32.xlu0 %v970_v63 }
 0x7e4   :  { %v969_v1 = vpop.xlane.xlu2 %968 }
 0x7e5   :  { %2613 = vrcp.f32 %v969_v1 }
 0x7eb   :  { %v2614_v2 = vpop.eup %2613 }
 0x7ec   :  { %v975_v3 = vmul.f32 %v2614_v2, %v2610_v59  ;;  %v972_v4 = vpop.xlane.xlu0 %971  ;;  %v2559_v2 = vld [vmem:[%s3280_s10] ss:$0 sm:$0xff] }
 0x7ed   :  { %2615 = vrcp.f32 %v972_v4 }
 0x7ee   :  { %2459 = vmatmul.msk.f32.vlgmr.msrb.gmra.mxu2 %vm299_vm3, %v975_v3  ;;  %2617 = vrcp.f32 %v2807_v22 }
 0x7f3   :  { %v2616_v5 = vpop.eup %2615 }
 0x7f4   :  { %v976_v7 = vmul.f32 %v2616_v5, %v2612_v62  ;;  %v2618_v23 = vpop.eup %2617  ;;  %v2558_v62 = vld [vmem:[%s3279_s9] ss:$0 sm:$0xff] }
 0x7f5   :  { %v1056_v24 = vmul.f32 32.0, %v2618_v23  ;;  %vm1060_vm5 = vweird.f32 %v2618_v23 }
 0x7f6   :  { %2460 = vmatmul.msk.f32.gmra.mxu2 %vm299_vm3, %v976_v7 }
 0x7f7   :  { %v1057_v25 = vsub.f32 1.0, %v1056_v24  ;;  %v2561_v24 = vld [vmem:[%s3278_s8] ss:$0 sm:$0xff] }
 0x7f9   :  { %v1058_v26 = vmul.f32 %v2618_v23, %v1057_v25 }
 0x7fb   :  { %v1059_v27 = vadd.f32 %v2618_v23, %v1058_v26 }
 0x871   :  { %v1000_v8 = vpop.f32.mrf.mxu2 }
 0x872   :  { %2461 = vmatmul.msk.f32.vlgmr.msrb.gmra.mxu3 %vm263_vm1, %v1000_v8 }
 0x879   :  { %v1003_v10 = vpop.f32.mrf.mxu2 }
 0x87a   :  { %2462 = vmatmul.msk.f32.gmra.mxu3 %vm263_vm1, %v1003_v10 }
 0x8f5   :  { %v1031_v12 = vpop.f32.mrf.mxu3 }
 0x8f6   :  { %v1037_v13 = vadd.f32 %v1031_v12, %v817_v39  ;;  %v1113_v39 = vld [vmem:[#allocation7 + $0x18] sm:$0xff] }
 0x8f7   :  { %1136 = vmatpush.msra.mxu0 %v1113_v39 }
 0x8f8   :  { %v1043_v14 = vadd.f32 %v2557_v11, %v1037_v13 }
 0x8f9   :  { %1137 = vmatpush.msra.mxu0 %v1112_v40 }
 0x8fa   :  { %v1045_v15 = vadd.f32 %v1043_v14, %v2906_v6  ;;  %v3040_v6 = vsel %vm1060_vm5, %v2618_v23, %v1059_v27  ;;  %v1151_v14 = vld [vmem:[#allocation9 + $0x10] sm:$0xff] }
 0x8fb   :  { %1138 = vmatpush.msra.mxu0 %v1111_v41  ;;  %1181 = vmatpush.msra.mxu1 %v1151_v14 }
 0x8fc   :  { %v1049_v16 = vsel %vm165_vm0, %v1045_v15, 0.0 }
 0x8fd   :  { %1050 = vadd.xlane.f32.xlu1 %v1049_v16  ;;  %v1034_v17 = vpop.f32.mrf.mxu3  ;;  %v1149_v16 = vld [vmem:[#allocation9] sm:$0xff] }
 0x8fe   :  { %v1038_v18 = vadd.f32 %v1034_v17, %v818_v42  ;;  %v1110_v42 = vld [vmem:[#allocation7] sm:$0xff]  ;;  %v2560_v17 = vld [vmem:[%s3276_s6] ss:$0 sm:$0xff] }
 0x8ff   :  { %1139 = vmatpush.msra.mxu0 %v1110_v42 }
 0x900   :  { %v1044_v19 = vadd.f32 %v2557_v11, %v1038_v18 }
 0x901   :  { %1345 = vmatpush.msrb.mxu0 %v1327_v45 }
 0x902   :  { %v1046_v20 = vadd.f32 %v1044_v19, %v2915_v9 }
 0x904   :  { %v1052_v21 = vsel %vm165_vm0, %v1046_v20, 0.0 }
 0x905   :  { %1053 = vadd.xlane.f32.xlu2 %v1052_v21 }
 0x970   :  { %v1051_v28 = vpop.xlane.xlu1 %1050 }
 0x971   :  { %v1062_v29 = vmul.f32 %v3040_v6, %v1051_v28 }
 0x973   :  { %v1064_v30 = vsub.f32 %v1045_v15, %v1062_v29  ;;  %v1150_v15 = vld [vmem:[#allocation9 + $0x8] sm:$0xff] }
 0x974   :  { %1182 = vmatpush.msra.mxu1 %v1150_v15 }
 0x975   :  { %v1066_v31 = vmul.f32 %v1064_v30, %v1064_v30 }
 0x976   :  { %1183 = vmatpush.msra.mxu1 %v1149_v16  ;;  %v2562_v16 = vld [vmem:[%s3281_s11] ss:$0 sm:$0xff] }
 0x977   :  { %v1068_v9 = vsel %vm165_vm0, %v1066_v31, 0.0 }
 0x978   :  { %1069 = vadd.xlane.f32.xlu0 %v1068_v9  ;;  %v1054_v32 = vpop.xlane.xlu2 %1053 }
 0x979   :  { %v1063_v33 = vmul.f32 %v3040_v6, %v1054_v32 }
 0x97b   :  { %v1065_v34 = vsub.f32 %v1046_v20, %v1063_v33 }
 0x97d   :  { %v1067_v36 = vmul.f32 %v1065_v34, %v1065_v34 }
 0x97f   :  { %v1071_v37 = vsel %vm165_vm0, %v1067_v36, 0.0 }
 0x980   :  { %1072 = vadd.xlane.f32.xlu1 %v1071_v37 }
 0x9eb   :  { %v1070_v43 = vpop.xlane.xlu0 %1069 }
 0x9ec   :  { %v1074_v35 = vmul.f32 %v1070_v43, %v3040_v6 }
 0x9ee   :  { %v1076_v44 = vadd.f32 1e-05, %v1074_v35  ;;  %v1253_v35 = vld [vmem:[#allocation2 + $0x198] sm:$0xff] }
 0x9ef   :  { %1277 = vmatpush.msra.mxu2 %v1253_v35 }
 0x9f0   :  { %2619 = vrsqrt.f32 %v1076_v44  ;;  %vm1084_vm7 = vweird.f32 %v1076_v44 }
 0x9f1   :  { %1278 = vmatpush.msra.mxu2 %v1252_v46  ;;  %v1515_v46 = vld [vmem:[#allocation2 + $0x2b0] sm:$0xff] }
 0x9f3   :  { %v1073_v48 = vpop.xlane.xlu1 %1072 }
 0x9f4   :  { %v1075_v50 = vmul.f32 %v1073_v48, %v3040_v6  ;;  %v1326_v48 = vld [vmem:[#allocation2 + $0x290] sm:$0xff] }
 0x9f5   :  { %1346 = vmatpush.msrb.mxu0 %v1326_v48  ;;  %v2567_v48 = vld [vmem:[#allocation4 + $0x11] ss:$0 sm:$0xff] }
 0x9f6   :  { %v2620_v49 = vpop.eup %2619  ;;  %v1077_v51 = vadd.f32 1e-05, %v1075_v50  ;;  %v1251_v50 = vld [vmem:[#allocation2 + $0x188] sm:$0xff] }
 0x9f7   :  { %v1079_v54 = vmul.f32 %v2620_v49, %v1076_v44  ;;  %vm1085_vm6 = vweird.f32 %v2620_v49  ;;  %v1294_v44 = vld [vmem:[#allocation2 + $0x218] sm:$0xff]  ;;  %1279 = vmatpush.msra.mxu2 %v1251_v50  ;;  %v1514_v50 = vld [vmem:[#allocation2 + $0x2a8] sm:$0xff] }
 0x9f8   :  { %2621 = vrsqrt.f32 %v1077_v51  ;;  %vm1086_vm8 = vmor %vm1084_vm7, %vm1085_vm6  ;;  %vm1094_vm10 = vweird.f32 %v1077_v51  ;;  %1312 = vmatpush.msra.mxu3 %v1294_v44  ;;  %v1516_v44 = vld [vmem:[#allocation2 + $0x2b8] sm:$0xff] }
 0x9f9   :  { %v1080_v55 = vmul.f32 %v2620_v49, %v1079_v54  ;;  %v1324_v54 = vld [vmem:[#allocation2 + $0x280] sm:$0xff] }
 0x9fa   :  { %1313 = vmatpush.msra.mxu3 %v1293_v47 }
 0x9fb   :  { %v1081_v56 = vmul.f32 0.5, %v1080_v55 }
 0x9fc   :  { %1314 = vmatpush.msra.mxu3 %v1292_v38 }
 0x9fd   :  { %v1082_v58 = vsub.f32 1.5, %v1081_v56 }
 0x9fe   :  { %v2622_v59 = vpop.eup %2621  ;;  %1315 = vmatpush.msra.mxu3 %v1291_v53  ;;  %v1513_v53 = vld [vmem:[#allocation2 + $0x2a0] sm:$0xff] }
 0x9ff   :  { %v1083_v60 = vmul.f32 %v2620_v49, %v1082_v58  ;;  %v1089_v61 = vmul.f32 %v2622_v59, %v1077_v51  ;;  %vm1095_vm9 = vweird.f32 %v2622_v59  ;;  %v1250_v51 = vld [vmem:[#allocation2 + $0x180] sm:$0xff] }
 0xa00   :  { %vm1096_vm11 = vmor %vm1094_vm10, %vm1095_vm9  ;;  %1280 = vmatpush.msra.mxu2 %v1250_v51 }
 0xa01   :  { %v1087_v63 = vsel %vm1086_vm8, %v2620_v49, %v1083_v60  ;;  %v1090_v0 = vmul.f32 %v2622_v59, %v1089_v61  ;;  %v1325_v49 = vld [vmem:[#allocation2 + $0x288] sm:$0xff]  ;;  %v1483_v60 = vld [vmem:[#allocation2 + $0x238] sm:$0xff]  ;;  %v1447_v61 = vld [vmem:[#allocation2 + $0x1b0] sm:$0xff] }
 0xa02   :  { %v1098_v1 = vmul.f32 %v1087_v63, %v1064_v30  ;;  %1347 = vmatpush.msrb.mxu0 %v1325_v49 }
 0xa03   :  { %v1091_v3 = vmul.f32 0.5, %v1090_v0  ;;  %v1446_v0 = vld [vmem:[#allocation2 + $0x1a8] sm:$0xff] }
 0xa04   :  { %v1103_v4 = vmul.f32 %v2558_v62, %v1098_v1  ;;  %1348 = vmatpush.msrb.mxu0 %v1324_v54  ;;  %v1481_v1 = vld [vmem:[#allocation2 + $0x228] sm:$0xff] }
 0xa05   :  { %v1092_v5 = vsub.f32 1.5, %v1091_v3  ;;  %v1445_v3 = vld [vmem:[#allocation2 + $0x1a0] sm:$0xff] }
 0xa06   :  { %v1108_v7 = vadd.f32 %v2559_v2, %v1103_v4  ;;  %v1480_v4 = vld [vmem:[#allocation2 + $0x220] sm:$0xff] }
 0xa07   :  { %v1093_v8 = vmul.f32 %v2622_v59, %v1092_v5 }
 0xa08   :  { %2463 = vmatmul.msk.f32.vlgmr.msra.gmra.mxu0 %vm165_vm0, %v1108_v7 }
 0xa09   :  { %v1097_v10 = vsel %vm1096_vm11, %v2622_v59, %v1093_v8  ;;  %v1448_v59 = vld [vmem:[#allocation2 + $0x1b8] sm:$0xff]  ;;  %1501 = vmatpush.msra.mxu0 %v1483_v60 }
 0xa0a   :  { %v1099_v11 = vmul.f32 %v1097_v10, %v1065_v34  ;;  %1466 = vmatpush.msrb.mxu3 %v1448_v59 }
 0xa0c   :  { %v1104_v12 = vmul.f32 %v2558_v62, %v1099_v11  ;;  %v1482_v62 = vld [vmem:[#allocation2 + $0x230] sm:$0xff]  ;;  %1467 = vmatpush.msrb.mxu3 %v1447_v61 }
 0xa0d   :  { %1502 = vmatpush.msra.mxu0 %v1482_v62 }
 0xa0e   :  { %v1109_v13 = vadd.f32 %v2559_v2, %v1104_v12  ;;  %1468 = vmatpush.msrb.mxu3 %v1446_v0  ;;  %v2569_v0 = vld [vmem:[#allocation4 + $0x15] ss:$0 sm:$0xff] }
 0xa0f   :  { %1503 = vmatpush.msra.mxu0 %v1481_v1 }
 0xa10   :  { %2464 = vmatmul.msk.f32.gmra.mxu0 %vm165_vm0, %v1109_v13  ;;  %1469 = vmatpush.msrb.mxu3 %v1445_v3 }
 0xa11   :  { %1504 = vmatpush.msra.mxu0 %v1480_v4 }
 0xa85   :  { %v1141_v18 = vpop.f32.mrf.mxu0 }
 0xa86   :  { %v1142_v19 = vadd.f32 %v2560_v17, %v1141_v18 }
 0xa88   :  { %v1147_v20 = vmax.f32 %v1142_v19, 0.0  ;;  %v2563_v19 = vld [vmem:[%s3282_s12] ss:$0 sm:$0xff] }
 0xa8a   :  { %2465 = vmatmul.msk.f32.vlgmr.msra.gmra.mxu1 %vm1161_vm12, %v1147_v20 }
 0xa8d   :  { %v1144_v21 = vpop.f32.mrf.mxu0 }
 0xa8e   :  { %v1145_v22 = vadd.f32 %v2560_v17, %v1144_v21 }
 0xa90   :  { %v1148_v23 = vmax.f32 %v1145_v22, 0.0 }
 0xa92   :  { %2466 = vmatmul.msk.f32.gmra.mxu1 %vm1161_vm12, %v1148_v23 }
 0xb07   :  { %v1185_v25 = vpop.f32.mrf.mxu1 }
 0xb08   :  { %v1186_v26 = vadd.f32 %v2561_v24, %v1185_v25 }
 0xb0a   :  { %v1191_v27 = vadd.f32 %v1186_v26, %v1108_v7 }
 0xb0c   :  { %v1195_v28 = vsel %vm165_vm0, %v1191_v27, 0.0 }
 0xb0d   :  { %1196 = vadd.xlane.f32.xlu2 %v1195_v28 }
 0xb0f   :  { %v1188_v29 = vpop.f32.mrf.mxu1 }
 0xb10   :  { %v1189_v30 = vadd.f32 %v2561_v24, %v1188_v29 }
 0xb12   :  { %v1192_v31 = vadd.f32 %v1189_v30, %v1109_v13 }
 0xb14   :  { %v1198_v9 = vsel %vm165_vm0, %v1192_v31, 0.0 }
 0xb15   :  { %1199 = vadd.xlane.f32.xlu0 %v1198_v9  ;;  %v2564_v9 = vld [vmem:[#allocation4 + $0x14] ss:$0 sm:$0xff] }
 0xb80   :  { %v1197_v32 = vpop.xlane.xlu2 %1196 }
 0xb81   :  { %v1201_v33 = vmul.f32 %v1197_v32, %v3040_v6 }
 0xb83   :  { %v3067_v34 = vsub.f32 %v1191_v27, %v1201_v33 }
 0xb85   :  { %v1205_v36 = vmul.f32 %v3067_v34, %v3067_v34 }
 0xb87   :  { %v1207_v37 = vsel %vm165_vm0, %v1205_v36, 0.0 }
 0xb88   :  { %v1200_v39 = vpop.xlane.xlu0 %1199  ;;  %1208 = vadd.xlane.f32.xlu1 %v1207_v37  ;;  %v2566_v37 = vld [vmem:[#allocation4 + $0x10] ss:$0 sm:$0xff] }
 0xb89   :  { %v1202_v40 = vmul.f32 %v1200_v39, %v3040_v6  ;;  %v2565_v39 = vld [vmem:[#allocation4 + $0xc] ss:$0 sm:$0xff] }
 0xb8b   :  { %v3073_v41 = vsub.f32 %v1192_v31, %v1202_v40 }
 0xb8d   :  { %v1206_v42 = vmul.f32 %v3073_v41, %v3073_v41 }
 0xb8f   :  { %v1210_v43 = vsel %vm165_vm0, %v1206_v42, 0.0 }
 0xb90   :  { %1211 = vadd.xlane.f32.xlu2 %v1210_v43 }
 0xbfb   :  { %v1209_v55 = vpop.xlane.xlu1 %1208 }
 0xbfc   :  { %v1213_v56 = vmul.f32 %v1209_v55, %v3040_v6 }
 0xbfe   :  { %v1215_v58 = vadd.f32 1e-05, %v1213_v56 }
 0xc00   :  { %2623 = vrsqrt.f32 %v1215_v58  ;;  %vm1223_vm14 = vweird.f32 %v1215_v58 }
 0xc03   :  { %v1212_v63 = vpop.xlane.xlu2 %1211 }
 0xc04   :  { %v1214_v2 = vmul.f32 %v1212_v63, %v3040_v6 }
 0xc06   :  { %v2624_v5 = vpop.eup %2623  ;;  %v1216_v7 = vadd.f32 1e-05, %v1214_v2 }
 0xc07   :  { %v1218_v8 = vmul.f32 %v2624_v5, %v1215_v58  ;;  %vm1224_vm13 = vweird.f32 %v2624_v5 }
 0xc08   :  { %2625 = vrsqrt.f32 %v1216_v7  ;;  %vm1225_vm15 = vmor %vm1223_vm14, %vm1224_vm13  ;;  %vm1233_vm4 = vweird.f32 %v1216_v7 }
 0xc09   :  { %v1219_v10 = vmul.f32 %v2624_v5, %v1218_v8 }
 0xc0b   :  { %v1220_v11 = vmul.f32 0.5, %v1219_v10 }
 0xc0d   :  { %v1221_v12 = vsub.f32 1.5, %v1220_v11 }
 0xc0e   :  { %v2626_v13 = vpop.eup %2625 }
 0xc0f   :  { %v1222_v14 = vmul.f32 %v2624_v5, %v1221_v12  ;;  %v1228_v15 = vmul.f32 %v2626_v13, %v1216_v7  ;;  %vm1234_vm2 = vweird.f32 %v2626_v13 }
 0xc10   :  { %vm1235_vm5 = vmor %vm1233_vm4, %vm1234_vm2 }
 0xc11   :  { %v1226_v17 = vsel %vm1225_vm15, %v2624_v5, %v1222_v14  ;;  %v1229_v18 = vmul.f32 %v2626_v13, %v1228_v15 }
 0xc12   :  { %v1237_v20 = vmul.f32 %v1226_v17, %v3067_v34 }
 0xc13   :  { %v1230_v21 = vmul.f32 0.5, %v1229_v18 }
 0xc14   :  { %v1242_v22 = vmul.f32 %v2562_v16, %v1237_v20  ;;  %v1695_v20 = vld [vmem:[#allocation2 + $0x1d8] sm:$0xff] }
 0xc15   :  { %v1231_v23 = vsub.f32 1.5, %v1230_v21  ;;  %v1694_v21 = vld [vmem:[#allocation2 + $0x1d0] sm:$0xff] }
 0xc16   :  { %v3087_v24 = vadd.f32 %v2563_v19, %v1242_v22  ;;  %v1693_v22 = vld [vmem:[#allocation2 + $0x1c8] sm:$0xff] }
 0xc17   :  { %v1232_v25 = vmul.f32 %v2626_v13, %v1231_v23  ;;  %v1692_v23 = vld [vmem:[#allocation2 + $0x1c0] sm:$0xff] }
 0xc18   :  { %2467 = vmatmul.msk.f32.vlgmr.msra.gmra.mxu2 %vm165_vm0, %v3087_v24  ;;  %2469 = vmatmul.msk.f32.vlgmr.msra.gmra.mxu3 %vm165_vm0, %v3087_v24 }
 0xc19   :  { %v1236_v26 = vsel %vm1235_vm5, %v2626_v13, %v1232_v25  ;;  %2471 = vmatmul.msk.f32.vlgmr.msrb.gmra.mxu0 %vm165_vm0, %v3087_v24 }
 0xc1a   :  { %v1238_v27 = vmul.f32 %v1236_v26, %v3073_v41 }
 0xc1c   :  { %v1243_v28 = vmul.f32 %v2562_v16, %v1238_v27  ;;  %v2568_v27 = vld [vmem:[#allocation4 + $0xd] ss:$0 sm:$0xff] }
 0xc1e   :  { %v3096_v29 = vadd.f32 %v2563_v19, %v1243_v28 }
 0xc20   :  { %2468 = vmatmul.msk.f32.gmra.mxu2 %vm165_vm0, %v3096_v29  ;;  %2470 = vmatmul.msk.f32.gmra.mxu3 %vm165_vm0, %v3096_v29 }
 0xc21   :  { %2472 = vmatmul.msk.f32.gmra.mxu0 %vm165_vm0, %v3096_v29 }
 0xc28   :  { %2479 = vmatmul.msk.f32.vlgmr.msrb.gmra.mxu3 %vm165_vm0, %v3087_v24 }
 0xc29   :  { %2481 = vmatmul.msk.f32.vlgmr.msra.gmra.mxu0 %vm165_vm0, %v3087_v24 }
 0xc30   :  { %2480 = vmatmul.msk.f32.gmra.mxu3 %vm165_vm0, %v3096_v29 }
 0xc31   :  { %2482 = vmatmul.msk.f32.gmra.mxu0 %vm165_vm0, %v3096_v29 }
 0xc96   :  { %v1350_v30 = vpop.f32.mrf.mxu0 }
 0xc97   :  { %v1351_v34 = vadd.f32 %v2564_v9, %v1350_v30 }
 0xc9b   :  { %v1317_v31 = vpop.f32.mrf.mxu3  ;;  %v1282_v36 = vpop.f32.mrf.mxu2 }
 0xc9c   :  { %v1283_v43 = vadd.f32 %v2565_v39, %v1282_v36  ;;  %v1318_v35 = vadd.f32 %v2566_v37, %v1317_v31 }
 0xc9e   :  { %v1353_v32 = vpop.f32.mrf.mxu0  ;;  %v1288_v45 = vmul.f32 0.35355338, %v1283_v43 }
 0xc9f   :  { %v1354_v33 = vadd.f32 %v2564_v9, %v1353_v32 }
 0xca1   :  { %1433 = vmatpush.msrb.mxu2 %v1354_v33 }
 0xca3   :  { %1434 = vmatpush.msrb.mxu2 %v1351_v34  ;;  %v1320_v40 = vpop.f32.mrf.mxu3  ;;  %v1285_v47 = vpop.f32.mrf.mxu2  ;;  %v1443_v34 = vld [vmem:[#allocation6 + $0x20] sm:$0xff] }
 0xca4   :  { %v1321_v41 = vadd.f32 %v2566_v37, %v1320_v40  ;;  %v1286_v49 = vadd.f32 %v2565_v39, %v1285_v47 }
 0xca6   :  { %v1506_v42 = vpop.f32.mrf.mxu0  ;;  %2473 = vmatpush.xpose.msk.msrb.mxu1 %vm263_vm1, %v1321_v41  ;;  %v1289_v54 = vmul.f32 0.35355338, %v1286_v49 }
 0xca7   :  { %v1507_v55 = vadd.f32 %v2567_v48, %v1506_v42 }
 0xcaa   :  { %2474 = vmatpush.xpose.msk.msrb.mxu1 %vm263_vm1, %v1318_v35 }
 0xcab   :  { %v1471_v26 = vpop.f32.mrf.mxu3 }
 0xcac   :  { %v1472_v30 = vadd.f32 %v2568_v27, %v1471_v26 }
 0xcad   :  { %2475 = vmatmul.msk.f32.vlgmr.msrb.gmra.mxu1 %vm263_vm1, %v1288_v45 }
 0xcae   :  { %1534 = vmatpush.msra.mxu1 %v1516_v44  ;;  %v1509_v38 = vpop.f32.mrf.mxu0  ;;  %v1477_v31 = vmul.f32 0.35355338, %v1472_v30  ;;  %v1947_v30 = vld [vmem:[#allocation2 + $0x260] sm:$0xff] }
 0xcaf   :  { %v1510_v51 = vadd.f32 %v2567_v48, %v1509_v38 }
 0xcb0   :  { %1535 = vmatpush.msra.mxu1 %v1515_v46 }
 0xcb1   :  { %2485 = vmatpush.xpose.msk.msra.mxu2 %vm263_vm1, %v1510_v51 }
 0xcb2   :  { %1536 = vmatpush.msra.mxu1 %v1514_v50 }
 0xcb3   :  { %v1474_v9 = vpop.f32.mrf.mxu3 }
 0xcb4   :  { %1537 = vmatpush.msra.mxu1 %v1513_v53  ;;  %v1475_v32 = vadd.f32 %v2568_v27, %v1474_v9  ;;  %v1948_v27 = vld [vmem:[#allocation2 + $0x268] sm:$0xff] }
 0xcb5   :  { %2486 = vmatpush.xpose.msk.msra.mxu2 %vm263_vm1, %v1507_v55  ;;  %2476 = vmatmul.msk.f32.gmra.mxu1 %vm263_vm1, %v1289_v54  ;;  %v1730_v54 = vld [vmem:[#allocation2 + $0x258] sm:$0xff]  ;;  %v1729_v55 = vld [vmem:[#allocation2 + $0x250] sm:$0xff] }
 0xcb6   :  { %v1478_v33 = vmul.f32 0.35355338, %v1475_v32  ;;  %1683 = vmatpush.msrb.mxu1 %v1443_v34 }
 0xcbd   :  { %2483 = vmatmul.msk.f32.vlgmr.msra.gmra.mxu1 %vm165_vm0, %v3087_v24 }
 0xcc5   :  { %2484 = vmatmul.msk.f32.gmra.mxu1 %vm165_vm0, %v3096_v29 }
 0xd2a   :  { %v1385_v56 = vpop.f32.mrf.mxu1 }
 0xd2b   :  { %v1386_v58 = vadd.f32 %v1385_v56, %v2929_v52  ;;  %v1728_v56 = vld [vmem:[#allocation2 + $0x248] sm:$0xff] }
 0xd2d   :  { %v1391_v59 = vsel %vm299_vm3, %v1386_v58, -inf }
 0xd2e   :  { %1392 = vmax.xlane.f32.xlu0 %v1391_v59 }
 0xd32   :  { %v1388_v60 = vpop.f32.mrf.mxu1 }
 0xd33   :  { %v1389_v61 = vadd.f32 %v1388_v60, %v2935_v57 }
 0xd35   :  { %v1394_v62 = vsel %vm299_vm3, %v1389_v61, -inf }
 0xd36   :  { %1395 = vmax.xlane.f32.xlu1 %v1394_v62 }
 0xd3a   :  { %v1539_v63 = vpop.f32.mrf.mxu1 }
 0xd3b   :  { %v1540_v3 = vadd.f32 %v2569_v0, %v1539_v63 }
 0xd42   :  { %v1542_v1 = vpop.f32.mrf.mxu1 }
 0xd43   :  { %v1543_v2 = vadd.f32 %v2569_v0, %v1542_v1  ;;  %v1632_v1 = vld [vmem:[#allocation6 + $0x28] sm:$0xff] }
 0xd44   :  { %1654 = vmatpush.msrb.mxu0 %v1632_v1  ;;  %v1983_v1 = vld [vmem:[#allocation2 + $0x2f8] sm:$0xff] }
 0xd45   :  { %1622 = vmatpush.msra.mxu3 %v1543_v2  ;;  %v1763_v2 = vld [vmem:[#allocation2 + $0x2d8] sm:$0xff] }
 0xd46   :  { %1781 = vmatpush.msra.mxu0 %v1763_v2  ;;  %v1982_v2 = vld [vmem:[#allocation2 + $0x2f0] sm:$0xff] }
 0xd47   :  { %1623 = vmatpush.msra.mxu3 %v1540_v3  ;;  %v1762_v3 = vld [vmem:[#allocation2 + $0x2d0] sm:$0xff] }
 0xd48   :  { %1782 = vmatpush.msra.mxu0 %v1762_v3  ;;  %v1981_v3 = vld [vmem:[#allocation2 + $0x2e8] sm:$0xff] }
 0xd49   :  { %1748 = vmatpush.msrb.mxu3 %v1730_v54 }
 0xd4b   :  { %1749 = vmatpush.msrb.mxu3 %v1729_v55 }
 0xd4d   :  { %1750 = vmatpush.msrb.mxu3 %v1728_v56 }
 0xda1   :  { %v1393_v4 = vpop.xlane.xlu0 %1392 }
 0xda2   :  { %v1397_v5 = vsub.f32 %v1386_v58, %v1393_v4  ;;  %v1727_v58 = vld [vmem:[#allocation2 + $0x240] sm:$0xff]  ;;  %v1761_v4 = vld [vmem:[#allocation2 + $0x2c8] sm:$0xff] }
 0xda3   :  { %1751 = vmatpush.msrb.mxu3 %v1727_v58  ;;  %1783 = vmatpush.msra.mxu0 %v1761_v4  ;;  %v1980_v4 = vld [vmem:[#allocation2 + $0x2e0] sm:$0xff] }
 0xda4   :  { %v1399_v7 = vmul.f32 1.442695, %v1397_v5  ;;  %v1760_v5 = vld [vmem:[#allocation2 + $0x2c0] sm:$0xff] }
 0xda5   :  { %1784 = vmatpush.msra.mxu0 %v1760_v5 }
 0xda6   :  { %2627 = vpow2.f32 %v1399_v7  ;;  %v1915_v7 = vld [vmem:[#allocation2 + $0x1f8] sm:$0xff] }
 0xda9   :  { %v1396_v8 = vpop.xlane.xlu1 %1395 }
 0xdaa   :  { %v1398_v10 = vsub.f32 %v1389_v61, %v1396_v8 }
 0xdac   :  { %v2628_v11 = vpop.eup %2627  ;;  %v1401_v12 = vmul.f32 1.442695, %v1398_v10  ;;  %v1914_v10 = vld [vmem:[#allocation2 + $0x1f0] sm:$0xff] }
 0xdad   :  { %v1403_v13 = vsel %vm299_vm3, %v2628_v11, 0.0 }
 0xdae   :  { %2629 = vpow2.f32 %v1401_v12  ;;  %1404 = vadd.xlane.f32.xlu2 %v1403_v13  ;;  %v1912_v12 = vld [vmem:[#allocation2 + $0x1e0] sm:$0xff] }
 0xdb4   :  { %v2630_v14 = vpop.eup %2629 }
 0xdb5   :  { %v1406_v15 = vsel %vm299_vm3, %v2630_v14, 0.0 }
 0xdb6   :  { %1407 = vadd.xlane.f32.xlu0 %v1406_v15 }
 0xe21   :  { %v1405_v16 = vpop.xlane.xlu2 %1404 }
 0xe22   :  { %2631 = vrcp.f32 %v1405_v16  ;;  %v2571_v16 = vld [vmem:[#allocation4 + $0x12] ss:$0 sm:$0xff] }
 0xe28   :  { %v2632_v17 = vpop.eup %2631 }
 0xe29   :  { %v1411_v18 = vmul.f32 %v2632_v17, %v2628_v11  ;;  %v1408_v19 = vpop.xlane.xlu0 %1407  ;;  %v1913_v11 = vld [vmem:[#allocation2 + $0x1e8] sm:$0xff] }
 0xe2a   :  { %2633 = vrcp.f32 %v1408_v19  ;;  %v2570_v17 = vld [vmem:[#allocation4 + $0xe] ss:$0 sm:$0xff] }
 0xe2b   :  { %2477 = vmatmul.msk.f32.vlgmr.msrb.gmra.mxu2 %vm299_vm3, %v1411_v18 }
 0xe2c   :  { %1713 = vmatpush.msrb.mxu2 %v1695_v20 }
 0xe2e   :  { %1714 = vmatpush.msrb.mxu2 %v1694_v21 }
 0xe30   :  { %v2634_v25 = vpop.eup %2633  ;;  %1715 = vmatpush.msrb.mxu2 %v1693_v22  ;;  %v1950_v22 = vld [vmem:[#allocation2 + $0x278] sm:$0xff] }
 0xe31   :  { %v1412_v28 = vmul.f32 %v2634_v25, %v2630_v14  ;;  %v1949_v25 = vld [vmem:[#allocation2 + $0x270] sm:$0xff] }
 0xe32   :  { %1716 = vmatpush.msrb.mxu2 %v1692_v23 }
 0xe33   :  { %2478 = vmatmul.msk.f32.gmra.mxu2 %vm299_vm3, %v1412_v28 }
 0xe3b   :  { %2487 = vmatmul.msk.f32.vlgmr.msra.gmra.mxu2 %vm263_vm1, %v1477_v31 }
 0xe43   :  { %2488 = vmatmul.msk.f32.gmra.mxu2 %vm263_vm1, %v1478_v33 }
 0xe4b   :  { %2495 = vmatmul.msk.f32.vlgmr.msrb.gmra.mxu2 %vm165_vm0, %v3087_v24 }
 0xe53   :  { %2496 = vmatmul.msk.f32.gmra.mxu2 %vm165_vm0, %v3096_v29 }
 0xeae   :  { %v1436_v36 = vpop.f32.mrf.mxu2 }
 0xeaf   :  { %2493 = vmatmul.msk.f32.vlgmr.msrb.gmra.mxu1 %vm263_vm1, %v1436_v36 }
 0xeb6   :  { %v1439_v37 = vpop.f32.mrf.mxu2 }
 0xeb7   :  { %2494 = vmatmul.msk.f32.gmra.mxu1 %vm263_vm1, %v1439_v37 }
 0xebe   :  { %v1574_v39 = vpop.f32.mrf.mxu2 }
 0xebf   :  { %v1575_v40 = vadd.f32 %v1574_v39, %v2929_v52  ;;  %v2572_v39 = vld [vmem:[#allocation4 + $0x16] ss:$0 sm:$0xff] }
 0xec1   :  { %v1580_v41 = vsel %vm299_vm3, %v1575_v40, -inf }
 0xec2   :  { %1581 = vmax.xlane.f32.xlu1 %v1580_v41 }
 0xec6   :  { %v1577_v42 = vpop.f32.mrf.mxu2 }
 0xec7   :  { %v1578_v43 = vadd.f32 %v1577_v42, %v2935_v57  ;;  %v1879_v42 = vld [vmem:[#allocation6 + $0x30] sm:$0xff] }
 0xec9   :  { %v1583_v35 = vsel %vm299_vm3, %v1578_v43, -inf }
 0xeca   :  { %1584 = vmax.xlane.f32.xlu2 %v1583_v35 }
 0xece   :  { %v1718_v15 = vpop.f32.mrf.mxu2 }
 0xecf   :  { %v1719_v20 = vadd.f32 %v2570_v17, %v1718_v15  ;;  %v2573_v15 = vld [vmem:[#allocation4 + $0xf] ss:$0 sm:$0xff] }
 0xed1   :  { %v1724_v23 = vmul.f32 0.35355338, %v1719_v20 }
 0xed6   :  { %v1721_v26 = vpop.f32.mrf.mxu2 }
 0xed7   :  { %v1722_v28 = vadd.f32 %v2570_v17, %v1721_v26 }
 0xed9   :  { %v1725_v31 = vmul.f32 0.35355338, %v1722_v28 }
 0xf2c   :  { %v3168_v9 = vpop.f32.mrf.mxu1 }
 0xf34   :  { %v1688_v33 = vpop.f32.mrf.mxu1 }
 0xf35   :  { %v1582_v44 = vpop.xlane.xlu1 %1581 }
 0xf36   :  { %v1586_v45 = vsub.f32 %v1575_v40, %v1582_v44 }
 0xf38   :  { %v1588_v46 = vmul.f32 1.442695, %v1586_v45 }
 0xf3a   :  { %2635 = vpow2.f32 %v1588_v46 }
 0xf3d   :  { %v1585_v47 = vpop.xlane.xlu2 %1584 }
 0xf3e   :  { %v1587_v48 = vsub.f32 %v1578_v43, %v1585_v47 }
 0xf40   :  { %v2636_v50 = vpop.eup %2635  ;;  %v1590_v38 = vmul.f32 1.442695, %v1587_v48 }
 0xf41   :  { %v1592_v49 = vsel %vm299_vm3, %v2636_v50, 0.0 }
 0xf42   :  { %2637 = vpow2.f32 %v1590_v38  ;;  %1593 = vadd.xlane.f32.xlu0 %v1592_v49  ;;  %v2574_v38 = vld [vmem:[#allocation4 + $0x13] ss:$0 sm:$0xff] }
 0xf48   :  { %v2638_v51 = vpop.eup %2637 }
 0xf49   :  { %v1595_v53 = vsel %vm299_vm3, %v2638_v51, 0.0 }
 0xf4a   :  { %1596 = vadd.xlane.f32.xlu1 %v1595_v53 }
 0xfb5   :  { %v1594_v59 = vpop.xlane.xlu0 %1593 }
 0xfb6   :  { %2639 = vrcp.f32 %v1594_v59 }
 0xfbc   :  { %v2640_v60 = vpop.eup %2639 }
 0xfbd   :  { %v1600_v61 = vmul.f32 %v2640_v60, %v2636_v50  ;;  %v1597_v62 = vpop.xlane.xlu1 %1596 }
 0xfbe   :  { %2641 = vrcp.f32 %v1597_v62 }
 0xfbf   :  { %2489 = vmatmul.msk.f32.vlgmr.msra.gmra.mxu3 %vm299_vm3, %v1600_v61 }
 0xfc0   :  { %1901 = vmatpush.msra.mxu3 %v1879_v42 }
 0xfc4   :  { %v2642_v63 = vpop.eup %2641 }
 0xfc5   :  { %v1601_v0 = vmul.f32 %v2642_v63, %v2638_v51 }
 0xfc7   :  { %2490 = vmatmul.msk.f32.gmra.mxu3 %vm299_vm3, %v1601_v0 }
 0xfcf   :  { %2497 = vmatmul.msk.f32.vlgmr.msrb.gmra.mxu3 %vm165_vm0, %v3087_v24 }
 0xfd7   :  { %2498 = vmatmul.msk.f32.gmra.mxu3 %vm165_vm0, %v3096_v29 }
0x1042   :  { %v1625_v8 = vpop.f32.mrf.mxu3 }
0x1043   :  { %2491 = vmatmul.msk.f32.vlgmr.msrb.gmra.mxu0 %vm263_vm1, %v1625_v8 }
0x1044   :  { %1933 = vmatpush.msrb.mxu0 %v1915_v7 }
0x1046   :  { %1934 = vmatpush.msrb.mxu0 %v1914_v10 }
0x1048   :  { %1935 = vmatpush.msrb.mxu0 %v1913_v11 }
0x104a   :  { %v1628_v13 = vpop.f32.mrf.mxu3  ;;  %1936 = vmatpush.msrb.mxu0 %v1912_v12 }
0x104b   :  { %2492 = vmatmul.msk.f32.gmra.mxu0 %vm263_vm1, %v1628_v13 }
0x1052   :  { %v1753_v14 = vpop.f32.mrf.mxu3 }
0x1053   :  { %2499 = vmatmul.msk.f32.vlgmr.msra.gmra.mxu0 %vm165_vm0, %v3087_v24  ;;  %v1754_v21 = vadd.f32 %v2571_v16, %v1753_v14 }
0x105a   :  { %v1756_v18 = vpop.f32.mrf.mxu3 }
0x105b   :  { %v1757_v19 = vadd.f32 %v2571_v16, %v1756_v18  ;;  %2500 = vmatmul.msk.f32.gmra.mxu0 %vm165_vm0, %v3096_v29 }
0x105d   :  { %2501 = vmatpush.xpose.msk.msra.mxu1 %vm263_vm1, %v1757_v19 }
0x1061   :  { %2502 = vmatpush.xpose.msk.msra.mxu1 %vm263_vm1, %v1754_v21 }
0x1063   :  { %2509 = vmatmul.msk.f32.vlgmr.msrb.gmra.mxu0 %vm165_vm0, %v3087_v24 }
0x1064   :  { %2503 = vmatmul.msk.f32.vlgmr.msra.gmra.mxu1 %vm263_vm1, %v1724_v23  ;;  %v2575_v23 = vld [vmem:[#allocation4 + $0x17] ss:$0 sm:$0xff] }
0x1065   :  { %1968 = vmatpush.msrb.mxu1 %v1950_v22 }
0x1067   :  { %1969 = vmatpush.msrb.mxu1 %v1949_v25 }
0x1069   :  { %1970 = vmatpush.msrb.mxu1 %v1948_v27 }
0x106b   :  { %1971 = vmatpush.msrb.mxu1 %v1947_v30  ;;  %2510 = vmatmul.msk.f32.gmra.mxu0 %vm165_vm0, %v3096_v29 }
0x106c   :  { %2504 = vmatmul.msk.f32.gmra.mxu1 %vm263_vm1, %v1725_v31 }
0x1074   :  { %2511 = vmatmul.msk.f32.vlgmr.msrb.gmra.mxu1 %vm165_vm0, %v3087_v24 }
0x107c   :  { %2512 = vmatmul.msk.f32.gmra.mxu1 %vm165_vm0, %v3096_v29 }
0x10c0   :  { %v3170_v32 = vpop.f32.mrf.mxu0 }
0x10c1   :  { %v1686_v28 = vadd.f32 %v3168_v9, %v3170_v32 }
0x10c8   :  { %v1659_v34 = vpop.f32.mrf.mxu0 }
0x10c9   :  { %v3172_v36 = vadd.f32 %v1688_v33, %v1659_v34 }
0x10d0   :  { %v1786_v37 = vpop.f32.mrf.mxu0 }
0x10d1   :  { %v1787_v43 = vadd.f32 %v2572_v39, %v1786_v37 }
0x10d8   :  { %v1789_v40 = vpop.f32.mrf.mxu0 }
0x10d9   :  { %v1790_v41 = vadd.f32 %v2572_v39, %v1789_v40 }
0x10db   :  { %1869 = vmatpush.msra.mxu2 %v1790_v41 }
0x10dd   :  { %1870 = vmatpush.msra.mxu2 %v1787_v43 }
0x10df   :  { %2001 = vmatpush.msrb.mxu2 %v1983_v1 }
0x10e0   :  { %v1938_v14 = vpop.f32.mrf.mxu0 }
0x10e1   :  { %v1821_v35 = vpop.f32.mrf.mxu1  ;;  %2002 = vmatpush.msrb.mxu2 %v1982_v2  ;;  %v1939_v17 = vadd.f32 %v2573_v15, %v1938_v14 }
0x10e2   :  { %v1822_v44 = vadd.f32 %v1821_v35, %v2929_v52 }
0x10e3   :  { %2003 = vmatpush.msrb.mxu2 %v1981_v3  ;;  %v1944_v18 = vmul.f32 0.35355338, %v1939_v17  ;;  %v2200_v17 = vld [vmem:[#allocation7 + $0x28] sm:$0xff] }
0x10e4   :  { %v1827_v45 = vsel %vm299_vm3, %v1822_v44, -inf }
0x10e5   :  { %1828 = vmax.xlane.f32.xlu2 %v1827_v45  ;;  %2004 = vmatpush.msrb.mxu2 %v1980_v4 }
0x10e8   :  { %v1941_v19 = vpop.f32.mrf.mxu0 }
0x10e9   :  { %v1824_v46 = vpop.f32.mrf.mxu1  ;;  %v1942_v21 = vadd.f32 %v2573_v15, %v1941_v19 }
0x10ea   :  { %v1825_v47 = vadd.f32 %v1824_v46, %v2935_v57 }
0x10eb   :  { %v1945_v22 = vmul.f32 0.35355338, %v1942_v21 }
0x10ec   :  { %v1830_v48 = vsel %vm299_vm3, %v1825_v47, -inf }
0x10ed   :  { %1831 = vmax.xlane.f32.xlu0 %v1830_v48 }
0x10f1   :  { %v1973_v50 = vpop.f32.mrf.mxu1 }
0x10f2   :  { %v1974_v53 = vadd.f32 %v2574_v38, %v1973_v50 }
0x10f9   :  { %v1976_v49 = vpop.f32.mrf.mxu1 }
0x10fa   :  { %v1977_v51 = vadd.f32 %v2574_v38, %v1976_v49 }
0x10fc   :  { %2515 = vmatpush.xpose.msk.msrb.mxu3 %vm263_vm1, %v1977_v51 }
0x1100   :  { %2516 = vmatpush.xpose.msk.msrb.mxu3 %vm263_vm1, %v1974_v53 }
0x1158   :  { %v1829_v54 = vpop.xlane.xlu2 %1828 }
0x1159   :  { %v1833_v55 = vsub.f32 %v1822_v44, %v1829_v54 }
0x115b   :  { %v1835_v56 = vmul.f32 1.442695, %v1833_v55 }
0x115d   :  { %2643 = vpow2.f32 %v1835_v56 }
0x1160   :  { %v1832_v58 = vpop.xlane.xlu0 %1831 }
0x1161   :  { %v1834_v59 = vsub.f32 %v1825_v47, %v1832_v58  ;;  %v2576_v58 = vld [vmem:[%s3274_s4 + $0x1] ss:$0 sm:$0xff] }
0x1163   :  { %v2644_v60 = vpop.eup %2643  ;;  %v1837_v61 = vmul.f32 1.442695, %v1834_v59 }
0x1164   :  { %v1839_v62 = vsel %vm299_vm3, %v2644_v60, 0.0 }
0x1165   :  { %2645 = vpow2.f32 %v1837_v61  ;;  %1840 = vadd.xlane.f32.xlu1 %v1839_v62 }
0x116b   :  { %v2646_v63 = vpop.eup %2645 }
0x116c   :  { %v1842_v0 = vsel %vm299_vm3, %v2646_v63, 0.0 }
0x116d   :  { %1843 = vadd.xlane.f32.xlu2 %v1842_v0 }
0x11d8   :  { %v1841_v5 = vpop.xlane.xlu1 %1840 }
0x11d9   :  { %2647 = vrcp.f32 %v1841_v5 }
0x11df   :  { %v2648_v7 = vpop.eup %2647 }
0x11e0   :  { %v1847_v8 = vmul.f32 %v2648_v7, %v2644_v60  ;;  %v1844_v10 = vpop.xlane.xlu2 %1843 }
0x11e1   :  { %2649 = vrcp.f32 %v1844_v10 }
0x11e2   :  { %2505 = vmatmul.msk.f32.vlgmr.msra.gmra.mxu2 %vm299_vm3, %v1847_v8 }
0x11e7   :  { %v2650_v11 = vpop.eup %2649 }
0x11e8   :  { %v1848_v12 = vmul.f32 %v2650_v11, %v2646_v63 }
0x11ea   :  { %2506 = vmatmul.msk.f32.gmra.mxu2 %vm299_vm3, %v1848_v12 }
0x11f2   :  { %2513 = vmatmul.msk.f32.vlgmr.msrb.gmra.mxu2 %vm165_vm0, %v3087_v24 }
0x11fa   :  { %2514 = vmatmul.msk.f32.gmra.mxu2 %vm165_vm0, %v3096_v29 }
0x1265   :  { %v1872_v13 = vpop.f32.mrf.mxu2 }
0x1266   :  { %2507 = vmatmul.msk.f32.vlgmr.msra.gmra.mxu3 %vm263_vm1, %v1872_v13 }
0x126d   :  { %v1875_v16 = vpop.f32.mrf.mxu2 }
0x126e   :  { %2508 = vmatmul.msk.f32.gmra.mxu3 %vm263_vm1, %v1875_v16  ;;  %v2201_v16 = vld [vmem:[#allocation7 + $0x30] sm:$0xff] }
0x1275   :  { %v2006_v20 = vpop.f32.mrf.mxu2 }
0x1276   :  { %2517 = vmatmul.msk.f32.vlgmr.msrb.gmra.mxu3 %vm263_vm1, %v1944_v18  ;;  %v2007_v27 = vadd.f32 %v2575_v23, %v2006_v20  ;;  %v2199_v18 = vld [vmem:[#allocation7 + $0x20] sm:$0xff] }
0x127d   :  { %v2009_v25 = vpop.f32.mrf.mxu2 }
0x127e   :  { %v2010_v26 = vadd.f32 %v2575_v23, %v2009_v25  ;;  %2518 = vmatmul.msk.f32.gmra.mxu3 %vm263_vm1, %v1945_v22  ;;  %v2247_v22 = vld [vmem:[#allocation9 + $0x78] sm:$0xff]  ;;  %v2246_v23 = vld [vmem:[#allocation9 + $0x70] sm:$0xff]  ;;  %v2245_v25 = vld [vmem:[#allocation9 + $0x68] sm:$0xff] }
0x127f   :  { %2267 = vmatpush.msra.mxu3 %v2247_v22 }
0x1280   :  { %2089 = vmatpush.msra.mxu0 %v2010_v26 }
0x1281   :  { %2268 = vmatpush.msra.mxu3 %v2246_v23 }
0x1282   :  { %2090 = vmatpush.msra.mxu0 %v2007_v27 }
0x1283   :  { %2269 = vmatpush.msra.mxu3 %v2245_v25 }
0x12e9   :  { %v1903_v30 = vpop.f32.mrf.mxu3 }
0x12ea   :  { %v1909_v31 = vadd.f32 %v1903_v30, %v1686_v28  ;;  %v2244_v28 = vld [vmem:[#allocation9 + $0x60] sm:$0xff] }
0x12eb   :  { %2270 = vmatpush.msra.mxu3 %v2244_v28 }
0x12f1   :  { %v1906_v33 = vpop.f32.mrf.mxu3 }
0x12f2   :  { %v1910_v34 = vadd.f32 %v1906_v33, %v3172_v36  ;;  %v2243_v33 = vld [vmem:[#allocation9 + $0x58] sm:$0xff] }
0x12f3   :  { %2271 = vmatpush.msra.mxu3 %v2243_v33 }
0x12f9   :  { %v2041_v37 = vpop.f32.mrf.mxu3 }
0x12fa   :  { %v2042_v39 = vadd.f32 %v2041_v37, %v2929_v52 }
0x12fc   :  { %v2047_v40 = vsel %vm299_vm3, %v2042_v39, -inf }
0x12fd   :  { %2048 = vmax.xlane.f32.xlu0 %v2047_v40 }
0x1301   :  { %v2044_v41 = vpop.f32.mrf.mxu3 }
0x1302   :  { %v2045_v42 = vadd.f32 %v2044_v41, %v2935_v57  ;;  %v2099_v57 = vld [vmem:[#allocation6 + $0x38] sm:$0xff] }
0x1303   :  { %2121 = vmatpush.msra.mxu1 %v2099_v57 }
0x1304   :  { %v2050_v43 = vsel %vm299_vm3, %v2045_v42, -inf }
0x1305   :  { %2051 = vmax.xlane.f32.xlu1 %v2050_v43 }
0x1370   :  { %v2049_v35 = vpop.xlane.xlu0 %2048 }
0x1371   :  { %v2053_v44 = vsub.f32 %v2042_v39, %v2049_v35  ;;  %v2577_v35 = vld [vmem:[%s3279_s9 + $0x1] ss:$0 sm:$0xff] }
0x1373   :  { %v2055_v9 = vmul.f32 1.442695, %v2053_v44 }
0x1375   :  { %2651 = vpow2.f32 %v2055_v9 }
0x1378   :  { %v2052_v32 = vpop.xlane.xlu1 %2051 }
0x1379   :  { %v2054_v45 = vsub.f32 %v2045_v42, %v2052_v32  ;;  %v2578_v32 = vld [vmem:[%s3280_s10 + $0x1] ss:$0 sm:$0xff] }
0x137b   :  { %v2652_v46 = vpop.eup %2651  ;;  %v2057_v36 = vmul.f32 1.442695, %v2054_v45 }
0x137c   :  { %v2059_v47 = vsel %vm299_vm3, %v2652_v46, 0.0 }
0x137d   :  { %2653 = vpow2.f32 %v2057_v36  ;;  %2060 = vadd.xlane.f32.xlu2 %v2059_v47 }
0x1383   :  { %v2654_v52 = vpop.eup %2653 }
0x1384   :  { %v2062_v48 = vsel %vm299_vm3, %v2654_v52, 0.0 }
0x1385   :  { %2063 = vadd.xlane.f32.xlu0 %v2062_v48 }
0x13f0   :  { %v2061_v50 = vpop.xlane.xlu2 %2060 }
0x13f1   :  { %2655 = vrcp.f32 %v2061_v50 }
0x13f7   :  { %v2656_v38 = vpop.eup %2655 }
0x13f8   :  { %v2067_v49 = vmul.f32 %v2656_v38, %v2652_v46  ;;  %v2064_v51 = vpop.xlane.xlu0 %2063 }
0x13f9   :  { %2657 = vrcp.f32 %v2064_v51  ;;  %v2242_v51 = vld [vmem:[#allocation9 + $0x50] sm:$0xff] }
0x13fa   :  { %2519 = vmatmul.msk.f32.vlgmr.msra.gmra.mxu0 %vm299_vm3, %v2067_v49  ;;  %2272 = vmatpush.msra.mxu3 %v2242_v51 }
0x13ff   :  { %v2658_v53 = vpop.eup %2657 }
0x1400   :  { %v2068_v54 = vmul.f32 %v2658_v53, %v2654_v52  ;;  %v2241_v53 = vld [vmem:[#allocation9 + $0x48] sm:$0xff] }
0x1401   :  { %2273 = vmatpush.msra.mxu3 %v2241_v53 }
0x1402   :  { %2520 = vmatmul.msk.f32.gmra.mxu0 %vm299_vm3, %v2068_v54  ;;  %v2240_v54 = vld [vmem:[#allocation9 + $0x40] sm:$0xff] }
0x1403   :  { %2274 = vmatpush.msra.mxu3 %v2240_v54 }
0x1477   :  { %v2092_v55 = vpop.f32.mrf.mxu0 }
0x1478   :  { %2521 = vmatmul.msk.f32.vlgmr.msra.gmra.mxu1 %vm263_vm1, %v2092_v55  ;;  %v2579_v55 = vld [vmem:[%s3276_s6 + $0x1] ss:$0 sm:$0xff] }
0x147f   :  { %v2095_v56 = vpop.f32.mrf.mxu0 }
0x1480   :  { %2522 = vmatmul.msk.f32.gmra.mxu1 %vm263_vm1, %v2095_v56 }
0x14f5   :  { %v2123_v59 = vpop.f32.mrf.mxu1 }
0x14f6   :  { %v2129_v60 = vadd.f32 %v2123_v59, %v1909_v31 }
0x14f8   :  { %v2136_v61 = vadd.f32 %v2576_v58, %v2129_v60 }
0x14fa   :  { %v2138_v62 = vadd.f32 %v2136_v61, %v3087_v24 }
0x14fc   :  { %v2144_v63 = vsel %vm165_vm0, %v2138_v62, 0.0 }
0x14fd   :  { %2145 = vadd.xlane.f32.xlu1 %v2144_v63  ;;  %v2126_v0 = vpop.f32.mrf.mxu1  ;;  %v2580_v63 = vld [vmem:[%s3278_s8 + $0x1] ss:$0 sm:$0xff] }
0x14fe   :  { %v2130_v1 = vadd.f32 %v2126_v0, %v1910_v34 }
0x1500   :  { %v2137_v2 = vadd.f32 %v2576_v58, %v2130_v1 }
0x1502   :  { %v2139_v3 = vadd.f32 %v2137_v2, %v3096_v29  ;;  %v2202_v29 = vld [vmem:[#allocation7 + $0x38] sm:$0xff] }
0x1503   :  { %2226 = vmatpush.msra.mxu2 %v2202_v29 }
0x1504   :  { %v2147_v4 = vsel %vm165_vm0, %v2139_v3, 0.0 }
0x1505   :  { %2148 = vadd.xlane.f32.xlu2 %v2147_v4  ;;  %2227 = vmatpush.msra.mxu2 %v2201_v16 }
0x1507   :  { %2228 = vmatpush.msra.mxu2 %v2200_v17 }
0x1509   :  { %2229 = vmatpush.msra.mxu2 %v2199_v18 }
0x1570   :  { %v2146_v5 = vpop.xlane.xlu1 %2145 }
0x1571   :  { %v2150_v7 = vmul.f32 %v2146_v5, %v3040_v6 }
0x1573   :  { %v2152_v8 = vsub.f32 %v2138_v62, %v2150_v7 }
0x1575   :  { %v2154_v10 = vmul.f32 %v2152_v8, %v2152_v8 }
0x1577   :  { %v2156_v11 = vsel %vm165_vm0, %v2154_v10, 0.0 }
0x1578   :  { %2157 = vadd.xlane.f32.xlu0 %v2156_v11  ;;  %v2149_v24 = vpop.xlane.xlu2 %2148 }
0x1579   :  { %v2151_v12 = vmul.f32 %v2149_v24, %v3040_v6 }
0x157b   :  { %v2153_v13 = vsub.f32 %v2139_v3, %v2151_v12 }
0x157d   :  { %v2155_v14 = vmul.f32 %v2153_v13, %v2153_v13 }
0x157f   :  { %v2159_v15 = vsel %vm165_vm0, %v2155_v14, 0.0 }
0x1580   :  { %2160 = vadd.xlane.f32.xlu1 %v2159_v15 }
0x15eb   :  { %v2158_v19 = vpop.xlane.xlu0 %2157 }
0x15ec   :  { %v2162_v20 = vmul.f32 %v2158_v19, %v3040_v6 }
0x15ee   :  { %v2164_v21 = vadd.f32 1e-05, %v2162_v20 }
0x15f0   :  { %2659 = vrsqrt.f32 %v2164_v21  ;;  %vm2172_vm3 = vweird.f32 %v2164_v21 }
0x15f3   :  { %v2161_v26 = vpop.xlane.xlu1 %2160 }
0x15f4   :  { %v2163_v27 = vmul.f32 %v2161_v26, %v3040_v6 }
0x15f6   :  { %v2660_v30 = vpop.eup %2659  ;;  %v2165_v31 = vadd.f32 1e-05, %v2163_v27 }
0x15f7   :  { %v2167_v34 = vmul.f32 %v2660_v30, %v2164_v21  ;;  %vm2173_vm1 = vweird.f32 %v2660_v30 }
0x15f8   :  { %2661 = vrsqrt.f32 %v2165_v31  ;;  %vm2174_vm6 = vmor %vm2172_vm3, %vm2173_vm1  ;;  %vm2182_vm8 = vweird.f32 %v2165_v31 }
0x15f9   :  { %v2168_v37 = vmul.f32 %v2660_v30, %v2167_v34 }
0x15fb   :  { %v2169_v39 = vmul.f32 0.5, %v2168_v37  ;;  %v2581_v37 = vld [vmem:[%s3281_s11 + $0x1] ss:$0 sm:$0xff] }
0x15fd   :  { %v2170_v40 = vsub.f32 1.5, %v2169_v39 }
0x15fe   :  { %v2662_v41 = vpop.eup %2661 }
0x15ff   :  { %v2171_v42 = vmul.f32 %v2660_v30, %v2170_v40  ;;  %v2177_v43 = vmul.f32 %v2662_v41, %v2165_v31  ;;  %vm2183_vm7 = vweird.f32 %v2662_v41 }
0x1600   :  { %vm2184_vm9 = vmor %vm2182_vm8, %vm2183_vm7 }
0x1601   :  { %v2175_v44 = vsel %vm2174_vm6, %v2660_v30, %v2171_v42  ;;  %v2178_v9 = vmul.f32 %v2662_v41, %v2177_v43  ;;  %v2582_v42 = vld [vmem:[%s3282_s12 + $0x1] ss:$0 sm:$0xff] }
0x1602   :  { %v2186_v45 = vmul.f32 %v2175_v44, %v2152_v8 }
0x1603   :  { %v2179_v46 = vmul.f32 0.5, %v2178_v9 }
0x1604   :  { %v2191_v36 = vmul.f32 %v2577_v35, %v2186_v45 }
0x1605   :  { %v2180_v47 = vsub.f32 1.5, %v2179_v46 }
0x1606   :  { %v2196_v52 = vadd.f32 %v2578_v32, %v2191_v36 }
0x1607   :  { %v2181_v48 = vmul.f32 %v2662_v41, %v2180_v47 }
0x1608   :  { %2527 = vmatmul.msk.f32.vlgmr.msra.gmra.mxu2 %vm165_vm0, %v2196_v52 }
0x1609   :  { %v2185_v57 = vsel %vm2184_vm9, %v2662_v41, %v2181_v48 }
0x160a   :  { %v2187_v50 = vmul.f32 %v2185_v57, %v2153_v13 }
0x160c   :  { %v2192_v38 = vmul.f32 %v2577_v35, %v2187_v50 }
0x160e   :  { %v2197_v49 = vadd.f32 %v2578_v32, %v2192_v38 }
0x1610   :  { %2528 = vmatmul.msk.f32.gmra.mxu2 %vm165_vm0, %v2197_v49 }
0x168b   :  { %v2231_v56 = vpop.f32.mrf.mxu2 }
0x168c   :  { %v2232_v58 = vadd.f32 %v2579_v55, %v2231_v56 }
0x168e   :  { %v2237_v59 = vmax.f32 %v2232_v58, 0.0 }
0x1690   :  { %2530 = vmatmul.msk.f32.vlgmr.msra.gmra.mxu3 %vm1161_vm12, %v2237_v59 }
0x1693   :  { %v2234_v60 = vpop.f32.mrf.mxu2 }
0x1694   :  { %v2235_v61 = vadd.f32 %v2579_v55, %v2234_v60 }
0x1696   :  { %v2238_v62 = vmax.f32 %v2235_v61, 0.0 }
0x1698   :  { %2531 = vmatmul.msk.f32.gmra.mxu3 %vm1161_vm12, %v2238_v62 }
0x1713   :  { %v2276_v0 = vpop.f32.mrf.mxu3 }
0x1714   :  { %v2277_v1 = vadd.f32 %v2580_v63, %v2276_v0 }
0x1716   :  { %v2282_v2 = vadd.f32 %v2277_v1, %v2196_v52 }
0x1718   :  { %v2288_v3 = vsel %vm165_vm0, %v2282_v2, 0.0 }
0x1719   :  { %2289 = vadd.xlane.f32.xlu2 %v2288_v3 }
0x171b   :  { %v2279_v4 = vpop.f32.mrf.mxu3 }
0x171c   :  { %v2280_v5 = vadd.f32 %v2580_v63, %v2279_v4 }
0x171e   :  { %v2283_v7 = vadd.f32 %v2280_v5, %v2197_v49 }
0x1720   :  { %v2291_v8 = vsel %vm165_vm0, %v2283_v7, 0.0 }
0x1721   :  { %2292 = vadd.xlane.f32.xlu0 %v2291_v8 }
0x178c   :  { %v2290_v10 = vpop.xlane.xlu2 %2289 }
0x178d   :  { %v2294_v11 = vmul.f32 %v2290_v10, %v3040_v6 }
0x178f   :  { %v2296_v24 = vsub.f32 %v2282_v2, %v2294_v11  ;;  %v2583_v11 = vld [vmem:[%s3283_s13] ss:$0 sm:$0xff] }
0x1791   :  { %v2298_v12 = vmul.f32 %v2296_v24, %v2296_v24 }
0x1793   :  { %v2300_v13 = vsel %vm165_vm0, %v2298_v12, 0.0 }
0x1794   :  { %v2293_v14 = vpop.xlane.xlu0 %2292  ;;  %2301 = vadd.xlane.f32.xlu1 %v2300_v13 }
0x1795   :  { %v2295_v15 = vmul.f32 %v2293_v14, %v3040_v6 }
0x1797   :  { %v2297_v29 = vsub.f32 %v2283_v7, %v2295_v15 }
0x1799   :  { %v2299_v16 = vmul.f32 %v2297_v29, %v2297_v29 }
0x179b   :  { %v2303_v17 = vsel %vm165_vm0, %v2299_v16, 0.0 }
0x179c   :  { %2304 = vadd.xlane.f32.xlu2 %v2303_v17 }
0x1807   :  { %v2302_v18 = vpop.xlane.xlu1 %2301 }
0x1808   :  { %v2306_v19 = vmul.f32 %v2302_v18, %v3040_v6 }
0x180a   :  { %v2308_v20 = vadd.f32 1e-05, %v2306_v19 }
0x180c   :  { %2663 = vrsqrt.f32 %v2308_v20  ;;  %vm2316_vm11 = vweird.f32 %v2308_v20 }
0x180f   :  { %v2305_v21 = vpop.xlane.xlu2 %2304 }
0x1810   :  { %v2307_v22 = vmul.f32 %v2305_v21, %v3040_v6 }
0x1812   :  { %v2664_v23 = vpop.eup %2663  ;;  %v2309_v25 = vadd.f32 1e-05, %v2307_v22 }
0x1813   :  { %v2311_v26 = vmul.f32 %v2664_v23, %v2308_v20  ;;  %vm2317_vm10 = vweird.f32 %v2664_v23 }
0x1814   :  { %2665 = vrsqrt.f32 %v2309_v25  ;;  %vm2318_vm12 = vmor %vm2316_vm11, %vm2317_vm10  ;;  %vm2326_vm14 = vweird.f32 %v2309_v25 }
0x1815   :  { %v2312_v27 = vmul.f32 %v2664_v23, %v2311_v26 }
0x1817   :  { %v2313_v28 = vmul.f32 0.5, %v2312_v27 }
0x1819   :  { %v2314_v30 = vsub.f32 1.5, %v2313_v28 }
0x181a   :  { %v2666_v31 = vpop.eup %2665 }
0x181b   :  { %v2315_v33 = vmul.f32 %v2664_v23, %v2314_v30  ;;  %v2321_v34 = vmul.f32 %v2666_v31, %v2309_v25  ;;  %vm2327_vm13 = vweird.f32 %v2666_v31 }
0x181c   :  { %vm2328_vm15 = vmor %vm2326_vm14, %vm2327_vm13 }
0x181d   :  { %v2322_v39 = vmul.f32 %v2666_v31, %v2321_v34  ;;  %v2319_v40 = vsel %vm2318_vm12, %v2664_v23, %v2315_v33 }
0x181e   :  { %v2330_v41 = vmul.f32 %v2319_v40, %v2296_v24 }
0x181f   :  { %v2323_v43 = vmul.f32 0.5, %v2322_v39 }
0x1820   :  { %v2335_v35 = vmul.f32 %v2581_v37, %v2330_v41 }
0x1821   :  { %v2324_v44 = vsub.f32 1.5, %v2323_v43 }
0x1822   :  { %v2340_v9 = vadd.f32 %v2582_v42, %v2335_v35 }
0x1823   :  { %v2325_v32 = vmul.f32 %v2666_v31, %v2324_v44 }
0x1824   :  { %v2344_v45 = vsel %vm165_vm0, %v2340_v9, 0.0 }
0x1825   :  { %2345 = vadd.xlane.f32.xlu0 %v2344_v45  ;;  %v2329_v46 = vsel %vm2328_vm15, %v2666_v31, %v2325_v32 }
0x1826   :  { %v2331_v36 = vmul.f32 %v2329_v46, %v2297_v29 }
0x1828   :  { %v2336_v47 = vmul.f32 %v2581_v37, %v2331_v36 }
0x182a   :  { %v2341_v52 = vadd.f32 %v2582_v42, %v2336_v47 }
0x182c   :  { %v2347_v48 = vsel %vm165_vm0, %v2341_v52, 0.0 }
0x182d   :  { %2348 = vadd.xlane.f32.xlu1 %v2347_v48 }
0x1898   :  { %v2346_v57 = vpop.xlane.xlu0 %2345 }
0x1899   :  { %v2350_v50 = vmul.f32 %v2346_v57, %v3040_v6 }
0x189b   :  { %v2352_v38 = vsub.f32 %v2340_v9, %v2350_v50 }
0x189d   :  { %v2354_v49 = vmul.f32 %v2352_v38, %v2352_v38 }
0x189f   :  { %v2356_v51 = vsel %vm165_vm0, %v2354_v49, 0.0 }
0x18a0   :  { %2357 = vadd.xlane.f32.xlu2 %v2356_v51  ;;  %v2349_v53 = vpop.xlane.xlu1 %2348 }
0x18a1   :  { %v2351_v54 = vmul.f32 %v2349_v53, %v3040_v6 }
0x18a3   :  { %v2353_v55 = vsub.f32 %v2341_v52, %v2351_v54 }
0x18a5   :  { %v2355_v56 = vmul.f32 %v2353_v55, %v2353_v55 }
0x18a7   :  { %v2359_v58 = vsel %vm165_vm0, %v2355_v56, 0.0 }
0x18a8   :  { %2360 = vadd.xlane.f32.xlu0 %v2359_v58 }
0x1913   :  { %v2358_v59 = vpop.xlane.xlu2 %2357 }
0x1914   :  { %v2362_v60 = vmul.f32 %v2358_v59, %v3040_v6 }
0x1916   :  { %v2364_v61 = vadd.f32 1e-05, %v2362_v60 }
0x1918   :  { %2667 = vrsqrt.f32 %v2364_v61  ;;  %vm2372_vm4 = vweird.f32 %v2364_v61 }
0x191b   :  { %v2361_v62 = vpop.xlane.xlu0 %2360 }
0x191c   :  { %v2363_v63 = vmul.f32 %v2361_v62, %v3040_v6  ;;  %v2584_v6 = vld [vmem:[%s3284_s14] ss:$0 sm:$0xff] }
0x191e   :  { %v2668_v0 = vpop.eup %2667  ;;  %v2365_v1 = vadd.f32 1e-05, %v2363_v63 }
0x191f   :  { %v2367_v2 = vmul.f32 %v2668_v0, %v2364_v61  ;;  %vm2373_vm2 = vweird.f32 %v2668_v0 }
0x1920   :  { %2669 = vrsqrt.f32 %v2365_v1  ;;  %vm2374_vm5 = vmor %vm2372_vm4, %vm2373_vm2  ;;  %vm2382_vm3 = vweird.f32 %v2365_v1 }
0x1921   :  { %v2368_v3 = vmul.f32 %v2668_v0, %v2367_v2 }
0x1923   :  { %v2369_v4 = vmul.f32 0.5, %v2368_v3 }
0x1925   :  { %v2370_v5 = vsub.f32 1.5, %v2369_v4 }
0x1926   :  { %v2670_v7 = vpop.eup %2669 }
0x1927   :  { %v2371_v8 = vmul.f32 %v2668_v0, %v2370_v5  ;;  %v2377_v10 = vmul.f32 %v2670_v7, %v2365_v1  ;;  %vm2383_vm1 = vweird.f32 %v2670_v7 }
0x1928   :  { %vm2384_vm6 = vmor %vm2382_vm3, %vm2383_vm1 }
0x1929   :  { %v2375_v24 = vsel %vm2374_vm5, %v2668_v0, %v2371_v8  ;;  %v2378_v12 = vmul.f32 %v2670_v7, %v2377_v10 }
0x192a   :  { %v2386_v13 = vmul.f32 %v2375_v24, %v2352_v38 }
0x192b   :  { %v2379_v14 = vmul.f32 0.5, %v2378_v12 }
0x192c   :  { %v2391_v15 = vmul.f32 %v2583_v11, %v2386_v13 }
0x192d   :  { %v2380_v29 = vsub.f32 1.5, %v2379_v14 }
0x192e   :  { %v2396_v16 = vadd.f32 %v2584_v6, %v2391_v15 }
0x192f   :  { %v2381_v17 = vmul.f32 %v2670_v7, %v2380_v29 }
0x1930   :  { %2398 = vst.msk [vmem:[%s3285_s15] sm:$0xff] %vm165_vm0, %v2396_v16 }
0x1931   :  { %v2385_v18 = vsel %vm2384_vm6, %v2670_v7, %v2381_v17 }
0x1932   :  { %v2387_v19 = vmul.f32 %v2385_v18, %v2353_v55 }
0x1934   :  { %v2392_v20 = vmul.f32 %v2583_v11, %v2387_v19 }
0x1936   :  { %v2397_v21 = vadd.f32 %v2584_v6, %v2392_v20 }
0x1938   :  { %2399 = vst.msk [vmem:[%s3285_s15 + $0x8] sm:$0xff] %vm165_vm0, %v2397_v21 }
0x1939   :  { %2404 = vsyncpa [#allocation3], 1 }
0x193a   :  { %2405 = vsyncpa [#allocation5], 1 }
0x193b   :  { %2406 = vsyncpa [#allocation8], 1 }

// kernel: transformer_model_forward.5
= control target key start
LH: loop header
LB: loop body
LE: loop exit
PB: predicated region body
PF: predicated region fallthrough
CT: control target
= control target key end

     0   :  { %s6141_s0 = inlined_call_operand.vmem [shape: f32[16,32], index: 0, kind: input, shape index: {}]   ;;  %s6142_s1 = inlined_call_operand.vmem [shape: f32[16,32], index: 1, kind: input, shape index: {}]   ;;  %s6143_s2 = inlined_call_operand.hbm [shape: f32[24,32,8], index: 2, kind: input, shape index: {}]   ;;  %s6144_s3 = inlined_call_operand.vmem [shape: f32[24,1,8], index: 3, kind: input, shape index: {}]   ;;  %s6145_s4 = inlined_call_operand.vmem [shape: f32[8,8,32], index: 4, kind: input, shape index: {}]   ;;  %s6146_s5 = inlined_call_operand.vmem [shape: f32[2,1,32], index: 5, kind: input, shape index: {}]   ;;  %s6147_s6 = inlined_call_operand.hbm [shape: f32[24,32,8], index: 6, kind: input, shape index: {}]   ;;  %s6148_s7 = inlined_call_operand.hbm [shape: f32[24,1,8], index: 7, kind: input, shape index: {}]   ;;  %s6149_s8 = inlined_call_operand.hbm [shape: f32[8,8,32], index: 8, kind: input, shape index: {}]   ;;  %s6150_s9 = inlined_call_operand.vmem [shape: f32[2,1,32], index: 9, kind: input, shape index: {}]   ;;  %s6151_s10 = inlined_call_operand.hbm [shape: f32[2,32,64], index: 10, kind: input, shape index: {}]   ;;  %s6152_s11 = inlined_call_operand.vmem [shape: f32[2,1,64], index: 11, kind: input, shape index: {}]   ;;  %s6153_s12 = inlined_call_operand.hbm [shape: f32[2,64,32], index: 12, kind: input, shape index: {}]   ;;  %s6154_s13 = inlined_call_operand.vmem [shape: f32[2,1,32], index: 13, kind: input, shape index: {}]   ;;  %s6155_s14 = inlined_call_operand.vmem [shape: f32[2,1,32], index: 14, kind: input, shape index: {}, may-alias: {14,16,18}]   ;;  %s6156_s15 = inlined_call_operand.vmem [shape: f32[2,1,32], index: 15, kind: input, shape index: {}, may-alias: {15,17,19}]   ;;  %s6157_s16 = inlined_call_operand.vmem [shape: f32[2,1,32], index: 16, kind: input, shape index: {}, may-alias: {14,16,18}]   ;;  %s6158_s17 = inlined_call_operand.vmem [shape: f32[2,1,32], index: 17, kind: input, shape index: {}, may-alias: {15,17,19}]   ;;  %s6159_s18 = inlined_call_operand.vmem [shape: f32[2,1,32], index: 18, kind: input, shape index: {}, may-alias: {14,16,18}]   ;;  %s6160_s19 = inlined_call_operand.vmem [shape: f32[2,1,32], index: 19, kind: input, shape index: {}, may-alias: {15,17,19}]   ;;  %s6161_s20 = inlined_call_operand.vmem [shape: f32[1,32], index: 20, kind: input, shape index: {}]   ;;  %s6162_s21 = inlined_call_operand.vmem [shape: f32[1,32], index: 21, kind: input, shape index: {}]   ;;  %s6163_s22 = inlined_call_operand.vmem [shape: f32[50,32], index: 22, kind: input, shape index: {}]   ;;  %s6164_s23 = inlined_call_operand.vmem [shape: f32[1,50], index: 23, kind: input, shape index: {}]   ;;  %s6165_s24 = inlined_call_operand.hbm [shape: f32[16,50], index: 24, kind: output, shape index: {}]  }
   0x1   :  { %6171 = sst [smem:[#allocation19_spill]] %s6141_s0 }
   0x2   :  { %6172 = sst [smem:[#allocation20_spill]] %s6142_s1 }
   0x3   :  { %6173 = sst [smem:[#allocation21_spill]] %s6143_s2 }
   0x4   :  { %6174 = sst [smem:[#allocation22_spill]] %s6144_s3 }
   0x5   :  { %6175 = sst [smem:[#allocation23_spill]] %s6145_s4 }
   0x6   :  { %6176 = sst [smem:[#allocation24_spill]] %s6146_s5 }
   0x7   :  { %6177 = sst [smem:[#allocation25_spill]] %s6147_s6 }
   0x8   :  { %6178 = sst [smem:[#allocation26_spill]] %s6148_s7 }
   0x9   :  { %6179 = sst [smem:[#allocation27_spill]] %s6149_s8 }
   0xa   :  { %6180 = sst [smem:[#allocation28_spill]] %s6164_s23 }
   0xb   :  { %6181 = sst [smem:[#allocation29_spill]] %s6165_s24 }
   0xc   :  { %29 = vsyncpa [#allocation3], 0 }
   0xd   :  { %30 = vsyncpa [#allocation6], 0 }
   0xe   :  { %31 = vsyncpa [#allocation9], 0 }
   0xf   :  { %32 = vsyncpa [#allocation12], 0 }
  0x10   :  { %33 = vsyncpa [#allocation4], 0  ;;  %s6182_s27 = sld [smem:[#allocation25_spill]]  ;;  %s5141_s6 = smov [#allocation5]  }
  0x11   :  { %s63_s2 = sshll.u32 %s5141_s6, 4  ;;  %s6183_s7 = sld [smem:[#allocation27_spill]]  ;;  %s64_s2 = int_to_ptr.vmem [resolvable:$true] %s63_s2 }
  0x12   :  { %s5142_s3 = smov 128   ;;  %s5143_s25 = smov 8  }
  0x13   :  { %s5144_s8 = smov [#allocation8]   ;;  %s6184_s26 = sld [smem:[#allocation21_spill]] }
  0x14   :  { %s89_s4 = sshll.u32 %s5144_s8, 4  ;;  %s6185_s0 = sld [smem:[#allocation26_spill]]  ;;  %s90_s4 = int_to_ptr.vmem [resolvable:$true] %s89_s4 }
  0x15   :  { %s5145_s24 = smov [#allocation2]   ;;  %s5147_s8 = smov 16  }
  0x16   :  { %s61_s28 = sshll.u32 %s6182_s27, 4  ;;  %s44_s23 = sshll.u32 %s5145_s24, 4  ;;  %s62_s28 = int_to_ptr.hbm [resolvable:$true] %s61_s28  ;;  %s45_s23 = int_to_ptr.vmem [resolvable:$true] %s44_s23 }
  0x17   :  { %s87_s30 = sshll.u32 %s6183_s7, 4  ;;  %s5148_s1 = smov 1   ;;  %s88_s30 = int_to_ptr.hbm [resolvable:$true] %s87_s30 }
  0x18   :  { %69 = dma.hbm_to_vmem [thread:$0]  %s62_s28, 12288, %s64_s2, [#allocation6], %s5142_s3, %s5142_s3, %s5143_s25  }
  0x19   :  { %s42_s27 = sshll.u32 %s6184_s26, 4  ;;  %s5146_s28 = smov [#allocation7]   ;;  %s43_s27 = int_to_ptr.hbm [resolvable:$true] %s42_s27 }
  0x1a   :  { %95 = dma.hbm_to_vmem [thread:$0]  %s88_s30, 1024, %s90_s4, [#allocation9], %s5142_s3, %s5142_s3, %s5143_s25  }
  0x1b   :  { %s74_s7 = sshll.u32 %s6185_s0, 4  ;;  %s76_s2 = sshll.u32 %s5146_s28, 4  ;;  %s75_s7 = int_to_ptr.hbm [resolvable:$true] %s74_s7  ;;  %s77_s2 = int_to_ptr.vmem [resolvable:$true] %s76_s2 }
  0x1c   :  { %50 = dma.hbm_to_vmem [thread:$0]  %s43_s27, 12288, %s45_s23, [#allocation3], %s5142_s3, %s5142_s3, %s5143_s25  }
  0x1d   :  { %82 = dma.hbm_to_vmem [thread:$0]  %s75_s7, 384, %s77_s2, [#allocation6], %s5147_s8, %s5147_s8, %s5148_s1  }
  0x1e   :  { %s102_s4 = sshll.u32 %s6151_s10, 4  ;;  %s5149_s26 = smov [#allocation10]   ;;  %s103_s4 = int_to_ptr.hbm [resolvable:$true] %s102_s4 }
  0x1f   :  { %s104_s6 = sshll.u32 %s5149_s26, 4  ;;  %s117_s0 = sshll.u32 %s6153_s12, 4  ;;  %s105_s6 = int_to_ptr.vmem [resolvable:$true] %s104_s6  ;;  %s118_s0 = int_to_ptr.hbm [resolvable:$true] %s117_s0 }
  0x20   :  { %110 = dma.hbm_to_vmem [thread:$0]  %s103_s4, 1024, %s105_s6, [#allocation9], %s5142_s3, %s5142_s3, %s5143_s25  }
  0x21   :  { %s5150_s23 = smov [#allocation11]  }
  0x22   :  { %s119_s27 = sshll.u32 %s5150_s23, 4  ;;  %s120_s27 = int_to_ptr.vmem [resolvable:$true] %s119_s27 }
  0x23   :  { %125 = dma.hbm_to_vmem [thread:$0]  %s118_s0, 2048, %s120_s27, [#allocation12], %s5142_s3, %s5142_s3, %s5143_s25  }
  0x24   :  { %5131 = dma.done.wait [#allocation3], 12288  }
  0x25   :  { %5132 = vsyncadd [#allocation3], 4294955008 }
  0x26   :  { %5133 = dma.done.wait [#allocation6], 12672  }
  0x27   :  { %5134 = vsyncadd [#allocation6], 4294954624 }
  0x28   :  { %5135 = dma.done.wait [#allocation9], 2048  }
  0x29   :  { %5136 = vsyncadd [#allocation9], 4294965248 }
  0x2a   :  { %5137 = dma.done.wait [#allocation12], 2048  }
  0x2b   :  { %5138 = vsyncadd [#allocation12], 4294965248  ;;  %v212_v0 = vld [vmem:[#allocation2 + $0x18] sm:$0xff]  ;;  %v211_v1 = vld [vmem:[#allocation2 + $0x10] sm:$0xff]  ;;  %s6186_s7 = sld [smem:[#allocation19_spill]]  ;;  %vm217_vm0 = vcmask 261120   ;;  %v176_v22 = vlaneseq }
  0x2c   :  { %236 = vmatpush.msra.mxu1 %v212_v0  ;;  %4715 = vmatpush.msra.mxu2 %v212_v0  ;;  %v210_v2 = vld [vmem:[#allocation2 + $0x8] sm:$0xff]  ;;  %v209_v3 = vld [vmem:[#allocation2] sm:$0xff]  ;;  %v253_v5 = vld [vmem:[#allocation2 + $0x98] sm:$0xff]  ;;  %s6187_s5 = sld [smem:[#allocation22_spill]]  ;;  %vm315_vm1 = vcmask 64512   ;;  %vm351_vm5 = vcmask 130048  }
  0x2d   :  { %v252_v7 = vld [vmem:[#allocation2 + $0x90] sm:$0xff]  ;;  %v251_v8 = vld [vmem:[#allocation2 + $0x88] sm:$0xff]  ;;  %v250_v9 = vld [vmem:[#allocation2 + $0x80] sm:$0xff]  ;;  %v177_v23 = vshrl.u32 %v176_v22, 7  ;;  %v182_v24 = vand.u32 127, %v176_v22  ;;  %s6188_s12 = sld [smem:[#allocation23_spill]] }
  0x2e   :  { %237 = vmatpush.msra.mxu1 %v211_v1  ;;  %4716 = vmatpush.msra.mxu2 %v211_v1  ;;  %v286_v36 = vld [vmem:[#allocation2 + $0x118] sm:$0xff]  ;;  %v285_v37 = vld [vmem:[#allocation2 + $0x110] sm:$0xff]  ;;  %v284_v38 = vld [vmem:[#allocation2 + $0x108] sm:$0xff]  ;;  %v5151_v52 = vmov -1e+30   ;;  %s6189_s26 = sld [smem:[#allocation24_spill]] }
  0x2f   :  { %v179_v25 = vcvt.s32.f32 %v177_v23  ;;  %v183_v26 = vcvt.s32.f32 %v182_v24  ;;  %v178_v29 = vadd.s32 8, %v177_v23  ;;  %v283_v42 = vld [vmem:[#allocation2 + $0x100] sm:$0xff]  ;;  %v443_v43 = vld [vmem:[#allocation2 + $0xb8] sm:$0xff]  ;;  %v442_v47 = vld [vmem:[#allocation2 + $0xb0] sm:$0xff]  ;;  %s6190_s29 = sld [smem:[#allocation20_spill]] }
  0x30   :  { %238 = vmatpush.msra.mxu1 %v210_v2  ;;  %4717 = vmatpush.msra.mxu2 %v210_v2  ;;  %v441_v48 = vld [vmem:[#allocation2 + $0xa8] sm:$0xff]  ;;  %v440_v50 = vld [vmem:[#allocation2 + $0xa0] sm:$0xff]  ;;  %v408_v61 = vld [vmem:[#allocation2 + $0x38] sm:$0xff] }
  0x31   :  { %v5315_v4 = vld [vmem:[%s6186_s7] sm:$0xff]  ;;  %v5320_v6 = vld [vmem:[%s6186_s7 + $0x8] sm:$0xff]  ;;  %v184_v27 = vadd.f32 0.5, %v179_v25  ;;  %v190_v28 = vadd.f32 0.5, %v183_v26  ;;  %v180_v32 = vcvt.s32.f32 %v178_v29  ;;  %v407_v62 = vld [vmem:[#allocation2 + $0x30] sm:$0xff] }
  0x32   :  { %239 = vmatpush.msra.mxu1 %v209_v3  ;;  %4718 = vmatpush.msra.mxu2 %v209_v3  ;;  %v4733_v12 = vld [vmem:[%s6187_s5 + $0x4] ss:$0 sm:$0xff]  ;;  %v4732_v13 = vld [vmem:[%s6187_s5] ss:$0 sm:$0xff]  ;;  %v406_v63 = vld [vmem:[#allocation2 + $0x28] sm:$0xff] }
  0x33   :  { %4434 = vmatmul.msk.f32.vlgmr.msra.gmra.mxu1 %vm217_vm0, %v5315_v4  ;;  %4435 = vmatmul.msk.f32.vlgmr.msra.gmra.mxu2 %vm217_vm0, %v5320_v6  ;;  %v186_v30 = vmul.f32 0.5, %v184_v27  ;;  %v191_v31 = vmul.f32 0.5, %v190_v28  ;;  %v185_v35 = vadd.f32 0.5, %v180_v32  ;;  %v405_v0 = vld [vmem:[#allocation2 + $0x20] sm:$0xff]  ;;  %v476_v24 = vld [vmem:[#allocation2 + $0x138] sm:$0xff] }
  0x34   :  { %271 = vmatpush.msrb.mxu1 %v253_v5  ;;  %304 = vmatpush.msrb.mxu2 %v286_v36  ;;  %v473_v27 = vld [vmem:[#allocation2 + $0x120] sm:$0xff] }
  0x35   :  { %v188_v33 = vfloor.f32 %v186_v30  ;;  %v192_v34 = vfloor.f32 %v191_v31  ;;  %v187_v41 = vmul.f32 0.5, %v185_v35 }
  0x36   :  { %272 = vmatpush.msrb.mxu1 %v252_v7  ;;  %305 = vmatpush.msrb.mxu2 %v285_v37  ;;  %v4734_v7 = vld [vmem:[%s6187_s5 + $0x8] ss:$0 sm:$0xff] }
  0x37   :  { %v193_v39 = vmul.f32 2.0, %v188_v33  ;;  %v197_v40 = vmul.f32 2.0, %v192_v34  ;;  %v189_v46 = vfloor.f32 %v187_v41  ;;  %vm201_vm3 = vcmp.ge.f32.partialorder %v188_v33, %v192_v34 }
  0x38   :  { %273 = vmatpush.msrb.mxu1 %v251_v8  ;;  %306 = vmatpush.msrb.mxu2 %v284_v38 }
  0x39   :  { %v5340_v44 = vsub.f32 %v179_v25, %v193_v39  ;;  %v5342_v45 = vsub.f32 %v183_v26, %v197_v40  ;;  %v194_v49 = vmul.f32 2.0, %v189_v46  ;;  %vm202_vm7 = vcmp.ge.f32.partialorder %v189_v46, %v192_v34  ;;  %v475_v25 = vld [vmem:[#allocation2 + $0x130] sm:$0xff]  ;;  %v474_v26 = vld [vmem:[#allocation2 + $0x128] sm:$0xff]  ;;  %v403_v40 = vld [vmem:[%s6188_s12] sm:$0xff] }
  0x3a   :  { %274 = vmatpush.msrb.mxu1 %v250_v9  ;;  %307 = vmatpush.msrb.mxu2 %v283_v42  ;;  %v4737_v46 = vld [vmem:[%s6187_s5 + $0x9] ss:$0 sm:$0xff] }
  0x3b   :  { %4437 = vmatmul.msk.f32.vlgmr.msrb.gmra.mxu1 %vm217_vm0, %v5315_v4  ;;  %4440 = vmatmul.msk.f32.vlgmr.msrb.gmra.mxu2 %vm217_vm0, %v5315_v4  ;;  %vm199_vm2 = vcmp.eq.f32.partialorder %v5340_v44, %v5342_v45  ;;  %v5351_v51 = vsub.f32 %v180_v32, %v194_v49  ;;  %v4736_v32 = vld [vmem:[%s6187_s5 + $0x1] ss:$0 sm:$0xff] }
  0x3c   :  { %461 = vmatpush.msra.mxu2 %v443_v43  ;;  %vm203_vm4 = vmand %vm199_vm2, %vm201_vm3  ;;  %426 = vmatpush.msra.mxu1 %v408_v61 }
  0x3d   :  { %v5356_v53 = vsel %vm203_vm4, 0.0, %v5151_v52  ;;  %vm200_vm6 = vcmp.eq.f32.partialorder %v5351_v51, %v5342_v45 }
  0x3e   :  { %462 = vmatpush.msra.mxu2 %v442_v47  ;;  %vm204_vm8 = vmand %vm200_vm6, %vm202_vm7  ;;  %427 = vmatpush.msra.mxu1 %v407_v62 }
  0x3f   :  { %v5368_v57 = vsel %vm204_vm8, 0.0, %v5151_v52 }
  0x40   :  { %463 = vmatpush.msra.mxu2 %v441_v48  ;;  %428 = vmatpush.msra.mxu1 %v406_v63 }
  0x42   :  { %464 = vmatpush.msra.mxu2 %v440_v50  ;;  %429 = vmatpush.msra.mxu1 %v405_v0 }
  0x43   :  { %4438 = vmatmul.msk.f32.gmra.mxu1 %vm217_vm0, %v5320_v6  ;;  %4441 = vmatmul.msk.f32.gmra.mxu2 %vm217_vm0, %v5320_v6 }
  0x4b   :  { %4452 = vmatmul.msk.f32.vlgmr.msra.gmra.mxu2 %vm217_vm0, %v5315_v4  ;;  %4449 = vmatmul.msk.f32.vlgmr.msra.gmra.mxu1 %vm217_vm0, %v5315_v4 }
  0x53   :  { %4453 = vmatmul.msk.f32.gmra.mxu2 %vm217_vm0, %v5320_v6  ;;  %4450 = vmatmul.msk.f32.gmra.mxu1 %vm217_vm0, %v5320_v6 }
  0xb0   :  { %v241_v10 = vpop.f32.mrf.mxu1 }
  0xb1   :  { %v242_v16 = vadd.f32 %v4732_v13, %v241_v10 }
  0xb3   :  { %v247_v19 = vmul.f32 0.35355338, %v242_v16 }
  0xb6   :  { %v244_v18 = vpop.f32.mrf.mxu2 }
  0xb7   :  { %v245_v20 = vadd.f32 %v4732_v13, %v244_v18 }
  0xb8   :  { %v276_v11 = vpop.f32.mrf.mxu1 }
  0xb9   :  { %v277_v17 = vadd.f32 %v4733_v12, %v276_v11  ;;  %v248_v21 = vmul.f32 0.35355338, %v245_v20 }
  0xbe   :  { %v309_v2 = vpop.f32.mrf.mxu2 }
  0xc0   :  { %v279_v14 = vpop.f32.mrf.mxu1 }
  0xc1   :  { %v280_v15 = vadd.f32 %v4733_v12, %v279_v14  ;;  %v310_v12 = vadd.f32 %v4734_v7, %v309_v2 }
  0xc3   :  { %4442 = vmatpush.xpose.msk.msra.mxu3 %vm315_vm1, %v280_v15 }
  0xc6   :  { %v312_v9 = vpop.f32.mrf.mxu2 }
  0xc7   :  { %4443 = vmatpush.xpose.msk.msra.mxu3 %vm315_vm1, %v277_v17  ;;  %v313_v11 = vadd.f32 %v4734_v7, %v312_v9  ;;  %v689_v9 = vld [vmem:[#allocation2 + $0xd0] sm:$0xff] }
  0xc8   :  { %v431_v31 = vpop.f32.mrf.mxu1 }
  0xc9   :  { %394 = vmatpush.msra.mxu0 %v313_v11  ;;  %v432_v35 = vadd.f32 %v4736_v32, %v431_v31  ;;  %v687_v11 = vld [vmem:[#allocation2 + $0xc0] sm:$0xff] }
  0xca   :  { %4444 = vmatmul.msk.f32.vlgmr.msra.gmra.mxu3 %vm315_vm1, %v247_v19  ;;  %v4735_v19 = vld [vmem:[%s6187_s5 + $0x5] ss:$0 sm:$0xff] }
  0xcb   :  { %395 = vmatpush.msra.mxu0 %v310_v12  ;;  %494 = vmatpush.msrb.mxu3 %v476_v24  ;;  %v437_v36 = vmul.f32 0.35355338, %v432_v35  ;;  %v655_v12 = vld [vmem:[#allocation2 + $0x58] sm:$0xff] }
  0xcd   :  { %495 = vmatpush.msrb.mxu3 %v475_v25 }
  0xce   :  { %v466_v18 = vpop.f32.mrf.mxu2 }
  0xcf   :  { %v467_v22 = vadd.f32 %v4735_v19, %v466_v18  ;;  %496 = vmatpush.msrb.mxu3 %v474_v26 }
  0xd0   :  { %v434_v37 = vpop.f32.mrf.mxu1 }
  0xd1   :  { %497 = vmatpush.msrb.mxu3 %v473_v27  ;;  %v435_v38 = vadd.f32 %v4736_v32, %v434_v37  ;;  %v4739_v27 = vld [vmem:[%s6187_s5 + $0x2] ss:$0 sm:$0xff]  ;;  %v723_v37 = vld [vmem:[#allocation2 + $0x158] sm:$0xff] }
  0xd2   :  { %4445 = vmatmul.msk.f32.gmra.mxu3 %vm315_vm1, %v248_v21 }
  0xd3   :  { %v438_v39 = vmul.f32 0.35355338, %v435_v38  ;;  %643 = vmatpush.msra.mxu3 %v403_v40  ;;  %v722_v38 = vld [vmem:[#allocation2 + $0x150] sm:$0xff]  ;;  %v721_v40 = vld [vmem:[#allocation2 + $0x148] sm:$0xff] }
  0xd6   :  { %v469_v20 = vpop.f32.mrf.mxu2 }
  0xd7   :  { %v470_v21 = vadd.f32 %v4735_v19, %v469_v20 }
  0xd9   :  { %4457 = vmatpush.xpose.msk.msrb.mxu0 %vm315_vm1, %v470_v21 }
  0xda   :  { %4455 = vmatmul.msk.f32.vlgmr.msrb.gmra.mxu3 %vm217_vm0, %v5315_v4 }
  0xdd   :  { %4458 = vmatpush.xpose.msk.msrb.mxu0 %vm315_vm1, %v467_v22  ;;  %v4463_v22 = vld [vmem:[%s6188_s12 + $0x8] sm:$0xff] }
  0xde   :  { %614 = vmatpush.msrb.mxu2 %v4463_v22 }
  0xe0   :  { %741 = vmatpush.msra.mxu2 %v723_v37 }
  0xe2   :  { %4456 = vmatmul.msk.f32.gmra.mxu3 %vm217_vm0, %v5320_v6  ;;  %742 = vmatpush.msra.mxu2 %v722_v38 }
  0xe4   :  { %743 = vmatpush.msra.mxu2 %v721_v40  ;;  %v943_v40 = vld [vmem:[#allocation2 + $0x178] sm:$0xff] }
 0x14d   :  { %v345_v54 = vpop.f32.mrf.mxu3 }
 0x14e   :  { %v346_v55 = vadd.f32 %v345_v54, %v5356_v53 }
 0x150   :  { %v352_v56 = vsel %vm351_vm5, %v346_v55, -inf }
 0x151   :  { %353 = vmax.xlane.f32.xlu0 %v352_v56 }
 0x155   :  { %v348_v58 = vpop.f32.mrf.mxu3 }
 0x156   :  { %v349_v59 = vadd.f32 %v348_v58, %v5368_v57 }
 0x158   :  { %v355_v60 = vsel %vm351_vm5, %v349_v59, -inf }
 0x159   :  { %356 = vmax.xlane.f32.xlu0 %v355_v60 }
 0x15d   :  { %v499_v42 = vpop.f32.mrf.mxu3 }
 0x15e   :  { %v500_v48 = vadd.f32 %v4737_v46, %v499_v42 }
 0x165   :  { %v502_v47 = vpop.f32.mrf.mxu3 }
 0x166   :  { %v503_v49 = vadd.f32 %v4737_v46, %v502_v47 }
 0x168   :  { %582 = vmatpush.msrb.mxu1 %v503_v49 }
 0x16a   :  { %583 = vmatpush.msrb.mxu1 %v500_v48 }
 0x1c4   :  { %v354_v1 = vpop.xlane.xlu0 %353 }
 0x1c5   :  { %v358_v3 = vsub.f32 %v346_v55, %v354_v1 }
 0x1c7   :  { %v360_v5 = vmul.f32 1.442695, %v358_v3 }
 0x1c9   :  { %4803 = vpow2.f32 %v360_v5 }
 0x1cc   :  { %v357_v8 = vpop.xlane.xlu0 %356 }
 0x1cd   :  { %v359_v10 = vsub.f32 %v349_v59, %v357_v8  ;;  %v690_v8 = vld [vmem:[#allocation2 + $0xd8] sm:$0xff] }
 0x1ce   :  { %708 = vmatpush.msra.mxu1 %v690_v8 }
 0x1cf   :  { %v4804_v13 = vpop.eup %4803  ;;  %v362_v14 = vmul.f32 1.442695, %v359_v10  ;;  %v688_v10 = vld [vmem:[#allocation2 + $0xc8] sm:$0xff] }
 0x1d0   :  { %v364_v15 = vsel %vm351_vm5, %v4804_v13, 0.0  ;;  %709 = vmatpush.msra.mxu1 %v689_v9 }
 0x1d1   :  { %4805 = vpow2.f32 %v362_v14  ;;  %365 = vadd.xlane.f32.xlu1 %v364_v15  ;;  %v653_v15 = vld [vmem:[#allocation2 + $0x48] sm:$0xff] }
 0x1d2   :  { %710 = vmatpush.msra.mxu1 %v688_v10 }
 0x1d4   :  { %711 = vmatpush.msra.mxu1 %v687_v11 }
 0x1d7   :  { %v4806_v16 = vpop.eup %4805 }
 0x1d8   :  { %v367_v17 = vsel %vm351_vm5, %v4806_v16, 0.0 }
 0x1d9   :  { %368 = vadd.xlane.f32.xlu1 %v367_v17 }
 0x244   :  { %v366_v23 = vpop.xlane.xlu1 %365 }
 0x245   :  { %4807 = vrcp.f32 %v366_v23 }
 0x24b   :  { %v4808_v28 = vpop.eup %4807 }
 0x24c   :  { %v369_v29 = vpop.xlane.xlu1 %368  ;;  %v372_v30 = vmul.f32 %v4808_v28, %v4804_v13  ;;  %v654_v13 = vld [vmem:[#allocation2 + $0x50] sm:$0xff]  ;;  %v4738_v28 = vld [vmem:[%s6187_s5 + $0x6] ss:$0 sm:$0xff] }
 0x24d   :  { %4809 = vrcp.f32 %v369_v29 }
 0x24e   :  { %4446 = vmatmul.msk.f32.vlgmr.msra.gmra.mxu0 %vm351_vm5, %v372_v30 }
 0x24f   :  { %673 = vmatpush.msra.mxu0 %v655_v12 }
 0x251   :  { %674 = vmatpush.msra.mxu0 %v654_v13 }
 0x253   :  { %v4810_v33 = vpop.eup %4809  ;;  %675 = vmatpush.msra.mxu0 %v653_v15  ;;  %v874_v15 = vld [vmem:[#allocation2 + $0x70] sm:$0xff] }
 0x254   :  { %v373_v34 = vmul.f32 %v4810_v33, %v4806_v16  ;;  %v652_v16 = vld [vmem:[#allocation2 + $0x40] sm:$0xff] }
 0x255   :  { %676 = vmatpush.msra.mxu0 %v652_v16  ;;  %v873_v16 = vld [vmem:[#allocation2 + $0x68] sm:$0xff] }
 0x256   :  { %4447 = vmatmul.msk.f32.gmra.mxu0 %vm351_vm5, %v373_v34 }
 0x25e   :  { %4459 = vmatmul.msk.f32.vlgmr.msrb.gmra.mxu0 %vm315_vm1, %v437_v36 }
 0x266   :  { %4460 = vmatmul.msk.f32.gmra.mxu0 %vm315_vm1, %v438_v39 }
 0x26e   :  { %4469 = vmatmul.msk.f32.vlgmr.msra.gmra.mxu0 %vm217_vm0, %v5315_v4 }
 0x276   :  { %4470 = vmatmul.msk.f32.gmra.mxu0 %vm217_vm0, %v5320_v6 }
 0x2cb   :  { %v397_v41 = vpop.f32.mrf.mxu0 }
 0x2cc   :  { %4466 = vmatmul.msk.f32.vlgmr.msra.gmra.mxu3 %vm315_vm1, %v397_v41  ;;  %v720_v41 = vld [vmem:[#allocation2 + $0x140] sm:$0xff] }
 0x2cd   :  { %744 = vmatpush.msra.mxu2 %v720_v41  ;;  %v942_v41 = vld [vmem:[#allocation2 + $0x170] sm:$0xff] }
 0x2d3   :  { %v400_v43 = vpop.f32.mrf.mxu0 }
 0x2d4   :  { %4467 = vmatmul.msk.f32.gmra.mxu3 %vm315_vm1, %v400_v43 }
 0x2db   :  { %v534_v50 = vpop.f32.mrf.mxu0 }
 0x2dc   :  { %v535_v54 = vadd.f32 %v534_v50, %v5356_v53 }
 0x2de   :  { %v540_v55 = vsel %vm351_vm5, %v535_v54, -inf }
 0x2df   :  { %541 = vmax.xlane.f32.xlu2 %v540_v55  ;;  %v910_v55 = vld [vmem:[#allocation2 + $0xf8] sm:$0xff] }
 0x2e3   :  { %v537_v56 = vpop.f32.mrf.mxu0 }
 0x2e4   :  { %v538_v58 = vadd.f32 %v537_v56, %v5368_v57  ;;  %v909_v56 = vld [vmem:[#allocation2 + $0xf0] sm:$0xff] }
 0x2e6   :  { %v543_v59 = vsel %vm351_vm5, %v538_v58, -inf }
 0x2e7   :  { %544 = vmax.xlane.f32.xlu2 %v543_v59 }
 0x2eb   :  { %v678_v26 = vpop.f32.mrf.mxu0 }
 0x2ec   :  { %v679_v31 = vadd.f32 %v4739_v27, %v678_v26 }
 0x2ee   :  { %v684_v33 = vmul.f32 0.35355338, %v679_v31 }
 0x2f3   :  { %v681_v34 = vpop.f32.mrf.mxu0 }
 0x2f4   :  { %v682_v35 = vadd.f32 %v4739_v27, %v681_v34 }
 0x2f6   :  { %v685_v36 = vmul.f32 0.35355338, %v682_v35 }
 0x34f   :  { %v5438_v39 = vpop.f32.mrf.mxu3 }
 0x352   :  { %v542_v60 = vpop.xlane.xlu2 %541 }
 0x353   :  { %v546_v61 = vsub.f32 %v535_v54, %v542_v60  ;;  %v907_v60 = vld [vmem:[#allocation2 + $0xe0] sm:$0xff] }
 0x355   :  { %v548_v62 = vmul.f32 1.442695, %v546_v61 }
 0x357   :  { %4811 = vpow2.f32 %v548_v62  ;;  %v5442_v42 = vpop.f32.mrf.mxu3 }
 0x35a   :  { %v545_v63 = vpop.xlane.xlu2 %544 }
 0x35b   :  { %v547_v0 = vsub.f32 %v538_v58, %v545_v63  ;;  %v908_v58 = vld [vmem:[#allocation2 + $0xe8] sm:$0xff] }
 0x35d   :  { %v4812_v1 = vpop.eup %4811  ;;  %v550_v2 = vmul.f32 1.442695, %v547_v0 }
 0x35e   :  { %v552_v3 = vsel %vm351_vm5, %v4812_v1, 0.0 }
 0x35f   :  { %4813 = vpow2.f32 %v550_v2  ;;  %553 = vadd.xlane.f32.xlu0 %v552_v3 }
 0x365   :  { %v4814_v5 = vpop.eup %4813 }
 0x366   :  { %v555_v7 = vsel %vm351_vm5, %v4814_v5, 0.0 }
 0x367   :  { %556 = vadd.xlane.f32.xlu1 %v555_v7 }
 0x3d2   :  { %v554_v14 = vpop.xlane.xlu0 %553 }
 0x3d3   :  { %4815 = vrcp.f32 %v554_v14  ;;  %v875_v14 = vld [vmem:[#allocation2 + $0x78] sm:$0xff] }
 0x3d9   :  { %v4816_v17 = vpop.eup %4815 }
 0x3da   :  { %v560_v18 = vmul.f32 %v4816_v17, %v4812_v1  ;;  %v557_v19 = vpop.xlane.xlu1 %556  ;;  %v4740_v1 = vld [vmem:[%s6187_s5 + $0xa] ss:$0 sm:$0xff]  ;;  %v872_v17 = vld [vmem:[#allocation2 + $0x60] sm:$0xff] }
 0x3db   :  { %4817 = vrcp.f32 %v557_v19 }
 0x3dc   :  { %4461 = vmatmul.msk.f32.vlgmr.msrb.gmra.mxu1 %vm351_vm5, %v560_v18  ;;  %v4483_v18 = vld [vmem:[%s6188_s12 + $0x10] sm:$0xff] }
 0x3dd   :  { %861 = vmatpush.msrb.mxu1 %v4483_v18 }
 0x3e1   :  { %v4818_v20 = vpop.eup %4817 }
 0x3e2   :  { %v561_v21 = vmul.f32 %v4818_v20, %v4814_v5 }
 0x3e4   :  { %4462 = vmatmul.msk.f32.gmra.mxu1 %vm351_vm5, %v561_v21  ;;  %v4741_v21 = vld [vmem:[%s6187_s5 + $0x7] ss:$0 sm:$0xff] }
 0x3ec   :  { %4472 = vmatmul.msk.f32.vlgmr.msra.gmra.mxu1 %vm217_vm0, %v5315_v4 }
 0x3f4   :  { %4473 = vmatmul.msk.f32.gmra.mxu1 %vm217_vm0, %v5320_v6 }
 0x459   :  { %v585_v23 = vpop.f32.mrf.mxu1 }
 0x45a   :  { %4464 = vmatmul.msk.f32.vlgmr.msrb.gmra.mxu2 %vm315_vm1, %v585_v23 }
 0x45b   :  { %893 = vmatpush.msrb.mxu2 %v875_v14  ;;  %v4501_v14 = vld [vmem:[%s6188_s12 + $0x18] sm:$0xff] }
 0x45d   :  { %894 = vmatpush.msrb.mxu2 %v874_v15 }
 0x45f   :  { %895 = vmatpush.msrb.mxu2 %v873_v16 }
 0x461   :  { %v588_v24 = vpop.f32.mrf.mxu1  ;;  %896 = vmatpush.msrb.mxu2 %v872_v17 }
 0x462   :  { %4465 = vmatmul.msk.f32.gmra.mxu2 %vm315_vm1, %v588_v24 }
 0x469   :  { %v713_v25 = vpop.f32.mrf.mxu1 }
 0x46a   :  { %v714_v32 = vadd.f32 %v4738_v28, %v713_v25  ;;  %4475 = vmatmul.msk.f32.vlgmr.msra.gmra.mxu2 %vm217_vm0, %v5315_v4 }
 0x471   :  { %v716_v29 = vpop.f32.mrf.mxu1 }
 0x472   :  { %v717_v30 = vadd.f32 %v4738_v28, %v716_v29  ;;  %4476 = vmatmul.msk.f32.gmra.mxu2 %vm217_vm0, %v5320_v6 }
 0x474   :  { %4477 = vmatpush.xpose.msk.msrb.mxu3 %vm315_vm1, %v717_v30 }
 0x478   :  { %4478 = vmatpush.xpose.msk.msrb.mxu3 %vm315_vm1, %v714_v32  ;;  %v4742_v32 = vld [vmem:[%s6187_s5 + $0x3] ss:$0 sm:$0xff] }
 0x47a   :  { %4487 = vmatmul.msk.f32.vlgmr.msrb.gmra.mxu2 %vm217_vm0, %v5315_v4 }
 0x47b   :  { %4479 = vmatmul.msk.f32.vlgmr.msrb.gmra.mxu3 %vm315_vm1, %v684_v33 }
 0x47c   :  { %928 = vmatpush.msra.mxu3 %v910_v55 }
 0x47e   :  { %929 = vmatpush.msra.mxu3 %v909_v56 }
 0x480   :  { %930 = vmatpush.msra.mxu3 %v908_v58 }
 0x482   :  { %931 = vmatpush.msra.mxu3 %v907_v60  ;;  %4488 = vmatmul.msk.f32.gmra.mxu2 %vm217_vm0, %v5320_v6 }
 0x483   :  { %4480 = vmatmul.msk.f32.gmra.mxu3 %vm315_vm1, %v685_v36 }
 0x484   :  { %1081 = vmatpush.msrb.mxu3 %v4501_v14 }
 0x48b   :  { %4490 = vmatmul.msk.f32.vlgmr.msra.gmra.mxu3 %vm217_vm0, %v5315_v4 }
 0x493   :  { %4491 = vmatmul.msk.f32.gmra.mxu3 %vm217_vm0, %v5320_v6 }
 0x4dd   :  { %v5450_v54 = vpop.f32.mrf.mxu2 }
 0x4e5   :  { %v5452_v59 = vpop.f32.mrf.mxu2 }
 0x4ed   :  { %v746_v62 = vpop.f32.mrf.mxu2 }
 0x4ee   :  { %v747_v7 = vadd.f32 %v4740_v1, %v746_v62  ;;  %v4743_v62 = vld [vmem:[%s6187_s5 + $0xb] ss:$0 sm:$0xff] }
 0x4f5   :  { %v749_v3 = vpop.f32.mrf.mxu2 }
 0x4f6   :  { %v750_v8 = vadd.f32 %v4740_v1, %v749_v3 }
 0x4f8   :  { %829 = vmatpush.msrb.mxu0 %v750_v8 }
 0x4fa   :  { %830 = vmatpush.msrb.mxu0 %v747_v7 }
 0x4fc   :  { %961 = vmatpush.msra.mxu0 %v943_v40  ;;  %v1205_v40 = vld [vmem:[#allocation5 + $0x98] sm:$0xff] }
 0x4fd   :  { %v898_v31 = vpop.f32.mrf.mxu2 }
 0x4fe   :  { %v781_v43 = vpop.f32.mrf.mxu3  ;;  %v899_v34 = vadd.f32 %v4742_v32, %v898_v31  ;;  %962 = vmatpush.msra.mxu0 %v942_v41 }
 0x4ff   :  { %v782_v46 = vadd.f32 %v781_v43, %v5356_v53  ;;  %v941_v43 = vld [vmem:[#allocation2 + $0x168] sm:$0xff] }
 0x500   :  { %v904_v35 = vmul.f32 0.35355338, %v899_v34  ;;  %963 = vmatpush.msra.mxu0 %v941_v43 }
 0x501   :  { %v787_v47 = vsel %vm351_vm5, %v782_v46, -inf }
 0x502   :  { %788 = vmax.xlane.f32.xlu2 %v787_v47  ;;  %v940_v47 = vld [vmem:[#allocation2 + $0x160] sm:$0xff] }
 0x503   :  { %964 = vmatpush.msra.mxu0 %v940_v47 }
 0x505   :  { %v901_v36 = vpop.f32.mrf.mxu2 }
 0x506   :  { %v784_v48 = vpop.f32.mrf.mxu3  ;;  %v902_v37 = vadd.f32 %v4742_v32, %v901_v36  ;;  %v5152_v36 = vmov 32.0  }
 0x507   :  { %v785_v49 = vadd.f32 %v784_v48, %v5368_v57 }
 0x508   :  { %v905_v38 = vmul.f32 0.35355338, %v902_v37 }
 0x509   :  { %v790_v50 = vsel %vm351_vm5, %v785_v49, -inf }
 0x50a   :  { %791 = vmax.xlane.f32.xlu0 %v790_v50 }
 0x50e   :  { %v933_v20 = vpop.f32.mrf.mxu3 }
 0x50f   :  { %v934_v27 = vadd.f32 %v4741_v21, %v933_v20 }
 0x516   :  { %v936_v25 = vpop.f32.mrf.mxu3 }
 0x517   :  { %v937_v26 = vadd.f32 %v4741_v21, %v936_v25  ;;  %v4744_v25 = vld [vmem:[%s6189_s26] ss:$0 sm:$0xff] }
 0x519   :  { %4495 = vmatpush.xpose.msk.msra.mxu1 %vm315_vm1, %v937_v26 }
 0x51d   :  { %4496 = vmatpush.xpose.msk.msra.mxu1 %vm315_vm1, %v934_v27 }
 0x575   :  { %v789_v61 = vpop.xlane.xlu2 %788 }
 0x576   :  { %v793_v63 = vsub.f32 %v782_v46, %v789_v61 }
 0x578   :  { %v795_v0 = vmul.f32 1.442695, %v793_v63 }
 0x57a   :  { %4819 = vpow2.f32 %v795_v0 }
 0x57d   :  { %v792_v2 = vpop.xlane.xlu0 %791 }
 0x57e   :  { %v794_v5 = vsub.f32 %v785_v49, %v792_v2 }
 0x580   :  { %v4820_v9 = vpop.eup %4819  ;;  %v797_v10 = vmul.f32 1.442695, %v794_v5 }
 0x581   :  { %v799_v11 = vsel %vm351_vm5, %v4820_v9, 0.0 }
 0x582   :  { %4821 = vpow2.f32 %v797_v10  ;;  %800 = vadd.xlane.f32.xlu1 %v799_v11 }
 0x588   :  { %v4822_v12 = vpop.eup %4821 }
 0x589   :  { %v802_v13 = vsel %vm351_vm5, %v4822_v12, 0.0 }
 0x58a   :  { %803 = vadd.xlane.f32.xlu2 %v802_v13 }
 0x5f5   :  { %v801_v19 = vpop.xlane.xlu1 %800 }
 0x5f6   :  { %4823 = vrcp.f32 %v801_v19 }
 0x5fc   :  { %v4824_v22 = vpop.eup %4823 }
 0x5fd   :  { %v807_v23 = vmul.f32 %v4824_v22, %v4820_v9  ;;  %v804_v24 = vpop.xlane.xlu2 %803 }
 0x5fe   :  { %4825 = vrcp.f32 %v804_v24 }
 0x5ff   :  { %4481 = vmatmul.msk.f32.vlgmr.msrb.gmra.mxu0 %vm351_vm5, %v807_v23  ;;  %v646_v23 = vadd.f32 %v5438_v39, %v5450_v54 }
 0x604   :  { %v4826_v28 = vpop.eup %4825 }
 0x605   :  { %v808_v29 = vmul.f32 %v4826_v28, %v4822_v12 }
 0x607   :  { %4482 = vmatmul.msk.f32.gmra.mxu0 %vm351_vm5, %v808_v29  ;;  %v649_v29 = vadd.f32 %v5442_v42, %v5452_v59  ;;  %v1204_v42 = vld [vmem:[#allocation5 + $0x90] sm:$0xff] }
 0x60f   :  { %4493 = vmatmul.msk.f32.vlgmr.msra.gmra.mxu0 %vm217_vm0, %v5315_v4 }
 0x617   :  { %4494 = vmatmul.msk.f32.gmra.mxu0 %vm217_vm0, %v5320_v6 }
 0x67c   :  { %v832_v30 = vpop.f32.mrf.mxu0 }
 0x67d   :  { %4484 = vmatmul.msk.f32.vlgmr.msrb.gmra.mxu1 %vm315_vm1, %v832_v30 }
 0x67e   :  { %1229 = vmatpush.msrb.mxu1 %v1205_v40 }
 0x680   :  { %1230 = vmatpush.msrb.mxu1 %v1204_v42 }
 0x684   :  { %v835_v33 = vpop.f32.mrf.mxu0 }
 0x685   :  { %4485 = vmatmul.msk.f32.gmra.mxu1 %vm315_vm1, %v835_v33 }
 0x68c   :  { %v966_v61 = vpop.f32.mrf.mxu0 }
 0x68d   :  { %4497 = vmatmul.msk.f32.vlgmr.msra.gmra.mxu1 %vm315_vm1, %v904_v35  ;;  %v967_v3 = vadd.f32 %v4743_v62, %v966_v61  ;;  %v1203_v61 = vld [vmem:[#allocation5 + $0x88] sm:$0xff] }
 0x68e   :  { %1231 = vmatpush.msrb.mxu1 %v1203_v61  ;;  %v1398_v61 = vld [vmem:[#allocation5 + $0xb0] sm:$0xff] }
 0x694   :  { %v969_v1 = vpop.f32.mrf.mxu0 }
 0x695   :  { %4498 = vmatmul.msk.f32.gmra.mxu1 %vm315_vm1, %v905_v38  ;;  %v970_v5 = vadd.f32 %v4743_v62, %v969_v1  ;;  %v1202_v62 = vld [vmem:[#allocation5 + $0x80] sm:$0xff]  ;;  %v1165_v1 = vld [vmem:[#allocation5 + $0x18] sm:$0xff] }
 0x696   :  { %1232 = vmatpush.msrb.mxu1 %v1202_v62  ;;  %1188 = vmatpush.msrb.mxu0 %v1165_v1  ;;  %v1397_v62 = vld [vmem:[#allocation5 + $0xa8] sm:$0xff]  ;;  %v1396_v1 = vld [vmem:[#allocation5 + $0xa0] sm:$0xff] }
 0x697   :  { %1049 = vmatpush.msra.mxu2 %v970_v5  ;;  %v1363_v5 = vld [vmem:[#allocation5 + $0x30] sm:$0xff] }
 0x699   :  { %1050 = vmatpush.msra.mxu2 %v967_v3  ;;  %v1164_v3 = vld [vmem:[#allocation5 + $0x10] sm:$0xff] }
 0x69a   :  { %1189 = vmatpush.msrb.mxu0 %v1164_v3 }
 0x6fa   :  { %v863_v46 = vpop.f32.mrf.mxu1 }
 0x6fb   :  { %v869_v24 = vadd.f32 %v863_v46, %v646_v23 }
 0x702   :  { %v866_v48 = vpop.f32.mrf.mxu1 }
 0x703   :  { %v870_v31 = vadd.f32 %v866_v48, %v649_v29  ;;  %v4746_v29 = vld [vmem:[%s6156_s15] ss:$0 sm:$0xff] }
 0x70a   :  { %v1001_v49 = vpop.f32.mrf.mxu1 }
 0x70b   :  { %v1002_v50 = vadd.f32 %v1001_v49, %v5356_v53 }
 0x70d   :  { %v1007_v55 = vsel %vm351_vm5, %v1002_v50, -inf }
 0x70e   :  { %1008 = vmax.xlane.f32.xlu0 %v1007_v55 }
 0x712   :  { %v1004_v56 = vpop.f32.mrf.mxu1 }
 0x713   :  { %v1005_v58 = vadd.f32 %v1004_v56, %v5368_v57 }
 0x715   :  { %v1010_v60 = vsel %vm351_vm5, %v1005_v58, -inf }
 0x716   :  { %1011 = vmax.xlane.f32.xlu1 %v1010_v60 }
 0x781   :  { %v1009_v63 = vpop.xlane.xlu0 %1008 }
 0x782   :  { %v1013_v0 = vsub.f32 %v1002_v50, %v1009_v63  ;;  %v5528_v63 = vld [vmem:[%s6190_s29] sm:$0xff] }
 0x783   :  { %4506 = vmatmul.msk.f32.vlgmr.msrb.gmra.mxu1 %vm217_vm0, %v5528_v63 }
 0x784   :  { %v1015_v2 = vmul.f32 1.442695, %v1013_v0  ;;  %v5535_v0 = vld [vmem:[%s6190_s29 + $0x8] sm:$0xff] }
 0x786   :  { %4827 = vpow2.f32 %v1015_v2  ;;  %v1364_v2 = vld [vmem:[#allocation5 + $0x38] sm:$0xff] }
 0x787   :  { %1382 = vmatpush.msra.mxu1 %v1364_v2  ;;  %v5572_v2 = vsel %vm199_vm2, 0.0, %v5151_v52 }
 0x789   :  { %v1012_v7 = vpop.xlane.xlu1 %1011  ;;  %1383 = vmatpush.msra.mxu1 %v1363_v5 }
 0x78a   :  { %v1014_v8 = vsub.f32 %v1005_v58, %v1012_v7  ;;  %v1163_v7 = vld [vmem:[#allocation5 + $0x8] sm:$0xff] }
 0x78b   :  { %4507 = vmatmul.msk.f32.gmra.mxu1 %vm217_vm0, %v5535_v0  ;;  %1190 = vmatpush.msrb.mxu0 %v1163_v7 }
 0x78c   :  { %v4828_v9 = vpop.eup %4827  ;;  %v1017_v10 = vmul.f32 1.442695, %v1014_v8  ;;  %v1362_v8 = vld [vmem:[#allocation5 + $0x28] sm:$0xff] }
 0x78d   :  { %v1019_v11 = vsel %vm351_vm5, %v4828_v9, 0.0  ;;  %1384 = vmatpush.msra.mxu1 %v1362_v8  ;;  %v5582_v8 = vsel %vm200_vm6, 0.0, %v5151_v52 }
 0x78e   :  { %4829 = vpow2.f32 %v1017_v10  ;;  %1020 = vadd.xlane.f32.xlu2 %v1019_v11  ;;  %v1361_v10 = vld [vmem:[#allocation5 + $0x20] sm:$0xff] }
 0x78f   :  { %1385 = vmatpush.msra.mxu1 %v1361_v10 }
 0x794   :  { %v4830_v12 = vpop.eup %4829 }
 0x795   :  { %v1022_v13 = vsel %vm351_vm5, %v4830_v12, 0.0 }
 0x796   :  { %1023 = vadd.xlane.f32.xlu0 %v1022_v13 }
 0x801   :  { %v1021_v15 = vpop.xlane.xlu2 %1020 }
 0x802   :  { %4831 = vrcp.f32 %v1021_v15 }
 0x808   :  { %v4832_v16 = vpop.eup %4831 }
 0x809   :  { %v1027_v17 = vmul.f32 %v4832_v16, %v4828_v9  ;;  %v1024_v18 = vpop.xlane.xlu0 %1023  ;;  %v1162_v9 = vld [vmem:[#allocation5] sm:$0xff] }
 0x80a   :  { %4833 = vrcp.f32 %v1024_v18  ;;  %1191 = vmatpush.msrb.mxu0 %v1162_v9 }
 0x80b   :  { %4499 = vmatmul.msk.f32.vlgmr.msra.gmra.mxu2 %vm351_vm5, %v1027_v17  ;;  %4835 = vrcp.f32 %v5152_v36 }
 0x810   :  { %v4834_v19 = vpop.eup %4833 }
 0x811   :  { %v1028_v20 = vmul.f32 %v4834_v19, %v4830_v12  ;;  %v4836_v37 = vpop.eup %4835 }
 0x812   :  { %v1108_v38 = vmul.f32 32.0, %v4836_v37  ;;  %vm1112_vm9 = vweird.f32 %v4836_v37 }
 0x813   :  { %4500 = vmatmul.msk.f32.gmra.mxu2 %vm351_vm5, %v1028_v20 }
 0x88e   :  { %v1052_v21 = vpop.f32.mrf.mxu2 }
 0x88f   :  { %4502 = vmatmul.msk.f32.vlgmr.msrb.gmra.mxu3 %vm315_vm1, %v1052_v21 }
 0x896   :  { %v1055_v22 = vpop.f32.mrf.mxu2 }
 0x897   :  { %4503 = vmatmul.msk.f32.gmra.mxu3 %vm315_vm1, %v1055_v22 }
 0x912   :  { %v1083_v26 = vpop.f32.mrf.mxu3 }
 0x913   :  { %v1089_v27 = vadd.f32 %v1083_v26, %v869_v24 }
 0x915   :  { %v1095_v28 = vadd.f32 %v4744_v25, %v1089_v27 }
 0x917   :  { %v1097_v30 = vadd.f32 %v1095_v28, %v5315_v4  ;;  %v1109_v4 = vsub.f32 1.0, %v1108_v38  ;;  %v4747_v38 = vld [vmem:[#allocation7 + $0x4] ss:$0 sm:$0xff] }
 0x919   :  { %v1101_v32 = vsel %vm217_vm0, %v1097_v30, 0.0  ;;  %v1110_v59 = vmul.f32 %v4836_v37, %v1109_v4 }
 0x91a   :  { %1102 = vadd.xlane.f32.xlu1 %v1101_v32  ;;  %v1086_v33 = vpop.f32.mrf.mxu3 }
 0x91b   :  { %v1090_v34 = vadd.f32 %v1086_v33, %v870_v31  ;;  %v1111_v41 = vadd.f32 %v4836_v37, %v1110_v59  ;;  %v4748_v59 = vld [vmem:[#allocation7] ss:$0 sm:$0xff] }
 0x91d   :  { %v1096_v39 = vadd.f32 %v4744_v25, %v1090_v34  ;;  %v5515_v43 = vsel %vm1112_vm9, %v4836_v37, %v1111_v41  ;;  %v4745_v25 = vld [vmem:[%s6155_s14] ss:$0 sm:$0xff]  ;;  %v1234_v37 = vpop.f32.mrf.mxu1  ;;  %vm2162_vm9 = vcmask 523264  }
 0x91e   :  { %v1235_v4 = vadd.f32 %v4747_v38, %v1234_v37 }
 0x91f   :  { %v1098_v54 = vadd.f32 %v1096_v39, %v5320_v6 }
 0x921   :  { %v1104_v35 = vsel %vm217_vm0, %v1098_v54, 0.0 }
 0x922   :  { %1105 = vadd.xlane.f32.xlu2 %v1104_v35 }
 0x925   :  { %v1237_v40 = vpop.f32.mrf.mxu1 }
 0x926   :  { %v1238_v42 = vadd.f32 %v4747_v38, %v1237_v40  ;;  %v4749_v38 = vld [vmem:[#allocation7 + $0x1] ss:$0 sm:$0xff] }
 0x928   :  { %4510 = vmatpush.xpose.msk.msra.mxu3 %vm315_vm1, %v1238_v42  ;;  %v1432_v42 = vld [vmem:[#allocation5 + $0x138] sm:$0xff] }
 0x92c   :  { %4511 = vmatpush.xpose.msk.msra.mxu3 %vm315_vm1, %v1235_v4  ;;  %v1431_v4 = vld [vmem:[#allocation5 + $0x130] sm:$0xff] }
 0x930   :  { %1450 = vmatpush.msrb.mxu3 %v1432_v42 }
 0x932   :  { %1451 = vmatpush.msrb.mxu3 %v1431_v4  ;;  %v4754_v4 = vld [vmem:[#allocation7 + $0x6] ss:$0 sm:$0xff] }
 0x98d   :  { %v1103_v46 = vpop.xlane.xlu1 %1102 }
 0x98e   :  { %v1114_v6 = vmul.f32 %v5515_v43, %v1103_v46 }
 0x990   :  { %v1116_v47 = vsub.f32 %v1097_v30, %v1114_v6 }
 0x992   :  { %v1118_v48 = vmul.f32 %v1116_v47, %v1116_v47 }
 0x994   :  { %v1120_v49 = vsel %vm217_vm0, %v1118_v48, 0.0 }
 0x995   :  { %1121 = vadd.xlane.f32.xlu0 %v1120_v49  ;;  %v1106_v50 = vpop.xlane.xlu2 %1105 }
 0x996   :  { %v1115_v55 = vmul.f32 %v5515_v43, %v1106_v50  ;;  %v1244_v50 = vld [vmem:[#allocation5 + $0x118] sm:$0xff] }
 0x997   :  { %1262 = vmatpush.msrb.mxu2 %v1244_v50  ;;  %v1359_v50 = vld [vmem:[#allocation8] sm:$0xff] }
 0x998   :  { %v5520_v56 = vsub.f32 %v1098_v54, %v1115_v55  ;;  %v1243_v55 = vld [vmem:[#allocation5 + $0x110] sm:$0xff] }
 0x999   :  { %1263 = vmatpush.msrb.mxu2 %v1243_v55 }
 0x99a   :  { %v1119_v58 = vmul.f32 %v5520_v56, %v5520_v56 }
 0x99c   :  { %v1123_v60 = vsel %vm217_vm0, %v1119_v58, 0.0  ;;  %v1241_v58 = vld [vmem:[#allocation5 + $0x100] sm:$0xff] }
 0x99d   :  { %1124 = vadd.xlane.f32.xlu1 %v1123_v60  ;;  %v1399_v60 = vld [vmem:[#allocation5 + $0xb8] sm:$0xff] }
 0xa08   :  { %v1122_v11 = vpop.xlane.xlu0 %1121 }
 0xa09   :  { %v1126_v12 = vmul.f32 %v1122_v11, %v5515_v43 }
 0xa0b   :  { %v1128_v13 = vadd.f32 1e-05, %v1126_v12 }
 0xa0d   :  { %4837 = vrsqrt.f32 %v1128_v13  ;;  %vm1136_vm11 = vweird.f32 %v1128_v13 }
 0xa10   :  { %v1125_v14 = vpop.xlane.xlu1 %1124 }
 0xa11   :  { %v1127_v15 = vmul.f32 %v1125_v14, %v5515_v43 }
 0xa13   :  { %v4838_v16 = vpop.eup %4837  ;;  %v1129_v17 = vadd.f32 1e-05, %v1127_v15  ;;  %v4750_v15 = vld [vmem:[#allocation7 + $0x8] ss:$0 sm:$0xff] }
 0xa14   :  { %v1131_v18 = vmul.f32 %v4838_v16, %v1128_v13  ;;  %vm1137_vm10 = vweird.f32 %v4838_v16 }
 0xa15   :  { %4839 = vrsqrt.f32 %v1129_v17  ;;  %vm1138_vm12 = vmor %vm1136_vm11, %vm1137_vm10  ;;  %vm1146_vm14 = vweird.f32 %v1129_v17 }
 0xa16   :  { %v1132_v19 = vmul.f32 %v4838_v16, %v1131_v18 }
 0xa18   :  { %v1133_v20 = vmul.f32 0.5, %v1132_v19 }
 0xa1a   :  { %v1134_v21 = vsub.f32 1.5, %v1133_v20 }
 0xa1b   :  { %v4840_v22 = vpop.eup %4839 }
 0xa1c   :  { %v1135_v23 = vmul.f32 %v4838_v16, %v1134_v21  ;;  %v1141_v24 = vmul.f32 %v4840_v22, %v1129_v17  ;;  %vm1147_vm13 = vweird.f32 %v4840_v22 }
 0xa1d   :  { %vm1148_vm15 = vmor %vm1146_vm14, %vm1147_vm13 }
 0xa1e   :  { %v1139_v26 = vsel %vm1138_vm12, %v4838_v16, %v1135_v23  ;;  %v1142_v27 = vmul.f32 %v4840_v22, %v1141_v24  ;;  %v4751_v24 = vld [vmem:[#allocation7 + $0x5] ss:$0 sm:$0xff] }
 0xa1f   :  { %v1150_v28 = vmul.f32 %v1139_v26, %v1116_v47 }
 0xa20   :  { %v1143_v30 = vmul.f32 0.5, %v1142_v27 }
 0xa21   :  { %v1155_v31 = vmul.f32 %v4745_v25, %v1150_v28 }
 0xa22   :  { %v1144_v32 = vsub.f32 1.5, %v1143_v30 }
 0xa23   :  { %v5547_v33 = vadd.f32 %v4746_v29, %v1155_v31 }
 0xa24   :  { %v1145_v34 = vmul.f32 %v4840_v22, %v1144_v32  ;;  %v1611_v32 = vld [vmem:[#allocation5 + $0x58] sm:$0xff] }
 0xa25   :  { %4504 = vmatmul.msk.f32.vlgmr.msrb.gmra.mxu0 %vm217_vm0, %v5547_v33  ;;  %4516 = vmatmul.msk.f32.vlgmr.msra.gmra.mxu1 %vm217_vm0, %v5547_v33 }
 0xa26   :  { %v1149_v39 = vsel %vm1148_vm15, %v4840_v22, %v1145_v34  ;;  %v1610_v34 = vld [vmem:[#allocation5 + $0x50] sm:$0xff] }
 0xa27   :  { %v1151_v54 = vmul.f32 %v1149_v39, %v5520_v56  ;;  %v1242_v56 = vld [vmem:[#allocation5 + $0x108] sm:$0xff] }
 0xa28   :  { %1264 = vmatpush.msrb.mxu2 %v1242_v56  ;;  %v1609_v39 = vld [vmem:[#allocation5 + $0x48] sm:$0xff] }
 0xa29   :  { %v1156_v35 = vmul.f32 %v4745_v25, %v1151_v54  ;;  %v1608_v54 = vld [vmem:[#allocation5 + $0x40] sm:$0xff] }
 0xa2a   :  { %1265 = vmatpush.msrb.mxu2 %v1241_v58 }
 0xa2b   :  { %v5554_v36 = vadd.f32 %v4746_v29, %v1156_v35  ;;  %4508 = vmatmul.msk.f32.vlgmr.msrb.gmra.mxu2 %vm217_vm0, %v5528_v63 }
 0xa2c   :  { %1417 = vmatpush.msra.mxu2 %v1399_v60 }
 0xa2d   :  { %4505 = vmatmul.msk.f32.gmra.mxu0 %vm217_vm0, %v5554_v36  ;;  %4517 = vmatmul.msk.f32.gmra.mxu1 %vm217_vm0, %v5554_v36 }
 0xa2e   :  { %1418 = vmatpush.msra.mxu2 %v1398_v61 }
 0xa30   :  { %1419 = vmatpush.msra.mxu2 %v1397_v62 }
 0xa32   :  { %1420 = vmatpush.msra.mxu2 %v1396_v1 }
 0xa33   :  { %4509 = vmatmul.msk.f32.gmra.mxu2 %vm217_vm0, %v5535_v0 }
 0xa3b   :  { %4518 = vmatmul.msk.f32.vlgmr.msra.gmra.mxu2 %vm217_vm0, %v5528_v63 }
 0xa43   :  { %4519 = vmatmul.msk.f32.gmra.mxu2 %vm217_vm0, %v5535_v0 }
 0xaa2   :  { %v1193_v41 = vpop.f32.mrf.mxu0  ;;  %v1387_v37 = vpop.f32.mrf.mxu1 }
 0xaa3   :  { %v1194_v46 = vadd.f32 %v4748_v59, %v1193_v41  ;;  %v1430_v41 = vld [vmem:[#allocation5 + $0x128] sm:$0xff] }
 0xaa4   :  { %1452 = vmatpush.msrb.mxu3 %v1430_v41 }
 0xaa5   :  { %v1199_v6 = vmul.f32 0.35355338, %v1194_v46  ;;  %v1429_v46 = vld [vmem:[#allocation5 + $0x120] sm:$0xff] }
 0xaa6   :  { %1453 = vmatpush.msrb.mxu3 %v1429_v46 }
 0xaa7   :  { %4512 = vmatmul.msk.f32.vlgmr.msra.gmra.mxu3 %vm315_vm1, %v1199_v6 }
 0xaa8   :  { %1599 = vmatpush.msra.mxu3 %v1359_v50 }
 0xaaa   :  { %v1196_v47 = vpop.f32.mrf.mxu0 }
 0xaab   :  { %v1197_v48 = vadd.f32 %v4748_v59, %v1196_v47  ;;  %v1388_v59 = vadd.f32 %v4749_v38, %v1387_v37  ;;  %v1390_v47 = vpop.f32.mrf.mxu1  ;;  %v1828_v37 = vld [vmem:[#allocation5 + $0x60] sm:$0xff] }
 0xaad   :  { %v1200_v49 = vmul.f32 0.35355338, %v1197_v48  ;;  %v1393_v6 = vmul.f32 0.35355338, %v1388_v59  ;;  %v1391_v48 = vadd.f32 %v4749_v38, %v1390_v47  ;;  %v4752_v59 = vld [vmem:[#allocation7 + $0x2] ss:$0 sm:$0xff] }
 0xaae   :  { %v1267_v12 = vpop.f32.mrf.mxu2 }
 0xaaf   :  { %4513 = vmatmul.msk.f32.gmra.mxu3 %vm315_vm1, %v1200_v49  ;;  %v1268_v51 = vadd.f32 %v4750_v15, %v1267_v12  ;;  %v1394_v49 = vmul.f32 0.35355338, %v1391_v48 }
 0xab6   :  { %v1270_v17 = vpop.f32.mrf.mxu2 }
 0xab7   :  { %v1271_v52 = vadd.f32 %v4750_v15, %v1270_v17  ;;  %4520 = vmatmul.msk.f32.vlgmr.msrb.gmra.mxu3 %vm217_vm0, %v5528_v63 }
 0xab9   :  { %1350 = vmatpush.msra.mxu0 %v1271_v52 }
 0xabb   :  { %1351 = vmatpush.msra.mxu0 %v1268_v51 }
 0xabe   :  { %v1422_v23 = vpop.f32.mrf.mxu2 }
 0xabf   :  { %v1423_v27 = vadd.f32 %v4751_v24, %v1422_v23  ;;  %4521 = vmatmul.msk.f32.gmra.mxu3 %vm217_vm0, %v5535_v0 }
 0xac6   :  { %v1425_v25 = vpop.f32.mrf.mxu2 }
 0xac7   :  { %v1426_v26 = vadd.f32 %v4751_v24, %v1425_v25 }
 0xac9   :  { %4522 = vmatpush.xpose.msk.msrb.mxu0 %vm315_vm1, %v1426_v26 }
 0xacd   :  { %4523 = vmatpush.xpose.msk.msrb.mxu0 %vm315_vm1, %v1423_v27 }
 0xb2a   :  { %v1302_v3 = vpop.f32.mrf.mxu3 }
 0xb2b   :  { %v1303_v5 = vadd.f32 %v1302_v3, %v5572_v2 }
 0xb2d   :  { %v1308_v7 = vsel %vm351_vm5, %v1303_v5, -inf }
 0xb2e   :  { %1309 = vmax.xlane.f32.xlu2 %v1308_v7  ;;  %v4753_v7 = vld [vmem:[#allocation7 + $0x9] ss:$0 sm:$0xff] }
 0xb32   :  { %v1305_v9 = vpop.f32.mrf.mxu3 }
 0xb33   :  { %v1306_v44 = vadd.f32 %v1305_v9, %v5582_v8 }
 0xb35   :  { %v1311_v10 = vsel %vm351_vm5, %v1306_v44, -inf }
 0xb36   :  { %1312 = vmax.xlane.f32.xlu0 %v1311_v10 }
 0xb3a   :  { %v1455_v62 = vpop.f32.mrf.mxu3 }
 0xb42   :  { %v1458_v9 = vpop.f32.mrf.mxu3 }
 0xb43   :  { %v1459_v10 = vadd.f32 %v4753_v7, %v1458_v9 }
 0xb45   :  { %1538 = vmatpush.msrb.mxu1 %v1459_v10 }
 0xba1   :  { %v1310_v11 = vpop.xlane.xlu2 %1309 }
 0xba2   :  { %v1314_v13 = vsub.f32 %v1303_v5, %v1310_v11 }
 0xba4   :  { %v1316_v14 = vmul.f32 1.442695, %v1314_v13 }
 0xba6   :  { %4841 = vpow2.f32 %v1316_v14 }
 0xba9   :  { %v1313_v16 = vpop.xlane.xlu0 %1312 }
 0xbaa   :  { %v1315_v45 = vsub.f32 %v1306_v44, %v1313_v16  ;;  %v1456_v44 = vadd.f32 %v4753_v7, %v1455_v62  ;;  %v4755_v62 = vld [vmem:[#allocation7 + $0xa] ss:$0 sm:$0xff] }
 0xbac   :  { %v4842_v18 = vpop.eup %4841  ;;  %v1318_v19 = vmul.f32 1.442695, %v1315_v45  ;;  %1539 = vmatpush.msrb.mxu1 %v1456_v44 }
 0xbad   :  { %v1320_v20 = vsel %vm351_vm5, %v4842_v18, 0.0 }
 0xbae   :  { %4843 = vpow2.f32 %v1318_v19  ;;  %1321 = vadd.xlane.f32.xlu1 %v1320_v20  ;;  %v1645_v19 = vld [vmem:[#allocation5 + $0xd0] sm:$0xff]  ;;  %v1644_v20 = vld [vmem:[#allocation5 + $0xc8] sm:$0xff] }
 0xbb4   :  { %v4844_v21 = vpop.eup %4843 }
 0xbb5   :  { %v1323_v22 = vsel %vm351_vm5, %v4844_v21, 0.0 }
 0xbb6   :  { %1324 = vadd.xlane.f32.xlu2 %v1323_v22 }
 0xc21   :  { %v1322_v28 = vpop.xlane.xlu1 %1321 }
 0xc22   :  { %4845 = vrcp.f32 %v1322_v28  ;;  %v1548_v28 = vld [vmem:[#allocation8 + $0x8] sm:$0xff] }
 0xc23   :  { %1570 = vmatpush.msrb.mxu2 %v1548_v28  ;;  %v4757_v28 = vld [vmem:[#allocation7 + $0x7] ss:$0 sm:$0xff] }
 0xc28   :  { %v4846_v29 = vpop.eup %4845 }
 0xc29   :  { %v1328_v30 = vmul.f32 %v4846_v29, %v4842_v18  ;;  %v1325_v31 = vpop.xlane.xlu2 %1324  ;;  %v1646_v18 = vld [vmem:[#allocation5 + $0xd8] sm:$0xff] }
 0xc2a   :  { %4847 = vrcp.f32 %v1325_v31  ;;  %1664 = vmatpush.msra.mxu1 %v1646_v18  ;;  %v1679_v29 = vld [vmem:[#allocation5 + $0x158] sm:$0xff]  ;;  %v1677_v31 = vld [vmem:[#allocation5 + $0x148] sm:$0xff] }
 0xc2b   :  { %4514 = vmatmul.msk.f32.vlgmr.msra.gmra.mxu0 %vm351_vm5, %v1328_v30  ;;  %v1678_v30 = vld [vmem:[#allocation5 + $0x150] sm:$0xff]  ;;  %1697 = vmatpush.msra.mxu2 %v1679_v29 }
 0xc2c   :  { %1629 = vmatpush.msra.mxu0 %v1611_v32  ;;  %1665 = vmatpush.msra.mxu1 %v1645_v19  ;;  %v1676_v32 = vld [vmem:[#allocation5 + $0x140] sm:$0xff] }
 0xc2d   :  { %1698 = vmatpush.msra.mxu2 %v1678_v30 }
 0xc2e   :  { %1630 = vmatpush.msra.mxu0 %v1610_v34  ;;  %1666 = vmatpush.msra.mxu1 %v1644_v20  ;;  %v1831_v34 = vld [vmem:[#allocation5 + $0x78] sm:$0xff] }
 0xc2f   :  { %1699 = vmatpush.msra.mxu2 %v1677_v31 }
 0xc30   :  { %v4848_v35 = vpop.eup %4847  ;;  %1631 = vmatpush.msra.mxu0 %v1609_v39 }
 0xc31   :  { %v1329_v40 = vmul.f32 %v4848_v35, %v4844_v21  ;;  %v1643_v21 = vld [vmem:[#allocation5 + $0xc0] sm:$0xff]  ;;  %1700 = vmatpush.msra.mxu2 %v1676_v32  ;;  %v1829_v35 = vld [vmem:[#allocation5 + $0x68] sm:$0xff] }
 0xc32   :  { %1632 = vmatpush.msra.mxu0 %v1608_v54  ;;  %1667 = vmatpush.msra.mxu1 %v1643_v21  ;;  %v1830_v54 = vld [vmem:[#allocation5 + $0x70] sm:$0xff] }
 0xc33   :  { %4515 = vmatmul.msk.f32.gmra.mxu0 %vm351_vm5, %v1329_v40 }
 0xc3b   :  { %4524 = vmatmul.msk.f32.vlgmr.msrb.gmra.mxu0 %vm315_vm1, %v1393_v6 }
 0xc43   :  { %4525 = vmatmul.msk.f32.gmra.mxu0 %vm315_vm1, %v1394_v49 }
 0xc4b   :  { %4532 = vmatmul.msk.f32.vlgmr.msra.gmra.mxu0 %vm217_vm0, %v5547_v33 }
 0xc53   :  { %4533 = vmatmul.msk.f32.gmra.mxu0 %vm217_vm0, %v5554_v36 }
 0xca8   :  { %v1353_v55 = vpop.f32.mrf.mxu0 }
 0xca9   :  { %4530 = vmatmul.msk.f32.vlgmr.msra.gmra.mxu3 %vm315_vm1, %v1353_v55 }
 0xcb0   :  { %v1356_v56 = vpop.f32.mrf.mxu0 }
 0xcb1   :  { %4531 = vmatmul.msk.f32.gmra.mxu3 %vm315_vm1, %v1356_v56 }
 0xcb8   :  { %v1490_v58 = vpop.f32.mrf.mxu0 }
 0xcb9   :  { %v1491_v60 = vadd.f32 %v1490_v58, %v5572_v2 }
 0xcbb   :  { %v1496_v61 = vsel %vm351_vm5, %v1491_v60, -inf }
 0xcbc   :  { %1497 = vmax.xlane.f32.xlu0 %v1496_v61 }
 0xcc0   :  { %v1493_v1 = vpop.f32.mrf.mxu0 }
 0xcc1   :  { %v1494_v3 = vadd.f32 %v1493_v1, %v5582_v8 }
 0xcc3   :  { %v1499_v5 = vsel %vm351_vm5, %v1494_v3, -inf }
 0xcc4   :  { %1500 = vmax.xlane.f32.xlu1 %v1499_v5 }
 0xcc8   :  { %v1634_v42 = vpop.f32.mrf.mxu0 }
 0xcc9   :  { %v1635_v6 = vadd.f32 %v4752_v59, %v1634_v42 }
 0xccb   :  { %v1640_v48 = vmul.f32 0.35355338, %v1635_v6 }
 0xcd0   :  { %v1637_v49 = vpop.f32.mrf.mxu0 }
 0xcd1   :  { %v1638_v50 = vadd.f32 %v4752_v59, %v1637_v49  ;;  %v1897_v49 = vld [vmem:[#allocation5 + $0x168] sm:$0xff] }
 0xcd3   :  { %v1641_v55 = vmul.f32 0.35355338, %v1638_v50 }
 0xd2f   :  { %v1498_v11 = vpop.xlane.xlu0 %1497 }
 0xd30   :  { %v1502_v12 = vsub.f32 %v1491_v60, %v1498_v11  ;;  %v5636_v60 = vpop.f32.mrf.mxu3 }
 0xd32   :  { %v1504_v13 = vmul.f32 1.442695, %v1502_v12 }
 0xd34   :  { %4849 = vpow2.f32 %v1504_v13 }
 0xd37   :  { %v1501_v14 = vpop.xlane.xlu1 %1500 }
 0xd38   :  { %v1503_v15 = vsub.f32 %v1494_v3, %v1501_v14  ;;  %v5638_v3 = vpop.f32.mrf.mxu3  ;;  %v1866_v14 = vld [vmem:[#allocation5 + $0xf8] sm:$0xff] }
 0xd3a   :  { %v4850_v16 = vpop.eup %4849  ;;  %v1506_v17 = vmul.f32 1.442695, %v1503_v15  ;;  %v1865_v15 = vld [vmem:[#allocation5 + $0xf0] sm:$0xff] }
 0xd3b   :  { %v1508_v45 = vsel %vm351_vm5, %v4850_v16, 0.0 }
 0xd3c   :  { %4851 = vpow2.f32 %v1506_v17  ;;  %1509 = vadd.xlane.f32.xlu2 %v1508_v45  ;;  %v1863_v17 = vld [vmem:[#allocation5 + $0xe0] sm:$0xff] }
 0xd42   :  { %v4852_v51 = vpop.eup %4851 }
 0xd43   :  { %v1511_v52 = vsel %vm351_vm5, %v4852_v51, 0.0 }
 0xd44   :  { %1512 = vadd.xlane.f32.xlu0 %v1511_v52 }
 0xdaf   :  { %v1510_v22 = vpop.xlane.xlu2 %1509 }
 0xdb0   :  { %4853 = vrcp.f32 %v1510_v22 }
 0xdb6   :  { %v4854_v23 = vpop.eup %4853 }
 0xdb7   :  { %v1516_v24 = vmul.f32 %v4854_v23, %v4850_v16  ;;  %v1513_v25 = vpop.xlane.xlu0 %1512  ;;  %v1864_v16 = vld [vmem:[#allocation5 + $0xe8] sm:$0xff] }
 0xdb8   :  { %4855 = vrcp.f32 %v1513_v25  ;;  %v1795_v25 = vld [vmem:[#allocation8 + $0x10] sm:$0xff] }
 0xdb9   :  { %4526 = vmatmul.msk.f32.vlgmr.msrb.gmra.mxu1 %vm351_vm5, %v1516_v24 }
 0xdba   :  { %1817 = vmatpush.msrb.mxu1 %v1795_v25 }
 0xdbe   :  { %v4856_v26 = vpop.eup %4855 }
 0xdbf   :  { %v1517_v27 = vmul.f32 %v4856_v26, %v4852_v51 }
 0xdc1   :  { %4527 = vmatmul.msk.f32.gmra.mxu1 %vm351_vm5, %v1517_v27 }
 0xdc9   :  { %4534 = vmatmul.msk.f32.vlgmr.msra.gmra.mxu1 %vm217_vm0, %v5528_v63 }
 0xdd1   :  { %4535 = vmatmul.msk.f32.gmra.mxu1 %vm217_vm0, %v5535_v0 }
 0xe36   :  { %v1541_v39 = vpop.f32.mrf.mxu1 }
 0xe37   :  { %4528 = vmatmul.msk.f32.vlgmr.msrb.gmra.mxu2 %vm315_vm1, %v1541_v39 }
 0xe38   :  { %1849 = vmatpush.msrb.mxu2 %v1831_v34 }
 0xe3a   :  { %1850 = vmatpush.msrb.mxu2 %v1830_v54 }
 0xe3c   :  { %1851 = vmatpush.msrb.mxu2 %v1829_v35 }
 0xe3e   :  { %v1544_v38 = vpop.f32.mrf.mxu1  ;;  %1852 = vmatpush.msrb.mxu2 %v1828_v37 }
 0xe3f   :  { %4529 = vmatmul.msk.f32.gmra.mxu2 %vm315_vm1, %v1544_v38 }
 0xe46   :  { %v1669_v40 = vpop.f32.mrf.mxu1 }
 0xe47   :  { %4536 = vmatmul.msk.f32.vlgmr.msra.gmra.mxu2 %vm217_vm0, %v5528_v63  ;;  %v1670_v47 = vadd.f32 %v4754_v4, %v1669_v40  ;;  %v4756_v40 = vld [vmem:[#allocation7 + $0x3] ss:$0 sm:$0xff] }
 0xe4e   :  { %v1672_v41 = vpop.f32.mrf.mxu1 }
 0xe4f   :  { %v1673_v46 = vadd.f32 %v4754_v4, %v1672_v41  ;;  %4537 = vmatmul.msk.f32.gmra.mxu2 %vm217_vm0, %v5535_v0 }
 0xe51   :  { %4538 = vmatpush.xpose.msk.msrb.mxu3 %vm315_vm1, %v1673_v46 }
 0xe55   :  { %4539 = vmatpush.xpose.msk.msrb.mxu3 %vm315_vm1, %v1670_v47  ;;  %v1899_v47 = vld [vmem:[#allocation5 + $0x178] sm:$0xff] }
 0xe57   :  { %4546 = vmatmul.msk.f32.vlgmr.msrb.gmra.mxu2 %vm217_vm0, %v5547_v33 }
 0xe58   :  { %4540 = vmatmul.msk.f32.vlgmr.msrb.gmra.mxu3 %vm315_vm1, %v1640_v48  ;;  %v1898_v48 = vld [vmem:[#allocation5 + $0x170] sm:$0xff] }
 0xe59   :  { %1884 = vmatpush.msra.mxu3 %v1866_v14 }
 0xe5b   :  { %1885 = vmatpush.msra.mxu3 %v1865_v15 }
 0xe5d   :  { %1886 = vmatpush.msra.mxu3 %v1864_v16 }
 0xe5f   :  { %4547 = vmatmul.msk.f32.gmra.mxu2 %vm217_vm0, %v5554_v36  ;;  %1887 = vmatpush.msra.mxu3 %v1863_v17 }
 0xe60   :  { %4541 = vmatmul.msk.f32.gmra.mxu3 %vm315_vm1, %v1641_v55  ;;  %v1896_v55 = vld [vmem:[#allocation5 + $0x160] sm:$0xff] }
 0xe68   :  { %4548 = vmatmul.msk.f32.vlgmr.msra.gmra.mxu3 %vm217_vm0, %v5528_v63 }
 0xe70   :  { %4549 = vmatmul.msk.f32.gmra.mxu3 %vm217_vm0, %v5535_v0 }
 0xeba   :  { %v5632_v56 = vpop.f32.mrf.mxu2 }
 0xec2   :  { %v5634_v58 = vpop.f32.mrf.mxu2 }
 0xeca   :  { %v1702_v61 = vpop.f32.mrf.mxu2 }
 0xecb   :  { %v1703_v5 = vadd.f32 %v4755_v62, %v1702_v61 }
 0xed2   :  { %v1705_v1 = vpop.f32.mrf.mxu2 }
 0xed3   :  { %v1706_v7 = vadd.f32 %v4755_v62, %v1705_v1 }
 0xed5   :  { %1785 = vmatpush.msrb.mxu0 %v1706_v7 }
 0xed7   :  { %1786 = vmatpush.msrb.mxu0 %v1703_v5 }
 0xed9   :  { %1917 = vmatpush.msra.mxu0 %v1899_v47 }
 0xeda   :  { %v1854_v38 = vpop.f32.mrf.mxu2 }
 0xedb   :  { %v1737_v9 = vpop.f32.mrf.mxu3  ;;  %v1855_v4 = vadd.f32 %v4756_v40, %v1854_v38  ;;  %1918 = vmatpush.msra.mxu0 %v1898_v48 }
 0xedc   :  { %v1738_v44 = vadd.f32 %v1737_v9, %v5572_v2 }
 0xedd   :  { %v1860_v59 = vmul.f32 0.35355338, %v1855_v4  ;;  %1919 = vmatpush.msra.mxu0 %v1897_v49 }
 0xede   :  { %v1743_v10 = vsel %vm351_vm5, %v1738_v44, -inf }
 0xedf   :  { %1744 = vmax.xlane.f32.xlu1 %v1743_v10  ;;  %1920 = vmatpush.msra.mxu0 %v1896_v55  ;;  %v2112_v55 = vld [vmem:[#allocation10 + $0x8] sm:$0xff] }
 0xee2   :  { %v1857_v41 = vpop.f32.mrf.mxu2 }
 0xee3   :  { %v1740_v11 = vpop.f32.mrf.mxu3  ;;  %v1858_v46 = vadd.f32 %v4756_v40, %v1857_v41 }
 0xee4   :  { %v1741_v12 = vadd.f32 %v1740_v11, %v5582_v8  ;;  %v4758_v11 = vld [vmem:[#allocation7 + $0xb] ss:$0 sm:$0xff] }
 0xee5   :  { %v1861_v6 = vmul.f32 0.35355338, %v1858_v46 }
 0xee6   :  { %v1746_v13 = vsel %vm351_vm5, %v1741_v12, -inf }
 0xee7   :  { %1747 = vmax.xlane.f32.xlu2 %v1746_v13 }
 0xeeb   :  { %v1889_v27 = vpop.f32.mrf.mxu3 }
 0xeec   :  { %v1890_v39 = vadd.f32 %v4757_v28, %v1889_v27 }
 0xef3   :  { %v1892_v32 = vpop.f32.mrf.mxu3 }
 0xef4   :  { %v1893_v34 = vadd.f32 %v4757_v28, %v1892_v32 }
 0xef6   :  { %4552 = vmatpush.xpose.msk.msra.mxu1 %vm315_vm1, %v1893_v34 }
 0xefa   :  { %4553 = vmatpush.xpose.msk.msra.mxu1 %vm315_vm1, %v1890_v39 }
 0xf52   :  { %v1745_v45 = vpop.xlane.xlu1 %1744 }
 0xf53   :  { %v1749_v51 = vsub.f32 %v1738_v44, %v1745_v45 }
 0xf55   :  { %v1751_v52 = vmul.f32 1.442695, %v1749_v51 }
 0xf57   :  { %4857 = vpow2.f32 %v1751_v52 }
 0xf5a   :  { %v1748_v18 = vpop.xlane.xlu2 %1747 }
 0xf5b   :  { %v1750_v19 = vsub.f32 %v1741_v12, %v1748_v18 }
 0xf5d   :  { %v4858_v20 = vpop.eup %4857  ;;  %v1753_v21 = vmul.f32 1.442695, %v1750_v19 }
 0xf5e   :  { %v1755_v22 = vsel %vm351_vm5, %v4858_v20, 0.0 }
 0xf5f   :  { %4859 = vpow2.f32 %v1753_v21  ;;  %1756 = vadd.xlane.f32.xlu0 %v1755_v22 }
 0xf65   :  { %v4860_v23 = vpop.eup %4859 }
 0xf66   :  { %v1758_v24 = vsel %vm351_vm5, %v4860_v23, 0.0 }
 0xf67   :  { %1759 = vadd.xlane.f32.xlu1 %v1758_v24 }
 0xfd2   :  { %v1757_v26 = vpop.xlane.xlu0 %1756 }
 0xfd3   :  { %4861 = vrcp.f32 %v1757_v26 }
 0xfd9   :  { %v4862_v29 = vpop.eup %4861 }
 0xfda   :  { %v1763_v30 = vmul.f32 %v4862_v29, %v4858_v20  ;;  %v1760_v31 = vpop.xlane.xlu1 %1759  ;;  %v2015_v20 = vld [vmem:[#allocation8 + $0x18] sm:$0xff]  ;;  %v1602_v29 = vadd.f32 %v5636_v60, %v5632_v56 }
 0xfdb   :  { %4863 = vrcp.f32 %v1760_v31  ;;  %2037 = vmatpush.msrb.mxu3 %v2015_v20  ;;  %v4759_v31 = vld [vmem:[%s6150_s9] ss:$0 sm:$0xff] }
 0xfdc   :  { %4542 = vmatmul.msk.f32.vlgmr.msrb.gmra.mxu0 %vm351_vm5, %v1763_v30 }
 0xfe1   :  { %v4864_v54 = vpop.eup %4863 }
 0xfe2   :  { %v1764_v35 = vmul.f32 %v4864_v54, %v4860_v23  ;;  %v1605_v54 = vadd.f32 %v5638_v3, %v5634_v58 }
 0xfe4   :  { %4543 = vmatmul.msk.f32.gmra.mxu0 %vm351_vm5, %v1764_v35 }
 0xfec   :  { %4550 = vmatmul.msk.f32.vlgmr.msra.gmra.mxu0 %vm217_vm0, %v5528_v63 }
 0xff4   :  { %4551 = vmatmul.msk.f32.gmra.mxu0 %vm217_vm0, %v5535_v0 }
0x1059   :  { %v1788_v37 = vpop.f32.mrf.mxu0 }
0x105a   :  { %4544 = vmatmul.msk.f32.vlgmr.msrb.gmra.mxu1 %vm315_vm1, %v1788_v37 }
0x1061   :  { %v1791_v42 = vpop.f32.mrf.mxu0 }
0x1062   :  { %4545 = vmatmul.msk.f32.gmra.mxu1 %vm315_vm1, %v1791_v42 }
0x1069   :  { %v1922_v10 = vpop.f32.mrf.mxu0 }
0x106a   :  { %4554 = vmatmul.msk.f32.vlgmr.msra.gmra.mxu1 %vm315_vm1, %v1860_v59  ;;  %v1923_v15 = vadd.f32 %v4758_v11, %v1922_v10 }
0x1071   :  { %v1925_v13 = vpop.f32.mrf.mxu0 }
0x1072   :  { %4555 = vmatmul.msk.f32.gmra.mxu1 %vm315_vm1, %v1861_v6  ;;  %v1926_v0 = vadd.f32 %v4758_v11, %v1925_v13 }
0x1074   :  { %2005 = vmatpush.msra.mxu2 %v1926_v0 }
0x1076   :  { %2006 = vmatpush.msra.mxu2 %v1923_v15 }
0x10d7   :  { %v1819_v50 = vpop.f32.mrf.mxu1 }
0x10d8   :  { %v1825_v30 = vadd.f32 %v1819_v50, %v1602_v29  ;;  %v2113_v50 = vld [vmem:[#allocation10 + $0x10] sm:$0xff] }
0x10df   :  { %v1822_v61 = vpop.f32.mrf.mxu1 }
0x10e0   :  { %v1826_v37 = vadd.f32 %v1822_v61, %v1605_v54  ;;  %v2111_v61 = vld [vmem:[#allocation10] sm:$0xff]  ;;  %v4762_v54 = vld [vmem:[%s6152_s11] ss:$0 sm:$0xff] }
0x10e7   :  { %v1957_v62 = vpop.f32.mrf.mxu1 }
0x10e8   :  { %v1958_v1 = vadd.f32 %v1957_v62, %v5572_v2 }
0x10ea   :  { %v1963_v5 = vsel %vm351_vm5, %v1958_v1, -inf }
0x10eb   :  { %1964 = vmax.xlane.f32.xlu2 %v1963_v5 }
0x10ef   :  { %v1960_v7 = vpop.f32.mrf.mxu1 }
0x10f0   :  { %v1961_v9 = vadd.f32 %v1960_v7, %v5582_v8  ;;  %v2157_v7 = vld [vmem:[#allocation11 + $0x38] sm:$0xff] }
0x10f1   :  { %2177 = vmatpush.msrb.mxu1 %v2157_v7  ;;  %v2254_v7 = vld [vmem:[#allocation2 + $0x198] sm:$0xff] }
0x10f2   :  { %v1966_v44 = vsel %vm351_vm5, %v1961_v9, -inf  ;;  %2278 = vmatpush.msrb.mxu2 %v2254_v7 }
0x10f3   :  { %1967 = vmax.xlane.f32.xlu0 %v1966_v44  ;;  %v2155_v44 = vld [vmem:[#allocation11 + $0x28] sm:$0xff] }
0x115e   :  { %v1965_v12 = vpop.xlane.xlu2 %1964 }
0x115f   :  { %v1969_v63 = vsub.f32 %v1958_v1, %v1965_v12  ;;  %v2154_v12 = vld [vmem:[#allocation11 + $0x20] sm:$0xff] }
0x1161   :  { %v1971_v14 = vmul.f32 1.442695, %v1969_v63 }
0x1163   :  { %4865 = vpow2.f32 %v1971_v14  ;;  %v2153_v14 = vld [vmem:[#allocation11 + $0x18] sm:$0xff] }
0x1166   :  { %v1968_v16 = vpop.xlane.xlu0 %1967 }
0x1167   :  { %v1970_v17 = vsub.f32 %v1961_v9, %v1968_v16  ;;  %v2156_v9 = vld [vmem:[#allocation11 + $0x30] sm:$0xff] }
0x1168   :  { %2178 = vmatpush.msrb.mxu1 %v2156_v9  ;;  %v2295_v9 = vld [vmem:[#allocation2 + $0x218] sm:$0xff] }
0x1169   :  { %v4866_v45 = vpop.eup %4865  ;;  %v1973_v51 = vmul.f32 1.442695, %v1970_v17  ;;  %2313 = vmatpush.msra.mxu3 %v2295_v9 }
0x116a   :  { %v1975_v52 = vsel %vm351_vm5, %v4866_v45, 0.0  ;;  %2179 = vmatpush.msrb.mxu1 %v2155_v44  ;;  %v2328_v44 = vld [vmem:[#allocation2 + $0x298] sm:$0xff] }
0x116b   :  { %4867 = vpow2.f32 %v1973_v51  ;;  %1976 = vadd.xlane.f32.xlu1 %v1975_v52 }
0x116c   :  { %2180 = vmatpush.msrb.mxu1 %v2154_v12  ;;  %v2327_v12 = vld [vmem:[#allocation2 + $0x290] sm:$0xff] }
0x116e   :  { %2181 = vmatpush.msrb.mxu1 %v2153_v14  ;;  %v2326_v14 = vld [vmem:[#allocation2 + $0x288] sm:$0xff] }
0x1171   :  { %v4868_v18 = vpop.eup %4867 }
0x1172   :  { %v1978_v19 = vsel %vm351_vm5, %v4868_v18, 0.0 }
0x1173   :  { %1979 = vadd.xlane.f32.xlu2 %v1978_v19 }
0x11de   :  { %v1977_v21 = vpop.xlane.xlu1 %1976 }
0x11df   :  { %4869 = vrcp.f32 %v1977_v21 }
0x11e5   :  { %v4870_v22 = vpop.eup %4869 }
0x11e6   :  { %v1983_v23 = vmul.f32 %v4870_v22, %v4866_v45  ;;  %v1980_v24 = vpop.xlane.xlu2 %1979  ;;  %v4761_v22 = vld [vmem:[%s6158_s17] ss:$0 sm:$0xff] }
0x11e7   :  { %4871 = vrcp.f32 %v1980_v24 }
0x11e8   :  { %4556 = vmatmul.msk.f32.vlgmr.msra.gmra.mxu2 %vm351_vm5, %v1983_v23 }
0x11ed   :  { %v4872_v25 = vpop.eup %4871 }
0x11ee   :  { %v1984_v26 = vmul.f32 %v4872_v25, %v4868_v18  ;;  %v4760_v18 = vld [vmem:[%s6157_s16] ss:$0 sm:$0xff] }
0x11f0   :  { %4557 = vmatmul.msk.f32.gmra.mxu2 %vm351_vm5, %v1984_v26 }
0x126b   :  { %v2008_v27 = vpop.f32.mrf.mxu2 }
0x126c   :  { %4558 = vmatmul.msk.f32.vlgmr.msrb.gmra.mxu3 %vm315_vm1, %v2008_v27 }
0x1273   :  { %v2011_v28 = vpop.f32.mrf.mxu2 }
0x1274   :  { %4559 = vmatmul.msk.f32.gmra.mxu3 %vm315_vm1, %v2011_v28 }
0x12ef   :  { %v2039_v32 = vpop.f32.mrf.mxu3 }
0x12f0   :  { %v2045_v34 = vadd.f32 %v2039_v32, %v1825_v30  ;;  %v2152_v32 = vld [vmem:[#allocation11 + $0x10] sm:$0xff] }
0x12f1   :  { %2182 = vmatpush.msrb.mxu1 %v2152_v32 }
0x12f2   :  { %v2051_v39 = vadd.f32 %v4759_v31, %v2045_v34  ;;  %v2151_v34 = vld [vmem:[#allocation11 + $0x8] sm:$0xff] }
0x12f3   :  { %2183 = vmatpush.msrb.mxu1 %v2151_v34 }
0x12f4   :  { %v2053_v35 = vadd.f32 %v2051_v39, %v5547_v33  ;;  %v2150_v39 = vld [vmem:[#allocation11] sm:$0xff] }
0x12f5   :  { %2184 = vmatpush.msrb.mxu1 %v2150_v39 }
0x12f6   :  { %v2057_v38 = vsel %vm217_vm0, %v2053_v35, 0.0 }
0x12f7   :  { %2058 = vadd.xlane.f32.xlu0 %v2057_v38  ;;  %v2042_v40 = vpop.f32.mrf.mxu3 }
0x12f8   :  { %v2046_v42 = vadd.f32 %v2042_v40, %v1826_v37 }
0x12fa   :  { %v2052_v56 = vadd.f32 %v4759_v31, %v2046_v42 }
0x12fc   :  { %v2054_v60 = vadd.f32 %v2052_v56, %v5554_v36  ;;  %v2114_v36 = vld [vmem:[#allocation10 + $0x18] sm:$0xff] }
0x12fd   :  { %2137 = vmatpush.msrb.mxu0 %v2114_v36 }
0x12fe   :  { %v2060_v4 = vsel %vm217_vm0, %v2054_v60, 0.0 }
0x12ff   :  { %2061 = vadd.xlane.f32.xlu1 %v2060_v4  ;;  %2138 = vmatpush.msrb.mxu0 %v2113_v50 }
0x1301   :  { %2139 = vmatpush.msrb.mxu0 %v2112_v55 }
0x1303   :  { %2140 = vmatpush.msrb.mxu0 %v2111_v61 }
0x1305   :  { %2346 = vmatpush.msra.mxu0 %v2328_v44 }
0x1307   :  { %2347 = vmatpush.msra.mxu0 %v2327_v12  ;;  %v2516_v12 = vld [vmem:[#allocation2 + $0x2b0] sm:$0xff] }
0x1309   :  { %2348 = vmatpush.msra.mxu0 %v2326_v14  ;;  %v2515_v14 = vld [vmem:[#allocation2 + $0x2a8] sm:$0xff] }
0x136a   :  { %v2059_v59 = vpop.xlane.xlu0 %2058 }
0x136b   :  { %v2063_v41 = vmul.f32 %v2059_v59, %v5515_v43 }
0x136d   :  { %v2065_v46 = vsub.f32 %v2053_v35, %v2063_v41 }
0x136f   :  { %v2067_v6 = vmul.f32 %v2065_v46, %v2065_v46 }
0x1371   :  { %v2069_v58 = vsel %vm217_vm0, %v2067_v6, 0.0 }
0x1372   :  { %2070 = vadd.xlane.f32.xlu2 %v2069_v58  ;;  %v2062_v33 = vpop.xlane.xlu1 %2061 }
0x1373   :  { %v2064_v3 = vmul.f32 %v2062_v33, %v5515_v43 }
0x1375   :  { %v2066_v47 = vsub.f32 %v2054_v60, %v2064_v3  ;;  %v4763_v60 = vld [vmem:[%s6154_s13] ss:$0 sm:$0xff] }
0x1377   :  { %v2068_v48 = vmul.f32 %v2066_v47, %v2066_v47 }
0x1379   :  { %v2072_v49 = vsel %vm217_vm0, %v2068_v48, 0.0 }
0x137a   :  { %2073 = vadd.xlane.f32.xlu0 %v2072_v49 }
0x13e5   :  { %v2071_v62 = vpop.xlane.xlu2 %2070 }
0x13e6   :  { %v2075_v1 = vmul.f32 %v2071_v62, %v5515_v43 }
0x13e8   :  { %v2077_v5 = vadd.f32 1e-05, %v2075_v1 }
0x13ea   :  { %4873 = vrsqrt.f32 %v2077_v5  ;;  %vm2085_vm3 = vweird.f32 %v2077_v5 }
0x13ed   :  { %v2074_v10 = vpop.xlane.xlu0 %2073 }
0x13ee   :  { %v2076_v11 = vmul.f32 %v2074_v10, %v5515_v43  ;;  %v2253_v10 = vld [vmem:[#allocation2 + $0x190] sm:$0xff] }
0x13ef   :  { %2279 = vmatpush.msrb.mxu2 %v2253_v10  ;;  %v2517_v10 = vld [vmem:[#allocation2 + $0x2b8] sm:$0xff] }
0x13f0   :  { %v4874_v63 = vpop.eup %4873  ;;  %v2078_v13 = vadd.f32 1e-05, %v2076_v11  ;;  %v2294_v11 = vld [vmem:[#allocation2 + $0x210] sm:$0xff] }
0x13f1   :  { %v2080_v15 = vmul.f32 %v4874_v63, %v2077_v5  ;;  %vm2086_vm2 = vweird.f32 %v4874_v63  ;;  %2314 = vmatpush.msra.mxu3 %v2294_v11 }
0x13f2   :  { %4875 = vrsqrt.f32 %v2078_v13  ;;  %vm2087_vm4 = vmor %vm2085_vm3, %vm2086_vm2  ;;  %vm2095_vm7 = vweird.f32 %v2078_v13 }
0x13f3   :  { %v2081_v0 = vmul.f32 %v4874_v63, %v2080_v15  ;;  %v2251_v15 = vld [vmem:[#allocation2 + $0x180] sm:$0xff] }
0x13f5   :  { %v2082_v16 = vmul.f32 0.5, %v2081_v0  ;;  %v2292_v0 = vld [vmem:[#allocation2 + $0x200] sm:$0xff] }
0x13f7   :  { %v2083_v17 = vsub.f32 1.5, %v2082_v16  ;;  %v2325_v16 = vld [vmem:[#allocation2 + $0x280] sm:$0xff] }
0x13f8   :  { %v4876_v45 = vpop.eup %4875  ;;  %2349 = vmatpush.msra.mxu0 %v2325_v16 }
0x13f9   :  { %v2084_v51 = vmul.f32 %v4874_v63, %v2083_v17  ;;  %v2090_v52 = vmul.f32 %v4876_v45, %v2078_v13  ;;  %vm2096_vm6 = vweird.f32 %v4876_v45  ;;  %v2293_v13 = vld [vmem:[#allocation2 + $0x208] sm:$0xff] }
0x13fa   :  { %vm2097_vm8 = vmor %vm2095_vm7, %vm2096_vm6  ;;  %2315 = vmatpush.msra.mxu3 %v2293_v13  ;;  %v4769_v13 = vld [vmem:[%s6187_s5 + $0x11] ss:$0 sm:$0xff] }
0x13fb   :  { %v2088_v19 = vsel %vm2087_vm4, %v4874_v63, %v2084_v51  ;;  %v2091_v20 = vmul.f32 %v4876_v45, %v2090_v52  ;;  %v2252_v63 = vld [vmem:[#allocation2 + $0x188] sm:$0xff]  ;;  %v2449_v52 = vld [vmem:[#allocation2 + $0x1b8] sm:$0xff] }
0x13fc   :  { %v2099_v21 = vmul.f32 %v2088_v19, %v2065_v46  ;;  %2280 = vmatpush.msrb.mxu2 %v2252_v63  ;;  %2316 = vmatpush.msra.mxu3 %v2292_v0  ;;  %v2448_v19 = vld [vmem:[#allocation2 + $0x1b0] sm:$0xff] }
0x13fd   :  { %v2092_v23 = vmul.f32 0.5, %v2091_v20  ;;  %v2483_v20 = vld [vmem:[#allocation2 + $0x230] sm:$0xff] }
0x13fe   :  { %v2104_v24 = vmul.f32 %v4760_v18, %v2099_v21  ;;  %2281 = vmatpush.msrb.mxu2 %v2251_v15  ;;  %2467 = vmatpush.msrb.mxu3 %v2449_v52 }
0x13ff   :  { %v2093_v25 = vsub.f32 1.5, %v2092_v23  ;;  %v2482_v23 = vld [vmem:[#allocation2 + $0x228] sm:$0xff] }
0x1400   :  { %v2109_v26 = vadd.f32 %v4761_v22, %v2104_v24  ;;  %2468 = vmatpush.msrb.mxu3 %v2448_v19 }
0x1401   :  { %v2094_v27 = vmul.f32 %v4876_v45, %v2093_v25  ;;  %v2446_v25 = vld [vmem:[#allocation2 + $0x1a0] sm:$0xff] }
0x1402   :  { %4560 = vmatmul.msk.f32.vlgmr.msrb.gmra.mxu0 %vm217_vm0, %v2109_v26 }
0x1403   :  { %v2098_v28 = vsel %vm2097_vm8, %v4876_v45, %v2094_v27 }
0x1404   :  { %v2100_v29 = vmul.f32 %v2098_v28, %v2066_v47 }
0x1406   :  { %v2105_v30 = vmul.f32 %v4760_v18, %v2100_v29  ;;  %v2484_v18 = vld [vmem:[#allocation2 + $0x238] sm:$0xff] }
0x1407   :  { %2502 = vmatpush.msrb.mxu0 %v2484_v18 }
0x1408   :  { %v2110_v31 = vadd.f32 %v4761_v22, %v2105_v30  ;;  %v2447_v22 = vld [vmem:[#allocation2 + $0x1a8] sm:$0xff] }
0x1409   :  { %2503 = vmatpush.msrb.mxu0 %v2483_v20  ;;  %2469 = vmatpush.msrb.mxu3 %v2447_v22 }
0x140a   :  { %4561 = vmatmul.msk.f32.gmra.mxu0 %vm217_vm0, %v2110_v31 }
0x140b   :  { %2504 = vmatpush.msrb.mxu0 %v2482_v23  ;;  %2470 = vmatpush.msrb.mxu3 %v2446_v25 }
0x147f   :  { %v2142_v35 = vpop.f32.mrf.mxu0 }
0x1480   :  { %v2143_v37 = vadd.f32 %v4762_v54, %v2142_v35  ;;  %v4764_v35 = vld [vmem:[%s6159_s18] ss:$0 sm:$0xff] }
0x1482   :  { %v2148_v38 = vmax.f32 %v2143_v37, 0.0 }
0x1484   :  { %4562 = vmatmul.msk.f32.vlgmr.msrb.gmra.mxu1 %vm2162_vm9, %v2148_v38 }
0x1487   :  { %v2145_v40 = vpop.f32.mrf.mxu0 }
0x1488   :  { %v2146_v42 = vadd.f32 %v4762_v54, %v2145_v40  ;;  %v4765_v40 = vld [vmem:[%s6160_s19] ss:$0 sm:$0xff] }
0x148a   :  { %v2149_v56 = vmax.f32 %v2146_v42, 0.0 }
0x148c   :  { %4563 = vmatmul.msk.f32.gmra.mxu1 %vm2162_vm9, %v2149_v56 }
0x1501   :  { %v2186_v4 = vpop.f32.mrf.mxu1 }
0x1502   :  { %v2187_v59 = vadd.f32 %v4763_v60, %v2186_v4 }
0x1504   :  { %v2192_v41 = vadd.f32 %v2187_v59, %v2109_v26  ;;  %v2481_v26 = vld [vmem:[#allocation2 + $0x220] sm:$0xff] }
0x1505   :  { %2505 = vmatpush.msrb.mxu0 %v2481_v26 }
0x1506   :  { %v2196_v46 = vsel %vm217_vm0, %v2192_v41, 0.0 }
0x1507   :  { %2197 = vadd.xlane.f32.xlu1 %v2196_v46 }
0x1509   :  { %v2189_v6 = vpop.f32.mrf.mxu1 }
0x150a   :  { %v2190_v58 = vadd.f32 %v4763_v60, %v2189_v6 }
0x150c   :  { %v2193_v33 = vadd.f32 %v2190_v58, %v2110_v31 }
0x150e   :  { %v2199_v3 = vsel %vm217_vm0, %v2193_v33, 0.0 }
0x150f   :  { %2200 = vadd.xlane.f32.xlu2 %v2199_v3 }
0x157a   :  { %v2198_v47 = vpop.xlane.xlu1 %2197 }
0x157b   :  { %v2202_v48 = vmul.f32 %v2198_v47, %v5515_v43 }
0x157d   :  { %v5708_v49 = vsub.f32 %v2192_v41, %v2202_v48  ;;  %v4766_v48 = vld [vmem:[%s6187_s5 + $0x14] ss:$0 sm:$0xff] }
0x157f   :  { %v2206_v36 = vmul.f32 %v5708_v49, %v5708_v49 }
0x1581   :  { %v2208_v50 = vsel %vm217_vm0, %v2206_v36, 0.0 }
0x1582   :  { %v2201_v55 = vpop.xlane.xlu2 %2200  ;;  %2209 = vadd.xlane.f32.xlu0 %v2208_v50 }
0x1583   :  { %v2203_v61 = vmul.f32 %v2201_v55, %v5515_v43 }
0x1585   :  { %v5714_v62 = vsub.f32 %v2193_v33, %v2203_v61  ;;  %v4768_v61 = vld [vmem:[%s6187_s5 + $0x10] ss:$0 sm:$0xff] }
0x1587   :  { %v2207_v1 = vmul.f32 %v5714_v62, %v5714_v62 }
0x1589   :  { %v2211_v5 = vsel %vm217_vm0, %v2207_v1, 0.0 }
0x158a   :  { %2212 = vadd.xlane.f32.xlu1 %v2211_v5 }
0x15f5   :  { %v2210_v17 = vpop.xlane.xlu0 %2209 }
0x15f6   :  { %v2214_v45 = vmul.f32 %v2210_v17, %v5515_v43  ;;  %v2514_v17 = vld [vmem:[#allocation2 + $0x2a0] sm:$0xff] }
0x15f8   :  { %v2216_v51 = vadd.f32 1e-05, %v2214_v45 }
0x15fa   :  { %4877 = vrsqrt.f32 %v2216_v51  ;;  %vm2224_vm11 = vweird.f32 %v2216_v51 }
0x15fd   :  { %v2213_v21 = vpop.xlane.xlu1 %2212 }
0x15fe   :  { %v2215_v24 = vmul.f32 %v2213_v21, %v5515_v43 }
0x1600   :  { %v4878_v27 = vpop.eup %4877  ;;  %v2217_v28 = vadd.f32 1e-05, %v2215_v24  ;;  %v4771_v24 = vld [vmem:[%s6187_s5 + $0x15] ss:$0 sm:$0xff] }
0x1601   :  { %v2219_v29 = vmul.f32 %v4878_v27, %v2216_v51  ;;  %vm2225_vm10 = vweird.f32 %v4878_v27 }
0x1602   :  { %4879 = vrsqrt.f32 %v2217_v28  ;;  %vm2226_vm12 = vmor %vm2224_vm11, %vm2225_vm10  ;;  %vm2234_vm14 = vweird.f32 %v2217_v28 }
0x1603   :  { %v2220_v30 = vmul.f32 %v4878_v27, %v2219_v29 }
0x1605   :  { %v2221_v31 = vmul.f32 0.5, %v2220_v30 }
0x1607   :  { %v2222_v32 = vsub.f32 1.5, %v2221_v31 }
0x1608   :  { %v4880_v34 = vpop.eup %4879 }
0x1609   :  { %v2223_v39 = vmul.f32 %v4878_v27, %v2222_v32  ;;  %v2229_v54 = vmul.f32 %v4880_v34, %v2217_v28  ;;  %vm2235_vm13 = vweird.f32 %v4880_v34 }
0x160a   :  { %vm2236_vm15 = vmor %vm2234_vm14, %vm2235_vm13 }
0x160b   :  { %v2227_v37 = vsel %vm2226_vm12, %v4878_v27, %v2223_v39  ;;  %v2230_v38 = vmul.f32 %v4880_v34, %v2229_v54 }
0x160c   :  { %v2238_v42 = vmul.f32 %v2227_v37, %v5708_v49 }
0x160d   :  { %v2231_v56 = vmul.f32 0.5, %v2230_v38 }
0x160e   :  { %v2243_v60 = vmul.f32 %v4764_v35, %v2238_v42 }
0x160f   :  { %v2232_v4 = vsub.f32 1.5, %v2231_v56 }
0x1610   :  { %v5728_v59 = vadd.f32 %v4765_v40, %v2243_v60  ;;  %v2696_v60 = vld [vmem:[#allocation2 + $0x1d8] sm:$0xff] }
0x1611   :  { %v2233_v41 = vmul.f32 %v4880_v34, %v2232_v4  ;;  %v2695_v4 = vld [vmem:[#allocation2 + $0x1d0] sm:$0xff] }
0x1612   :  { %4565 = vmatmul.msk.f32.vlgmr.msrb.gmra.mxu2 %vm217_vm0, %v5728_v59  ;;  %4568 = vmatmul.msk.f32.vlgmr.msra.gmra.mxu3 %vm217_vm0, %v5728_v59 }
0x1613   :  { %v2237_v46 = vsel %vm2236_vm15, %v4880_v34, %v2233_v41  ;;  %4571 = vmatmul.msk.f32.vlgmr.msra.gmra.mxu0 %vm217_vm0, %v5728_v59  ;;  %v2694_v41 = vld [vmem:[#allocation2 + $0x1c8] sm:$0xff] }
0x1614   :  { %v2239_v6 = vmul.f32 %v2237_v46, %v5714_v62  ;;  %v4767_v62 = vld [vmem:[%s6187_s5 + $0xc] ss:$0 sm:$0xff]  ;;  %v2693_v46 = vld [vmem:[#allocation2 + $0x1c0] sm:$0xff] }
0x1616   :  { %v2244_v58 = vmul.f32 %v4764_v35, %v2239_v6 }
0x1618   :  { %v5737_v33 = vadd.f32 %v4765_v40, %v2244_v58 }
0x161a   :  { %4566 = vmatmul.msk.f32.gmra.mxu2 %vm217_vm0, %v5737_v33  ;;  %4569 = vmatmul.msk.f32.gmra.mxu3 %vm217_vm0, %v5737_v33 }
0x161b   :  { %4572 = vmatmul.msk.f32.gmra.mxu0 %vm217_vm0, %v5737_v33 }
0x1622   :  { %4581 = vmatmul.msk.f32.vlgmr.msrb.gmra.mxu3 %vm217_vm0, %v5728_v59 }
0x1623   :  { %4584 = vmatmul.msk.f32.vlgmr.msrb.gmra.mxu0 %vm217_vm0, %v5728_v59 }
0x162a   :  { %4582 = vmatmul.msk.f32.gmra.mxu3 %vm217_vm0, %v5737_v33 }
0x162b   :  { %4585 = vmatmul.msk.f32.gmra.mxu0 %vm217_vm0, %v5737_v33 }
0x1690   :  { %v2351_v3 = vpop.f32.mrf.mxu0 }
0x1691   :  { %v2352_v50 = vadd.f32 %v4766_v48, %v2351_v3  ;;  %v4770_v3 = vld [vmem:[%s6187_s5 + $0xd] ss:$0 sm:$0xff] }
0x1695   :  { %v2318_v47 = vpop.f32.mrf.mxu3  ;;  %v2283_v55 = vpop.f32.mrf.mxu2 }
0x1696   :  { %v2284_v9 = vadd.f32 %v4767_v62, %v2283_v55  ;;  %v2319_v44 = vadd.f32 %v4768_v61, %v2318_v47 }
0x1698   :  { %v2354_v49 = vpop.f32.mrf.mxu0  ;;  %v2289_v11 = vmul.f32 0.35355338, %v2284_v9 }
0x1699   :  { %v2355_v36 = vadd.f32 %v4766_v48, %v2354_v49 }
0x169b   :  { %2434 = vmatpush.msra.mxu2 %v2355_v36 }
0x169d   :  { %2435 = vmatpush.msra.mxu2 %v2352_v50  ;;  %v2321_v1 = vpop.f32.mrf.mxu3  ;;  %v2286_v63 = vpop.f32.mrf.mxu2 }
0x169e   :  { %v2322_v5 = vadd.f32 %v4768_v61, %v2321_v1  ;;  %v2287_v0 = vadd.f32 %v4767_v62, %v2286_v63  ;;  %v4579_v61 = vld [vmem:[%s6188_s12 + $0x20] sm:$0xff] }
0x16a0   :  { %v2507_v7 = vpop.f32.mrf.mxu0  ;;  %4573 = vmatpush.xpose.msk.msra.mxu1 %vm315_vm1, %v2322_v5  ;;  %v2290_v45 = vmul.f32 0.35355338, %v2287_v0 }
0x16a1   :  { %v2508_v51 = vadd.f32 %v4769_v13, %v2507_v7 }
0x16a4   :  { %4574 = vmatpush.xpose.msk.msra.mxu1 %vm315_vm1, %v2319_v44 }
0x16a5   :  { %v2472_v58 = vpop.f32.mrf.mxu3 }
0x16a6   :  { %v2473_v48 = vadd.f32 %v4770_v3, %v2472_v58 }
0x16a7   :  { %4575 = vmatmul.msk.f32.vlgmr.msra.gmra.mxu1 %vm315_vm1, %v2289_v11 }
0x16a8   :  { %2535 = vmatpush.msrb.mxu1 %v2517_v10  ;;  %v2510_v15 = vpop.f32.mrf.mxu0  ;;  %v2478_v49 = vmul.f32 0.35355338, %v2473_v48  ;;  %v2949_v48 = vld [vmem:[#allocation2 + $0x268] sm:$0xff] }
0x16a9   :  { %v2511_v16 = vadd.f32 %v4769_v13, %v2510_v15 }
0x16aa   :  { %2536 = vmatpush.msrb.mxu1 %v2516_v12 }
0x16ab   :  { %4589 = vmatpush.xpose.msk.msrb.mxu2 %vm315_vm1, %v2511_v16 }
0x16ac   :  { %2537 = vmatpush.msrb.mxu1 %v2515_v14 }
0x16ad   :  { %v2475_v36 = vpop.f32.mrf.mxu3 }
0x16ae   :  { %2538 = vmatpush.msrb.mxu1 %v2514_v17  ;;  %v2476_v50 = vadd.f32 %v4770_v3, %v2475_v36  ;;  %v2950_v3 = vld [vmem:[#allocation2 + $0x270] sm:$0xff]  ;;  %v2948_v36 = vld [vmem:[#allocation2 + $0x260] sm:$0xff] }
0x16af   :  { %4590 = vmatpush.xpose.msk.msrb.mxu2 %vm315_vm1, %v2508_v51  ;;  %4576 = vmatmul.msk.f32.gmra.mxu1 %vm315_vm1, %v2290_v45 }
0x16b0   :  { %v2479_v55 = vmul.f32 0.35355338, %v2476_v50  ;;  %2684 = vmatpush.msra.mxu1 %v4579_v61 }
0x16b7   :  { %4587 = vmatmul.msk.f32.vlgmr.msrb.gmra.mxu1 %vm217_vm0, %v5728_v59 }
0x16bf   :  { %4588 = vmatmul.msk.f32.gmra.mxu1 %vm217_vm0, %v5737_v33 }
0x1724   :  { %v2386_v52 = vpop.f32.mrf.mxu1 }
0x1725   :  { %v2387_v18 = vadd.f32 %v2386_v52, %v5356_v53  ;;  %v2731_v52 = vld [vmem:[#allocation2 + $0x258] sm:$0xff] }
0x1727   :  { %v2392_v19 = vsel %vm351_vm5, %v2387_v18, -inf }
0x1728   :  { %2393 = vmax.xlane.f32.xlu2 %v2392_v19  ;;  %v2729_v19 = vld [vmem:[#allocation2 + $0x248] sm:$0xff] }
0x172c   :  { %v2389_v20 = vpop.f32.mrf.mxu1 }
0x172d   :  { %v2390_v21 = vadd.f32 %v2389_v20, %v5368_v57  ;;  %v2728_v20 = vld [vmem:[#allocation2 + $0x240] sm:$0xff] }
0x172f   :  { %v2395_v22 = vsel %vm351_vm5, %v2390_v21, -inf }
0x1730   :  { %2396 = vmax.xlane.f32.xlu0 %v2395_v22 }
0x1734   :  { %v2540_v23 = vpop.f32.mrf.mxu1 }
0x1735   :  { %v2541_v27 = vadd.f32 %v4771_v24, %v2540_v23 }
0x173c   :  { %v2543_v25 = vpop.f32.mrf.mxu1 }
0x173d   :  { %v2544_v26 = vadd.f32 %v4771_v24, %v2543_v25 }
0x173f   :  { %2623 = vmatpush.msra.mxu3 %v2544_v26 }
0x1741   :  { %2624 = vmatpush.msra.mxu3 %v2541_v27  ;;  %v4595_v27 = vld [vmem:[%s6188_s12 + $0x28] sm:$0xff] }
0x1742   :  { %2655 = vmatpush.msra.mxu0 %v4595_v27 }
0x1743   :  { %2749 = vmatpush.msrb.mxu3 %v2731_v52 }
0x179b   :  { %v2394_v28 = vpop.xlane.xlu2 %2393 }
0x179c   :  { %v2398_v29 = vsub.f32 %v2387_v18, %v2394_v28  ;;  %v2730_v18 = vld [vmem:[#allocation2 + $0x250] sm:$0xff]  ;;  %v2764_v28 = vld [vmem:[#allocation2 + $0x2d8] sm:$0xff] }
0x179d   :  { %2750 = vmatpush.msrb.mxu3 %v2730_v18  ;;  %2782 = vmatpush.msrb.mxu0 %v2764_v28 }
0x179e   :  { %v2400_v30 = vmul.f32 1.442695, %v2398_v29  ;;  %v2763_v29 = vld [vmem:[#allocation2 + $0x2d0] sm:$0xff] }
0x179f   :  { %2751 = vmatpush.msrb.mxu3 %v2729_v19  ;;  %2783 = vmatpush.msrb.mxu0 %v2763_v29  ;;  %v2984_v29 = vld [vmem:[#allocation2 + $0x2f8] sm:$0xff] }
0x17a0   :  { %4881 = vpow2.f32 %v2400_v30  ;;  %v2762_v30 = vld [vmem:[#allocation2 + $0x2c8] sm:$0xff] }
0x17a1   :  { %2752 = vmatpush.msrb.mxu3 %v2728_v20  ;;  %2784 = vmatpush.msrb.mxu0 %v2762_v30  ;;  %v2983_v30 = vld [vmem:[#allocation2 + $0x2f0] sm:$0xff] }
0x17a3   :  { %v2397_v31 = vpop.xlane.xlu0 %2396 }
0x17a4   :  { %v2399_v32 = vsub.f32 %v2390_v21, %v2397_v31  ;;  %v2761_v31 = vld [vmem:[#allocation2 + $0x2c0] sm:$0xff] }
0x17a5   :  { %2785 = vmatpush.msrb.mxu0 %v2761_v31  ;;  %v2982_v31 = vld [vmem:[#allocation2 + $0x2e8] sm:$0xff] }
0x17a6   :  { %v4882_v34 = vpop.eup %4881  ;;  %v2402_v39 = vmul.f32 1.442695, %v2399_v32  ;;  %v2916_v32 = vld [vmem:[#allocation2 + $0x1f8] sm:$0xff] }
0x17a7   :  { %v2404_v54 = vsel %vm351_vm5, %v4882_v34, 0.0 }
0x17a8   :  { %4883 = vpow2.f32 %v2402_v39  ;;  %2405 = vadd.xlane.f32.xlu1 %v2404_v54  ;;  %v2915_v39 = vld [vmem:[#allocation2 + $0x1f0] sm:$0xff]  ;;  %v2914_v54 = vld [vmem:[#allocation2 + $0x1e8] sm:$0xff] }
0x17ae   :  { %v4884_v35 = vpop.eup %4883 }
0x17af   :  { %v2407_v37 = vsel %vm351_vm5, %v4884_v35, 0.0 }
0x17b0   :  { %2408 = vadd.xlane.f32.xlu2 %v2407_v37 }
0x181b   :  { %v2406_v38 = vpop.xlane.xlu1 %2405 }
0x181c   :  { %4885 = vrcp.f32 %v2406_v38 }
0x1822   :  { %v4886_v40 = vpop.eup %4885 }
0x1823   :  { %v2412_v42 = vmul.f32 %v4886_v40, %v4882_v34  ;;  %v2409_v56 = vpop.xlane.xlu2 %2408 }
0x1824   :  { %4887 = vrcp.f32 %v2409_v56  ;;  %v4772_v56 = vld [vmem:[%s6187_s5 + $0xe] ss:$0 sm:$0xff] }
0x1825   :  { %4577 = vmatmul.msk.f32.vlgmr.msra.gmra.mxu2 %vm351_vm5, %v2412_v42  ;;  %v4773_v42 = vld [vmem:[%s6187_s5 + $0x12] ss:$0 sm:$0xff] }
0x1826   :  { %2714 = vmatpush.msra.mxu2 %v2696_v60 }
0x1828   :  { %2715 = vmatpush.msra.mxu2 %v2695_v4 }
0x182a   :  { %v4888_v6 = vpop.eup %4887  ;;  %2716 = vmatpush.msra.mxu2 %v2694_v41 }
0x182b   :  { %v2413_v47 = vmul.f32 %v4888_v6, %v4884_v35  ;;  %v2913_v35 = vld [vmem:[#allocation2 + $0x1e0] sm:$0xff]  ;;  %v2951_v6 = vld [vmem:[#allocation2 + $0x278] sm:$0xff] }
0x182c   :  { %2717 = vmatpush.msra.mxu2 %v2693_v46 }
0x182d   :  { %4578 = vmatmul.msk.f32.gmra.mxu2 %vm351_vm5, %v2413_v47 }
0x1835   :  { %4591 = vmatmul.msk.f32.vlgmr.msrb.gmra.mxu2 %vm315_vm1, %v2478_v49 }
0x183d   :  { %4592 = vmatmul.msk.f32.gmra.mxu2 %vm315_vm1, %v2479_v55 }
0x1845   :  { %4601 = vmatmul.msk.f32.vlgmr.msra.gmra.mxu2 %vm217_vm0, %v5728_v59 }
0x184d   :  { %4602 = vmatmul.msk.f32.gmra.mxu2 %vm217_vm0, %v5737_v33 }
0x18a8   :  { %v2437_v62 = vpop.f32.mrf.mxu2 }
0x18a9   :  { %4598 = vmatmul.msk.f32.vlgmr.msra.gmra.mxu1 %vm315_vm1, %v2437_v62 }
0x18b0   :  { %v2440_v1 = vpop.f32.mrf.mxu2 }
0x18b1   :  { %4599 = vmatmul.msk.f32.gmra.mxu1 %vm315_vm1, %v2440_v1 }
0x18b8   :  { %v2575_v5 = vpop.f32.mrf.mxu2 }
0x18b9   :  { %v2576_v7 = vadd.f32 %v2575_v5, %v5356_v53 }
0x18bb   :  { %v2581_v9 = vsel %vm351_vm5, %v2576_v7, -inf }
0x18bc   :  { %2582 = vmax.xlane.f32.xlu0 %v2581_v9  ;;  %v4774_v9 = vld [vmem:[%s6187_s5 + $0x16] ss:$0 sm:$0xff] }
0x18c0   :  { %v2578_v44 = vpop.f32.mrf.mxu2 }
0x18c1   :  { %v2579_v10 = vadd.f32 %v2578_v44, %v5368_v57 }
0x18c3   :  { %v2584_v11 = vsel %vm351_vm5, %v2579_v10, -inf }
0x18c4   :  { %2585 = vmax.xlane.f32.xlu1 %v2584_v11  ;;  %v4615_v11 = vld [vmem:[%s6188_s12 + $0x30] sm:$0xff] }
0x18c8   :  { %v2719_v40 = vpop.f32.mrf.mxu2 }
0x18c9   :  { %v2720_v41 = vadd.f32 %v4772_v56, %v2719_v40 }
0x18cb   :  { %v2725_v58 = vmul.f32 0.35355338, %v2720_v41 }
0x18d0   :  { %v2722_v47 = vpop.f32.mrf.mxu2 }
0x18d1   :  { %v2723_v49 = vadd.f32 %v4772_v56, %v2722_v47  ;;  %v4775_v56 = vld [vmem:[%s6187_s5 + $0xf] ss:$0 sm:$0xff]  ;;  %v4777_v47 = vld [vmem:[%s6187_s5 + $0x17] ss:$0 sm:$0xff] }
0x18d3   :  { %v2726_v50 = vmul.f32 0.35355338, %v2723_v49 }
0x1926   :  { %v5839_v55 = vpop.f32.mrf.mxu1 }
0x192e   :  { %v2689_v62 = vpop.f32.mrf.mxu1 }
0x192f   :  { %v2583_v12 = vpop.xlane.xlu0 %2582 }
0x1930   :  { %v2587_v63 = vsub.f32 %v2576_v7, %v2583_v12 }
0x1932   :  { %v2589_v13 = vmul.f32 1.442695, %v2587_v63 }
0x1934   :  { %4889 = vpow2.f32 %v2589_v13 }
0x1937   :  { %v2586_v14 = vpop.xlane.xlu1 %2585 }
0x1938   :  { %v2588_v15 = vsub.f32 %v2579_v10, %v2586_v14 }
0x193a   :  { %v4890_v0 = vpop.eup %4889  ;;  %v2591_v16 = vmul.f32 1.442695, %v2588_v15 }
0x193b   :  { %v2593_v17 = vsel %vm351_vm5, %v4890_v0, 0.0 }
0x193c   :  { %4891 = vpow2.f32 %v2591_v16  ;;  %2594 = vadd.xlane.f32.xlu2 %v2593_v17 }
0x1942   :  { %v4892_v45 = vpop.eup %4891 }
0x1943   :  { %v2596_v51 = vsel %vm351_vm5, %v4892_v45, 0.0 }
0x1944   :  { %2597 = vadd.xlane.f32.xlu0 %v2596_v51 }
0x19af   :  { %v2595_v21 = vpop.xlane.xlu2 %2594 }
0x19b0   :  { %4893 = vrcp.f32 %v2595_v21 }
0x19b6   :  { %v4894_v22 = vpop.eup %4893 }
0x19b7   :  { %v2601_v23 = vmul.f32 %v4894_v22, %v4890_v0  ;;  %v2598_v24 = vpop.xlane.xlu0 %2597 }
0x19b8   :  { %4895 = vrcp.f32 %v2598_v24 }
0x19b9   :  { %4593 = vmatmul.msk.f32.vlgmr.msra.gmra.mxu3 %vm351_vm5, %v2601_v23 }
0x19ba   :  { %2902 = vmatpush.msra.mxu3 %v4615_v11 }
0x19be   :  { %v4896_v25 = vpop.eup %4895 }
0x19bf   :  { %v2602_v26 = vmul.f32 %v4896_v25, %v4892_v45  ;;  %v4776_v45 = vld [vmem:[%s6187_s5 + $0x13] ss:$0 sm:$0xff] }
0x19c1   :  { %4594 = vmatmul.msk.f32.gmra.mxu3 %vm351_vm5, %v2602_v26 }
0x19c9   :  { %4604 = vmatmul.msk.f32.vlgmr.msrb.gmra.mxu3 %vm217_vm0, %v5728_v59 }
0x19d1   :  { %4605 = vmatmul.msk.f32.gmra.mxu3 %vm217_vm0, %v5737_v33 }
0x1a3c   :  { %v2626_v34 = vpop.f32.mrf.mxu3 }
0x1a3d   :  { %4596 = vmatmul.msk.f32.vlgmr.msra.gmra.mxu0 %vm315_vm1, %v2626_v34 }
0x1a3e   :  { %2934 = vmatpush.msra.mxu0 %v2916_v32  ;;  %v2981_v32 = vld [vmem:[#allocation2 + $0x2e0] sm:$0xff] }
0x1a40   :  { %2935 = vmatpush.msra.mxu0 %v2915_v39 }
0x1a42   :  { %2936 = vmatpush.msra.mxu0 %v2914_v54 }
0x1a44   :  { %v2629_v37 = vpop.f32.mrf.mxu3  ;;  %2937 = vmatpush.msra.mxu0 %v2913_v35 }
0x1a45   :  { %4597 = vmatmul.msk.f32.gmra.mxu0 %vm315_vm1, %v2629_v37 }
0x1a4c   :  { %v2754_v38 = vpop.f32.mrf.mxu3 }
0x1a4d   :  { %4607 = vmatmul.msk.f32.vlgmr.msrb.gmra.mxu0 %vm217_vm0, %v5728_v59  ;;  %v2755_v46 = vadd.f32 %v4773_v42, %v2754_v38 }
0x1a54   :  { %v2757_v60 = vpop.f32.mrf.mxu3 }
0x1a55   :  { %v2758_v4 = vadd.f32 %v4773_v42, %v2757_v60  ;;  %4608 = vmatmul.msk.f32.gmra.mxu0 %vm217_vm0, %v5737_v33 }
0x1a57   :  { %4609 = vmatpush.xpose.msk.msrb.mxu1 %vm315_vm1, %v2758_v4 }
0x1a5b   :  { %4610 = vmatpush.xpose.msk.msrb.mxu1 %vm315_vm1, %v2755_v46 }
0x1a5d   :  { %4619 = vmatmul.msk.f32.vlgmr.msra.gmra.mxu0 %vm217_vm0, %v5728_v59 }
0x1a5e   :  { %4611 = vmatmul.msk.f32.vlgmr.msrb.gmra.mxu1 %vm315_vm1, %v2725_v58 }
0x1a5f   :  { %2969 = vmatpush.msra.mxu1 %v2951_v6 }
0x1a61   :  { %2970 = vmatpush.msra.mxu1 %v2950_v3 }
0x1a63   :  { %2971 = vmatpush.msra.mxu1 %v2949_v48 }
0x1a65   :  { %2972 = vmatpush.msra.mxu1 %v2948_v36  ;;  %4620 = vmatmul.msk.f32.gmra.mxu0 %vm217_vm0, %v5737_v33 }
0x1a66   :  { %4612 = vmatmul.msk.f32.gmra.mxu1 %vm315_vm1, %v2726_v50 }
0x1a6e   :  { %4622 = vmatmul.msk.f32.vlgmr.msra.gmra.mxu1 %vm217_vm0, %v5728_v59 }
0x1a76   :  { %4623 = vmatmul.msk.f32.gmra.mxu1 %vm217_vm0, %v5737_v33 }
0x1aba   :  { %v5841_v61 = vpop.f32.mrf.mxu0 }
0x1abb   :  { %v2687_v50 = vadd.f32 %v5839_v55, %v5841_v61 }
0x1ac2   :  { %v2660_v1 = vpop.f32.mrf.mxu0 }
0x1ac3   :  { %v5843_v5 = vadd.f32 %v2689_v62, %v2660_v1 }
0x1aca   :  { %v2787_v7 = vpop.f32.mrf.mxu0 }
0x1acb   :  { %v2788_v12 = vadd.f32 %v4774_v9, %v2787_v7 }
0x1ad2   :  { %v2790_v44 = vpop.f32.mrf.mxu0 }
0x1ad3   :  { %v2791_v10 = vadd.f32 %v4774_v9, %v2790_v44 }
0x1ad5   :  { %2870 = vmatpush.msrb.mxu2 %v2791_v10 }
0x1ad7   :  { %2871 = vmatpush.msrb.mxu2 %v2788_v12 }
0x1ad9   :  { %3002 = vmatpush.msra.mxu2 %v2984_v29 }
0x1ada   :  { %v2939_v42 = vpop.f32.mrf.mxu0 }
0x1adb   :  { %v2822_v63 = vpop.f32.mrf.mxu1  ;;  %3003 = vmatpush.msra.mxu2 %v2983_v30  ;;  %v2940_v4 = vadd.f32 %v4775_v56, %v2939_v42 }
0x1adc   :  { %v2823_v13 = vadd.f32 %v2822_v63, %v5356_v53 }
0x1add   :  { %3004 = vmatpush.msra.mxu2 %v2982_v31  ;;  %v2945_v41 = vmul.f32 0.35355338, %v2940_v4 }
0x1ade   :  { %v2828_v14 = vsel %vm351_vm5, %v2823_v13, -inf }
0x1adf   :  { %2829 = vmax.xlane.f32.xlu1 %v2828_v14  ;;  %3005 = vmatpush.msra.mxu2 %v2981_v32 }
0x1ae2   :  { %v2942_v46 = vpop.f32.mrf.mxu0 }
0x1ae3   :  { %v2825_v15 = vpop.f32.mrf.mxu1  ;;  %v2943_v58 = vadd.f32 %v4775_v56, %v2942_v46  ;;  %v3242_v46 = vld [vmem:[#allocation5 + $0x208] sm:$0xff] }
0x1ae4   :  { %v2826_v0 = vadd.f32 %v2825_v15, %v5368_v57 }
0x1ae5   :  { %v2946_v3 = vmul.f32 0.35355338, %v2943_v58  ;;  %v5912_v58 = vld [vmem:[%s6190_s29] sm:$0xff] }
0x1ae6   :  { %v2831_v16 = vsel %vm351_vm5, %v2826_v0, -inf }
0x1ae7   :  { %2832 = vmax.xlane.f32.xlu2 %v2831_v16 }
0x1aeb   :  { %v2974_v17 = vpop.f32.mrf.mxu1 }
0x1aec   :  { %v2975_v18 = vadd.f32 %v4776_v45, %v2974_v17 }
0x1af3   :  { %v2977_v51 = vpop.f32.mrf.mxu1 }
0x1af4   :  { %v2978_v52 = vadd.f32 %v4776_v45, %v2977_v51 }
0x1af6   :  { %4627 = vmatpush.xpose.msk.msrb.mxu3 %vm315_vm1, %v2978_v52 }
0x1afa   :  { %4628 = vmatpush.xpose.msk.msrb.mxu3 %vm315_vm1, %v2975_v18 }
0x1b52   :  { %v2830_v19 = vpop.xlane.xlu1 %2829 }
0x1b53   :  { %v2834_v20 = vsub.f32 %v2823_v13, %v2830_v19 }
0x1b55   :  { %v2836_v21 = vmul.f32 1.442695, %v2834_v20 }
0x1b57   :  { %4897 = vpow2.f32 %v2836_v21 }
0x1b5a   :  { %v2833_v22 = vpop.xlane.xlu2 %2832 }
0x1b5b   :  { %v2835_v23 = vsub.f32 %v2826_v0, %v2833_v22 }
0x1b5d   :  { %v4898_v24 = vpop.eup %4897  ;;  %v2838_v25 = vmul.f32 1.442695, %v2835_v23 }
0x1b5e   :  { %v2840_v26 = vsel %vm351_vm5, %v4898_v24, 0.0 }
0x1b5f   :  { %4899 = vpow2.f32 %v2838_v25  ;;  %2841 = vadd.xlane.f32.xlu0 %v2840_v26 }
0x1b65   :  { %v4900_v27 = vpop.eup %4899 }
0x1b66   :  { %v2843_v28 = vsel %vm351_vm5, %v4900_v27, 0.0 }
0x1b67   :  { %2844 = vadd.xlane.f32.xlu1 %v2843_v28 }
0x1bd2   :  { %v2842_v34 = vpop.xlane.xlu0 %2841 }
0x1bd3   :  { %4901 = vrcp.f32 %v2842_v34 }
0x1bd9   :  { %v4902_v39 = vpop.eup %4901 }
0x1bda   :  { %v2848_v54 = vmul.f32 %v4902_v39, %v4898_v24  ;;  %v2845_v35 = vpop.xlane.xlu1 %2844  ;;  %v4778_v24 = vld [vmem:[%s6189_s26 + $0x1] ss:$0 sm:$0xff] }
0x1bdb   :  { %4903 = vrcp.f32 %v2845_v35  ;;  %v3243_v35 = vld [vmem:[#allocation5 + $0x210] sm:$0xff] }
0x1bdc   :  { %4613 = vmatmul.msk.f32.vlgmr.msrb.gmra.mxu2 %vm351_vm5, %v2848_v54  ;;  %v3244_v54 = vld [vmem:[#allocation5 + $0x218] sm:$0xff] }
0x1be1   :  { %v4904_v37 = vpop.eup %4903 }
0x1be2   :  { %v2849_v38 = vmul.f32 %v4904_v37, %v4900_v27 }
0x1be4   :  { %4614 = vmatmul.msk.f32.gmra.mxu2 %vm351_vm5, %v2849_v38 }
0x1bec   :  { %4625 = vmatmul.msk.f32.vlgmr.msra.gmra.mxu2 %vm217_vm0, %v5728_v59 }
0x1bf4   :  { %4626 = vmatmul.msk.f32.gmra.mxu2 %vm217_vm0, %v5737_v33 }
0x1c5f   :  { %v2873_v40 = vpop.f32.mrf.mxu2 }
0x1c60   :  { %4616 = vmatmul.msk.f32.vlgmr.msra.gmra.mxu3 %vm315_vm1, %v2873_v40 }
0x1c61   :  { %3262 = vmatpush.msra.mxu3 %v3244_v54 }
0x1c63   :  { %3263 = vmatpush.msra.mxu3 %v3243_v35 }
0x1c65   :  { %3264 = vmatpush.msra.mxu3 %v3242_v46 }
0x1c67   :  { %v2876_v60 = vpop.f32.mrf.mxu2 }
0x1c68   :  { %4617 = vmatmul.msk.f32.gmra.mxu3 %vm315_vm1, %v2876_v60 }
0x1c6f   :  { %v3007_v6 = vpop.f32.mrf.mxu2 }
0x1c70   :  { %4629 = vmatmul.msk.f32.vlgmr.msrb.gmra.mxu3 %vm315_vm1, %v2945_v41  ;;  %v3008_v36 = vadd.f32 %v4777_v47, %v3007_v6  ;;  %v3241_v6 = vld [vmem:[#allocation5 + $0x200] sm:$0xff] }
0x1c71   :  { %3265 = vmatpush.msra.mxu3 %v3241_v6 }
0x1c77   :  { %v3010_v48 = vpop.f32.mrf.mxu2 }
0x1c78   :  { %v3011_v49 = vadd.f32 %v4777_v47, %v3010_v48  ;;  %4630 = vmatmul.msk.f32.gmra.mxu3 %vm315_vm1, %v2946_v3  ;;  %v5919_v3 = vld [vmem:[%s6190_s29 + $0x8] sm:$0xff]  ;;  %v3203_v47 = vld [vmem:[#allocation5 + $0x198] sm:$0xff] }
0x1c79   :  { %v3398_v48 = vld [vmem:[#allocation5 + $0x1b8] sm:$0xff]  ;;  %3227 = vmatpush.msrb.mxu2 %v3203_v47 }
0x1c7a   :  { %3090 = vmatpush.msrb.mxu0 %v3011_v49  ;;  %3416 = vmatpush.msrb.mxu3 %v3398_v48  ;;  %v3202_v49 = vld [vmem:[#allocation5 + $0x190] sm:$0xff] }
0x1c7b   :  { %3228 = vmatpush.msrb.mxu2 %v3202_v49 }
0x1c7c   :  { %3091 = vmatpush.msrb.mxu0 %v3008_v36  ;;  %v3397_v36 = vld [vmem:[#allocation5 + $0x1b0] sm:$0xff] }
0x1c7d   :  { %3417 = vmatpush.msrb.mxu3 %v3397_v36 }
0x1c80   :  { %4641 = vmatmul.msk.f32.vlgmr.msra.gmra.mxu3 %vm217_vm0, %v5912_v58 }
0x1c88   :  { %4642 = vmatmul.msk.f32.gmra.mxu3 %vm217_vm0, %v5919_v3 }
0x1ce3   :  { %v2904_v62 = vpop.f32.mrf.mxu3 }
0x1ce4   :  { %v2910_v1 = vadd.f32 %v2904_v62, %v2687_v50  ;;  %v3201_v50 = vld [vmem:[#allocation5 + $0x188] sm:$0xff] }
0x1ce5   :  { %v3396_v62 = vld [vmem:[#allocation5 + $0x1a8] sm:$0xff]  ;;  %3229 = vmatpush.msrb.mxu2 %v3201_v50  ;;  %v4784_v50 = vld [vmem:[#allocation7 + $0x14] ss:$0 sm:$0xff] }
0x1ce6   :  { %3418 = vmatpush.msrb.mxu3 %v3396_v62 }
0x1ceb   :  { %v2907_v7 = vpop.f32.mrf.mxu3 }
0x1cec   :  { %v2911_v9 = vadd.f32 %v2907_v7, %v5843_v5  ;;  %v3395_v7 = vld [vmem:[#allocation5 + $0x1a0] sm:$0xff] }
0x1ced   :  { %3419 = vmatpush.msrb.mxu3 %v3395_v7 }
0x1cf3   :  { %v3042_v44 = vpop.f32.mrf.mxu3 }
0x1cf4   :  { %v3043_v10 = vadd.f32 %v3042_v44, %v5356_v53 }
0x1cf6   :  { %v3048_v11 = vsel %vm351_vm5, %v3043_v10, -inf }
0x1cf7   :  { %3049 = vmax.xlane.f32.xlu2 %v3048_v11 }
0x1cfb   :  { %v3045_v12 = vpop.f32.mrf.mxu3 }
0x1cfc   :  { %v3046_v63 = vadd.f32 %v3045_v12, %v5368_v57  ;;  %v4633_v57 = vld [vmem:[%s6188_s12 + $0x38] sm:$0xff] }
0x1cfd   :  { %3122 = vmatpush.msrb.mxu1 %v4633_v57  ;;  %v4780_v57 = vld [vmem:[%s6156_s15 + $0x1] ss:$0 sm:$0xff] }
0x1cfe   :  { %v3051_v13 = vsel %vm351_vm5, %v3046_v63, -inf }
0x1cff   :  { %3052 = vmax.xlane.f32.xlu0 %v3051_v13 }
0x1d6a   :  { %v3050_v14 = vpop.xlane.xlu2 %3049 }
0x1d6b   :  { %v3054_v15 = vsub.f32 %v3043_v10, %v3050_v14 }
0x1d6d   :  { %v3056_v55 = vmul.f32 1.442695, %v3054_v15 }
0x1d6f   :  { %4905 = vpow2.f32 %v3056_v55 }
0x1d72   :  { %v3053_v61 = vpop.xlane.xlu0 %3052 }
0x1d73   :  { %v3055_v0 = vsub.f32 %v3046_v63, %v3053_v61 }
0x1d75   :  { %v4906_v16 = vpop.eup %4905  ;;  %v3058_v5 = vmul.f32 1.442695, %v3055_v0 }
0x1d76   :  { %v3060_v17 = vsel %vm351_vm5, %v4906_v16, 0.0 }
0x1d77   :  { %4907 = vpow2.f32 %v3058_v5  ;;  %3061 = vadd.xlane.f32.xlu1 %v3060_v17  ;;  %v4779_v17 = vld [vmem:[%s6155_s14 + $0x1] ss:$0 sm:$0xff] }
0x1d7d   :  { %v4908_v53 = vpop.eup %4907 }
0x1d7e   :  { %v3063_v45 = vsel %vm351_vm5, %v4908_v53, 0.0 }
0x1d7f   :  { %3064 = vadd.xlane.f32.xlu2 %v3063_v45 }
0x1dea   :  { %v3062_v51 = vpop.xlane.xlu1 %3061 }
0x1deb   :  { %4909 = vrcp.f32 %v3062_v51 }
0x1df1   :  { %v4910_v52 = vpop.eup %4909 }
0x1df2   :  { %v3068_v18 = vmul.f32 %v4910_v52, %v4906_v16  ;;  %v3065_v19 = vpop.xlane.xlu2 %3064 }
0x1df3   :  { %4911 = vrcp.f32 %v3065_v19 }
0x1df4   :  { %4631 = vmatmul.msk.f32.vlgmr.msrb.gmra.mxu0 %vm351_vm5, %v3068_v18 }
0x1df9   :  { %v4912_v20 = vpop.eup %4911 }
0x1dfa   :  { %v3069_v21 = vmul.f32 %v4912_v20, %v4908_v53 }
0x1dfc   :  { %4632 = vmatmul.msk.f32.gmra.mxu0 %vm351_vm5, %v3069_v21 }
0x1e71   :  { %v3093_v22 = vpop.f32.mrf.mxu0 }
0x1e72   :  { %4634 = vmatmul.msk.f32.vlgmr.msrb.gmra.mxu1 %vm315_vm1, %v3093_v22 }
0x1e79   :  { %v3096_v23 = vpop.f32.mrf.mxu0 }
0x1e7a   :  { %4635 = vmatmul.msk.f32.gmra.mxu1 %vm315_vm1, %v3096_v23 }
0x1eef   :  { %v3124_v25 = vpop.f32.mrf.mxu1 }
0x1ef0   :  { %v3130_v26 = vadd.f32 %v3124_v25, %v2910_v1  ;;  %v3200_v1 = vld [vmem:[#allocation5 + $0x180] sm:$0xff] }
0x1ef1   :  { %3230 = vmatpush.msrb.mxu2 %v3200_v1 }
0x1ef2   :  { %v3137_v27 = vadd.f32 %v4778_v24, %v3130_v26  ;;  %v3267_v26 = vpop.f32.mrf.mxu3 }
0x1ef4   :  { %v3139_v28 = vadd.f32 %v3137_v27, %v5728_v59  ;;  %v4781_v27 = vld [vmem:[#allocation7 + $0x10] ss:$0 sm:$0xff] }
0x1ef6   :  { %v3145_v29 = vsel %vm217_vm0, %v3139_v28, 0.0 }
0x1ef7   :  { %3146 = vadd.xlane.f32.xlu0 %v3145_v29  ;;  %v3127_v30 = vpop.f32.mrf.mxu1 }
0x1ef8   :  { %v3131_v31 = vadd.f32 %v3127_v30, %v2911_v9  ;;  %v3268_v30 = vadd.f32 %v4781_v27, %v3267_v26 }
0x1efa   :  { %v3138_v32 = vadd.f32 %v4778_v24, %v3131_v31  ;;  %v4782_v31 = vld [vmem:[#allocation7 + $0xc] ss:$0 sm:$0xff] }
0x1efc   :  { %v3140_v34 = vadd.f32 %v3138_v32, %v5737_v33 }
0x1efe   :  { %v3148_v39 = vsel %vm217_vm0, %v3140_v34, 0.0 }
0x1eff   :  { %3149 = vadd.xlane.f32.xlu1 %v3148_v39 }
0x1f6a   :  { %v3147_v37 = vpop.xlane.xlu0 %3146 }
0x1f6b   :  { %v3151_v38 = vmul.f32 %v3147_v37, %v5515_v43 }
0x1f6d   :  { %v3153_v40 = vsub.f32 %v3139_v28, %v3151_v38  ;;  %v3270_v28 = vpop.f32.mrf.mxu3  ;;  %v3277_v38 = vld [vmem:[#allocation5 + $0x298] sm:$0xff] }
0x1f6e   :  { %v3271_v29 = vadd.f32 %v4781_v27, %v3270_v28  ;;  %3295 = vmatpush.msra.mxu0 %v3277_v38  ;;  %v3466_v27 = vld [vmem:[#allocation5 + $0x2b8] sm:$0xff]  ;;  %v3465_v28 = vld [vmem:[#allocation5 + $0x2b0] sm:$0xff] }
0x1f6f   :  { %v3155_v59 = vmul.f32 %v3153_v40, %v3153_v40 }
0x1f70   :  { %4645 = vmatpush.xpose.msk.msra.mxu1 %vm315_vm1, %v3271_v29 }
0x1f71   :  { %v3157_v42 = vsel %vm217_vm0, %v3155_v59, 0.0  ;;  %v3275_v59 = vld [vmem:[#allocation5 + $0x288] sm:$0xff] }
0x1f72   :  { %3158 = vadd.xlane.f32.xlu2 %v3157_v42  ;;  %v3150_v56 = vpop.xlane.xlu1 %3149  ;;  %v3274_v42 = vld [vmem:[#allocation5 + $0x280] sm:$0xff] }
0x1f73   :  { %v3152_v60 = vmul.f32 %v3150_v56, %v5515_v43  ;;  %v3433_v56 = vld [vmem:[#allocation5 + $0x238] sm:$0xff] }
0x1f74   :  { %4646 = vmatpush.xpose.msk.msra.mxu1 %vm315_vm1, %v3268_v30  ;;  %v3464_v30 = vld [vmem:[#allocation5 + $0x2a8] sm:$0xff] }
0x1f75   :  { %v5904_v4 = vsub.f32 %v3140_v34, %v3152_v60  ;;  %v3432_v60 = vld [vmem:[#allocation5 + $0x230] sm:$0xff] }
0x1f77   :  { %v3156_v33 = vmul.f32 %v5904_v4, %v5904_v4 }
0x1f78   :  { %3484 = vmatpush.msrb.mxu1 %v3466_v27  ;;  %v4786_v27 = vld [vmem:[#allocation7 + $0xe] ss:$0 sm:$0xff] }
0x1f79   :  { %v3160_v41 = vsel %vm217_vm0, %v3156_v33, 0.0  ;;  %v3430_v33 = vld [vmem:[#allocation5 + $0x220] sm:$0xff] }
0x1f7a   :  { %3161 = vadd.xlane.f32.xlu0 %v3160_v41  ;;  %3485 = vmatpush.msrb.mxu1 %v3465_v28 }
0x1f7c   :  { %3486 = vmatpush.msrb.mxu1 %v3464_v30 }
0x1fe5   :  { %v3159_v9 = vpop.xlane.xlu2 %3158 }
0x1fe6   :  { %v3163_v44 = vmul.f32 %v3159_v9, %v5515_v43 }
0x1fe8   :  { %v3165_v10 = vadd.f32 1e-05, %v3163_v44 }
0x1fea   :  { %4913 = vrsqrt.f32 %v3165_v10  ;;  %vm3173_vm3 = vweird.f32 %v3165_v10 }
0x1fed   :  { %v3162_v11 = vpop.xlane.xlu0 %3161 }
0x1fee   :  { %v3164_v12 = vmul.f32 %v3162_v11, %v5515_v43 }
0x1ff0   :  { %v4914_v63 = vpop.eup %4913  ;;  %v3166_v13 = vadd.f32 1e-05, %v3164_v12 }
0x1ff1   :  { %v3168_v14 = vmul.f32 %v4914_v63, %v3165_v10  ;;  %vm3174_vm2 = vweird.f32 %v4914_v63 }
0x1ff2   :  { %4915 = vrsqrt.f32 %v3166_v13  ;;  %vm3175_vm4 = vmor %vm3173_vm3, %vm3174_vm2  ;;  %vm3183_vm7 = vweird.f32 %v3166_v13 }
0x1ff3   :  { %v3169_v15 = vmul.f32 %v4914_v63, %v3168_v14 }
0x1ff5   :  { %v3170_v55 = vmul.f32 0.5, %v3169_v15 }
0x1ff7   :  { %v3171_v61 = vsub.f32 1.5, %v3170_v55 }
0x1ff8   :  { %v4916_v0 = vpop.eup %4915 }
0x1ff9   :  { %v3172_v16 = vmul.f32 %v4914_v63, %v3171_v61  ;;  %v3178_v5 = vmul.f32 %v4916_v0, %v3166_v13  ;;  %vm3184_vm6 = vweird.f32 %v4916_v0 }
0x1ffa   :  { %vm3185_vm8 = vmor %vm3183_vm7, %vm3184_vm6 }
0x1ffb   :  { %v3176_v53 = vsel %vm3175_vm4, %v4914_v63, %v3172_v16  ;;  %v3179_v45 = vmul.f32 %v4916_v0, %v3178_v5 }
0x1ffc   :  { %v3187_v51 = vmul.f32 %v3176_v53, %v3153_v40  ;;  %v3276_v40 = vld [vmem:[#allocation5 + $0x290] sm:$0xff] }
0x1ffd   :  { %v3180_v52 = vmul.f32 0.5, %v3179_v45  ;;  %3296 = vmatpush.msra.mxu0 %v3276_v40 }
0x1ffe   :  { %v3192_v18 = vmul.f32 %v4779_v17, %v3187_v51 }
0x1fff   :  { %v3181_v19 = vsub.f32 1.5, %v3180_v52  ;;  %3297 = vmatpush.msra.mxu0 %v3275_v59  ;;  %v3645_v52 = vld [vmem:[#allocation5 + $0x1d8] sm:$0xff] }
0x2000   :  { %v5931_v20 = vadd.f32 %v4780_v57, %v3192_v18  ;;  %v3644_v18 = vld [vmem:[#allocation5 + $0x1d0] sm:$0xff] }
0x2001   :  { %v3182_v21 = vmul.f32 %v4916_v0, %v3181_v19  ;;  %3298 = vmatpush.msra.mxu0 %v3274_v42  ;;  %v3643_v19 = vld [vmem:[#allocation5 + $0x1c8] sm:$0xff]  ;;  %v4787_v42 = vld [vmem:[#allocation7 + $0x15] ss:$0 sm:$0xff] }
0x2002   :  { %4639 = vmatmul.msk.f32.vlgmr.msrb.gmra.mxu2 %vm217_vm0, %v5931_v20  ;;  %4651 = vmatmul.msk.f32.vlgmr.msrb.gmra.mxu3 %vm217_vm0, %v5931_v20 }
0x2003   :  { %v3186_v22 = vsel %vm3185_vm8, %v4916_v0, %v3182_v21  ;;  %4643 = vmatmul.msk.f32.vlgmr.msra.gmra.mxu0 %vm217_vm0, %v5912_v58  ;;  %v4785_v0 = vld [vmem:[#allocation7 + $0x11] ss:$0 sm:$0xff]  ;;  %v3642_v21 = vld [vmem:[#allocation5 + $0x1c0] sm:$0xff] }
0x2004   :  { %v3188_v23 = vmul.f32 %v3186_v22, %v5904_v4  ;;  %3451 = vmatpush.msrb.mxu0 %v3433_v56  ;;  %v3431_v4 = vld [vmem:[#allocation5 + $0x228] sm:$0xff] }
0x2006   :  { %v3193_v24 = vmul.f32 %v4779_v17, %v3188_v23  ;;  %3452 = vmatpush.msrb.mxu0 %v3432_v60 }
0x2008   :  { %v5938_v25 = vadd.f32 %v4780_v57, %v3193_v24  ;;  %3453 = vmatpush.msrb.mxu0 %v3431_v4  ;;  %v4783_v24 = vld [vmem:[#allocation7 + $0xd] ss:$0 sm:$0xff] }
0x200a   :  { %4640 = vmatmul.msk.f32.gmra.mxu2 %vm217_vm0, %v5938_v25  ;;  %4652 = vmatmul.msk.f32.gmra.mxu3 %vm217_vm0, %v5938_v25 }
0x200b   :  { %3454 = vmatpush.msrb.mxu0 %v3430_v33 }
0x200c   :  { %4644 = vmatmul.msk.f32.gmra.mxu0 %vm217_vm0, %v5919_v3 }
0x2014   :  { %4653 = vmatmul.msk.f32.vlgmr.msrb.gmra.mxu0 %vm217_vm0, %v5912_v58 }
0x201c   :  { %4654 = vmatmul.msk.f32.gmra.mxu0 %vm217_vm0, %v5919_v3 }
0x2080   :  { %v3300_v36 = vpop.f32.mrf.mxu0 }
0x2081   :  { %v3301_v44 = vadd.f32 %v4784_v50, %v3300_v36 }
0x2085   :  { %v3232_v32 = vpop.f32.mrf.mxu2  ;;  %v3421_v23 = vpop.f32.mrf.mxu3 }
0x2086   :  { %v3233_v34 = vadd.f32 %v4782_v31, %v3232_v32  ;;  %v3422_v29 = vadd.f32 %v4783_v24, %v3421_v23 }
0x2088   :  { %v3238_v39 = vmul.f32 0.35355338, %v3233_v34  ;;  %v3427_v32 = vmul.f32 0.35355338, %v3422_v29 }
0x2089   :  { %v3303_v7 = vpop.f32.mrf.mxu0 }
0x208a   :  { %4647 = vmatmul.msk.f32.vlgmr.msra.gmra.mxu1 %vm315_vm1, %v3238_v39  ;;  %v3304_v10 = vadd.f32 %v4784_v50, %v3303_v7 }
0x208c   :  { %3383 = vmatpush.msra.mxu2 %v3304_v10 }
0x208d   :  { %v3235_v54 = vpop.f32.mrf.mxu2  ;;  %v3424_v34 = vpop.f32.mrf.mxu3 }
0x208e   :  { %v3236_v35 = vadd.f32 %v4782_v31, %v3235_v54  ;;  %3384 = vmatpush.msra.mxu2 %v3301_v44  ;;  %v3463_v31 = vld [vmem:[#allocation5 + $0x2a0] sm:$0xff]  ;;  %v3425_v39 = vadd.f32 %v4783_v24, %v3424_v34 }
0x208f   :  { %3487 = vmatpush.msrb.mxu1 %v3463_v31 }
0x2090   :  { %v3239_v37 = vmul.f32 0.35355338, %v3236_v35  ;;  %v3428_v54 = vmul.f32 0.35355338, %v3425_v39  ;;  %v3393_v35 = vld [vmem:[#allocation8 + $0x20] sm:$0xff] }
0x2091   :  { %v3456_v61 = vpop.f32.mrf.mxu0  ;;  %3633 = vmatpush.msra.mxu1 %v3393_v35 }
0x2092   :  { %4648 = vmatmul.msk.f32.gmra.mxu1 %vm315_vm1, %v3239_v37  ;;  %v3457_v17 = vadd.f32 %v4785_v0, %v3456_v61 }
0x2099   :  { %v3459_v16 = vpop.f32.mrf.mxu0 }
0x209a   :  { %v3460_v5 = vadd.f32 %v4785_v0, %v3459_v16  ;;  %4655 = vmatmul.msk.f32.vlgmr.msrb.gmra.mxu1 %vm217_vm0, %v5912_v58 }
0x209c   :  { %4657 = vmatpush.xpose.msk.msrb.mxu2 %vm315_vm1, %v3460_v5  ;;  %v3582_v5 = vld [vmem:[#allocation8 + $0x28] sm:$0xff] }
0x209d   :  { %3604 = vmatpush.msra.mxu0 %v3582_v5 }
0x20a0   :  { %4658 = vmatpush.xpose.msk.msrb.mxu2 %vm315_vm1, %v3457_v17  ;;  %v3713_v17 = vld [vmem:[#allocation5 + $0x2d8] sm:$0xff] }
0x20a1   :  { %3731 = vmatpush.msrb.mxu0 %v3713_v17 }
0x20a2   :  { %4656 = vmatmul.msk.f32.gmra.mxu1 %vm217_vm0, %v5919_v3 }
0x2107   :  { %v3335_v41 = vpop.f32.mrf.mxu1 }
0x2108   :  { %v3336_v46 = vadd.f32 %v3335_v41, %v5572_v2 }
0x210a   :  { %v3341_v6 = vsel %vm351_vm5, %v3336_v46, -inf }
0x210b   :  { %3342 = vmax.xlane.f32.xlu1 %v3341_v6 }
0x210f   :  { %v3338_v47 = vpop.f32.mrf.mxu1 }
0x2110   :  { %v3339_v48 = vadd.f32 %v3338_v47, %v5582_v8 }
0x2112   :  { %v3344_v49 = vsel %vm351_vm5, %v3339_v48, -inf }
0x2113   :  { %3345 = vmax.xlane.f32.xlu2 %v3344_v49 }
0x2117   :  { %v3489_v40 = vpop.f32.mrf.mxu1 }
0x2118   :  { %v3490_v33 = vadd.f32 %v4787_v42, %v3489_v40 }
0x211f   :  { %v3492_v4 = vpop.f32.mrf.mxu1 }
0x2120   :  { %v3493_v41 = vadd.f32 %v4787_v42, %v3492_v4 }
0x2122   :  { %3572 = vmatpush.msra.mxu3 %v3493_v41 }
0x2124   :  { %3573 = vmatpush.msra.mxu3 %v3490_v33 }
0x217e   :  { %v3343_v62 = vpop.xlane.xlu1 %3342 }
0x217f   :  { %v3347_v1 = vsub.f32 %v3336_v46, %v3343_v62 }
0x2181   :  { %v3349_v9 = vmul.f32 1.442695, %v3347_v1 }
0x2183   :  { %4917 = vpow2.f32 %v3349_v9 }
0x2186   :  { %v3346_v11 = vpop.xlane.xlu2 %3345 }
0x2187   :  { %v3348_v12 = vsub.f32 %v3339_v48, %v3346_v11  ;;  %v3680_v11 = vld [vmem:[#allocation5 + $0x258] sm:$0xff] }
0x2188   :  { %3698 = vmatpush.msrb.mxu3 %v3680_v11 }
0x2189   :  { %v4918_v63 = vpop.eup %4917  ;;  %v3351_v13 = vmul.f32 1.442695, %v3348_v12  ;;  %v3679_v12 = vld [vmem:[#allocation5 + $0x250] sm:$0xff] }
0x218a   :  { %v3353_v14 = vsel %vm351_vm5, %v4918_v63, 0.0  ;;  %3699 = vmatpush.msrb.mxu3 %v3679_v12 }
0x218b   :  { %4919 = vpow2.f32 %v3351_v13  ;;  %3354 = vadd.xlane.f32.xlu0 %v3353_v14  ;;  %v3677_v13 = vld [vmem:[#allocation5 + $0x240] sm:$0xff] }
0x2191   :  { %v4920_v15 = vpop.eup %4919 }
0x2192   :  { %v3356_v55 = vsel %vm351_vm5, %v4920_v15, 0.0 }
0x2193   :  { %3357 = vadd.xlane.f32.xlu1 %v3356_v55 }
0x21fe   :  { %v3355_v53 = vpop.xlane.xlu0 %3354 }
0x21ff   :  { %4921 = vrcp.f32 %v3355_v53  ;;  %v3712_v53 = vld [vmem:[#allocation5 + $0x2d0] sm:$0xff] }
0x2200   :  { %3732 = vmatpush.msrb.mxu0 %v3712_v53  ;;  %v3829_v53 = vld [vmem:[#allocation8 + $0x30] sm:$0xff] }
0x2205   :  { %v4922_v45 = vpop.eup %4921 }
0x2206   :  { %v3361_v57 = vmul.f32 %v4922_v45, %v4918_v63  ;;  %v3358_v51 = vpop.xlane.xlu1 %3357  ;;  %v3678_v63 = vld [vmem:[#allocation5 + $0x248] sm:$0xff] }
0x2207   :  { %4923 = vrcp.f32 %v3358_v51  ;;  %3700 = vmatpush.msrb.mxu3 %v3678_v63  ;;  %v3711_v45 = vld [vmem:[#allocation5 + $0x2c8] sm:$0xff]  ;;  %v3865_v51 = vld [vmem:[#allocation5 + $0x1f8] sm:$0xff] }
0x2208   :  { %4649 = vmatmul.msk.f32.vlgmr.msra.gmra.mxu2 %vm351_vm5, %v3361_v57  ;;  %3733 = vmatpush.msrb.mxu0 %v3711_v45  ;;  %v3710_v57 = vld [vmem:[#allocation5 + $0x2c0] sm:$0xff] }
0x2209   :  { %3663 = vmatpush.msra.mxu2 %v3645_v52  ;;  %3701 = vmatpush.msrb.mxu3 %v3677_v13 }
0x220a   :  { %3734 = vmatpush.msrb.mxu0 %v3710_v57  ;;  %v4791_v57 = vld [vmem:[#allocation7 + $0x13] ss:$0 sm:$0xff] }
0x220b   :  { %3664 = vmatpush.msra.mxu2 %v3644_v18  ;;  %v3864_v18 = vld [vmem:[#allocation5 + $0x1f0] sm:$0xff] }
0x220d   :  { %v4924_v22 = vpop.eup %4923  ;;  %3665 = vmatpush.msra.mxu2 %v3643_v19  ;;  %v3863_v19 = vld [vmem:[#allocation5 + $0x1e8] sm:$0xff] }
0x220e   :  { %v3362_v26 = vmul.f32 %v4924_v22, %v4920_v15 }
0x220f   :  { %3666 = vmatpush.msra.mxu2 %v3642_v21  ;;  %v3862_v21 = vld [vmem:[#allocation5 + $0x1e0] sm:$0xff] }
0x2210   :  { %4650 = vmatmul.msk.f32.gmra.mxu2 %vm351_vm5, %v3362_v26  ;;  %v4788_v26 = vld [vmem:[#allocation7 + $0x12] ss:$0 sm:$0xff] }
0x2218   :  { %4659 = vmatmul.msk.f32.vlgmr.msrb.gmra.mxu2 %vm315_vm1, %v3427_v32 }
0x2220   :  { %4660 = vmatmul.msk.f32.gmra.mxu2 %vm315_vm1, %v3428_v54 }
0x2228   :  { %4667 = vmatmul.msk.f32.vlgmr.msra.gmra.mxu2 %vm217_vm0, %v5931_v20 }
0x2230   :  { %4668 = vmatmul.msk.f32.gmra.mxu2 %vm217_vm0, %v5938_v25 }
0x228b   :  { %v3386_v37 = vpop.f32.mrf.mxu2 }
0x228c   :  { %4665 = vmatmul.msk.f32.vlgmr.msra.gmra.mxu1 %vm315_vm1, %v3386_v37 }
0x2293   :  { %v3389_v38 = vpop.f32.mrf.mxu2 }
0x2294   :  { %4666 = vmatmul.msk.f32.gmra.mxu1 %vm315_vm1, %v3389_v38 }
0x229b   :  { %v3524_v59 = vpop.f32.mrf.mxu2 }
0x229c   :  { %v3525_v56 = vadd.f32 %v3524_v59, %v5572_v2 }
0x229e   :  { %v3530_v60 = vsel %vm351_vm5, %v3525_v56, -inf }
0x229f   :  { %3531 = vmax.xlane.f32.xlu2 %v3530_v60 }
0x22a3   :  { %v3527_v46 = vpop.f32.mrf.mxu2 }
0x22a4   :  { %v3528_v6 = vadd.f32 %v3527_v46, %v5582_v8 }
0x22a6   :  { %v3533_v47 = vsel %vm351_vm5, %v3528_v6, -inf }
0x22a7   :  { %3534 = vmax.xlane.f32.xlu0 %v3533_v47 }
0x22ab   :  { %v3668_v24 = vpop.f32.mrf.mxu2 }
0x22ac   :  { %v3669_v30 = vadd.f32 %v4786_v27, %v3668_v24 }
0x22ae   :  { %v3674_v32 = vmul.f32 0.35355338, %v3669_v30  ;;  %v3933_v30 = vld [vmem:[#allocation5 + $0x2f8] sm:$0xff] }
0x22b3   :  { %v3671_v34 = vpop.f32.mrf.mxu2 }
0x22b4   :  { %v3672_v39 = vadd.f32 %v4786_v27, %v3671_v34 }
0x22b6   :  { %v3675_v54 = vmul.f32 0.35355338, %v3672_v39 }
0x2309   :  { %v6004_v35 = vpop.f32.mrf.mxu1 }
0x2311   :  { %v3638_v38 = vpop.f32.mrf.mxu1 }
0x2312   :  { %v3532_v48 = vpop.xlane.xlu2 %3531 }
0x2313   :  { %v3536_v49 = vsub.f32 %v3525_v56, %v3532_v48  ;;  %v4789_v56 = vld [vmem:[#allocation7 + $0x16] ss:$0 sm:$0xff] }
0x2315   :  { %v3538_v36 = vmul.f32 1.442695, %v3536_v49 }
0x2317   :  { %4925 = vpow2.f32 %v3538_v36  ;;  %v3900_v36 = vld [vmem:[#allocation5 + $0x278] sm:$0xff] }
0x231a   :  { %v3535_v50 = vpop.xlane.xlu0 %3534 }
0x231b   :  { %v3537_v62 = vsub.f32 %v3528_v6, %v3535_v50  ;;  %v3899_v50 = vld [vmem:[#allocation5 + $0x270] sm:$0xff] }
0x231d   :  { %v4926_v1 = vpop.eup %4925  ;;  %v3540_v7 = vmul.f32 1.442695, %v3537_v62  ;;  %v3898_v62 = vld [vmem:[#allocation5 + $0x268] sm:$0xff] }
0x231e   :  { %v3542_v9 = vsel %vm351_vm5, %v4926_v1, 0.0 }
0x231f   :  { %4927 = vpow2.f32 %v3540_v7  ;;  %3543 = vadd.xlane.f32.xlu1 %v3542_v9 }
0x2325   :  { %v4928_v44 = vpop.eup %4927 }
0x2326   :  { %v3545_v10 = vsel %vm351_vm5, %v4928_v44, 0.0 }
0x2327   :  { %3546 = vadd.xlane.f32.xlu2 %v3545_v10 }
0x2392   :  { %v3544_v14 = vpop.xlane.xlu1 %3543 }
0x2393   :  { %4929 = vrcp.f32 %v3544_v14 }
0x2399   :  { %v4930_v15 = vpop.eup %4929 }
0x239a   :  { %v3550_v55 = vmul.f32 %v4930_v15, %v4926_v1  ;;  %v3547_v61 = vpop.xlane.xlu2 %3546  ;;  %v3897_v15 = vld [vmem:[#allocation5 + $0x260] sm:$0xff] }
0x239b   :  { %4931 = vrcp.f32 %v3547_v61 }
0x239c   :  { %4661 = vmatmul.msk.f32.vlgmr.msra.gmra.mxu3 %vm351_vm5, %v3550_v55 }
0x239d   :  { %3851 = vmatpush.msra.mxu3 %v3829_v53 }
0x23a1   :  { %v4932_v0 = vpop.eup %4931 }
0x23a2   :  { %v3551_v16 = vmul.f32 %v4932_v0, %v4928_v44 }
0x23a4   :  { %4662 = vmatmul.msk.f32.gmra.mxu3 %vm351_vm5, %v3551_v16 }
0x23ac   :  { %4669 = vmatmul.msk.f32.vlgmr.msrb.gmra.mxu3 %vm217_vm0, %v5912_v58 }
0x23b4   :  { %4670 = vmatmul.msk.f32.gmra.mxu3 %vm217_vm0, %v5919_v3 }
0x241f   :  { %v3575_v52 = vpop.f32.mrf.mxu3 }
0x2420   :  { %4663 = vmatmul.msk.f32.vlgmr.msra.gmra.mxu0 %vm315_vm1, %v3575_v52 }
0x2421   :  { %3883 = vmatpush.msra.mxu0 %v3865_v51 }
0x2423   :  { %3884 = vmatpush.msra.mxu0 %v3864_v18 }
0x2425   :  { %3885 = vmatpush.msra.mxu0 %v3863_v19 }
0x2427   :  { %v3578_v22 = vpop.f32.mrf.mxu3  ;;  %3886 = vmatpush.msra.mxu0 %v3862_v21 }
0x2428   :  { %4664 = vmatmul.msk.f32.gmra.mxu0 %vm315_vm1, %v3578_v22  ;;  %v4790_v22 = vld [vmem:[#allocation7 + $0xf] ss:$0 sm:$0xff] }
0x242f   :  { %v3703_v23 = vpop.f32.mrf.mxu3 }
0x2430   :  { %4671 = vmatmul.msk.f32.vlgmr.msrb.gmra.mxu0 %vm217_vm0, %v5912_v58  ;;  %v3704_v31 = vadd.f32 %v4788_v26, %v3703_v23 }
0x2437   :  { %v3706_v28 = vpop.f32.mrf.mxu3 }
0x2438   :  { %v3707_v29 = vadd.f32 %v4788_v26, %v3706_v28  ;;  %4672 = vmatmul.msk.f32.gmra.mxu0 %vm217_vm0, %v5919_v3 }
0x243a   :  { %4673 = vmatpush.xpose.msk.msrb.mxu1 %vm315_vm1, %v3707_v29 }
0x243e   :  { %4674 = vmatpush.xpose.msk.msrb.mxu1 %vm315_vm1, %v3704_v31  ;;  %v3932_v31 = vld [vmem:[#allocation5 + $0x2f0] sm:$0xff] }
0x2440   :  { %4681 = vmatmul.msk.f32.vlgmr.msra.gmra.mxu0 %vm217_vm0, %v5931_v20 }
0x2441   :  { %4675 = vmatmul.msk.f32.vlgmr.msrb.gmra.mxu1 %vm315_vm1, %v3674_v32  ;;  %v3931_v32 = vld [vmem:[#allocation5 + $0x2e8] sm:$0xff] }
0x2442   :  { %3918 = vmatpush.msra.mxu1 %v3900_v36 }
0x2444   :  { %3919 = vmatpush.msra.mxu1 %v3899_v50 }
0x2446   :  { %3920 = vmatpush.msra.mxu1 %v3898_v62 }
0x2448   :  { %4682 = vmatmul.msk.f32.gmra.mxu0 %vm217_vm0, %v5938_v25  ;;  %3921 = vmatpush.msra.mxu1 %v3897_v15  ;;  %v4793_v15 = vld [vmem:[%s6150_s9 + $0x1] ss:$0 sm:$0xff] }
0x2449   :  { %4676 = vmatmul.msk.f32.gmra.mxu1 %vm315_vm1, %v3675_v54  ;;  %v3930_v54 = vld [vmem:[#allocation5 + $0x2e0] sm:$0xff] }
0x2451   :  { %4683 = vmatmul.msk.f32.vlgmr.msra.gmra.mxu1 %vm217_vm0, %v5912_v58 }
0x2459   :  { %4684 = vmatmul.msk.f32.gmra.mxu1 %vm217_vm0, %v5919_v3 }
0x249d   :  { %v6006_v37 = vpop.f32.mrf.mxu0 }
0x249e   :  { %v3636_v34 = vadd.f32 %v6004_v35, %v6006_v37 }
0x24a5   :  { %v3609_v40 = vpop.f32.mrf.mxu0 }
0x24a6   :  { %v6008_v59 = vadd.f32 %v3638_v38, %v3609_v40 }
0x24ad   :  { %v3736_v42 = vpop.f32.mrf.mxu0 }
0x24ae   :  { %v3737_v4 = vadd.f32 %v4789_v56, %v3736_v42 }
0x24b5   :  { %v3739_v60 = vpop.f32.mrf.mxu0 }
0x24b6   :  { %v3740_v33 = vadd.f32 %v4789_v56, %v3739_v60 }
0x24b8   :  { %3819 = vmatpush.msrb.mxu2 %v3740_v33 }
0x24ba   :  { %3820 = vmatpush.msrb.mxu2 %v3737_v4 }
0x24bc   :  { %3951 = vmatpush.msra.mxu2 %v3933_v30  ;;  %v4149_v30 = vld [vmem:[#allocation10 + $0x20] sm:$0xff] }
0x24bd   :  { %v3888_v21 = vpop.f32.mrf.mxu0 }
0x24be   :  { %v3771_v41 = vpop.f32.mrf.mxu1  ;;  %v3889_v24 = vadd.f32 %v4790_v22, %v3888_v21  ;;  %3952 = vmatpush.msra.mxu2 %v3932_v31 }
0x24bf   :  { %v3772_v46 = vadd.f32 %v3771_v41, %v5572_v2 }
0x24c0   :  { %v3894_v26 = vmul.f32 0.35355338, %v3889_v24  ;;  %3953 = vmatpush.msra.mxu2 %v3931_v32 }
0x24c1   :  { %v3777_v6 = vsel %vm351_vm5, %v3772_v46, -inf }
0x24c2   :  { %3778 = vmax.xlane.f32.xlu0 %v3777_v6  ;;  %3954 = vmatpush.msra.mxu2 %v3930_v54  ;;  %v4196_v54 = vld [vmem:[#allocation11 + $0x70] sm:$0xff] }
0x24c5   :  { %v3891_v27 = vpop.f32.mrf.mxu0 }
0x24c6   :  { %v3774_v47 = vpop.f32.mrf.mxu1  ;;  %v3892_v28 = vadd.f32 %v4790_v22, %v3891_v27 }
0x24c7   :  { %v3775_v48 = vadd.f32 %v3774_v47, %v5582_v8 }
0x24c8   :  { %v3895_v29 = vmul.f32 0.35355338, %v3892_v28  ;;  %v4151_v28 = vld [vmem:[#allocation10 + $0x30] sm:$0xff] }
0x24c9   :  { %v3780_v49 = vsel %vm351_vm5, %v3775_v48, -inf }
0x24ca   :  { %3781 = vmax.xlane.f32.xlu1 %v3780_v49 }
0x24ce   :  { %v3923_v45 = vpop.f32.mrf.mxu1 }
0x24cf   :  { %v3924_v18 = vadd.f32 %v4791_v57, %v3923_v45 }
0x24d6   :  { %v3926_v51 = vpop.f32.mrf.mxu1 }
0x24d7   :  { %v3927_v52 = vadd.f32 %v4791_v57, %v3926_v51 }
0x24d9   :  { %4687 = vmatpush.xpose.msk.msrb.mxu3 %vm315_vm1, %v3927_v52 }
0x24dd   :  { %4688 = vmatpush.xpose.msk.msrb.mxu3 %vm315_vm1, %v3924_v18 }
0x2535   :  { %v3779_v1 = vpop.xlane.xlu0 %3778 }
0x2536   :  { %v3783_v7 = vsub.f32 %v3772_v46, %v3779_v1 }
0x2538   :  { %v3785_v9 = vmul.f32 1.442695, %v3783_v7  ;;  %v4049_v7 = vld [vmem:[#allocation8 + $0x38] sm:$0xff] }
0x2539   :  { %4071 = vmatpush.msrb.mxu1 %v4049_v7 }
0x253a   :  { %4933 = vpow2.f32 %v3785_v9 }
0x253d   :  { %v3782_v44 = vpop.xlane.xlu1 %3781 }
0x253e   :  { %v3784_v10 = vsub.f32 %v3775_v48, %v3782_v44 }
0x2540   :  { %v4934_v11 = vpop.eup %4933  ;;  %v3787_v12 = vmul.f32 1.442695, %v3784_v10 }
0x2541   :  { %v3789_v63 = vsel %vm351_vm5, %v4934_v11, 0.0 }
0x2542   :  { %4935 = vpow2.f32 %v3787_v12  ;;  %3790 = vadd.xlane.f32.xlu2 %v3789_v63 }
0x2548   :  { %v4936_v13 = vpop.eup %4935 }
0x2549   :  { %v3792_v14 = vsel %vm351_vm5, %v4936_v13, 0.0 }
0x254a   :  { %3793 = vadd.xlane.f32.xlu0 %v3792_v14 }
0x25b5   :  { %v3791_v55 = vpop.xlane.xlu2 %3790 }
0x25b6   :  { %4937 = vrcp.f32 %v3791_v55 }
0x25bc   :  { %v4938_v61 = vpop.eup %4937 }
0x25bd   :  { %v3797_v0 = vmul.f32 %v4938_v61, %v4934_v11  ;;  %v3794_v16 = vpop.xlane.xlu0 %3793 }
0x25be   :  { %4939 = vrcp.f32 %v3794_v16 }
0x25bf   :  { %4677 = vmatmul.msk.f32.vlgmr.msrb.gmra.mxu2 %vm351_vm5, %v3797_v0 }
0x25c4   :  { %v4940_v5 = vpop.eup %4939 }
0x25c5   :  { %v3798_v17 = vmul.f32 %v4940_v5, %v4936_v13 }
0x25c7   :  { %4678 = vmatmul.msk.f32.gmra.mxu2 %vm351_vm5, %v3798_v17 }
0x25cf   :  { %4685 = vmatmul.msk.f32.vlgmr.msra.gmra.mxu2 %vm217_vm0, %v5912_v58 }
0x25d7   :  { %4686 = vmatmul.msk.f32.gmra.mxu2 %vm217_vm0, %v5919_v3 }
0x2642   :  { %v3822_v19 = vpop.f32.mrf.mxu2 }
0x2643   :  { %4679 = vmatmul.msk.f32.vlgmr.msra.gmra.mxu3 %vm315_vm1, %v3822_v19 }
0x264a   :  { %v3825_v23 = vpop.f32.mrf.mxu2 }
0x264b   :  { %4680 = vmatmul.msk.f32.gmra.mxu3 %vm315_vm1, %v3825_v23 }
0x2652   :  { %v3956_v58 = vpop.f32.mrf.mxu2 }
0x2653   :  { %4689 = vmatmul.msk.f32.vlgmr.msrb.gmra.mxu3 %vm315_vm1, %v3894_v26 }
0x265a   :  { %v3959_v3 = vpop.f32.mrf.mxu2 }
0x265b   :  { %4690 = vmatmul.msk.f32.gmra.mxu3 %vm315_vm1, %v3895_v29  ;;  %v4150_v29 = vld [vmem:[#allocation10 + $0x28] sm:$0xff] }
0x26c6   :  { %v3853_v39 = vpop.f32.mrf.mxu3 }
0x26c7   :  { %v3859_v38 = vadd.f32 %v3853_v39, %v3636_v34  ;;  %v4197_v39 = vld [vmem:[#allocation11 + $0x78] sm:$0xff] }
0x26c8   :  { %4217 = vmatpush.msra.mxu3 %v4197_v39 }
0x26ca   :  { %4218 = vmatpush.msra.mxu3 %v4196_v54 }
0x26ce   :  { %v3856_v40 = vpop.f32.mrf.mxu3 }
0x26cf   :  { %v3860_v42 = vadd.f32 %v3856_v40, %v6008_v59  ;;  %v4792_v59 = vld [vmem:[#allocation7 + $0x17] ss:$0 sm:$0xff] }
0x26d0   :  { %v3957_v49 = vadd.f32 %v4792_v59, %v3956_v58 }
0x26d6   :  { %v3991_v56 = vpop.f32.mrf.mxu3 }
0x26d7   :  { %v3992_v60 = vadd.f32 %v3991_v56, %v5572_v2  ;;  %v3960_v2 = vadd.f32 %v4792_v59, %v3959_v3  ;;  %v4194_v56 = vld [vmem:[#allocation11 + $0x60] sm:$0xff] }
0x26d9   :  { %v3997_v35 = vsel %vm351_vm5, %v3992_v60, -inf  ;;  %4039 = vmatpush.msrb.mxu0 %v3960_v2 }
0x26da   :  { %3998 = vmax.xlane.f32.xlu1 %v3997_v35 }
0x26db   :  { %4040 = vmatpush.msrb.mxu0 %v3957_v49  ;;  %v4795_v49 = vld [vmem:[%s6158_s17 + $0x1] ss:$0 sm:$0xff] }
0x26de   :  { %v3994_v37 = vpop.f32.mrf.mxu3 }
0x26df   :  { %v3995_v4 = vadd.f32 %v3994_v37, %v5582_v8  ;;  %v4193_v37 = vld [vmem:[#allocation11 + $0x58] sm:$0xff] }
0x26e1   :  { %v4000_v33 = vsel %vm351_vm5, %v3995_v4, -inf }
0x26e2   :  { %4001 = vmax.xlane.f32.xlu2 %v4000_v33 }
0x274d   :  { %v3999_v41 = vpop.xlane.xlu1 %3998 }
0x274e   :  { %v4003_v46 = vsub.f32 %v3992_v60, %v3999_v41 }
0x2750   :  { %v4005_v6 = vmul.f32 1.442695, %v4003_v46 }
0x2752   :  { %4941 = vpow2.f32 %v4005_v6 }
0x2755   :  { %v4002_v47 = vpop.xlane.xlu2 %4001 }
0x2756   :  { %v4004_v48 = vsub.f32 %v3995_v4, %v4002_v47  ;;  %v4794_v47 = vld [vmem:[%s6157_s16 + $0x1] ss:$0 sm:$0xff]  ;;  %s5153_s16 = smov [#allocation13]  }
0x2757   :  { %s4416_s17 = sshll.u32 %s5153_s16, 4  ;;  %s4417_s17 = int_to_ptr.vmem [resolvable:$true] %s4416_s17 }
0x2758   :  { %v4942_v36 = vpop.eup %4941  ;;  %v4007_v50 = vmul.f32 1.442695, %v4004_v48 }
0x2759   :  { %v4009_v62 = vsel %vm351_vm5, %v4942_v36, 0.0 }
0x275a   :  { %4943 = vpow2.f32 %v4007_v50  ;;  %4010 = vadd.xlane.f32.xlu0 %v4009_v62 }
0x2760   :  { %v4944_v8 = vpop.eup %4943 }
0x2761   :  { %v4012_v1 = vsel %vm351_vm5, %v4944_v8, 0.0 }
0x2762   :  { %4013 = vadd.xlane.f32.xlu1 %v4012_v1 }
0x27cd   :  { %v4011_v9 = vpop.xlane.xlu0 %4010 }
0x27ce   :  { %4945 = vrcp.f32 %v4011_v9 }
0x27d4   :  { %v4946_v44 = vpop.eup %4945 }
0x27d5   :  { %v4017_v10 = vmul.f32 %v4946_v44, %v4942_v36  ;;  %v4014_v11 = vpop.xlane.xlu1 %4013 }
0x27d6   :  { %4947 = vrcp.f32 %v4014_v11  ;;  %v4192_v11 = vld [vmem:[#allocation11 + $0x50] sm:$0xff] }
0x27d7   :  { %4691 = vmatmul.msk.f32.vlgmr.msrb.gmra.mxu0 %vm351_vm5, %v4017_v10 }
0x27dc   :  { %v4948_v12 = vpop.eup %4947 }
0x27dd   :  { %v4018_v63 = vmul.f32 %v4948_v12, %v4944_v8  ;;  %v4191_v12 = vld [vmem:[#allocation11 + $0x48] sm:$0xff] }
0x27df   :  { %4692 = vmatmul.msk.f32.gmra.mxu0 %vm351_vm5, %v4018_v63  ;;  %v4190_v63 = vld [vmem:[#allocation11 + $0x40] sm:$0xff] }
0x2854   :  { %v4042_v13 = vpop.f32.mrf.mxu0 }
0x2855   :  { %4693 = vmatmul.msk.f32.vlgmr.msrb.gmra.mxu1 %vm315_vm1, %v4042_v13  ;;  %v4796_v13 = vld [vmem:[%s6152_s11 + $0x1] ss:$0 sm:$0xff]  ;;  %s6192_s11 = sld [smem:[#allocation29_spill]] }
0x285c   :  { %v4045_v14 = vpop.f32.mrf.mxu0 }
0x285d   :  { %4694 = vmatmul.msk.f32.gmra.mxu1 %vm315_vm1, %v4045_v14 }
0x28d2   :  { %v4073_v55 = vpop.f32.mrf.mxu1 }
0x28d3   :  { %v4079_v61 = vadd.f32 %v4073_v55, %v3859_v38  ;;  %v4195_v38 = vld [vmem:[#allocation11 + $0x68] sm:$0xff] }
0x28d4   :  { %4219 = vmatpush.msra.mxu3 %v4195_v38 }
0x28d5   :  { %v4086_v0 = vadd.f32 %v4793_v15, %v4079_v61 }
0x28d6   :  { %4220 = vmatpush.msra.mxu3 %v4194_v56 }
0x28d7   :  { %v4088_v16 = vadd.f32 %v4086_v0, %v5931_v20 }
0x28d8   :  { %4221 = vmatpush.msra.mxu3 %v4193_v37 }
0x28d9   :  { %v4094_v5 = vsel %vm217_vm0, %v4088_v16, 0.0 }
0x28da   :  { %4095 = vadd.xlane.f32.xlu2 %v4094_v5  ;;  %v4076_v17 = vpop.f32.mrf.mxu1  ;;  %4222 = vmatpush.msra.mxu3 %v4192_v11  ;;  %v4797_v5 = vld [vmem:[%s6154_s13 + $0x1] ss:$0 sm:$0xff]  ;;  %s4418_s13 = sshll.u32 %s6192_s11, 4  ;;  %s4419_s13 = int_to_ptr.hbm [resolvable:$true] %s4418_s13 }
0x28db   :  { %v4080_v53 = vadd.f32 %v4076_v17, %v3860_v42 }
0x28dc   :  { %4223 = vmatpush.msra.mxu3 %v4191_v12 }
0x28dd   :  { %v4087_v45 = vadd.f32 %v4793_v15, %v4080_v53 }
0x28de   :  { %4224 = vmatpush.msra.mxu3 %v4190_v63 }
0x28df   :  { %v4089_v57 = vadd.f32 %v4087_v45, %v5938_v25  ;;  %v4152_v25 = vld [vmem:[#allocation10 + $0x38] sm:$0xff] }
0x28e0   :  { %4176 = vmatpush.msrb.mxu2 %v4152_v25 }
0x28e1   :  { %v4097_v51 = vsel %vm217_vm0, %v4089_v57, 0.0 }
0x28e2   :  { %4098 = vadd.xlane.f32.xlu0 %v4097_v51  ;;  %4177 = vmatpush.msrb.mxu2 %v4151_v28 }
0x28e4   :  { %4178 = vmatpush.msrb.mxu2 %v4150_v29 }
0x28e6   :  { %4179 = vmatpush.msrb.mxu2 %v4149_v30 }
0x294d   :  { %v4096_v52 = vpop.xlane.xlu2 %4095 }
0x294e   :  { %v4100_v18 = vmul.f32 %v4096_v52, %v5515_v43 }
0x2950   :  { %v4102_v19 = vsub.f32 %v4088_v16, %v4100_v18 }
0x2952   :  { %v4104_v21 = vmul.f32 %v4102_v19, %v4102_v19 }
0x2954   :  { %v4106_v22 = vsel %vm217_vm0, %v4104_v21, 0.0 }
0x2955   :  { %4107 = vadd.xlane.f32.xlu1 %v4106_v22  ;;  %v4099_v20 = vpop.xlane.xlu0 %4098 }
0x2956   :  { %v4101_v23 = vmul.f32 %v4099_v20, %v5515_v43 }
0x2958   :  { %v4103_v24 = vsub.f32 %v4089_v57, %v4101_v23 }
0x295a   :  { %v4105_v26 = vmul.f32 %v4103_v24, %v4103_v24 }
0x295c   :  { %v4109_v27 = vsel %vm217_vm0, %v4105_v26, 0.0 }
0x295d   :  { %4110 = vadd.xlane.f32.xlu2 %v4109_v27 }
0x29c8   :  { %v4108_v31 = vpop.xlane.xlu1 %4107 }
0x29c9   :  { %v4112_v32 = vmul.f32 %v4108_v31, %v5515_v43 }
0x29cb   :  { %v4114_v34 = vadd.f32 1e-05, %v4112_v32 }
0x29cd   :  { %4949 = vrsqrt.f32 %v4114_v34  ;;  %vm4122_vm5 = vweird.f32 %v4114_v34 }
0x29d0   :  { %v4111_v40 = vpop.xlane.xlu2 %4110 }
0x29d1   :  { %v4113_v42 = vmul.f32 %v4111_v40, %v5515_v43 }
0x29d3   :  { %v4950_v60 = vpop.eup %4949  ;;  %v4115_v35 = vadd.f32 1e-05, %v4113_v42 }
0x29d4   :  { %v4117_v4 = vmul.f32 %v4950_v60, %v4114_v34  ;;  %vm4123_vm1 = vweird.f32 %v4950_v60 }
0x29d5   :  { %4951 = vrsqrt.f32 %v4115_v35  ;;  %vm4124_vm10 = vmor %vm4122_vm5, %vm4123_vm1  ;;  %vm4132_vm12 = vweird.f32 %v4115_v35 }
0x29d6   :  { %v4118_v33 = vmul.f32 %v4950_v60, %v4117_v4 }
0x29d8   :  { %v4119_v41 = vmul.f32 0.5, %v4118_v33  ;;  %v4798_v33 = vld [vmem:[%s6159_s18 + $0x1] ss:$0 sm:$0xff] }
0x29da   :  { %v4120_v58 = vsub.f32 1.5, %v4119_v41 }
0x29db   :  { %v4952_v46 = vpop.eup %4951 }
0x29dc   :  { %v4121_v6 = vmul.f32 %v4950_v60, %v4120_v58  ;;  %v4127_v59 = vmul.f32 %v4952_v46, %v4115_v35  ;;  %vm4133_vm11 = vweird.f32 %v4952_v46 }
0x29dd   :  { %vm4134_vm13 = vmor %vm4132_vm12, %vm4133_vm11  ;;  %vm4409_vm11 = vcmask 408576  }
0x29de   :  { %v4125_v3 = vsel %vm4124_vm10, %v4950_v60, %v4121_v6  ;;  %v4128_v48 = vmul.f32 %v4952_v46, %v4127_v59  ;;  %v4799_v6 = vld [vmem:[%s6160_s19 + $0x1] ss:$0 sm:$0xff] }
0x29df   :  { %v4136_v2 = vmul.f32 %v4125_v3, %v4102_v19 }
0x29e0   :  { %v4129_v36 = vmul.f32 0.5, %v4128_v48 }
0x29e1   :  { %v4141_v50 = vmul.f32 %v4794_v47, %v4136_v2 }
0x29e2   :  { %v4130_v62 = vsub.f32 1.5, %v4129_v36 }
0x29e3   :  { %v4146_v8 = vadd.f32 %v4795_v49, %v4141_v50 }
0x29e4   :  { %v4131_v1 = vmul.f32 %v4952_v46, %v4130_v62 }
0x29e5   :  { %4699 = vmatmul.msk.f32.vlgmr.msrb.gmra.mxu2 %vm217_vm0, %v4146_v8 }
0x29e6   :  { %v4135_v7 = vsel %vm4134_vm13, %v4952_v46, %v4131_v1 }
0x29e7   :  { %v4137_v9 = vmul.f32 %v4135_v7, %v4103_v24 }
0x29e9   :  { %v4142_v44 = vmul.f32 %v4794_v47, %v4137_v9 }
0x29eb   :  { %v4147_v10 = vadd.f32 %v4795_v49, %v4142_v44 }
0x29ed   :  { %4700 = vmatmul.msk.f32.gmra.mxu2 %vm217_vm0, %v4147_v10 }
0x2a68   :  { %v4181_v14 = vpop.f32.mrf.mxu2 }
0x2a69   :  { %v4182_v15 = vadd.f32 %v4796_v13, %v4181_v14 }
0x2a6b   :  { %v4187_v55 = vmax.f32 %v4182_v15, 0.0 }
0x2a6d   :  { %4702 = vmatmul.msk.f32.vlgmr.msra.gmra.mxu3 %vm2162_vm9, %v4187_v55  ;;  %v4354_v55 = vld [vmem:[%s6163_s22 + $0x30] sm:$0x3] }
0x2a6e   :  { %4706 = vmatpush.xpose.msk.msra.mxu0 %vm217_vm0, %v4354_v55 }
0x2a70   :  { %v4184_v61 = vpop.f32.mrf.mxu2 }
0x2a71   :  { %v4185_v0 = vadd.f32 %v4796_v13, %v4184_v61  ;;  %v4353_v61 = vld [vmem:[%s6163_s22 + $0x28] sm:$0xff] }
0x2a72   :  { %4707 = vmatpush.xpose.msk.msra.mxu0 %vm217_vm0, %v4353_v61 }
0x2a73   :  { %v4188_v16 = vmax.f32 %v4185_v0, 0.0  ;;  %v4352_v0 = vld [vmem:[%s6163_s22 + $0x20] sm:$0xff] }
0x2a75   :  { %4703 = vmatmul.msk.f32.gmra.mxu3 %vm2162_vm9, %v4188_v16  ;;  %v4351_v16 = vld [vmem:[%s6163_s22 + $0x18] sm:$0xff] }
0x2a76   :  { %4708 = vmatpush.xpose.msk.msra.mxu0 %vm217_vm0, %v4352_v0 }
0x2a7a   :  { %4709 = vmatpush.xpose.msk.msra.mxu0 %vm217_vm0, %v4351_v16 }
0x2af0   :  { %v4226_v17 = vpop.f32.mrf.mxu3 }
0x2af1   :  { %v4227_v53 = vadd.f32 %v4797_v5, %v4226_v17  ;;  %v4349_v17 = vld [vmem:[%s6163_s22 + $0x8] sm:$0xff] }
0x2af3   :  { %v4232_v45 = vadd.f32 %v4227_v53, %v4146_v8  ;;  %v4348_v53 = vld [vmem:[%s6163_s22] sm:$0xff] }
0x2af5   :  { %v4238_v57 = vsel %vm217_vm0, %v4232_v45, 0.0 }
0x2af6   :  { %4239 = vadd.xlane.f32.xlu0 %v4238_v57 }
0x2af8   :  { %v4229_v51 = vpop.f32.mrf.mxu3 }
0x2af9   :  { %v4230_v52 = vadd.f32 %v4797_v5, %v4229_v51  ;;  %v4350_v5 = vld [vmem:[%s6163_s22 + $0x10] sm:$0xff] }
0x2afa   :  { %4710 = vmatpush.xpose.msk.msra.mxu0 %vm217_vm0, %v4350_v5 }
0x2afb   :  { %v4233_v18 = vadd.f32 %v4230_v52, %v4147_v10 }
0x2afd   :  { %v4241_v19 = vsel %vm217_vm0, %v4233_v18, 0.0 }
0x2afe   :  { %4242 = vadd.xlane.f32.xlu1 %v4241_v19  ;;  %4711 = vmatpush.xpose.msk.msra.mxu0 %vm217_vm0, %v4349_v17 }
0x2b02   :  { %4712 = vmatpush.xpose.msk.msra.mxu0 %vm217_vm0, %v4348_v53 }
0x2b69   :  { %v4240_v21 = vpop.xlane.xlu0 %4239 }
0x2b6a   :  { %v4244_v22 = vmul.f32 %v4240_v21, %v5515_v43 }
0x2b6c   :  { %v4246_v20 = vsub.f32 %v4232_v45, %v4244_v22 }
0x2b6e   :  { %v4248_v23 = vmul.f32 %v4246_v20, %v4246_v20 }
0x2b70   :  { %v4250_v24 = vsel %vm217_vm0, %v4248_v23, 0.0 }
0x2b71   :  { %v4243_v26 = vpop.xlane.xlu1 %4242  ;;  %4251 = vadd.xlane.f32.xlu2 %v4250_v24 }
0x2b72   :  { %v4245_v27 = vmul.f32 %v4243_v26, %v5515_v43 }
0x2b74   :  { %v4247_v25 = vsub.f32 %v4233_v18, %v4245_v27 }
0x2b76   :  { %v4249_v28 = vmul.f32 %v4247_v25, %v4247_v25 }
0x2b78   :  { %v4253_v29 = vsel %vm217_vm0, %v4249_v28, 0.0  ;;  %v4800_v28 = vld [vmem:[%s6161_s20] ss:$0 sm:$0xff] }
0x2b79   :  { %4254 = vadd.xlane.f32.xlu0 %v4253_v29 }
0x2be4   :  { %v4252_v30 = vpop.xlane.xlu2 %4251 }
0x2be5   :  { %v4256_v31 = vmul.f32 %v4252_v30, %v5515_v43 }
0x2be7   :  { %v4258_v32 = vadd.f32 1e-05, %v4256_v31 }
0x2be9   :  { %4953 = vrsqrt.f32 %v4258_v32  ;;  %vm4266_vm14 = vweird.f32 %v4258_v32 }
0x2bec   :  { %v4255_v34 = vpop.xlane.xlu0 %4254 }
0x2bed   :  { %v4257_v39 = vmul.f32 %v4255_v34, %v5515_v43 }
0x2bef   :  { %v4954_v54 = vpop.eup %4953  ;;  %v4259_v38 = vadd.f32 1e-05, %v4257_v39 }
0x2bf0   :  { %v4261_v40 = vmul.f32 %v4954_v54, %v4258_v32  ;;  %vm4267_vm9 = vweird.f32 %v4954_v54 }
0x2bf1   :  { %4955 = vrsqrt.f32 %v4259_v38  ;;  %vm4268_vm15 = vmor %vm4266_vm14, %vm4267_vm9  ;;  %vm4276_vm3 = vweird.f32 %v4259_v38 }
0x2bf2   :  { %v4262_v42 = vmul.f32 %v4954_v54, %v4261_v40 }
0x2bf4   :  { %v4263_v56 = vmul.f32 0.5, %v4262_v42 }
0x2bf6   :  { %v4264_v60 = vsub.f32 1.5, %v4263_v56 }
0x2bf7   :  { %v4956_v35 = vpop.eup %4955 }
0x2bf8   :  { %v4265_v37 = vmul.f32 %v4954_v54, %v4264_v60  ;;  %v4271_v4 = vmul.f32 %v4956_v35, %v4259_v38  ;;  %vm4277_vm2 = vweird.f32 %v4956_v35 }
0x2bf9   :  { %vm4278_vm4 = vmor %vm4276_vm3, %vm4277_vm2 }
0x2bfa   :  { %v4272_v41 = vmul.f32 %v4956_v35, %v4271_v4  ;;  %v4269_v58 = vsel %vm4268_vm15, %v4954_v54, %v4265_v37 }
0x2bfb   :  { %v4280_v46 = vmul.f32 %v4269_v58, %v4246_v20 }
0x2bfc   :  { %v4273_v59 = vmul.f32 0.5, %v4272_v41 }
0x2bfd   :  { %v4285_v47 = vmul.f32 %v4798_v33, %v4280_v46 }
0x2bfe   :  { %v4274_v3 = vsub.f32 1.5, %v4273_v59 }
0x2bff   :  { %v4290_v48 = vadd.f32 %v4799_v6, %v4285_v47 }
0x2c00   :  { %v4275_v49 = vmul.f32 %v4956_v35, %v4274_v3 }
0x2c01   :  { %v4294_v2 = vsel %vm217_vm0, %v4290_v48, 0.0 }
0x2c02   :  { %4295 = vadd.xlane.f32.xlu1 %v4294_v2  ;;  %v4279_v36 = vsel %vm4278_vm4, %v4956_v35, %v4275_v49 }
0x2c03   :  { %v4281_v50 = vmul.f32 %v4279_v36, %v4247_v25 }
0x2c05   :  { %v4286_v62 = vmul.f32 %v4798_v33, %v4281_v50 }
0x2c07   :  { %v4291_v8 = vadd.f32 %v4799_v6, %v4286_v62 }
0x2c09   :  { %v4297_v1 = vsel %vm217_vm0, %v4291_v8, 0.0 }
0x2c0a   :  { %4298 = vadd.xlane.f32.xlu2 %v4297_v1 }
0x2c75   :  { %v4296_v7 = vpop.xlane.xlu1 %4295 }
0x2c76   :  { %v4300_v9 = vmul.f32 %v4296_v7, %v5515_v43 }
0x2c78   :  { %v4302_v44 = vsub.f32 %v4290_v48, %v4300_v9 }
0x2c7a   :  { %v4304_v10 = vmul.f32 %v4302_v44, %v4302_v44 }
0x2c7c   :  { %v4306_v11 = vsel %vm217_vm0, %v4304_v10, 0.0 }
0x2c7d   :  { %4307 = vadd.xlane.f32.xlu0 %v4306_v11  ;;  %v4299_v12 = vpop.xlane.xlu2 %4298 }
0x2c7e   :  { %v4301_v63 = vmul.f32 %v4299_v12, %v5515_v43 }
0x2c80   :  { %v4303_v13 = vsub.f32 %v4291_v8, %v4301_v63 }
0x2c82   :  { %v4305_v14 = vmul.f32 %v4303_v13, %v4303_v13 }
0x2c84   :  { %v4309_v15 = vsel %vm217_vm0, %v4305_v14, 0.0 }
0x2c85   :  { %4310 = vadd.xlane.f32.xlu1 %v4309_v15 }
0x2cf0   :  { %v4308_v45 = vpop.xlane.xlu0 %4307 }
0x2cf1   :  { %v4312_v57 = vmul.f32 %v4308_v45, %v5515_v43 }
0x2cf3   :  { %v4314_v51 = vadd.f32 1e-05, %v4312_v57 }
0x2cf5   :  { %4957 = vrsqrt.f32 %v4314_v51  ;;  %vm4322_vm7 = vweird.f32 %v4314_v51 }
0x2cf8   :  { %v4311_v52 = vpop.xlane.xlu1 %4310 }
0x2cf9   :  { %v4313_v18 = vmul.f32 %v4311_v52, %v5515_v43  ;;  %v4801_v43 = vld [vmem:[%s6162_s21] ss:$0 sm:$0xff]  ;;  %s6191_s21 = sld [smem:[#allocation28_spill]] }
0x2cfb   :  { %v4958_v19 = vpop.eup %4957  ;;  %v4315_v21 = vadd.f32 1e-05, %v4313_v18 }
0x2cfc   :  { %v4317_v22 = vmul.f32 %v4958_v19, %v4314_v51  ;;  %vm4323_vm6 = vweird.f32 %v4958_v19 }
0x2cfd   :  { %4959 = vrsqrt.f32 %v4315_v21  ;;  %vm4324_vm8 = vmor %vm4322_vm7, %vm4323_vm6  ;;  %vm4332_vm5 = vweird.f32 %v4315_v21 }
0x2cfe   :  { %v4318_v20 = vmul.f32 %v4958_v19, %v4317_v22 }
0x2cff   :  { %v4802_v35 = vld [vmem:[%s6191_s21] ss:$0 sm:$0xff] }
0x2d00   :  { %v4319_v23 = vmul.f32 0.5, %v4318_v20 }
0x2d02   :  { %v4320_v24 = vsub.f32 1.5, %v4319_v23 }
0x2d03   :  { %v4960_v26 = vpop.eup %4959 }
0x2d04   :  { %v4321_v27 = vmul.f32 %v4958_v19, %v4320_v24  ;;  %v4327_v25 = vmul.f32 %v4960_v26, %v4315_v21  ;;  %vm4333_vm1 = vweird.f32 %v4960_v26 }
0x2d05   :  { %vm4334_vm10 = vmor %vm4332_vm5, %vm4333_vm1 }
0x2d06   :  { %v4325_v29 = vsel %vm4324_vm8, %v4958_v19, %v4321_v27  ;;  %v4328_v30 = vmul.f32 %v4960_v26, %v4327_v25 }
0x2d07   :  { %v4336_v31 = vmul.f32 %v4325_v29, %v4302_v44 }
0x2d08   :  { %v4329_v32 = vmul.f32 0.5, %v4328_v30 }
0x2d09   :  { %v4341_v34 = vmul.f32 %v4800_v28, %v4336_v31 }
0x2d0a   :  { %v4330_v39 = vsub.f32 1.5, %v4329_v32 }
0x2d0b   :  { %v4346_v54 = vadd.f32 %v4801_v43, %v4341_v34 }
0x2d0c   :  { %v4331_v38 = vmul.f32 %v4960_v26, %v4330_v39 }
0x2d0d   :  { %4713 = vmatmul.msk.f32.vlgmr.msra.gmra.mxu0 %vm217_vm0, %v4346_v54 }
0x2d0e   :  { %v4335_v40 = vsel %vm4334_vm10, %v4960_v26, %v4331_v38 }
0x2d0f   :  { %v4337_v42 = vmul.f32 %v4335_v40, %v4303_v13 }
0x2d11   :  { %v4342_v56 = vmul.f32 %v4800_v28, %v4337_v42 }
0x2d13   :  { %v4347_v60 = vadd.f32 %v4801_v43, %v4342_v56 }
0x2d15   :  { %4714 = vmatmul.msk.f32.gmra.mxu0 %vm217_vm0, %v4347_v60 }
0x2d8a   :  { %v4403_v37 = vpop.f32.mrf.mxu0 }
0x2d8b   :  { %v4404_v4 = vadd.f32 %v4802_v35, %v4403_v37 }
0x2d8d   :  { %4410 = vst.msk [vmem:[#allocation13] sm:$0xff] %vm4409_vm11, %v4404_v4 }
0x2d92   :  { %v4406_v33 = vpop.f32.mrf.mxu0 }
0x2d93   :  { %v4407_v41 = vadd.f32 %v4802_v35, %v4406_v33 }
0x2d95   :  { %4411 = vst.msk [vmem:[#allocation13 + $0x8] sm:$0xff] %vm4409_vm11, %v4407_v41 }
0x2d96   :  { %4424 = dma.vmem_to_hbm [thread:$0]  %s4417_s17, 256, %s4419_s13, [#allocation4], %s5142_s3, %s5142_s3, %s5143_s25  }
0x2d97   :  { %5139 = dma.done.wait [#allocation4], 256  }
0x2d98   :  { %5140 = vsyncadd [#allocation4], 4294967040 }
0x2d99   :  { %4429 = vsyncpa [#allocation3], 1 }
0x2d9a   :  { %4430 = vsyncpa [#allocation6], 1 }
0x2d9b   :  { %4431 = vsyncpa [#allocation9], 1 }
0x2d9c   :  { %4432 = vsyncpa [#allocation12], 1 }
0x2d9d   :  { %4433 = vsyncpa [#allocation4], 1 }

</bundles_post_ra>
